<compile_context>
chip_gen: v7x
topology: tpu7x:2x2x1
jax: 0.10.0
libtpu: 0.0.40
codegen_flags: <defaults>
</compile_context>

<pallas_src>
import functools

import numpy as np
import jax
import jax.numpy as jnp
from jax.experimental import pallas as pl
from jax.experimental.pallas import tpu as pltpu

W_HID = 256          # W
DEPTH = 8            # D
SKIP_IDX = 4         # skips=[4]
PAD = 8              # pad tiny input feature dims (3/4) up to 8 with zeros
OUT_PAD = 8          # pad tiny per-net output dims (3/4) up to 8 lanes
MAX_TILE_N = 1024    # upper bound on rows per grid step (256-aligned)

_PARAM_ORDER = ("w0", "w5p", "wh", "b", "wf", "bf")   # 6 packed arrays per network
N_PARAMS = len(_PARAM_ORDER)


def _default_carry_dtype():
    """bf16 inter-layer activations on chips with a bf16 VPU (v6e / v7x);
    f32 on v5-and-older, where bf16 elementwise would be emulated."""
    try:
        kind = jax.devices()[0].device_kind.lower()
    except Exception:
        return jnp.float32
    if any(v in kind for v in ("v2", "v3", "v4", "v5")):
        return jnp.float32
    return jnp.bfloat16


# ----------------------------- Pallas kernel ---------------------------------
def _fused_kernel(carry_dtype, flag_ref, x_ref,
                  tw0, tw5p, twh, tb, twf, tbf,
                  ow0, ow5p, owh, ob, owf, obf,
                  out_ref):
    """Fused DirectTemporalNeRF forward for one row tile.

    flag_ref : SMEM (1,) int32  -- 1 iff cur_time != 0 (run the time-deformation net)
    x_ref    : [TILE_N, 8] f32  -- [px, py, pz, t, 0, 0, 0, 0]
    t*/o*    : packed time-net / occ-net params (w0, w5p, wh[7,W,W], b[8,W], wf, bf)
    out_ref  : [TILE_N, 16] f32 -- lanes 0..7 = occ output (4 real), 8..15 = dx (3 real)
    """
    f32, bf16 = jnp.float32, jnp.bfloat16

    x = x_ref[...]                                            # [TILE_N, 8]
    lane = jax.lax.broadcasted_iota(jnp.int32, x.shape, 1)
    pts = jnp.where(lane < 3, x, 0.0)                         # zero-padded 3-d points

    def mlp(x0, skip, w0_ref, w5p_ref, wh_ref, b_ref, wf_ref, bfin_ref):
        """8 Linear+ReLU layers with skip-concat after layer 4 (exact split matmul),
        then a final Linear.  Hidden weights are bf16 MXU operands, f32 accumulate;
        the inter-layer activation is carried in `carry_dtype`."""
        bv = b_ref[...]                                       # [8, W] f32
        # layer 0: f32 operands (K=8, negligible FLOPs) -> raw coords/time keep f32.
        h = jnp.maximum(
            jnp.dot(x0, w0_ref[...], preferred_element_type=f32) + bv[0:1], 0.0
        ).astype(carry_dtype)
        for i in (1, 2, 3, 4):                                # hidden layers 1..4
            h = jnp.maximum(
                jnp.dot(h.astype(bf16), wh_ref[i - 1],
                        preferred_element_type=f32) + bv[i:i + 1], 0.0
            ).astype(carry_dtype)
        # layer 5 = skip: torch does Linear(cat([pts, h])); identical split matmul.
        # Keep the two dots as separate summed jnp.dot calls (v7x MRB accumulation).
        h = jnp.maximum(
            jnp.dot(skip, w5p_ref[...], preferred_element_type=f32)
            + jnp.dot(h.astype(bf16), wh_ref[4], preferred_element_type=f32)
            + bv[5:6], 0.0
        ).astype(carry_dtype)
        for i in (6, 7):                                      # hidden layers 6..7
            h = jnp.maximum(
                jnp.dot(h.astype(bf16), wh_ref[i - 1],
                        preferred_element_type=f32) + bv[i:i + 1], 0.0
            ).astype(carry_dtype)
        return jnp.dot(h.astype(bf16), wf_ref[...],
                       preferred_element_type=f32) + bfin_ref[...]

    # dx = query_time(pts, t) if t != 0 else 0 (zero_canonical).  lax.cond skips the
    # whole time net on the canonical frame and keeps dx live (no VMEM round-trip).
    # Padded wf/bf lanes 3..7 are zero -> dx lanes 3..7 are exactly zero.
    def time_branch():
        return mlp(x, pts, tw0, tw5p, twh, tb, twf, tbf)

    dx = jax.lax.cond(flag_ref[0] != 0, time_branch,
                      lambda: jnp.zeros((x.shape[0], OUT_PAD), f32))

    # new_pts = embed_fn(pts + dx); identity embedding (see TODO in wrapper).
    new_pts = pts + dx
    occ = mlp(new_pts, new_pts, ow0, ow5p, owh, ob, owf, obf)

    out_ref[...] = jnp.concatenate([occ, dx], axis=-1)        # single [TILE_N,16] store


# --------------------------- parameter construction --------------------------
def _uniform(key, fan_in, shape):
    bound = 1.0 / float(np.sqrt(fan_in))
    return jax.random.uniform(key, shape, jnp.float32, -bound, bound)


def init_skip_mlp(key, c_in, skip_ch, out_dim, width=W_HID, depth=DEPTH):
    """nn.Linear shapes of NeRFOriginal.pts_linears / DirectTemporalNeRF._time,
    packed: w0/w5p f32 (input-precision), wh[7,W,W] bf16, b[8,W] f32, wf bf16, bf f32."""
    assert depth == 8 and SKIP_IDX == 4
    keys = jax.random.split(key, 2 * depth + 2)

    w0 = _uniform(keys[0], c_in, (c_in, width))
    w0 = jnp.pad(w0, ((0, PAD - c_in), (0, 0)))                     # [PAD, W] f32
    biases = [_uniform(keys[1], c_in, (width,))]

    wh = []                                                         # layers 1-4, 5h, 6, 7
    w5p = None
    for i in range(1, depth):
        fan = width + (skip_ch if i == SKIP_IDX + 1 else 0)
        kw, kb = keys[2 * i], keys[2 * i + 1]
        if i == SKIP_IDX + 1:
            w_full = _uniform(kw, fan, (fan, width))                # [skip_ch + W, W]
            w5p = jnp.pad(w_full[:skip_ch], ((0, PAD - skip_ch), (0, 0)))   # f32
            wh.append(w_full[skip_ch:].astype(jnp.bfloat16))
        else:
            wh.append(_uniform(kw, fan, (fan, width)).astype(jnp.bfloat16))
        biases.append(_uniform(kb, fan, (width,)))

    wf = _uniform(keys[-2], width, (width, out_dim))
    bf = _uniform(keys[-1], width, (out_dim,))
    return {
        "w0": w0,                                                    # [8, W]   f32
        "w5p": w5p,                                                  # [8, W]   f32
        "wh": jnp.stack(wh, axis=0),                                 # [7, W, W] bf16
        "b": jnp.stack(biases, axis=0),                              # [8, W]   f32
        "wf": jnp.pad(wf, ((0, 0), (0, OUT_PAD - out_dim))).astype(jnp.bfloat16),
        "bf": jnp.pad(bf, (0, OUT_PAD - out_dim)).reshape(1, OUT_PAD),
    }


# ------------------------------ model forward --------------------------------
def direct_temporal_nerf_forward(x, ts, time_params, occ_params,
                                 tile_n=None, carry_dtype=None):
    """DirectTemporalNeRF.forward (default non-straightforward / non-ViT path).

    x  : [N, 6]      = [pts(3) | views(3)]   (views unused: use_viewdirs=False)
    ts : [1, N, 1]   -- all points must share one time (the torch assert); the
                        canonical-frame flag is taken from ts[0, 0, 0].
    returns (out [N, 4], dx [N, 3])
    """
    # TODO(synk): module default embed_fn=None (torch would crash for t != 0);
    #             the identity positional embedding is used here.
    n = x.shape[0]
    if carry_dtype is None:
        carry_dtype = _default_carry_dtype()
    if tile_n is None:
        # Big tiles amortize MXU weight-load / per-step pipeline overhead; cap at
        # ~half the batch (256-aligned) so the grid keeps >= 2 steps for v7x's 2 TCs.
        half = (((n + 1) // 2) + 255) // 256 * 256
        tile_n = int(min(MAX_TILE_N, max(256, half)))

    input_pts = x[:, :3]
    t = ts[0]                                                  # [N, 1]
    cur_time = t[0, 0]
    flag = (cur_time != 0.0).astype(jnp.int32).reshape((1,))   # scalar prefetch (SMEM)

    n_pad = int(pl.cdiv(n, tile_n)) * tile_n
    xin = jnp.concatenate([input_pts, t], axis=-1)             # [N, 4] = [pts | t]
    xin = jnp.pad(xin, ((0, n_pad - n), (0, PAD - 4)))         # [n_pad, 8]

    tp = [time_params[k] for k in _PARAM_ORDER]
    op = [occ_params[k] for k in _PARAM_ORDER]

    def full_spec(a):                                          # resident weights
        zeros = (0,) * a.ndim
        return pl.BlockSpec(a.shape, lambda i, *_: zeros)

    in_specs = ([pl.BlockSpec((tile_n, PAD), lambda i, *_: (i, 0))]
                + [full_spec(a) for a in tp + op])
    out_specs = pl.BlockSpec((tile_n, 2 * OUT_PAD), lambda i, *_: (i, 0))

    weight_bytes = sum(int(np.prod(a.shape)) * a.dtype.itemsize for a in tp + op)
    cost = pl.CostEstimate(
        flops=int(2 * 2 * 7 * W_HID * W_HID) * int(n_pad),
        transcendentals=0,
        bytes_accessed=int(weight_bytes + n_pad * PAD * 4 + n_pad * 2 * OUT_PAD * 4),
    )

    out_pad = pl.pallas_call(
        functools.partial(_fused_kernel, carry_dtype),
        out_shape=jax.ShapeDtypeStruct((n_pad, 2 * OUT_PAD), jnp.float32),
        grid_spec=pltpu.PrefetchScalarGridSpec(
            num_scalar_prefetch=1,
            grid=(n_pad // tile_n,),
            in_specs=in_specs,
            out_specs=out_specs,
        ),
        compiler_params=pltpu.CompilerParams(
            dimension_semantics=("parallel",)),
        cost_estimate=cost,
    )(flag, xin, *tp, *op)

    return out_pad[:n, :4], out_pad[:n, OUT_PAD:OUT_PAD + 3]


# ------------------------------ pure-JAX reference ---------------------------
def _mlp_ref(x_pad, skip_pad, p, carry_dtype):
    f32, bf16 = jnp.float32, jnp.bfloat16
    hp = jax.lax.Precision.HIGHEST
    b = p["b"]
    h = jnp.maximum(jnp.dot(x_pad, p["w0"], precision=hp,
                            preferred_element_type=f32) + b[0:1], 0.0).astype(carry_dtype)
    for i in (1, 2, 3, 4):
        h = jnp.maximum(jnp.dot(h.astype(bf16), p["wh"][i - 1],
                                preferred_element_type=f32) + b[i:i + 1],
                        0.0).astype(carry_dtype)
    h = jnp.maximum(jnp.dot(skip_pad, p["w5p"], precision=hp, preferred_element_type=f32)
                    + jnp.dot(h.astype(bf16), p["wh"][4], preferred_element_type=f32)
                    + b[5:6], 0.0).astype(carry_dtype)
    for i in (6, 7):
        h = jnp.maximum(jnp.dot(h.astype(bf16), p["wh"][i - 1],
                                preferred_element_type=f32) + b[i:i + 1],
                        0.0).astype(carry_dtype)
    return jnp.dot(h.astype(bf16), p["wf"], preferred_element_type=f32) + p["bf"]


def _forward_ref(x, ts, time_params, occ_params, carry_dtype):
    pts = x[:, :3]
    t = ts[0]
    cur_time = t[0, 0]
    pts_pad = jnp.pad(pts, ((0, 0), (0, PAD - 3)))
    xin = jnp.pad(jnp.concatenate([pts, t], axis=-1), ((0, 0), (0, PAD - 4)))
    dx_q = _mlp_ref(xin, pts_pad, time_params, carry_dtype)     # [N, 8]
    dx = jnp.where(cur_time == 0.0, jnp.zeros_like(dx_q), dx_q)
    new_pts = pts_pad + dx
    out = _mlp_ref(new_pts, new_pts, occ_params, carry_dtype)
    return out[:, :4], dx[:, :3]


# ----------------------------------- main -------------------------------------
if __name__ == "__main__":
    key = jax.random.PRNGKey(0)
    kx, kp_time, kp_occ = jax.random.split(key, 3)

    N = 500                                                     # demo batch (pads to 512, grid=2)
    x = jax.random.normal(kx, (N, 6), jnp.float32)              # [pts(3) | views(3)]
    time_params = init_skip_mlp(kp_time, c_in=4, skip_ch=3, out_dim=3)   # _time / _time_out
    occ_params = init_skip_mlp(kp_occ, c_in=3, skip_ch=3, out_dim=4)     # _occ

    cd = _default_carry_dtype()

    # --- non-zero time: the time-deformation network runs ---
    ts1 = jnp.full((1, N, 1), 0.5, jnp.float32)
    out1, dx1 = jax.block_until_ready(
        direct_temporal_nerf_forward(x, ts1, time_params, occ_params, carry_dtype=cd))
    out1_ref, dx1_ref = _forward_ref(x, ts1, time_params, occ_params, cd)
    assert out1.shape == (N, 4) and dx1.shape == (N, 3)
    assert jnp.allclose(out1, out1_ref, rtol=1e-3, atol=1e-3), "out mismatch (t!=0)"
    assert jnp.allclose(dx1, dx1_ref, rtol=1e-3, atol=1e-3), "dx mismatch (t!=0)"

    # --- t == 0 (canonical frame): time net is skipped in-kernel, dx must be 0 ---
    ts0 = jnp.zeros((1, N, 1), jnp.float32)
    out0, dx0 = jax.block_until_ready(
        direct_temporal_nerf_forward(x, ts0, time_params, occ_params, carry_dtype=cd))
    out0_ref, dx0_ref = _forward_ref(x, ts0, time_params, occ_params, cd)
    assert jnp.allclose(out0, out0_ref, rtol=1e-3, atol=1e-3), "out mismatch (t==0)"
    assert jnp.all(dx0 == 0.0), "dx must be exactly zero at t==0"

    print("KERNEL_OK")
</pallas_src>

<mosaic_0001>
module attributes {stable_mosaic.version = 11 : i64} {
  func.func @_fused_kernel(%arg0: i32, %arg1: memref<1xi32, #tpu.memory_space<smem>>, %arg2: memref<256x8xf32, #tpu.memory_space<vmem>>, %arg3: memref<8x256xf32, #tpu.memory_space<vmem>>, %arg4: memref<8x256xf32, #tpu.memory_space<vmem>>, %arg5: memref<7x256x256xbf16, #tpu.memory_space<vmem>>, %arg6: memref<8x256xf32, #tpu.memory_space<vmem>>, %arg7: memref<256x8xbf16, #tpu.memory_space<vmem>>, %arg8: memref<1x8xf32, #tpu.memory_space<vmem>>, %arg9: memref<8x256xf32, #tpu.memory_space<vmem>>, %arg10: memref<8x256xf32, #tpu.memory_space<vmem>>, %arg11: memref<7x256x256xbf16, #tpu.memory_space<vmem>>, %arg12: memref<8x256xf32, #tpu.memory_space<vmem>>, %arg13: memref<256x8xbf16, #tpu.memory_space<vmem>>, %arg14: memref<1x8xf32, #tpu.memory_space<vmem>>, %arg15: memref<256x16xf32, #tpu.memory_space<vmem>>) attributes {dimension_semantics = [#tpu.dimension_semantics<parallel>], iteration_bounds = array<i64: 2>, scalar_prefetch = 1 : i64, scratch_operands = 0 : i64, tpu.core_type = #tpu.core_type<tc>, window_params = [{transform_indices = @transform_0, window_bounds = array<i64: 256, 8>}, {pipeline_mode = #tpu.pipeline_mode<synchronous>, transform_indices = @transform_1, window_bounds = array<i64: 8, 256>}, {pipeline_mode = #tpu.pipeline_mode<synchronous>, transform_indices = @transform_2, window_bounds = array<i64: 8, 256>}, {pipeline_mode = #tpu.pipeline_mode<synchronous>, transform_indices = @transform_3, window_bounds = array<i64: 7, 256, 256>}, {pipeline_mode = #tpu.pipeline_mode<synchronous>, transform_indices = @transform_4, window_bounds = array<i64: 8, 256>}, {pipeline_mode = #tpu.pipeline_mode<synchronous>, transform_indices = @transform_5, window_bounds = array<i64: 256, 8>}, {pipeline_mode = #tpu.pipeline_mode<synchronous>, transform_indices = @transform_6, window_bounds = array<i64: 1, 8>}, {pipeline_mode = #tpu.pipeline_mode<synchronous>, transform_indices = @transform_7, window_bounds = array<i64: 8, 256>}, {pipeline_mode = #tpu.pipeline_mode<synchronous>, transform_indices = @transform_8, window_bounds = array<i64: 8, 256>}, {pipeline_mode = #tpu.pipeline_mode<synchronous>, transform_indices = @transform_9, window_bounds = array<i64: 7, 256, 256>}, {pipeline_mode = #tpu.pipeline_mode<synchronous>, transform_indices = @transform_10, window_bounds = array<i64: 8, 256>}, {pipeline_mode = #tpu.pipeline_mode<synchronous>, transform_indices = @transform_11, window_bounds = array<i64: 256, 8>}, {pipeline_mode = #tpu.pipeline_mode<synchronous>, transform_indices = @transform_12, window_bounds = array<i64: 1, 8>}, {transform_indices = @transform_13, window_bounds = array<i64: 256, 16>}]} {
    %c0 = arith.constant 0 : index
    %c0_0 = arith.constant 0 : index
    %0 = vector.load %arg2[%c0, %c0_0] : memref<256x8xf32, #tpu.memory_space<vmem>>, vector<256x8xf32>
    %1 = tpu.iota {dimensions = array<i32: 1>} : vector<256x8xi32>
    %c3_i32 = arith.constant 3 : i32
    %2 = vector.broadcast %c3_i32 : i32 to vector<256x8xi32>
    %3 = arith.cmpi slt, %1, %2 : vector<256x8xi32>
    %cst = arith.constant 0.000000e+00 : f32
    %4 = vector.broadcast %cst : f32 to vector<256x8xf32>
    %5 = arith.select %3, %0, %4 : vector<256x8xi1>, vector<256x8xf32>
    %c0_1 = arith.constant 0 : index
    %6 = memref.load %arg1[%c0_1] : memref<1xi32, #tpu.memory_space<smem>>
    %c0_i32 = arith.constant 0 : i32
    %7 = arith.cmpi ne, %6, %c0_i32 : i32
    %8 = arith.extui %7 : i1 to i32
    %c0_i32_2 = arith.constant 0 : i32
    %9 = arith.cmpi ne, %8, %c0_i32_2 : i32
    %10 = scf.if %9 -> (vector<256x8xf32>) {
      %c0_48 = arith.constant 0 : index
      %c0_49 = arith.constant 0 : index
      %94 = vector.load %arg6[%c0_48, %c0_49] : memref<8x256xf32, #tpu.memory_space<vmem>>, vector<8x256xf32>
      %c0_50 = arith.constant 0 : index
      %c0_51 = arith.constant 0 : index
      %95 = vector.load %arg3[%c0_50, %c0_51] : memref<8x256xf32, #tpu.memory_space<vmem>>, vector<8x256xf32>
      %cst_52 = arith.constant dense<0.000000e+00> : vector<256x256xf32>
      %96 = tpu.matmul %0, %95, %cst_52 {dimension_numbers = #tpu.dot_dimension_numbers<[1], [0], [0], [1], [0, 0, 1, 1], [], []>} : vector<256x8xf32>, vector<8x256xf32>, vector<256x256xf32> -> vector<256x256xf32>
      %97 = vector.extract_strided_slice %94 {offsets = [0, 0], sizes = [1, 256], strides = [1, 1]} : vector<8x256xf32> to vector<1x256xf32>
      %98 = vector.broadcast %97 : vector<1x256xf32> to vector<256x256xf32>
      %99 = arith.addf %96, %98 : vector<256x256xf32>
      %cst_53 = arith.constant 0.000000e+00 : f32
      %100 = vector.broadcast %cst_53 : f32 to vector<256x256xf32>
      %101 = arith.maximumf %99, %100 : vector<256x256xf32>
      %102 = arith.truncf %101 : vector<256x256xf32> to vector<256x256xbf16>
      %c0_54 = arith.constant 0 : index
      %c0_55 = arith.constant 0 : index
      %c0_56 = arith.constant 0 : index
      %103 = vector.load %arg5[%c0_54, %c0_55, %c0_56] : memref<7x256x256xbf16, #tpu.memory_space<vmem>>, vector<1x256x256xbf16>
      %104 = vector.shape_cast %103 : vector<1x256x256xbf16> to vector<256x256xbf16>
      %cst_57 = arith.constant dense<0.000000e+00> : vector<256x256xf32>
      %105 = tpu.matmul %102, %104, %cst_57 {dimension_numbers = #tpu.dot_dimension_numbers<[1], [0], [0], [1], [0, 0, 1, 1], [], []>} : vector<256x256xbf16>, vector<256x256xbf16>, vector<256x256xf32> -> vector<256x256xf32>
      %106 = vector.extract_strided_slice %94 {offsets = [1, 0], sizes = [1, 256], strides = [1, 1]} : vector<8x256xf32> to vector<1x256xf32>
      %107 = vector.broadcast %106 : vector<1x256xf32> to vector<256x256xf32>
      %108 = arith.addf %105, %107 : vector<256x256xf32>
      %cst_58 = arith.constant 0.000000e+00 : f32
      %109 = vector.broadcast %cst_58 : f32 to vector<256x256xf32>
      %110 = arith.maximumf %108, %109 : vector<256x256xf32>
      %111 = arith.truncf %110 : vector<256x256xf32> to vector<256x256xbf16>
      %c1_59 = arith.constant 1 : index
      %c0_60 = arith.constant 0 : index
      %c0_61 = arith.constant 0 : index
      %112 = vector.load %arg5[%c1_59, %c0_60, %c0_61] : memref<7x256x256xbf16, #tpu.memory_space<vmem>>, vector<1x256x256xbf16>
      %113 = vector.shape_cast %112 : vector<1x256x256xbf16> to vector<256x256xbf16>
      %cst_62 = arith.constant dense<0.000000e+00> : vector<256x256xf32>
      %114 = tpu.matmul %111, %113, %cst_62 {dimension_numbers = #tpu.dot_dimension_numbers<[1], [0], [0], [1], [0, 0, 1, 1], [], []>} : vector<256x256xbf16>, vector<256x256xbf16>, vector<256x256xf32> -> vector<256x256xf32>
      %115 = vector.extract_strided_slice %94 {offsets = [2, 0], sizes = [1, 256], strides = [1, 1]} : vector<8x256xf32> to vector<1x256xf32>
      %116 = vector.broadcast %115 : vector<1x256xf32> to vector<256x256xf32>
      %117 = arith.addf %114, %116 : vector<256x256xf32>
      %cst_63 = arith.constant 0.000000e+00 : f32
      %118 = vector.broadcast %cst_63 : f32 to vector<256x256xf32>
      %119 = arith.maximumf %117, %118 : vector<256x256xf32>
      %120 = arith.truncf %119 : vector<256x256xf32> to vector<256x256xbf16>
      %c2_64 = arith.constant 2 : index
      %c0_65 = arith.constant 0 : index
      %c0_66 = arith.constant 0 : index
      %121 = vector.load %arg5[%c2_64, %c0_65, %c0_66] : memref<7x256x256xbf16, #tpu.memory_space<vmem>>, vector<1x256x256xbf16>
      %122 = vector.shape_cast %121 : vector<1x256x256xbf16> to vector<256x256xbf16>
      %cst_67 = arith.constant dense<0.000000e+00> : vector<256x256xf32>
      %123 = tpu.matmul %120, %122, %cst_67 {dimension_numbers = #tpu.dot_dimension_numbers<[1], [0], [0], [1], [0, 0, 1, 1], [], []>} : vector<256x256xbf16>, vector<256x256xbf16>, vector<256x256xf32> -> vector<256x256xf32>
      %124 = vector.extract_strided_slice %94 {offsets = [3, 0], sizes = [1, 256], strides = [1, 1]} : vector<8x256xf32> to vector<1x256xf32>
      %125 = vector.broadcast %124 : vector<1x256xf32> to vector<256x256xf32>
      %126 = arith.addf %123, %125 : vector<256x256xf32>
      %cst_68 = arith.constant 0.000000e+00 : f32
      %127 = vector.broadcast %cst_68 : f32 to vector<256x256xf32>
      %128 = arith.maximumf %126, %127 : vector<256x256xf32>
      %129 = arith.truncf %128 : vector<256x256xf32> to vector<256x256xbf16>
      %c3_69 = arith.constant 3 : index
      %c0_70 = arith.constant 0 : index
      %c0_71 = arith.constant 0 : index
      %130 = vector.load %arg5[%c3_69, %c0_70, %c0_71] : memref<7x256x256xbf16, #tpu.memory_space<vmem>>, vector<1x256x256xbf16>
      %131 = vector.shape_cast %130 : vector<1x256x256xbf16> to vector<256x256xbf16>
      %cst_72 = arith.constant dense<0.000000e+00> : vector<256x256xf32>
      %132 = tpu.matmul %129, %131, %cst_72 {dimension_numbers = #tpu.dot_dimension_numbers<[1], [0], [0], [1], [0, 0, 1, 1], [], []>} : vector<256x256xbf16>, vector<256x256xbf16>, vector<256x256xf32> -> vector<256x256xf32>
      %133 = vector.extract_strided_slice %94 {offsets = [4, 0], sizes = [1, 256], strides = [1, 1]} : vector<8x256xf32> to vector<1x256xf32>
      %134 = vector.broadcast %133 : vector<1x256xf32> to vector<256x256xf32>
      %135 = arith.addf %132, %134 : vector<256x256xf32>
      %cst_73 = arith.constant 0.000000e+00 : f32
      %136 = vector.broadcast %cst_73 : f32 to vector<256x256xf32>
      %137 = arith.maximumf %135, %136 : vector<256x256xf32>
      %138 = arith.truncf %137 : vector<256x256xf32> to vector<256x256xbf16>
      %c0_74 = arith.constant 0 : index
      %c0_75 = arith.constant 0 : index
      %139 = vector.load %arg4[%c0_74, %c0_75] : memref<8x256xf32, #tpu.memory_space<vmem>>, vector<8x256xf32>
      %cst_76 = arith.constant dense<0.000000e+00> : vector<256x256xf32>
      %140 = tpu.matmul %5, %139, %cst_76 {dimension_numbers = #tpu.dot_dimension_numbers<[1], [0], [0], [1], [0, 0, 1, 1], [], []>} : vector<256x8xf32>, vector<8x256xf32>, vector<256x256xf32> -> vector<256x256xf32>
      %c4_77 = arith.constant 4 : index
      %c0_78 = arith.constant 0 : index
      %c0_79 = arith.constant 0 : index
      %141 = vector.load %arg5[%c4_77, %c0_78, %c0_79] : memref<7x256x256xbf16, #tpu.memory_space<vmem>>, vector<1x256x256xbf16>
      %142 = vector.shape_cast %141 : vector<1x256x256xbf16> to vector<256x256xbf16>
      %cst_80 = arith.constant dense<0.000000e+00> : vector<256x256xf32>
      %143 = tpu.matmul %138, %142, %cst_80 {dimension_numbers = #tpu.dot_dimension_numbers<[1], [0], [0], [1], [0, 0, 1, 1], [], []>} : vector<256x256xbf16>, vector<256x256xbf16>, vector<256x256xf32> -> vector<256x256xf32>
      %144 = arith.addf %140, %143 : vector<256x256xf32>
      %145 = vector.extract_strided_slice %94 {offsets = [5, 0], sizes = [1, 256], strides = [1, 1]} : vector<8x256xf32> to vector<1x256xf32>
      %146 = vector.broadcast %145 : vector<1x256xf32> to vector<256x256xf32>
      %147 = arith.addf %144, %146 : vector<256x256xf32>
      %cst_81 = arith.constant 0.000000e+00 : f32
      %148 = vector.broadcast %cst_81 : f32 to vector<256x256xf32>
      %149 = arith.maximumf %147, %148 : vector<256x256xf32>
      %150 = arith.truncf %149 : vector<256x256xf32> to vector<256x256xbf16>
      %c5_82 = arith.constant 5 : index
      %c0_83 = arith.constant 0 : index
      %c0_84 = arith.constant 0 : index
      %151 = vector.load %arg5[%c5_82, %c0_83, %c0_84] : memref<7x256x256xbf16, #tpu.memory_space<vmem>>, vector<1x256x256xbf16>
      %152 = vector.shape_cast %151 : vector<1x256x256xbf16> to vector<256x256xbf16>
      %cst_85 = arith.constant dense<0.000000e+00> : vector<256x256xf32>
      %153 = tpu.matmul %150, %152, %cst_85 {dimension_numbers = #tpu.dot_dimension_numbers<[1], [0], [0], [1], [0, 0, 1, 1], [], []>} : vector<256x256xbf16>, vector<256x256xbf16>, vector<256x256xf32> -> vector<256x256xf32>
      %154 = vector.extract_strided_slice %94 {offsets = [6, 0], sizes = [1, 256], strides = [1, 1]} : vector<8x256xf32> to vector<1x256xf32>
      %155 = vector.broadcast %154 : vector<1x256xf32> to vector<256x256xf32>
      %156 = arith.addf %153, %155 : vector<256x256xf32>
      %cst_86 = arith.constant 0.000000e+00 : f32
      %157 = vector.broadcast %cst_86 : f32 to vector<256x256xf32>
      %158 = arith.maximumf %156, %157 : vector<256x256xf32>
      %159 = arith.truncf %158 : vector<256x256xf32> to vector<256x256xbf16>
      %c6_87 = arith.constant 6 : index
      %c0_88 = arith.constant 0 : index
      %c0_89 = arith.constant 0 : index
      %160 = vector.load %arg5[%c6_87, %c0_88, %c0_89] : memref<7x256x256xbf16, #tpu.memory_space<vmem>>, vector<1x256x256xbf16>
      %161 = vector.shape_cast %160 : vector<1x256x256xbf16> to vector<256x256xbf16>
      %cst_90 = arith.constant dense<0.000000e+00> : vector<256x256xf32>
      %162 = tpu.matmul %159, %161, %cst_90 {dimension_numbers = #tpu.dot_dimension_numbers<[1], [0], [0], [1], [0, 0, 1, 1], [], []>} : vector<256x256xbf16>, vector<256x256xbf16>, vector<256x256xf32> -> vector<256x256xf32>
      %163 = vector.extract_strided_slice %94 {offsets = [7, 0], sizes = [1, 256], strides = [1, 1]} : vector<8x256xf32> to vector<1x256xf32>
      %164 = vector.broadcast %163 : vector<1x256xf32> to vector<256x256xf32>
      %165 = arith.addf %162, %164 : vector<256x256xf32>
      %cst_91 = arith.constant 0.000000e+00 : f32
      %166 = vector.broadcast %cst_91 : f32 to vector<256x256xf32>
      %167 = arith.maximumf %165, %166 : vector<256x256xf32>
      %168 = arith.truncf %167 : vector<256x256xf32> to vector<256x256xbf16>
      %c0_92 = arith.constant 0 : index
      %c0_93 = arith.constant 0 : index
      %169 = vector.load %arg7[%c0_92, %c0_93] : memref<256x8xbf16, #tpu.memory_space<vmem>>, vector<256x8xbf16>
      %cst_94 = arith.constant dense<0.000000e+00> : vector<256x8xf32>
      %170 = tpu.matmul %168, %169, %cst_94 {dimension_numbers = #tpu.dot_dimension_numbers<[1], [0], [0], [1], [0, 0, 1, 1], [], []>} : vector<256x256xbf16>, vector<256x8xbf16>, vector<256x8xf32> -> vector<256x8xf32>
      %c0_95 = arith.constant 0 : index
      %c0_96 = arith.constant 0 : index
      %171 = vector.load %arg8[%c0_95, %c0_96] : memref<1x8xf32, #tpu.memory_space<vmem>>, vector<1x8xf32>
      %172 = vector.broadcast %171 : vector<1x8xf32> to vector<256x8xf32>
      %173 = arith.addf %170, %172 : vector<256x8xf32>
      scf.yield %173 : vector<256x8xf32>
    } else {
      %cst_48 = arith.constant 0.000000e+00 : f32
      %94 = vector.broadcast %cst_48 : f32 to vector<256x8xf32>
      scf.yield %94 : vector<256x8xf32>
    }
    %11 = arith.addf %5, %10 : vector<256x8xf32>
    %c0_3 = arith.constant 0 : index
    %c0_4 = arith.constant 0 : index
    %12 = vector.load %arg12[%c0_3, %c0_4] : memref<8x256xf32, #tpu.memory_space<vmem>>, vector<8x256xf32>
    %c0_5 = arith.constant 0 : index
    %c0_6 = arith.constant 0 : index
    %13 = vector.load %arg9[%c0_5, %c0_6] : memref<8x256xf32, #tpu.memory_space<vmem>>, vector<8x256xf32>
    %cst_7 = arith.constant dense<0.000000e+00> : vector<256x256xf32>
    %14 = tpu.matmul %11, %13, %cst_7 {dimension_numbers = #tpu.dot_dimension_numbers<[1], [0], [0], [1], [0, 0, 1, 1], [], []>} : vector<256x8xf32>, vector<8x256xf32>, vector<256x256xf32> -> vector<256x256xf32>
    %15 = vector.extract_strided_slice %12 {offsets = [0, 0], sizes = [1, 256], strides = [1, 1]} : vector<8x256xf32> to vector<1x256xf32>
    %16 = vector.broadcast %15 : vector<1x256xf32> to vector<256x256xf32>
    %17 = arith.addf %14, %16 : vector<256x256xf32>
    %cst_8 = arith.constant 0.000000e+00 : f32
    %18 = vector.broadcast %cst_8 : f32 to vector<256x256xf32>
    %19 = arith.maximumf %17, %18 : vector<256x256xf32>
    %20 = arith.truncf %19 : vector<256x256xf32> to vector<256x256xbf16>
    %c0_9 = arith.constant 0 : index
    %c0_10 = arith.constant 0 : index
    %c0_11 = arith.constant 0 : index
    %21 = vector.load %arg11[%c0_9, %c0_10, %c0_11] : memref<7x256x256xbf16, #tpu.memory_space<vmem>>, vector<1x256x256xbf16>
    %22 = vector.shape_cast %21 : vector<1x256x256xbf16> to vector<256x256xbf16>
    %cst_12 = arith.constant dense<0.000000e+00> : vector<256x256xf32>
    %23 = tpu.matmul %20, %22, %cst_12 {dimension_numbers = #tpu.dot_dimension_numbers<[1], [0], [0], [1], [0, 0, 1, 1], [], []>} : vector<256x256xbf16>, vector<256x256xbf16>, vector<256x256xf32> -> vector<256x256xf32>
    %24 = vector.extract_strided_slice %12 {offsets = [1, 0], sizes = [1, 256], strides = [1, 1]} : vector<8x256xf32> to vector<1x256xf32>
    %25 = vector.broadcast %24 : vector<1x256xf32> to vector<256x256xf32>
    %26 = arith.addf %23, %25 : vector<256x256xf32>
    %cst_13 = arith.constant 0.000000e+00 : f32
    %27 = vector.broadcast %cst_13 : f32 to vector<256x256xf32>
    %28 = arith.maximumf %26, %27 : vector<256x256xf32>
    %29 = arith.truncf %28 : vector<256x256xf32> to vector<256x256xbf16>
    %c1 = arith.constant 1 : index
    %c0_14 = arith.constant 0 : index
    %c0_15 = arith.constant 0 : index
    %30 = vector.load %arg11[%c1, %c0_14, %c0_15] : memref<7x256x256xbf16, #tpu.memory_space<vmem>>, vector<1x256x256xbf16>
    %31 = vector.shape_cast %30 : vector<1x256x256xbf16> to vector<256x256xbf16>
    %cst_16 = arith.constant dense<0.000000e+00> : vector<256x256xf32>
    %32 = tpu.matmul %29, %31, %cst_16 {dimension_numbers = #tpu.dot_dimension_numbers<[1], [0], [0], [1], [0, 0, 1, 1], [], []>} : vector<256x256xbf16>, vector<256x256xbf16>, vector<256x256xf32> -> vector<256x256xf32>
    %33 = vector.extract_strided_slice %12 {offsets = [2, 0], sizes = [1, 256], strides = [1, 1]} : vector<8x256xf32> to vector<1x256xf32>
    %34 = vector.broadcast %33 : vector<1x256xf32> to vector<256x256xf32>
    %35 = arith.addf %32, %34 : vector<256x256xf32>
    %cst_17 = arith.constant 0.000000e+00 : f32
    %36 = vector.broadcast %cst_17 : f32 to vector<256x256xf32>
    %37 = arith.maximumf %35, %36 : vector<256x256xf32>
    %38 = arith.truncf %37 : vector<256x256xf32> to vector<256x256xbf16>
    %c2 = arith.constant 2 : index
    %c0_18 = arith.constant 0 : index
    %c0_19 = arith.constant 0 : index
    %39 = vector.load %arg11[%c2, %c0_18, %c0_19] : memref<7x256x256xbf16, #tpu.memory_space<vmem>>, vector<1x256x256xbf16>
    %40 = vector.shape_cast %39 : vector<1x256x256xbf16> to vector<256x256xbf16>
    %cst_20 = arith.constant dense<0.000000e+00> : vector<256x256xf32>
    %41 = tpu.matmul %38, %40, %cst_20 {dimension_numbers = #tpu.dot_dimension_numbers<[1], [0], [0], [1], [0, 0, 1, 1], [], []>} : vector<256x256xbf16>, vector<256x256xbf16>, vector<256x256xf32> -> vector<256x256xf32>
    %42 = vector.extract_strided_slice %12 {offsets = [3, 0], sizes = [1, 256], strides = [1, 1]} : vector<8x256xf32> to vector<1x256xf32>
    %43 = vector.broadcast %42 : vector<1x256xf32> to vector<256x256xf32>
    %44 = arith.addf %41, %43 : vector<256x256xf32>
    %cst_21 = arith.constant 0.000000e+00 : f32
    %45 = vector.broadcast %cst_21 : f32 to vector<256x256xf32>
    %46 = arith.maximumf %44, %45 : vector<256x256xf32>
    %47 = arith.truncf %46 : vector<256x256xf32> to vector<256x256xbf16>
    %c3 = arith.constant 3 : index
    %c0_22 = arith.constant 0 : index
    %c0_23 = arith.constant 0 : index
    %48 = vector.load %arg11[%c3, %c0_22, %c0_23] : memref<7x256x256xbf16, #tpu.memory_space<vmem>>, vector<1x256x256xbf16>
    %49 = vector.shape_cast %48 : vector<1x256x256xbf16> to vector<256x256xbf16>
    %cst_24 = arith.constant dense<0.000000e+00> : vector<256x256xf32>
    %50 = tpu.matmul %47, %49, %cst_24 {dimension_numbers = #tpu.dot_dimension_numbers<[1], [0], [0], [1], [0, 0, 1, 1], [], []>} : vector<256x256xbf16>, vector<256x256xbf16>, vector<256x256xf32> -> vector<256x256xf32>
    %51 = vector.extract_strided_slice %12 {offsets = [4, 0], sizes = [1, 256], strides = [1, 1]} : vector<8x256xf32> to vector<1x256xf32>
    %52 = vector.broadcast %51 : vector<1x256xf32> to vector<256x256xf32>
    %53 = arith.addf %50, %52 : vector<256x256xf32>
    %cst_25 = arith.constant 0.000000e+00 : f32
    %54 = vector.broadcast %cst_25 : f32 to vector<256x256xf32>
    %55 = arith.maximumf %53, %54 : vector<256x256xf32>
    %56 = arith.truncf %55 : vector<256x256xf32> to vector<256x256xbf16>
    %c0_26 = arith.constant 0 : index
    %c0_27 = arith.constant 0 : index
    %57 = vector.load %arg10[%c0_26, %c0_27] : memref<8x256xf32, #tpu.memory_space<vmem>>, vector<8x256xf32>
    %cst_28 = arith.constant dense<0.000000e+00> : vector<256x256xf32>
    %58 = tpu.matmul %11, %57, %cst_28 {dimension_numbers = #tpu.dot_dimension_numbers<[1], [0], [0], [1], [0, 0, 1, 1], [], []>} : vector<256x8xf32>, vector<8x256xf32>, vector<256x256xf32> -> vector<256x256xf32>
    %c4 = arith.constant 4 : index
    %c0_29 = arith.constant 0 : index
    %c0_30 = arith.constant 0 : index
    %59 = vector.load %arg11[%c4, %c0_29, %c0_30] : memref<7x256x256xbf16, #tpu.memory_space<vmem>>, vector<1x256x256xbf16>
    %60 = vector.shape_cast %59 : vector<1x256x256xbf16> to vector<256x256xbf16>
    %cst_31 = arith.constant dense<0.000000e+00> : vector<256x256xf32>
    %61 = tpu.matmul %56, %60, %cst_31 {dimension_numbers = #tpu.dot_dimension_numbers<[1], [0], [0], [1], [0, 0, 1, 1], [], []>} : vector<256x256xbf16>, vector<256x256xbf16>, vector<256x256xf32> -> vector<256x256xf32>
    %62 = arith.addf %58, %61 : vector<256x256xf32>
    %63 = vector.extract_strided_slice %12 {offsets = [5, 0], sizes = [1, 256], strides = [1, 1]} : vector<8x256xf32> to vector<1x256xf32>
    %64 = vector.broadcast %63 : vector<1x256xf32> to vector<256x256xf32>
    %65 = arith.addf %62, %64 : vector<256x256xf32>
    %cst_32 = arith.constant 0.000000e+00 : f32
    %66 = vector.broadcast %cst_32 : f32 to vector<256x256xf32>
    %67 = arith.maximumf %65, %66 : vector<256x256xf32>
    %68 = arith.truncf %67 : vector<256x256xf32> to vector<256x256xbf16>
    %c5 = arith.constant 5 : index
    %c0_33 = arith.constant 0 : index
    %c0_34 = arith.constant 0 : index
    %69 = vector.load %arg11[%c5, %c0_33, %c0_34] : memref<7x256x256xbf16, #tpu.memory_space<vmem>>, vector<1x256x256xbf16>
    %70 = vector.shape_cast %69 : vector<1x256x256xbf16> to vector<256x256xbf16>
    %cst_35 = arith.constant dense<0.000000e+00> : vector<256x256xf32>
    %71 = tpu.matmul %68, %70, %cst_35 {dimension_numbers = #tpu.dot_dimension_numbers<[1], [0], [0], [1], [0, 0, 1, 1], [], []>} : vector<256x256xbf16>, vector<256x256xbf16>, vector<256x256xf32> -> vector<256x256xf32>
    %72 = vector.extract_strided_slice %12 {offsets = [6, 0], sizes = [1, 256], strides = [1, 1]} : vector<8x256xf32> to vector<1x256xf32>
    %73 = vector.broadcast %72 : vector<1x256xf32> to vector<256x256xf32>
    %74 = arith.addf %71, %73 : vector<256x256xf32>
    %cst_36 = arith.constant 0.000000e+00 : f32
    %75 = vector.broadcast %cst_36 : f32 to vector<256x256xf32>
    %76 = arith.maximumf %74, %75 : vector<256x256xf32>
    %77 = arith.truncf %76 : vector<256x256xf32> to vector<256x256xbf16>
    %c6 = arith.constant 6 : index
    %c0_37 = arith.constant 0 : index
    %c0_38 = arith.constant 0 : index
    %78 = vector.load %arg11[%c6, %c0_37, %c0_38] : memref<7x256x256xbf16, #tpu.memory_space<vmem>>, vector<1x256x256xbf16>
    %79 = vector.shape_cast %78 : vector<1x256x256xbf16> to vector<256x256xbf16>
    %cst_39 = arith.constant dense<0.000000e+00> : vector<256x256xf32>
    %80 = tpu.matmul %77, %79, %cst_39 {dimension_numbers = #tpu.dot_dimension_numbers<[1], [0], [0], [1], [0, 0, 1, 1], [], []>} : vector<256x256xbf16>, vector<256x256xbf16>, vector<256x256xf32> -> vector<256x256xf32>
    %81 = vector.extract_strided_slice %12 {offsets = [7, 0], sizes = [1, 256], strides = [1, 1]} : vector<8x256xf32> to vector<1x256xf32>
    %82 = vector.broadcast %81 : vector<1x256xf32> to vector<256x256xf32>
    %83 = arith.addf %80, %82 : vector<256x256xf32>
    %cst_40 = arith.constant 0.000000e+00 : f32
    %84 = vector.broadcast %cst_40 : f32 to vector<256x256xf32>
    %85 = arith.maximumf %83, %84 : vector<256x256xf32>
    %86 = arith.truncf %85 : vector<256x256xf32> to vector<256x256xbf16>
    %c0_41 = arith.constant 0 : index
    %c0_42 = arith.constant 0 : index
    %87 = vector.load %arg13[%c0_41, %c0_42] : memref<256x8xbf16, #tpu.memory_space<vmem>>, vector<256x8xbf16>
    %cst_43 = arith.constant dense<0.000000e+00> : vector<256x8xf32>
    %88 = tpu.matmul %86, %87, %cst_43 {dimension_numbers = #tpu.dot_dimension_numbers<[1], [0], [0], [1], [0, 0, 1, 1], [], []>} : vector<256x256xbf16>, vector<256x8xbf16>, vector<256x8xf32> -> vector<256x8xf32>
    %c0_44 = arith.constant 0 : index
    %c0_45 = arith.constant 0 : index
    %89 = vector.load %arg14[%c0_44, %c0_45] : memref<1x8xf32, #tpu.memory_space<vmem>>, vector<1x8xf32>
    %90 = vector.broadcast %89 : vector<1x8xf32> to vector<256x8xf32>
    %91 = arith.addf %88, %90 : vector<256x8xf32>
    %92 = tpu.concatenate %91, %10 in 1 : vector<256x8xf32>, vector<256x8xf32> -> vector<256x16xf32>
    %c0_46 = arith.constant 0 : index
    %c0_47 = arith.constant 0 : index
    %93 = vector.load %arg15[%c0_46, %c0_47] : memref<256x16xf32, #tpu.memory_space<vmem>>, vector<256x16xf32>
    tpu.vector_store %arg15[%c0_46, %c0_47], %92 {strides = array<i32>} : memref<256x16xf32, #tpu.memory_space<vmem>>, vector<256x16xf32>,
    return
  }
  func.func @transform_0(%arg0: i32, %arg1: memref<1xi32, #tpu.memory_space<smem>>) -> (i32, i32) {
    %c0_i32 = arith.constant 0 : i32
    %c0_i32_0 = arith.constant 0 : i32
    return %arg0, %c0_i32 : i32, i32
  }
  func.func @transform_1(%arg0: i32, %arg1: memref<1xi32, #tpu.memory_space<smem>>) -> (i32, i32) {
    %c0_i32 = arith.constant 0 : i32
    %c0_i32_0 = arith.constant 0 : i32
    %c0_i32_1 = arith.constant 0 : i32
    return %c0_i32, %c0_i32_0 : i32, i32
  }
  func.func @transform_2(%arg0: i32, %arg1: memref<1xi32, #tpu.memory_space<smem>>) -> (i32, i32) {
    %c0_i32 = arith.constant 0 : i32
    %c0_i32_0 = arith.constant 0 : i32
    %c0_i32_1 = arith.constant 0 : i32
    return %c0_i32, %c0_i32_0 : i32, i32
  }
  func.func @transform_3(%arg0: i32, %arg1: memref<1xi32, #tpu.memory_space<smem>>) -> (i32, i32, i32) {
    %c0_i32 = arith.constant 0 : i32
    %c0_i32_0 = arith.constant 0 : i32
    %c0_i32_1 = arith.constant 0 : i32
    %c0_i32_2 = arith.constant 0 : i32
    return %c0_i32, %c0_i32_0, %c0_i32_1 : i32, i32, i32
  }
  func.func @transform_4(%arg0: i32, %arg1: memref<1xi32, #tpu.memory_space<smem>>) -> (i32, i32) {
    %c0_i32 = arith.constant 0 : i32
    %c0_i32_0 = arith.constant 0 : i32
    %c0_i32_1 = arith.constant 0 : i32
    return %c0_i32, %c0_i32_0 : i32, i32
  }
  func.func @transform_5(%arg0: i32, %arg1: memref<1xi32, #tpu.memory_space<smem>>) -> (i32, i32) {
    %c0_i32 = arith.constant 0 : i32
    %c0_i32_0 = arith.constant 0 : i32
    %c0_i32_1 = arith.constant 0 : i32
    return %c0_i32, %c0_i32_0 : i32, i32
  }
  func.func @transform_6(%arg0: i32, %arg1: memref<1xi32, #tpu.memory_space<smem>>) -> (i32, i32) {
    %c0_i32 = arith.constant 0 : i32
    %c0_i32_0 = arith.constant 0 : i32
    %c0_i32_1 = arith.constant 0 : i32
    return %c0_i32, %c0_i32_0 : i32, i32
  }
  func.func @transform_7(%arg0: i32, %arg1: memref<1xi32, #tpu.memory_space<smem>>) -> (i32, i32) {
    %c0_i32 = arith.constant 0 : i32
    %c0_i32_0 = arith.constant 0 : i32
    %c0_i32_1 = arith.constant 0 : i32
    return %c0_i32, %c0_i32_0 : i32, i32
  }
  func.func @transform_8(%arg0: i32, %arg1: memref<1xi32, #tpu.memory_space<smem>>) -> (i32, i32) {
    %c0_i32 = arith.constant 0 : i32
    %c0_i32_0 = arith.constant 0 : i32
    %c0_i32_1 = arith.constant 0 : i32
    return %c0_i32, %c0_i32_0 : i32, i32
  }
  func.func @transform_9(%arg0: i32, %arg1: memref<1xi32, #tpu.memory_space<smem>>) -> (i32, i32, i32) {
    %c0_i32 = arith.constant 0 : i32
    %c0_i32_0 = arith.constant 0 : i32
    %c0_i32_1 = arith.constant 0 : i32
    %c0_i32_2 = arith.constant 0 : i32
    return %c0_i32, %c0_i32_0, %c0_i32_1 : i32, i32, i32
  }
  func.func @transform_10(%arg0: i32, %arg1: memref<1xi32, #tpu.memory_space<smem>>) -> (i32, i32) {
    %c0_i32 = arith.constant 0 : i32
    %c0_i32_0 = arith.constant 0 : i32
    %c0_i32_1 = arith.constant 0 : i32
    return %c0_i32, %c0_i32_0 : i32, i32
  }
  func.func @transform_11(%arg0: i32, %arg1: memref<1xi32, #tpu.memory_space<smem>>) -> (i32, i32) {
    %c0_i32 = arith.constant 0 : i32
    %c0_i32_0 = arith.constant 0 : i32
    %c0_i32_1 = arith.constant 0 : i32
    return %c0_i32, %c0_i32_0 : i32, i32
  }
  func.func @transform_12(%arg0: i32, %arg1: memref<1xi32, #tpu.memory_space<smem>>) -> (i32, i32) {
    %c0_i32 = arith.constant 0 : i32
    %c0_i32_0 = arith.constant 0 : i32
    %c0_i32_1 = arith.constant 0 : i32
    return %c0_i32, %c0_i32_0 : i32, i32
  }
  func.func @transform_13(%arg0: i32, %arg1: memref<1xi32, #tpu.memory_space<smem>>) -> (i32, i32) {
    %c0_i32 = arith.constant 0 : i32
    %c0_i32_0 = arith.constant 0 : i32
    return %arg0, %c0_i32 : i32, i32
  }
}

</mosaic_0001>

<bundles_post_ra>
// kernel: tpu_custom_call.1
= control target key start
LH: loop header
LB: loop body
LE: loop exit
PB: predicated region body
PF: predicated region fallthrough
CT: control target
= control target key end

     0   :  { %s15898_s0 = inlined_call_operand.<no memory space> [shape: s32[1], index: 0, kind: input, shape index: {}]   ;;  %s15899_s1 = inlined_call_operand.vmem [shape: f32[512,8], index: 1, kind: input, shape index: {}]   ;;  %s15900_s2 = inlined_call_operand.vmem [shape: f32[8,256], index: 2, kind: input, shape index: {}]   ;;  %s15901_s3 = inlined_call_operand.vmem [shape: f32[8,256], index: 3, kind: input, shape index: {}]   ;;  %s15902_s4 = inlined_call_operand.hbm [shape: bf16[7,256,256], index: 4, kind: input, shape index: {}]   ;;  %s15903_s5 = inlined_call_operand.vmem [shape: f32[8,256], index: 5, kind: input, shape index: {}]   ;;  %s15904_s6 = inlined_call_operand.vmem [shape: bf16[256,8], index: 6, kind: input, shape index: {}]   ;;  %s15905_s7 = inlined_call_operand.vmem [shape: f32[1,8], index: 7, kind: input, shape index: {}]   ;;  %s15906_s8 = inlined_call_operand.vmem [shape: f32[8,256], index: 8, kind: input, shape index: {}]   ;;  %s15907_s9 = inlined_call_operand.vmem [shape: f32[8,256], index: 9, kind: input, shape index: {}]   ;;  %s15908_s10 = inlined_call_operand.hbm [shape: bf16[7,256,256], index: 10, kind: input, shape index: {}]   ;;  %s15909_s11 = inlined_call_operand.vmem [shape: f32[8,256], index: 11, kind: input, shape index: {}]   ;;  %s15910_s12 = inlined_call_operand.vmem [shape: bf16[256,8], index: 12, kind: input, shape index: {}]   ;;  %s15911_s13 = inlined_call_operand.vmem [shape: f32[1,8], index: 13, kind: input, shape index: {}]   ;;  %s15912_s14 = inlined_call_operand.vmem [shape: f32[512,16], index: 14, kind: output, shape index: {}]  }
   0x1   :  { %19 = sst [smem:[#allocation3]] %s15898_s0 }
   0x2   :  { %20 = vsyncpa [#allocation5], 0 }
   0x3   :  { %21 = vsyncpa [#allocation7], 0  ;;  %s12498_s15 = smov 0  }
   0x4 LB: > { %s15916_s16 = sadd.s32 4294967295, %s12283_s15   ;;  %p10037_p0 = scmp.ge.s32.totalorder %s12283_s15, 1  ;;  %s12283_s15 = sphi %s12498_s15, %s27_s15  }
   0x5   : > { %p336_p1 = scmp.lt.s32.totalorder %s12283_s15, 3  ;;  %s12413_s17 = smov [#allocation4]  }
   0x6   : > { %s354_s18 = sshll.u32 %s12413_s17, 4  ;;  %p12512_p3 = scmp.eq.s32.totalorder %s15916_s16, 0  ;;  %s355_s18 = int_to_ptr.vmem [resolvable:$true] %s354_s18 }
   0x7   : > { %p12506_p2 = pnand %p10037_p0, %p336_p1  ;;  %s12414_s20 = smov [#allocation6]  }
   0x8   : > { %s15956_s19 = scalar_select %p12512_p3, 1, 0 }
   0x9   : > { %s15955_s0 = scalar_select %p12506_p2, 1, 0 }
   0xa   : > { %p11086_p4 = pneg %p12506_p2  ;;  %s382_s21 = sshll.u32 %s12414_s20, 4  ;;  %s12524_s21 = int_to_ptr.vmem [resolvable:$true] %s382_s21 }
   0xb   : > { %s12085_s25 = scalar_lea.hbm %s15902_s4, 28672 }
   0xc   : > { %p12520_p5 = pnand %p12512_p3, %p11086_p4  ;;  %p12086_p6 = scmp.ne.s32.totalorder %s15902_s4, %s12085_s25 }
   0xd   : > { %p12092_p10 = scmp.lt.u32.totalorder %s12085_s25, %s15902_s4 }
   0xe   : > { %p12087_p7 = pneg %p12520_p5 }
  0x10   : > { %p12088_p8 = pnand %p12087_p7, %p12086_p6 }
  0x12   : > { %p12089_p9 = pneg %p12088_p8 }
  0x14   : > { %p12094_p11 = pnand %p12092_p10, %p12089_p9 }
  0x16   : > { %12097 = shalt.err (!%p12094_p11)
}
  0x17   : > { %s12098_s30 = scalar_lea.vmem %s355_s18, 28672  ;;  %p12106_p1 = scmp.lt.s32.totalorder %s355_s18, %s355_s18 }
  0x18   : > { %p12099_p12 = scmp.ne.s32.totalorder %s355_s18, %s12098_s30  ;;  %p12107_p4 = scmp.lt.s32.totalorder %s12098_s30, %s12098_s30 }
  0x1a   : > { %p12101_p13 = pnand %p12099_p12, %p12087_p7  ;;  %p12108_p3 = por %p12107_p4, %p12106_p1 }
  0x1c   : > { %p12102_p0 = pneg %p12101_p13 }
  0x1e   : > { %p12109_p2 = pnand %p12108_p3, %p12102_p0 }
  0x20   : > { %12112 = shalt.err (!%p12109_p2)
}
  0x21   : > { %s12415_s17 = smov 128   ;;  %s12416_s20 = smov 8  }
  0x22   : > { %11089 = dma.hbm_to_vmem [thread:$0]  (!%p12520_p5), %s15902_s4, 28672, %s355_s18, [#allocation5], %s12415_s17, %s12415_s17, %s12416_s20  }
  0x23   : > { %s12113_s27 = scalar_lea.hbm %s15908_s10, 28672 }
  0x24   : > { %p12114_p6 = scmp.ne.s32.totalorder %s15908_s10, %s12113_s27  ;;  %p12120_p8 = scmp.lt.u32.totalorder %s12113_s27, %s15908_s10 }
  0x26   : > { %p12116_p2 = pnand %p12114_p6, %p12087_p7 }
  0x28   : > { %p12117_p3 = pneg %p12116_p2 }
  0x2a   : > { %p12122_p9 = pnand %p12120_p8, %p12117_p3 }
  0x2c   : > { %12125 = shalt.err (!%p12122_p9)
}
  0x2d   : > { %s12126_s18 = scalar_lea.vmem %s12524_s21, 28672  ;;  %p12134_p13 = scmp.lt.s32.totalorder %s12524_s21, %s12524_s21 }
  0x2e   : > { %p12127_p10 = scmp.ne.s32.totalorder %s12524_s21, %s12126_s18  ;;  %p12135_p0 = scmp.lt.s32.totalorder %s12126_s18, %s12126_s18 }
  0x30   : > { %p12129_p11 = pnand %p12127_p10, %p12087_p7  ;;  %p12136_p1 = por %p12135_p0, %p12134_p13 }
  0x32   : > { %p12130_p12 = pneg %p12129_p11 }
  0x34   : > { %p12137_p4 = pnand %p12136_p1, %p12130_p12 }
  0x36   : > { %12140 = shalt.err (!%p12137_p4)
}
  0x37   : > { %11092 = dma.hbm_to_vmem [thread:$0]  (!%p12520_p5), %s15908_s10, 28672, %s12524_s21, [#allocation7], %s12415_s17, %s12415_s17, %s12416_s20  }
  0x38   : > { %p15958_p6 = scmp.ne.s32.totalorder %s15955_s0, 0 }
  0x3a   : > { %416 = sbr.rel (%p15958_p6) target bundleno = 4400 (0x1130), region = 72 }
  0x41   : > { %p15959_p2 = scmp.ne.s32.totalorder %s15956_s19, 0 }
  0x43   : > { %12274 = dma.done.wait (%p15959_p2), [#allocation5], 28672  }
  0x44   : > { %12276 = vsyncadd (%p15959_p2), [#allocation5], 4294938624 }
  0x45   : > { %12278 = dma.done.wait (%p15959_p2), [#allocation7], 28672  }
  0x46   : > { %12280 = vsyncadd (%p15959_p2), [#allocation7], 4294938624  ;;  %s15960_s22 = sadd.s32 4294967295, %s12283_s15   ;;  %v15917_v0 = vlaneseq  ;;  %s12585_s21 = sld [smem:[#allocation3]] }
  0x47   : > { %s10044_s24 = sshll.u32 %s15960_s22, 5 }
  0x48   : > { %p465_p5 = scmp.lt.s32.totalorder %s10044_s24, 63  ;;  %v12588_v1 = vand.u32 127, %v15917_v0 }
  0x4a   : > { %s16133_s24 = smov (!%p465_p5, %s10044_s24), 63  ;;  %vm511_vm0 = vcmp.lt.s32.totalorder %v12588_v1, 3  ;;  %v12874_v1 = vmov 0  }
  0x4b   : > { %s10045_s0 = sshll.u32 %s16133_s24, 3 }
  0x4c   : > { %s12594_s25 = scalar_lea.vmem %s15899_s1, %s10045_s0  ;;  %s12599_s27 = scalar_lea.vmem %s15912_s14, %s10045_s0 }
  0x4d   : > { %v12602_v2 = vld [vmem:[%s12594_s25] sm:$0xff]  ;;  %v12605_v3 = vld [vmem:[%s12594_s25 + $0x8] sm:$0xff]  ;;  %v12608_v4 = vld [vmem:[%s12594_s25 + $0x10] sm:$0xff]  ;;  %p10048_p7 = scmp.eq.s32.totalorder %s12585_s21, 0 }
  0x4e   : > { %v12611_v5 = vld [vmem:[%s12594_s25 + $0x18] sm:$0xff]  ;;  %v12614_v6 = vld [vmem:[%s12594_s25 + $0x20] sm:$0xff]  ;;  %v12617_v7 = vld [vmem:[%s12594_s25 + $0x28] sm:$0xff]  ;;  %v12622_v8 = vsel %vm511_vm0, %v12602_v2, 0.0  ;;  %v12627_v9 = vsel %vm511_vm0, %v12605_v3, 0.0  ;;  %v12632_v10 = vsel %vm511_vm0, %v12608_v4, 0.0 }
  0x4f   : > { %15961 = vst [vmem:[#allocation10_spill] sm:$0xff] %v12622_v8  ;;  %15962 = vst [vmem:[#allocation11_spill] sm:$0xff] %v12627_v9  ;;  %v12635_v11 = vld [vmem:[%s12594_s25 + $0x30] sm:$0xff]  ;;  %v12638_v12 = vld [vmem:[%s12594_s25 + $0x38] sm:$0xff]  ;;  %v12646_v14 = vsel %vm511_vm0, %v12611_v5, 0.0  ;;  %v12651_v15 = vsel %vm511_vm0, %v12614_v6, 0.0 }
  0x50   : > { %15963 = vst [vmem:[#allocation12_spill] sm:$0xff] %v12632_v10  ;;  %v12641_v13 = vld [vmem:[%s12594_s25 + $0x40] sm:$0xff]  ;;  %15964 = vst [vmem:[#allocation13_spill] sm:$0xff] %v12646_v14  ;;  %v12656_v16 = vsel %vm511_vm0, %v12617_v7, 0.0  ;;  %v12659_v17 = vld [vmem:[%s12594_s25 + $0x48] sm:$0xff]  ;;  %v12670_v20 = vsel %vm511_vm0, %v12635_v11, 0.0 }
  0x51   : > { %15965 = vst [vmem:[#allocation14_spill] sm:$0xff] %v12651_v15  ;;  %15966 = vst [vmem:[#allocation15_spill] sm:$0xff] %v12656_v16  ;;  %v12662_v18 = vld [vmem:[%s12594_s25 + $0x50] sm:$0xff]  ;;  %v12665_v19 = vld [vmem:[%s12594_s25 + $0x58] sm:$0xff]  ;;  %v12675_v21 = vsel %vm511_vm0, %v12638_v12, 0.0  ;;  %v12680_v22 = vsel %vm511_vm0, %v12641_v13, 0.0 }
  0x52   : > { %15967 = vst [vmem:[#allocation16_spill] sm:$0xff] %v12670_v20  ;;  %15968 = vst [vmem:[#allocation17_spill] sm:$0xff] %v12675_v21  ;;  %v12683_v23 = vld [vmem:[%s12594_s25 + $0x60] sm:$0xff]  ;;  %v12686_v24 = vld [vmem:[%s12594_s25 + $0x68] sm:$0xff]  ;;  %v12694_v26 = vsel %vm511_vm0, %v12659_v17, 0.0  ;;  %v12699_v27 = vsel %vm511_vm0, %v12662_v18, 0.0 }
  0x53   : > { %15969 = vst [vmem:[#allocation18_spill] sm:$0xff] %v12680_v22  ;;  %v12689_v25 = vld [vmem:[%s12594_s25 + $0x70] sm:$0xff]  ;;  %15970 = vst [vmem:[#allocation19_spill] sm:$0xff] %v12694_v26  ;;  %v12704_v28 = vsel %vm511_vm0, %v12665_v19, 0.0  ;;  %v12707_v29 = vld [vmem:[%s12594_s25 + $0x78] sm:$0xff]  ;;  %v12718_v32 = vsel %vm511_vm0, %v12683_v23, 0.0 }
  0x54   : > { %15971 = vst [vmem:[#allocation20_spill] sm:$0xff] %v12699_v27  ;;  %15972 = vst [vmem:[#allocation21_spill] sm:$0xff] %v12704_v28  ;;  %v12710_v30 = vld [vmem:[%s12594_s25 + $0x80] sm:$0xff]  ;;  %v12713_v31 = vld [vmem:[%s12594_s25 + $0x88] sm:$0xff]  ;;  %v12723_v33 = vsel %vm511_vm0, %v12686_v24, 0.0  ;;  %v12728_v34 = vsel %vm511_vm0, %v12689_v25, 0.0 }
  0x55   : > { %15973 = vst [vmem:[#allocation22_spill] sm:$0xff] %v12718_v32  ;;  %15974 = vst [vmem:[#allocation23_spill] sm:$0xff] %v12723_v33  ;;  %v12731_v35 = vld [vmem:[%s12594_s25 + $0x90] sm:$0xff]  ;;  %v12734_v36 = vld [vmem:[%s12594_s25 + $0x98] sm:$0xff]  ;;  %v12742_v38 = vsel %vm511_vm0, %v12707_v29, 0.0  ;;  %v12747_v39 = vsel %vm511_vm0, %v12710_v30, 0.0 }
  0x56   : > { %15975 = vst [vmem:[#allocation24_spill] sm:$0xff] %v12728_v34  ;;  %v12737_v37 = vld [vmem:[%s12594_s25 + $0xa0] sm:$0xff]  ;;  %15976 = vst [vmem:[#allocation25_spill] sm:$0xff] %v12742_v38  ;;  %v12752_v40 = vsel %vm511_vm0, %v12713_v31, 0.0  ;;  %v12755_v41 = vld [vmem:[%s12594_s25 + $0xa8] sm:$0xff]  ;;  %v12766_v44 = vsel %vm511_vm0, %v12731_v35, 0.0 }
  0x57   : > { %15977 = vst [vmem:[#allocation26_spill] sm:$0xff] %v12747_v39  ;;  %15978 = vst [vmem:[#allocation27_spill] sm:$0xff] %v12752_v40  ;;  %v12758_v42 = vld [vmem:[%s12594_s25 + $0xb0] sm:$0xff]  ;;  %v12761_v43 = vld [vmem:[%s12594_s25 + $0xb8] sm:$0xff]  ;;  %v12771_v45 = vsel %vm511_vm0, %v12734_v36, 0.0  ;;  %v12776_v46 = vsel %vm511_vm0, %v12737_v37, 0.0 }
  0x58   : > { %15979 = vst [vmem:[#allocation28_spill] sm:$0xff] %v12766_v44  ;;  %15980 = vst [vmem:[#allocation29_spill] sm:$0xff] %v12771_v45  ;;  %v12779_v47 = vld [vmem:[%s12594_s25 + $0xc0] sm:$0xff]  ;;  %v12782_v48 = vld [vmem:[%s12594_s25 + $0xc8] sm:$0xff]  ;;  %v12790_v50 = vsel %vm511_vm0, %v12755_v41, 0.0  ;;  %v12795_v51 = vsel %vm511_vm0, %v12758_v42, 0.0 }
  0x59   : > { %15981 = vst [vmem:[#allocation30_spill] sm:$0xff] %v12776_v46  ;;  %v12785_v49 = vld [vmem:[%s12594_s25 + $0xd0] sm:$0xff]  ;;  %15983 = vst [vmem:[#allocation32_spill] sm:$0xff] %v12790_v50  ;;  %v12800_v52 = vsel %vm511_vm0, %v12761_v43, 0.0  ;;  %v12803_v53 = vld [vmem:[%s12594_s25 + $0xd8] sm:$0xff]  ;;  %v12814_v56 = vsel %vm511_vm0, %v12779_v47, 0.0 }
  0x5a   : > { %15982 = vst [vmem:[#allocation31_spill] sm:$0xff] %v12785_v49  ;;  %15984 = vst [vmem:[#allocation33_spill] sm:$0xff] %v12795_v51  ;;  %v12806_v54 = vld [vmem:[%s12594_s25 + $0xe0] sm:$0xff]  ;;  %v12809_v55 = vld [vmem:[%s12594_s25 + $0xe8] sm:$0xff]  ;;  %v12819_v57 = vsel %vm511_vm0, %v12782_v48, 0.0  ;;  %v12824_v58 = vsel %vm511_vm0, %v12785_v49, 0.0 }
  0x5b   : > { %15985 = vst [vmem:[#allocation34_spill] sm:$0xff] %v12800_v52  ;;  %15986 = vst [vmem:[#allocation35_spill] sm:$0xff] %v12803_v53  ;;  %v12827_v59 = vld [vmem:[%s12594_s25 + $0xf0] sm:$0xff]  ;;  %v12830_v60 = vld [vmem:[%s12594_s25 + $0xf8] sm:$0xff]  ;;  %v12835_v61 = vsel %vm511_vm0, %v12803_v53, 0.0  ;;  %v12840_v62 = vsel %vm511_vm0, %v12806_v54, 0.0 }
  0x5c   : > { %15987 = vst [vmem:[#allocation36_spill] sm:$0xff] %v12806_v54  ;;  %15988 = vst [vmem:[#allocation37_spill] sm:$0xff] %v12809_v55  ;;  %v12845_v63 = vsel %vm511_vm0, %v12809_v55, 0.0  ;;  %v12850_v0 = vsel %vm511_vm0, %v12827_v59, 0.0  ;;  %v12868_v52 = vmov 0   ;;  %v12872_v51 = vmov 0  }
  0x5d   : > { %15989 = vst [vmem:[#allocation38_spill] sm:$0xff] %v12814_v56  ;;  %15990 = vst [vmem:[#allocation39_spill] sm:$0xff] %v12819_v57  ;;  %v12862_v57 = vmov 0   ;;  %v12864_v56 = vmov 0   ;;  %v12878_v50 = vmov 0   ;;  %v12880_v46 = vmov 0  }
  0x5e   : > { %15991 = vst [vmem:[#allocation40_spill] sm:$0xff] %v12824_v58  ;;  %15992 = vst [vmem:[#allocation41_spill] sm:$0xff] %v12827_v59  ;;  %v12855_v58 = vsel %vm511_vm0, %v12830_v60, 0.0  ;;  %v12882_v45 = vmov 0   ;;  %v12884_v44 = vmov 0   ;;  %v12886_v40 = vmov 0  }
  0x5f   : > { %15993 = vst [vmem:[#allocation42_spill] sm:$0xff] %v12830_v60  ;;  %15994 = vst [vmem:[#allocation43_spill] sm:$0xff] %v12835_v61  ;;  %v12858_v61 = vmov 0   ;;  %v12888_v39 = vmov 0   ;;  %v12890_v38 = vmov 0   ;;  %v12892_v34 = vmov 0  }
  0x60   : > { %15995 = vst [vmem:[#allocation44_spill] sm:$0xff] %v12840_v62  ;;  %15996 = vst [vmem:[#allocation45_spill] sm:$0xff] %v12845_v63  ;;  %v12860_v62 = vmov 0   ;;  %v12866_v63 = vmov 0   ;;  %v12894_v33 = vmov 0   ;;  %v12896_v32 = vmov 0  }
  0x61   : > { %15997 = vst [vmem:[#allocation46_spill] sm:$0xff] %v12850_v0  ;;  %15998 = vst [vmem:[#allocation47_spill] sm:$0xff] %v12855_v58  ;;  %v12870_v0 = vmov 0   ;;  %v12876_v58 = vmov 0   ;;  %v12898_v28 = vmov 0   ;;  %v12900_v27 = vmov 0  }
  0x62   : > { %v12902_v26 = vmov 0   ;;  %v12904_v22 = vmov 0   ;;  %v12906_v21 = vmov 0   ;;  %v12908_v20 = vmov 0   ;;  %548 = sbr.rel (%p10048_p7) target bundleno = 2246 (0x8c6), region = 84  ;;  %v552_v60 = vld [vmem:[%s15900_s2 + $0x8] sm:$0xff] (!%p10048_p7) }
  0x63   : > { %v12910_v16 = vmov 0   ;;  %v12912_v15 = vmov 0   ;;  %v12914_v14 = vmov 0   ;;  %v12916_v10 = vmov 0   ;;  %v551_v59 = vld [vmem:[%s15900_s2] sm:$0xff] (!%p10048_p7)  ;;  %658 = vmatprep.subr.mxu0 (!%p10048_p7), %v552_v60  ;;  %v16002_v33 = vld [vmem:[#allocation37_spill] sm:$0xff] (!%p10048_p7) }
  0x64   : > { %v12918_v9 = vmov 0   ;;  %v12920_v8 = vmov 0   ;;  %vm561_vm1 = vcmask (!%p10048_p7), 64512   ;;  %v12417_v55 = vmov (!%p10048_p7), 0.0   ;;  %v11369_v54 = vld [vmem:[#allocation4 + $0x4] ss:$8 sps:$4 sm:$0xff] (!%p10048_p7)   ;;  %659 = vmatpush1.msra.mxu0 (!%p10048_p7), %v551_v59 }
  0x65   : > { %722 = vmatprep.mubr.f32.mxu0 (!%p10048_p7), %v12417_v55  ;;  %v11371_v53 = vld [vmem:[#allocation4] ss:$8 sps:$4 sm:$0xff] (!%p10048_p7)   ;;  %v11372_v49 = vld [vmem:[#allocation4 + $0x14] ss:$8 sps:$4 sm:$0xff] (!%p10048_p7)   ;;  %1211 = vmatprep.subr.bf16.mxu1 (!%p10048_p7), %v11369_v54  ;;  %v11374_v0 = vld [vmem:[#allocation4 + $0x10] ss:$8 sps:$4 sm:$0xff] (!%p10048_p7)   ;;  %v16005_v40 = vlaneseq (!%p10048_p7) }
  0x66   : > { %10049 = vmatmul.mubr.msk.f32.vlgmr.msra.gmra.mrb[0].mxu0 (!%p10048_p7), %vm561_vm1, %v12602_v2  ;;  %1212 = vmatpush1.bf16.msra.mxu1 (!%p10048_p7), %v11371_v53  ;;  %v11375_v8 = vld [vmem:[#allocation4 + $0x24] ss:$8 sps:$4 sm:$0xff] (!%p10048_p7)   ;;  %v11377_v9 = vld [vmem:[#allocation4 + $0x20] ss:$8 sps:$4 sm:$0xff] (!%p10048_p7)   ;;  %v11378_v10 = vld [vmem:[#allocation4 + $0x34] ss:$8 sps:$4 sm:$0xff] (!%p10048_p7)  }
  0x67   : > { %728 = vmatprep.mubr.f32.mxu0 (!%p10048_p7), %v12417_v55  ;;  %1213 = vmatprep.subr.bf16.mxu1 (!%p10048_p7), %v11372_v49  ;;  %v11380_v2 = vld [vmem:[#allocation4 + $0x30] ss:$8 sps:$4 sm:$0xff] (!%p10048_p7)   ;;  %v11381_v14 = vld [vmem:[#allocation4 + $0x44] ss:$8 sps:$4 sm:$0xff] (!%p10048_p7)   ;;  %v11384_v15 = vld [vmem:[#allocation4 + $0x54] ss:$8 sps:$4 sm:$0xff] (!%p10048_p7)  }
  0x68   : > { %v11386_v16 = vld [vmem:[#allocation4 + $0x50] ss:$8 sps:$4 sm:$0xff] (!%p10048_p7)   ;;  %v11389_v20 = vld [vmem:[#allocation4 + $0x60] ss:$8 sps:$4 sm:$0xff] (!%p10048_p7)   ;;  %v11393_v22 = vld [vmem:[#allocation4 + $0x84] ss:$8 sps:$4 sm:$0xff] (!%p10048_p7)  }
  0x69   : > { %v11392_v21 = vld [vmem:[#allocation4 + $0x70] ss:$8 sps:$4 sm:$0xff]   ;;  %v11396_v26 = vld [vmem:[#allocation4 + $0x94] ss:$8 sps:$4 sm:$0xff]   ;;  %v11399_v27 = vld [vmem:[#allocation4 + $0xa4] ss:$8 sps:$4 sm:$0xff]  }
  0x6a   : > { %10050 = vmatmul.mubr.msk.f32.gmra.mrb[2].mxu0 %vm561_vm1, %v12605_v3  ;;  %1214 = vmatpush1.bf16.msra.mxu1 %v11374_v0  ;;  %v11383_v3 = vld [vmem:[#allocation4 + $0x40] ss:$8 sps:$4 sm:$0xff]   ;;  %v11402_v28 = vld [vmem:[#allocation4 + $0xb4] ss:$8 sps:$4 sm:$0xff]   ;;  %v11405_v32 = vld [vmem:[#allocation4 + $0xc4] ss:$8 sps:$4 sm:$0xff]  }
  0x6b   : > { %734 = vmatprep.mubr.f32.mxu0 %v12417_v55  ;;  %1215 = vmatprep.subr.bf16.mxu1 %v11375_v8  ;;  %v16003_v34 = vld [vmem:[#allocation41_spill] sm:$0xff]  ;;  %v13033_v45 = vld [vmem:[%s15903_s5] sm:$0xff]  ;;  %v13038_v46 = vld [vmem:[%s15903_s5 + $0x8] sm:$0xff] }
  0x6c   : > { %v11420_v38 = vld [vmem:[#allocation4 + $0x110] ss:$8 sps:$4 sm:$0xff]   ;;  %v11422_v39 = vld [vmem:[#allocation4 + $0x114] ss:$8 sps:$4 sm:$0xff]   ;;  %v11429_v59 = vld [vmem:[#allocation4 + $0x140] ss:$8 sps:$4 sm:$0xff]  }
  0x6d   : > { %v11426_v50 = vld [vmem:[#allocation4 + $0x130] ss:$8 sps:$4 sm:$0xff]   ;;  %v11428_v51 = vld [vmem:[#allocation4 + $0x134] ss:$8 sps:$4 sm:$0xff]   ;;  %v11431_v60 = vld [vmem:[#allocation4 + $0x144] ss:$8 sps:$4 sm:$0xff]  }
  0x6e   : > { %10051 = vmatmul.mubr.msk.f32.gmra.mrb[4].mxu0 %vm561_vm1, %v12608_v4  ;;  %1216 = vmatpush1.bf16.msra.mxu1 %v11377_v9  ;;  %v11387_v4 = vld [vmem:[#allocation4 + $0x64] ss:$8 sps:$4 sm:$0xff]   ;;  %v11434_v62 = vld [vmem:[#allocation4 + $0x154] ss:$8 sps:$4 sm:$0xff]  }
  0x6f   : > { %740 = vmatprep.mubr.f32.mxu0 %v12417_v55  ;;  %1217 = vmatprep.subr.bf16.mxu1 %v11378_v10  ;;  %v11432_v10 = vld [vmem:[#allocation4 + $0x150] ss:$8 sps:$4 sm:$0xff]  }
  0x72   : > { %10052 = vmatmul.mubr.msk.f32.gmra.mrb[6].mxu0 %vm561_vm1, %v12611_v5  ;;  %1218 = vmatpush1.bf16.msra.mxu1 %v11380_v2  ;;  %v11390_v5 = vld [vmem:[#allocation4 + $0x74] ss:$8 sps:$4 sm:$0xff]  }
  0x73   : > { %746 = vmatprep.mubr.f32.mxu0 %v12417_v55  ;;  %1219 = vmatprep.subr.bf16.mxu1 %v11381_v14 }
  0x76   : > { %10053 = vmatmul.mubr.msk.f32.gmra.mrb[8].mxu0 %vm561_vm1, %v12614_v6  ;;  %1220 = vmatpush1.bf16.msra.mxu1 %v11383_v3  ;;  %v11395_v6 = vld [vmem:[#allocation4 + $0x80] ss:$8 sps:$4 sm:$0xff]   ;;  %v11437_v3 = vld [vmem:[#allocation4 + $0x164] ss:$8 sps:$4 sm:$0xff]  }
  0x77   : > { %752 = vmatprep.mubr.f32.mxu0 %v12417_v55  ;;  %1221 = vmatprep.subr.bf16.mxu1 %v11384_v15 }
  0x7a   : > { %10054 = vmatmul.mubr.msk.f32.gmra.mrb[10].mxu0 %vm561_vm1, %v12617_v7  ;;  %1222 = vmatpush1.bf16.msra.mxu1 %v11386_v16  ;;  %v11398_v7 = vld [vmem:[#allocation4 + $0x90] ss:$8 sps:$4 sm:$0xff]  }
  0x7b   : > { %758 = vmatprep.mubr.f32.mxu0 %v12417_v55  ;;  %1223 = vmatprep.subr.bf16.mxu1 %v11387_v4 }
  0x7e   : > { %10055 = vmatmul.mubr.msk.f32.gmra.mrb[12].mxu0 %vm561_vm1, %v12635_v11  ;;  %1224 = vmatpush1.bf16.msra.mxu1 %v11389_v20  ;;  %v11401_v11 = vld [vmem:[#allocation4 + $0xa0] ss:$8 sps:$4 sm:$0xff]  }
  0x7f   : > { %764 = vmatprep.mubr.f32.mxu0 %v12417_v55  ;;  %1225 = vmatprep.subr.bf16.mxu1 %v11390_v5  ;;  %v11435_v5 = vld [vmem:[#allocation4 + $0x160] ss:$8 sps:$4 sm:$0xff]  }
  0x82   : > { %10056 = vmatmul.mubr.msk.f32.gmra.mrb[14].mxu0 %vm561_vm1, %v12638_v12  ;;  %1226 = vmatpush1.bf16.msra.mxu1 %v11392_v21  ;;  %v11404_v12 = vld [vmem:[#allocation4 + $0xb0] ss:$8 sps:$4 sm:$0xff]  }
  0x83   : > { %770 = vmatprep.mubr.f32.mxu0 %v12417_v55  ;;  %1227 = vmatprep.subr.bf16.mxu1 %v11393_v22 }
  0x86   : > { %10057 = vmatmul.mubr.msk.f32.gmra.mrb[16].mxu0 %vm561_vm1, %v12641_v13  ;;  %1228 = vmatpush1.bf16.msra.mxu1 %v11395_v6  ;;  %v11407_v13 = vld [vmem:[#allocation4 + $0xc0] ss:$8 sps:$4 sm:$0xff]   ;;  %v11440_v6 = vld [vmem:[#allocation4 + $0x174] ss:$8 sps:$4 sm:$0xff]  }
  0x87   : > { %776 = vmatprep.mubr.f32.mxu0 %v12417_v55  ;;  %1229 = vmatprep.subr.bf16.mxu1 %v11396_v26 }
  0x8a   : > { %10058 = vmatmul.mubr.msk.f32.gmra.mrb[18].mxu0 %vm561_vm1, %v12659_v17  ;;  %1230 = vmatpush1.bf16.msra.mxu1 %v11398_v7  ;;  %v11408_v17 = vld [vmem:[#allocation4 + $0xd4] ss:$8 sps:$4 sm:$0xff]  }
  0x8b   : > { %782 = vmatprep.mubr.f32.mxu0 %v12417_v55  ;;  %1231 = vmatprep.subr.bf16.mxu1 %v11399_v27 }
  0x8e   : > { %10059 = vmatmul.mubr.msk.f32.gmra.mrb[20].mxu0 %vm561_vm1, %v12662_v18  ;;  %1232 = vmatpush1.bf16.msra.mxu1 %v11401_v11  ;;  %v11410_v18 = vld [vmem:[#allocation4 + $0xd0] ss:$8 sps:$4 sm:$0xff]  }
  0x8f   : > { %788 = vmatprep.mubr.f32.mxu0 %v12417_v55  ;;  %1233 = vmatprep.subr.bf16.mxu1 %v11402_v28 }
  0x92   : > { %10060 = vmatmul.mubr.msk.f32.gmra.mrb[22].mxu0 %vm561_vm1, %v12665_v19  ;;  %1234 = vmatpush1.bf16.msra.mxu1 %v11404_v12  ;;  %v11411_v19 = vld [vmem:[#allocation4 + $0xe4] ss:$8 sps:$4 sm:$0xff]  }
  0x93   : > { %794 = vmatprep.mubr.f32.mxu0 %v12417_v55  ;;  %1235 = vmatprep.subr.bf16.mxu1 %v11405_v32  ;;  %v11438_v32 = vld [vmem:[#allocation4 + $0x170] ss:$8 sps:$4 sm:$0xff]  }
  0x96   : > { %10061 = vmatmul.mubr.msk.f32.gmra.mrb[24].mxu0 %vm561_vm1, %v12683_v23  ;;  %1236 = vmatpush1.bf16.msra.mxu1 %v11407_v13  ;;  %v11413_v23 = vld [vmem:[#allocation4 + $0xe0] ss:$8 sps:$4 sm:$0xff]  }
  0x97   : > { %800 = vmatprep.mubr.f32.mxu0 %v12417_v55  ;;  %1237 = vmatprep.subr.bf16.mxu1 %v11408_v17 }
  0x9a   : > { %10062 = vmatmul.mubr.msk.f32.gmra.mrb[26].mxu0 %vm561_vm1, %v12686_v24  ;;  %1238 = vmatpush1.bf16.msra.mxu1 %v11410_v18  ;;  %v11414_v24 = vld [vmem:[#allocation4 + $0xf4] ss:$8 sps:$4 sm:$0xff]   ;;  %v11443_v18 = vld [vmem:[#allocation4 + $0x184] ss:$8 sps:$4 sm:$0xff]  }
  0x9b   : > { %806 = vmatprep.mubr.f32.mxu0 %v12417_v55  ;;  %1239 = vmatprep.subr.bf16.mxu1 %v11411_v19 }
  0x9e   : > { %10063 = vmatmul.mubr.msk.f32.gmra.mrb[28].mxu0 %vm561_vm1, %v12689_v25  ;;  %1240 = vmatpush1.bf16.msra.mxu1 %v11413_v23  ;;  %v11416_v25 = vld [vmem:[#allocation4 + $0xf0] ss:$8 sps:$4 sm:$0xff]  }
  0x9f   : > { %812 = vmatprep.mubr.f32.mxu0 %v12417_v55  ;;  %1241 = vmatprep.subr.bf16.mxu1 %v11414_v24 }
  0xa2   : > { %10064 = vmatmul.mubr.msk.f32.gmra.mrb[30].mxu0 %vm561_vm1, %v12707_v29  ;;  %1242 = vmatpush1.bf16.msra.mxu1 %v11416_v25  ;;  %v15999_v29 = vld [vmem:[#allocation31_spill] sm:$0xff] }
  0xa3   : > { %818 = vmatprep.mubr.f32.mxu0 %v12417_v55 }
  0xa6   : > { %10065 = vmatmul.mubr.msk.f32.gmra.mrb[32].mxu0 %vm561_vm1, %v12710_v30  ;;  %v16000_v30 = vld [vmem:[#allocation35_spill] sm:$0xff] }
  0xa7   : > { %824 = vmatprep.mubr.f32.mxu0 %v12417_v55 }
  0xaa   : > { %10066 = vmatmul.mubr.msk.f32.gmra.mrb[34].mxu0 %vm561_vm1, %v12713_v31  ;;  %v16001_v31 = vld [vmem:[#allocation36_spill] sm:$0xff] }
  0xab   : > { %830 = vmatprep.mubr.f32.mxu0 %v12417_v55 }
  0xae   : > { %10067 = vmatmul.mubr.msk.f32.gmra.mrb[36].mxu0 %vm561_vm1, %v12731_v35  ;;  %v16004_v35 = vld [vmem:[#allocation42_spill] sm:$0xff] }
  0xaf   : > { %836 = vmatprep.mubr.f32.mxu0 %v12417_v55 }
  0xb2   : > { %10068 = vmatmul.mubr.msk.f32.gmra.mrb[38].mxu0 %vm561_vm1, %v12734_v36  ;;  %v11417_v36 = vld [vmem:[#allocation4 + $0x100] ss:$8 sps:$4 sm:$0xff]  }
  0xb3   : > { %842 = vmatprep.mubr.f32.mxu0 %v12417_v55 }
  0xb6   : > { %10069 = vmatmul.mubr.msk.f32.gmra.mrb[40].mxu0 %vm561_vm1, %v12737_v37  ;;  %v11419_v37 = vld [vmem:[#allocation4 + $0x104] ss:$8 sps:$4 sm:$0xff]  }
  0xb7   : > { %848 = vmatprep.mubr.f32.mxu0 %v12417_v55  ;;  %1701 = vmatprep.subr.bf16.mxu0 %v11419_v37 }
  0xb8   : > { %1702 = vmatpush1.bf16.msra.mxu0 %v11417_v36 }
  0xb9   : > { %1703 = vmatprep.subr.bf16.mxu0 %v11422_v39 }
  0xba   : > { %10070 = vmatmul.mubr.msk.f32.gmra.mrb[42].mxu0 %vm561_vm1, %v12755_v41  ;;  %v13027_v41 = vshrl.u32 %v16005_v40, 7  ;;  %v11444_v40 = vld [vmem:[#allocation4 + $0x190] ss:$8 sps:$4 sm:$0xff]  }
  0xbb   : > { %854 = vmatprep.mubr.f32.mxu0 %v12417_v55 }
  0xbc   : > { %1704 = vmatpush1.bf16.msra.mxu0 %v11420_v38  ;;  %v555_v44 = vsub.s32 0, %v13027_v41 }
  0xbe   : > { %10071 = vmatmul.mubr.msk.f32.gmra.mrb[44].mxu0 %vm561_vm1, %v12758_v42  ;;  %v11423_v42 = vld [vmem:[#allocation4 + $0x120] ss:$8 sps:$4 sm:$0xff]   ;;  %v13044_v49 = vrot.slane %v13038_v46, %v555_v44 }
  0xbf   : > { %860 = vmatprep.mubr.f32.mxu0 %v12417_v55 }
  0xc2   : > { %10072 = vmatmul.mubr.msk.f32.gmra.mrb[46].mxu0 %vm561_vm1, %v12761_v43  ;;  %v11425_v43 = vld [vmem:[#allocation4 + $0x124] ss:$8 sps:$4 sm:$0xff]  }
  0xc3   : > { %866 = vmatprep.mubr.f32.mxu0 %v12417_v55  ;;  %1705 = vmatprep.subr.bf16.mxu0 %v11425_v43 }
  0xc4   : > { %1706 = vmatpush1.bf16.msra.mxu0 %v11423_v42 }
  0xc5   : > { %1707 = vmatprep.subr.bf16.mxu0 %v11428_v51 }
  0xc6   : > { %10073 = vmatmul.mubr.msk.f32.gmra.mrb[48].mxu0 %vm561_vm1, %v12779_v47  ;;  %v13041_v47 = vrot.slane %v13033_v45, %v555_v44 }
  0xc7   : > { %872 = vmatprep.mubr.f32.mxu0 %v12417_v55 }
  0xc8   : > { %1708 = vmatpush1.bf16.msra.mxu0 %v11426_v50 }
  0xc9   : > { %1709 = vmatprep.subr.bf16.mxu0 %v11431_v60 }
  0xca   : > { %10074 = vmatmul.mubr.msk.f32.gmra.mrb[50].mxu0 %vm561_vm1, %v12782_v48 }
  0xcb   : > { %878 = vmatprep.mubr.f32.mxu0 %v12417_v55 }
  0xcc   : > { %1710 = vmatpush1.bf16.msra.mxu0 %v11429_v59 }
  0xcd   : > { %1711 = vmatprep.subr.bf16.mxu0 %v11434_v62 }
  0xce   : > { %10075 = vmatmul.mubr.msk.f32.gmra.mrb[52].mxu0 %vm561_vm1, %v15999_v29  ;;  %v11441_v29 = vld [vmem:[#allocation4 + $0x180] ss:$8 sps:$4 sm:$0xff]  }
  0xcf   : > { %884 = vmatprep.mubr.f32.mxu0 %v12417_v55 }
  0xd0   : > { %1712 = vmatpush1.bf16.msra.mxu0 %v11432_v10  ;;  %v11455_v10 = vld [vmem:[#allocation4 + $0x1c4] ss:$8 sps:$4 sm:$0xff]  }
  0xd1   : > { %1713 = vmatprep.subr.bf16.mxu0 %v11437_v3 }
  0xd2   : > { %10076 = vmatmul.mubr.msk.f32.gmra.mrb[54].mxu0 %vm561_vm1, %v16000_v30 }
  0xd3   : > { %890 = vmatprep.mubr.f32.mxu0 %v12417_v55 }
  0xd4   : > { %1714 = vmatpush1.bf16.msra.mxu0 %v11435_v5  ;;  %v11458_v5 = vld [vmem:[#allocation4 + $0x1d4] ss:$8 sps:$4 sm:$0xff]  }
  0xd5   : > { %1715 = vmatprep.subr.bf16.mxu0 %v11440_v6 }
  0xd6   : > { %10077 = vmatmul.mubr.msk.f32.gmra.mrb[56].mxu0 %vm561_vm1, %v16001_v31 }
  0xd7   : > { %896 = vmatprep.mubr.f32.mxu0 %v12417_v55 }
  0xd8   : > { %1716 = vmatpush1.bf16.msra.mxu0 %v11438_v32  ;;  %v11461_v32 = vld [vmem:[#allocation4 + $0x1e4] ss:$8 sps:$4 sm:$0xff]  }
  0xd9   : > { %1717 = vmatprep.subr.bf16.mxu0 %v11443_v18 }
  0xda   : > { %10078 = vmatmul.mubr.msk.f32.gmra.mrb[58].mxu0 %vm561_vm1, %v16002_v33  ;;  %v11446_v33 = vld [vmem:[#allocation4 + $0x194] ss:$8 sps:$4 sm:$0xff]  }
  0xdb   : > { %902 = vmatprep.mubr.f32.mxu0 %v12417_v55 }
  0xdc   : > { %1718 = vmatpush1.bf16.msra.mxu0 %v11441_v29 }
  0xdd   : > { %1719 = vmatprep.subr.bf16.mxu0 %v11446_v33 }
  0xde   : > { %10079 = vmatmul.mubr.msk.f32.gmra.mrb[60].mxu0 %vm561_vm1, %v16003_v34 }
  0xdf   : > { %908 = vmatprep.mubr.f32.mxu0 %v12417_v55 }
  0xe0   : > { %1720 = vmatpush1.bf16.msra.mxu0 %v11444_v40 }
  0xe2   : > { %10080 = vmatmul.mubr.msk.f32.gmra.mrb[62].mxu0 %vm561_vm1, %v16004_v35 }
 0x139   : > { %v724_v48 = vpop.f32.mrb[0].mxu0 }
 0x13a   : > { %v726_v52 = vpop.f32.mrb[1].mxu0  ;;  %v725_v53 = vadd.f32 %v724_v48, %v13041_v47  ;;  %v11449_v48 = vld [vmem:[#allocation4 + $0x1a4] ss:$8 sps:$4 sm:$0xff]  }
 0x13b   : > { %v727_v56 = vadd.f32 %v726_v52, %v13044_v49  ;;  %1721 = vmatprep.subr.bf16.mxu0 %v11449_v48 }
 0x13c   : > { %v915_v63 = vmax.f32 %v725_v53, 0.0  ;;  %v11447_v53 = vld [vmem:[#allocation4 + $0x1a0] ss:$8 sps:$4 sm:$0xff]  }
 0x13d   : > { %v730_v54 = vpop.f32.mrb[2].mxu0  ;;  %v916_v8 = vmax.f32 %v727_v56, 0.0  ;;  %1722 = vmatpush1.bf16.msra.mxu0 %v11447_v53 }
 0x13e   : > { %v731_v57 = vadd.f32 %v730_v54, %v13041_v47  ;;  %v732_v58 = vpop.f32.mrb[3].mxu0 }
 0x13f   : > { %v733_v61 = vadd.f32 %v732_v58, %v13044_v49  ;;  %v11452_v58 = vld [vmem:[#allocation4 + $0x1b4] ss:$8 sps:$4 sm:$0xff]  }
 0x140   : > { %v917_v1 = vmax.f32 %v731_v57, 0.0  ;;  %1723 = vmatprep.subr.bf16.mxu0 %v11452_v58 }
 0x141   : > { %v736_v0 = vpop.f32.mrb[4].mxu0  ;;  %v918_v9 = vmax.f32 %v733_v61, 0.0 }
 0x142   : > { %v738_v2 = vpop.f32.mrb[5].mxu0  ;;  %v979_v14 = vpack.c.bf16 %v917_v1, %v915_v63  ;;  %v737_v16 = vadd.f32 %v736_v0, %v13041_v47  ;;  %v11450_v1 = vld [vmem:[#allocation4 + $0x1b0] ss:$8 sps:$4 sm:$0xff]  }
 0x143   : > { %v980_v15 = vpack.c.bf16 %v918_v9, %v916_v8  ;;  %v739_v4 = vadd.f32 %v738_v2, %v13044_v49  ;;  %1724 = vmatpush1.bf16.msra.mxu0 %v11450_v1 }
 0x144   : > { %v919_v7 = vmax.f32 %v737_v16, 0.0  ;;  %1725 = vmatprep.subr.bf16.mxu0 %v11455_v10 }
 0x145   : > { %v742_v20 = vpop.f32.mrb[6].mxu0  ;;  %1243 = vmatprep.mubr.bf16.mxu1 %v980_v15  ;;  %v920_v11 = vmax.f32 %v739_v4, 0.0  ;;  %v11453_v15 = vld [vmem:[#allocation4 + $0x1c0] ss:$8 sps:$4 sm:$0xff]  }
 0x146   : > { %v743_v21 = vadd.f32 %v742_v20, %v13041_v47  ;;  %v744_v22 = vpop.f32.mrb[7].mxu0  ;;  %1244 = vmatmul.mubr.bf16.vlgmr.msra.gmra.mrb[0].mxu1 %v979_v14 }
 0x147   : > { %v745_v26 = vadd.f32 %v744_v22, %v13044_v49  ;;  %1726 = vmatpush1.bf16.msra.mxu0 %v11453_v15 }
 0x148   : > { %v921_v27 = vmax.f32 %v743_v21, 0.0  ;;  %1727 = vmatprep.subr.bf16.mxu0 %v11458_v5 }
 0x149   : > { %v922_v28 = vmax.f32 %v745_v26, 0.0  ;;  %v748_v12 = vpop.f32.mrb[8].mxu0 }
 0x14a   : > { %v750_v13 = vpop.f32.mrb[9].mxu0  ;;  %v981_v17 = vpack.c.bf16 %v921_v27, %v919_v7  ;;  %v749_v23 = vadd.f32 %v748_v12, %v13041_v47  ;;  %v11456_v27 = vld [vmem:[#allocation4 + $0x1d0] ss:$8 sps:$4 sm:$0xff]  }
 0x14b   : > { %v982_v19 = vpack.c.bf16 %v922_v28, %v920_v11  ;;  %v751_v24 = vadd.f32 %v750_v13, %v13044_v49  ;;  %1728 = vmatpush1.bf16.msra.mxu0 %v11456_v27 }
 0x14c   : > { %v923_v35 = vmax.f32 %v749_v23, 0.0  ;;  %1729 = vmatprep.subr.bf16.mxu0 %v11461_v32 }
 0x14d   : > { %v754_v25 = vpop.f32.mrb[10].mxu0  ;;  %1253 = vmatprep.mubr.bf16.mxu1 %v982_v19  ;;  %v924_v37 = vmax.f32 %v751_v24, 0.0  ;;  %v11459_v19 = vld [vmem:[#allocation4 + $0x1e0] ss:$8 sps:$4 sm:$0xff]  }
 0x14e   : > { %v755_v30 = vadd.f32 %v754_v25, %v13041_v47  ;;  %v756_v31 = vpop.f32.mrb[11].mxu0  ;;  %1254 = vmatmul.mubr.bf16.gmra.mrb[4].mxu1 %v981_v17 }
 0x14f   : > { %v757_v34 = vadd.f32 %v756_v31, %v13044_v49  ;;  %1730 = vmatpush1.bf16.msra.mxu0 %v11459_v19 }
 0x150   : > { %v925_v36 = vmax.f32 %v755_v30, 0.0 }
 0x151   : > { %v926_v38 = vmax.f32 %v757_v34, 0.0  ;;  %v760_v39 = vpop.f32.mrb[12].mxu0 }
 0x152   : > { %v761_v42 = vadd.f32 %v760_v39, %v13041_v47  ;;  %v762_v43 = vpop.f32.mrb[13].mxu0  ;;  %v983_v44 = vpack.c.bf16 %v925_v36, %v923_v35 }
 0x153   : > { %v763_v50 = vadd.f32 %v762_v43, %v13044_v49  ;;  %v984_v51 = vpack.c.bf16 %v926_v38, %v924_v37 }
 0x154   : > { %v927_v54 = vmax.f32 %v761_v42, 0.0 }
 0x155   : > { %1263 = vmatprep.mubr.bf16.mxu1 %v984_v51  ;;  %v766_v52 = vpop.f32.mrb[14].mxu0  ;;  %v928_v59 = vmax.f32 %v763_v50, 0.0 }
 0x156   : > { %v767_v56 = vadd.f32 %v766_v52, %v13041_v47  ;;  %1264 = vmatmul.mubr.bf16.gmra.mrb[8].mxu1 %v983_v44  ;;  %v768_v57 = vpop.f32.mrb[15].mxu0 }
 0x157   : > { %v769_v60 = vadd.f32 %v768_v57, %v13044_v49 }
 0x158   : > { %v929_v61 = vmax.f32 %v767_v56, 0.0 }
 0x159   : > { %v930_v62 = vmax.f32 %v769_v60, 0.0  ;;  %v772_v63 = vpop.f32.mrb[16].mxu0 }
 0x15a   : > { %v773_v0 = vadd.f32 %v772_v63, %v13041_v47  ;;  %v774_v8 = vpop.f32.mrb[17].mxu0  ;;  %v985_v9 = vpack.c.bf16 %v929_v61, %v927_v54 }
 0x15b   : > { %v775_v2 = vadd.f32 %v774_v8, %v13044_v49  ;;  %v986_v14 = vpack.c.bf16 %v930_v62, %v928_v59 }
 0x15c   : > { %v931_v16 = vmax.f32 %v773_v0, 0.0 }
 0x15d   : > { %v778_v3 = vpop.f32.mrb[18].mxu0  ;;  %1273 = vmatprep.mubr.bf16.mxu1 %v986_v14  ;;  %v932_v21 = vmax.f32 %v775_v2, 0.0 }
 0x15e   : > { %v779_v4 = vadd.f32 %v778_v3, %v13041_v47  ;;  %v780_v20 = vpop.f32.mrb[19].mxu0  ;;  %1274 = vmatmul.mubr.bf16.gmra.mrb[12].mxu1 %v985_v9 }
 0x15f   : > { %v781_v22 = vadd.f32 %v780_v20, %v13044_v49 }
 0x160   : > { %v933_v6 = vmax.f32 %v779_v4, 0.0 }
 0x161   : > { %v934_v26 = vmax.f32 %v781_v22, 0.0  ;;  %v784_v7 = vpop.f32.mrb[20].mxu0 }
 0x162   : > { %v785_v11 = vadd.f32 %v784_v7, %v13041_v47  ;;  %v786_v28 = vpop.f32.mrb[21].mxu0  ;;  %v987_v12 = vpack.c.bf16 %v933_v6, %v931_v16 }
 0x163   : > { %v787_v13 = vadd.f32 %v786_v28, %v13044_v49  ;;  %v988_v17 = vpack.c.bf16 %v934_v26, %v932_v21 }
 0x164   : > { %v935_v23 = vmax.f32 %v785_v11, 0.0 }
 0x165   : > { %v790_v18 = vpop.f32.mrb[22].mxu0  ;;  %1283 = vmatprep.mubr.bf16.mxu1 %v988_v17  ;;  %v936_v29 = vmax.f32 %v787_v13, 0.0 }
 0x166   : > { %v791_v24 = vadd.f32 %v790_v18, %v13041_v47  ;;  %v792_v25 = vpop.f32.mrb[23].mxu0  ;;  %1284 = vmatmul.mubr.bf16.gmra.mrb[16].mxu1 %v987_v12 }
 0x167   : > { %v793_v30 = vadd.f32 %v792_v25, %v13044_v49 }
 0x168   : > { %v937_v31 = vmax.f32 %v791_v24, 0.0 }
 0x169   : > { %v938_v33 = vmax.f32 %v793_v30, 0.0  ;;  %v796_v34 = vpop.f32.mrb[24].mxu0 }
 0x16a   : > { %v797_v35 = vadd.f32 %v796_v34, %v13041_v47  ;;  %v798_v36 = vpop.f32.mrb[25].mxu0  ;;  %v989_v37 = vpack.c.bf16 %v937_v31, %v935_v23 }
 0x16b   : > { %v799_v38 = vadd.f32 %v798_v36, %v13044_v49  ;;  %v990_v39 = vpack.c.bf16 %v938_v33, %v936_v29 }
 0x16c   : > { %v939_v42 = vmax.f32 %v797_v35, 0.0 }
 0x16d   : > { %v802_v40 = vpop.f32.mrb[26].mxu0  ;;  %1293 = vmatprep.mubr.bf16.mxu1 %v990_v39  ;;  %v940_v48 = vmax.f32 %v799_v38, 0.0 }
 0x16e   : > { %v803_v43 = vadd.f32 %v802_v40, %v13041_v47  ;;  %v804_v44 = vpop.f32.mrb[27].mxu0  ;;  %1294 = vmatmul.mubr.bf16.gmra.mrb[20].mxu1 %v989_v37 }
 0x16f   : > { %v805_v50 = vadd.f32 %v804_v44, %v13044_v49 }
 0x170   : > { %v941_v51 = vmax.f32 %v803_v43, 0.0 }
 0x171   : > { %v942_v52 = vmax.f32 %v805_v50, 0.0  ;;  %v808_v53 = vpop.f32.mrb[28].mxu0 }
 0x172   : > { %v809_v54 = vadd.f32 %v808_v53, %v13041_v47  ;;  %v810_v56 = vpop.f32.mrb[29].mxu0  ;;  %v991_v57 = vpack.c.bf16 %v941_v51, %v939_v42 }
 0x173   : > { %v811_v58 = vadd.f32 %v810_v56, %v13044_v49  ;;  %v992_v59 = vpack.c.bf16 %v942_v52, %v940_v48 }
 0x174   : > { %v943_v61 = vmax.f32 %v809_v54, 0.0 }
 0x175   : > { %v814_v60 = vpop.f32.mrb[30].mxu0  ;;  %1303 = vmatprep.mubr.bf16.mxu1 %v992_v59  ;;  %v944_v1 = vmax.f32 %v811_v58, 0.0 }
 0x176   : > { %v815_v62 = vadd.f32 %v814_v60, %v13041_v47  ;;  %v816_v63 = vpop.f32.mrb[31].mxu0  ;;  %1304 = vmatmul.mubr.bf16.gmra.mrb[24].mxu1 %v991_v57 }
 0x177   : > { %v817_v0 = vadd.f32 %v816_v63, %v13044_v49 }
 0x178   : > { %v945_v8 = vmax.f32 %v815_v62, 0.0 }
 0x179   : > { %v946_v9 = vmax.f32 %v817_v0, 0.0  ;;  %v820_v10 = vpop.f32.mrb[32].mxu0 }
 0x17a   : > { %v821_v2 = vadd.f32 %v820_v10, %v13041_v47  ;;  %v822_v14 = vpop.f32.mrb[33].mxu0  ;;  %v993_v3 = vpack.c.bf16 %v945_v8, %v943_v61 }
 0x17b   : > { %v823_v15 = vadd.f32 %v822_v14, %v13044_v49  ;;  %v994_v16 = vpack.c.bf16 %v946_v9, %v944_v1 }
 0x17c   : > { %v947_v20 = vmax.f32 %v821_v2, 0.0 }
 0x17d   : > { %v826_v4 = vpop.f32.mrb[34].mxu0  ;;  %1313 = vmatprep.mubr.bf16.mxu1 %v994_v16  ;;  %v948_v22 = vmax.f32 %v823_v15, 0.0 }
 0x17e   : > { %v827_v5 = vadd.f32 %v826_v4, %v13041_v47  ;;  %v828_v21 = vpop.f32.mrb[35].mxu0  ;;  %1314 = vmatmul.mubr.bf16.gmra.mrb[28].mxu1 %v993_v3 }
 0x17f   : > { %v829_v6 = vadd.f32 %v828_v21, %v13044_v49 }
 0x180   : > { %v949_v26 = vmax.f32 %v827_v5, 0.0  ;;  %v11464_v5 = vld [vmem:[#allocation4 + $0x1f4] ss:$8 sps:$4 sm:$0xff]  }
 0x181   : > { %v950_v7 = vmax.f32 %v829_v6, 0.0  ;;  %v832_v27 = vpop.f32.mrb[36].mxu0  ;;  %v11462_v6 = vld [vmem:[#allocation4 + $0x1f0] ss:$8 sps:$4 sm:$0xff]   ;;  %1731 = vmatprep.subr.bf16.mxu0 %v11464_v5 }
 0x182   : > { %v833_v11 = vadd.f32 %v832_v27, %v13041_v47  ;;  %v834_v28 = vpop.f32.mrb[37].mxu0  ;;  %v995_v12 = vpack.c.bf16 %v949_v26, %v947_v20  ;;  %1732 = vmatpush1.bf16.msra.mxu0 %v11462_v6  ;;  %v11474_v5 = vld [vmem:[#allocation4 + $0x230] ss:$8 sps:$4 sm:$0xff]  }
 0x183   : > { %v835_v32 = vadd.f32 %v834_v28, %v13044_v49  ;;  %v996_v13 = vpack.c.bf16 %v950_v7, %v948_v22 }
 0x184   : > { %v951_v18 = vmax.f32 %v833_v11, 0.0 }
 0x185   : > { %v838_v17 = vpop.f32.mrb[38].mxu0  ;;  %1323 = vmatprep.mubr.bf16.mxu1 %v996_v13  ;;  %v952_v24 = vmax.f32 %v835_v32, 0.0 }
 0x186   : > { %v839_v19 = vadd.f32 %v838_v17, %v13041_v47  ;;  %v840_v23 = vpop.f32.mrb[39].mxu0  ;;  %1324 = vmatmul.mubr.bf16.gmra.mrb[32].mxu1 %v995_v12 }
 0x187   : > { %v841_v25 = vadd.f32 %v840_v23, %v13044_v49 }
 0x188   : > { %v953_v29 = vmax.f32 %v839_v19, 0.0 }
 0x189   : > { %v954_v30 = vmax.f32 %v841_v25, 0.0  ;;  %v844_v31 = vpop.f32.mrb[40].mxu0 }
 0x18a   : > { %v845_v33 = vadd.f32 %v844_v31, %v13041_v47  ;;  %v846_v34 = vpop.f32.mrb[41].mxu0  ;;  %v997_v35 = vpack.c.bf16 %v953_v29, %v951_v18 }
 0x18b   : > { %v847_v36 = vadd.f32 %v846_v34, %v13044_v49  ;;  %v998_v37 = vpack.c.bf16 %v954_v30, %v952_v24 }
 0x18c   : > { %v955_v39 = vmax.f32 %v845_v33, 0.0 }
 0x18d   : > { %v850_v38 = vpop.f32.mrb[42].mxu0  ;;  %1333 = vmatprep.mubr.bf16.mxu1 %v998_v37  ;;  %v956_v43 = vmax.f32 %v847_v36, 0.0 }
 0x18e   : > { %v851_v40 = vadd.f32 %v850_v38, %v13041_v47  ;;  %v852_v42 = vpop.f32.mrb[43].mxu0  ;;  %1334 = vmatmul.mubr.bf16.gmra.mrb[36].mxu1 %v997_v35 }
 0x18f   : > { %v853_v44 = vadd.f32 %v852_v42, %v13044_v49 }
 0x190   : > { %v957_v48 = vmax.f32 %v851_v40, 0.0 }
 0x191   : > { %v958_v50 = vmax.f32 %v853_v44, 0.0  ;;  %v856_v51 = vpop.f32.mrb[44].mxu0 }
 0x192   : > { %v857_v52 = vadd.f32 %v856_v51, %v13041_v47  ;;  %v858_v53 = vpop.f32.mrb[45].mxu0  ;;  %v999_v54 = vpack.c.bf16 %v957_v48, %v955_v39 }
 0x193   : > { %v859_v56 = vadd.f32 %v858_v53, %v13044_v49  ;;  %v1000_v57 = vpack.c.bf16 %v958_v50, %v956_v43 }
 0x194   : > { %v959_v59 = vmax.f32 %v857_v52, 0.0 }
 0x195   : > { %v862_v58 = vpop.f32.mrb[46].mxu0  ;;  %1343 = vmatprep.mubr.bf16.mxu1 %v1000_v57  ;;  %v960_v62 = vmax.f32 %v859_v56, 0.0 }
 0x196   : > { %v863_v60 = vadd.f32 %v862_v58, %v13041_v47  ;;  %v864_v61 = vpop.f32.mrb[47].mxu0  ;;  %1344 = vmatmul.mubr.bf16.gmra.mrb[40].mxu1 %v999_v54 }
 0x197   : > { %v865_v63 = vadd.f32 %v864_v61, %v13044_v49 }
 0x198   : > { %v961_v1 = vmax.f32 %v863_v60, 0.0 }
 0x199   : > { %v962_v0 = vmax.f32 %v865_v63, 0.0  ;;  %v868_v8 = vpop.f32.mrb[48].mxu0 }
 0x19a   : > { %v869_v9 = vadd.f32 %v868_v8, %v13041_v47  ;;  %v870_v10 = vpop.f32.mrb[49].mxu0  ;;  %v1001_v2 = vpack.c.bf16 %v961_v1, %v959_v59 }
 0x19b   : > { %v871_v14 = vadd.f32 %v870_v10, %v13044_v49  ;;  %v1002_v3 = vpack.c.bf16 %v962_v0, %v960_v62  ;;  %v11465_v10 = vld [vmem:[#allocation4 + $0x200] ss:$8 sps:$4 sm:$0xff]  }
 0x19c   : > { %v963_v16 = vmax.f32 %v869_v9, 0.0 }
 0x19d   : > { %v874_v15 = vpop.f32.mrb[50].mxu0  ;;  %1353 = vmatprep.mubr.bf16.mxu1 %v1002_v3  ;;  %v964_v21 = vmax.f32 %v871_v14, 0.0  ;;  %v11468_v14 = vld [vmem:[#allocation4 + $0x210] ss:$8 sps:$4 sm:$0xff]   ;;  %v11470_v3 = vld [vmem:[#allocation4 + $0x214] ss:$8 sps:$4 sm:$0xff]  }
 0x19e   : > { %v875_v4 = vadd.f32 %v874_v15, %v13041_v47  ;;  %v876_v20 = vpop.f32.mrb[51].mxu0  ;;  %1354 = vmatmul.mubr.bf16.gmra.mrb[44].mxu1 %v1001_v2  ;;  %v11467_v2 = vld [vmem:[#allocation4 + $0x204] ss:$8 sps:$4 sm:$0xff]  }
 0x19f   : > { %v877_v22 = vadd.f32 %v876_v20, %v13044_v49  ;;  %2191 = vmatprep.subr.bf16.mxu1 %v11467_v2  ;;  %v11473_v15 = vld [vmem:[#allocation4 + $0x224] ss:$8 sps:$4 sm:$0xff]   ;;  %v11492_v2 = vld [vmem:[#allocation4 + $0x290] ss:$8 sps:$4 sm:$0xff]  }
 0x1a0   : > { %v965_v26 = vmax.f32 %v875_v4, 0.0  ;;  %2192 = vmatpush1.bf16.msra.mxu1 %v11465_v10 }
 0x1a1   : > { %v966_v7 = vmax.f32 %v877_v22, 0.0  ;;  %v880_v27 = vpop.f32.mrb[52].mxu0  ;;  %2193 = vmatprep.subr.bf16.mxu1 %v11470_v3 }
 0x1a2   : > { %v881_v11 = vadd.f32 %v880_v27, %v13041_v47  ;;  %v882_v28 = vpop.f32.mrb[53].mxu0  ;;  %v1003_v12 = vpack.c.bf16 %v965_v26, %v963_v16  ;;  %v1045_v16 = vsub.s32 1, %v13027_v41 }
 0x1a3   : > { %v883_v32 = vadd.f32 %v882_v28, %v13044_v49  ;;  %v1004_v13 = vpack.c.bf16 %v966_v7, %v964_v21  ;;  %v11476_v21 = vld [vmem:[#allocation4 + $0x234] ss:$8 sps:$4 sm:$0xff]   ;;  %v11477_v28 = vld [vmem:[#allocation4 + $0x240] ss:$8 sps:$4 sm:$0xff]  }
 0x1a4   : > { %v967_v18 = vmax.f32 %v881_v11, 0.0  ;;  %2194 = vmatpush1.bf16.msra.mxu1 %v11468_v14  ;;  %v13115_v4 = vrot.slane %v13038_v46, %v1045_v16  ;;  %v11482_v46 = vld [vmem:[#allocation4 + $0x254] ss:$8 sps:$4 sm:$0xff]  }
 0x1a5   : > { %v886_v17 = vpop.f32.mrb[54].mxu0  ;;  %1363 = vmatprep.mubr.bf16.mxu1 %v1004_v13  ;;  %v968_v24 = vmax.f32 %v883_v32, 0.0  ;;  %2195 = vmatprep.subr.bf16.mxu1 %v11473_v15 }
 0x1a6   : > { %v887_v19 = vadd.f32 %v886_v17, %v13041_v47  ;;  %v888_v23 = vpop.f32.mrb[55].mxu0  ;;  %1364 = vmatmul.mubr.bf16.gmra.mrb[48].mxu1 %v1003_v12 }
 0x1a7   : > { %v889_v25 = vadd.f32 %v888_v23, %v13044_v49  ;;  %v11480_v23 = vld [vmem:[#allocation4 + $0x250] ss:$8 sps:$4 sm:$0xff]  }
 0x1a8   : > { %v969_v29 = vmax.f32 %v887_v19, 0.0 }
 0x1a9   : > { %v970_v30 = vmax.f32 %v889_v25, 0.0  ;;  %v892_v31 = vpop.f32.mrb[56].mxu0 }
 0x1aa   : > { %v893_v33 = vadd.f32 %v892_v31, %v13041_v47  ;;  %v894_v34 = vpop.f32.mrb[57].mxu0  ;;  %v1005_v35 = vpack.c.bf16 %v969_v29, %v967_v18  ;;  %v11485_v29 = vld [vmem:[#allocation4 + $0x264] ss:$8 sps:$4 sm:$0xff]  }
 0x1ab   : > { %v895_v36 = vadd.f32 %v894_v34, %v13044_v49  ;;  %v1006_v37 = vpack.c.bf16 %v970_v30, %v968_v24 }
 0x1ac   : > { %v971_v39 = vmax.f32 %v893_v33, 0.0 }
 0x1ad   : > { %v898_v38 = vpop.f32.mrb[58].mxu0  ;;  %1373 = vmatprep.mubr.bf16.mxu1 %v1006_v37  ;;  %v972_v43 = vmax.f32 %v895_v36, 0.0  ;;  %v11483_v37 = vld [vmem:[#allocation4 + $0x260] ss:$8 sps:$4 sm:$0xff]  }
 0x1ae   : > { %v899_v40 = vadd.f32 %v898_v38, %v13041_v47  ;;  %v900_v42 = vpop.f32.mrb[59].mxu0  ;;  %1374 = vmatmul.mubr.bf16.gmra.mrb[52].mxu1 %v1005_v35 }
 0x1af   : > { %v901_v44 = vadd.f32 %v900_v42, %v13044_v49 }
 0x1b0   : > { %v973_v48 = vmax.f32 %v899_v40, 0.0 }
 0x1b1   : > { %v974_v50 = vmax.f32 %v901_v44, 0.0  ;;  %v904_v51 = vpop.f32.mrb[60].mxu0 }
 0x1b2   : > { %v905_v52 = vadd.f32 %v904_v51, %v13041_v47  ;;  %v906_v53 = vpop.f32.mrb[61].mxu0  ;;  %v1007_v54 = vpack.c.bf16 %v973_v48, %v971_v39  ;;  %v11488_v39 = vld [vmem:[#allocation4 + $0x274] ss:$8 sps:$4 sm:$0xff]  }
 0x1b3   : > { %v907_v56 = vadd.f32 %v906_v53, %v13044_v49  ;;  %v1008_v57 = vpack.c.bf16 %v974_v50, %v972_v43  ;;  %v11486_v50 = vld [vmem:[#allocation4 + $0x270] ss:$8 sps:$4 sm:$0xff]   ;;  %v11491_v53 = vld [vmem:[#allocation4 + $0x284] ss:$8 sps:$4 sm:$0xff]  }
 0x1b4   : > { %v975_v59 = vmax.f32 %v905_v52, 0.0 }
 0x1b5   : > { %v910_v58 = vpop.f32.mrb[62].mxu0  ;;  %1383 = vmatprep.mubr.bf16.mxu1 %v1008_v57  ;;  %v976_v62 = vmax.f32 %v907_v56, 0.0 }
 0x1b6   : > { %v911_v60 = vadd.f32 %v910_v58, %v13041_v47  ;;  %v912_v61 = vpop.f32.mrb[63].mxu0  ;;  %1384 = vmatmul.mubr.bf16.gmra.mrb[56].mxu1 %v1007_v54  ;;  %v11471_v47 = vld [vmem:[#allocation4 + $0x220] ss:$8 sps:$4 sm:$0xff]  }
 0x1b7   : > { %v913_v63 = vadd.f32 %v912_v61, %v13044_v49  ;;  %2196 = vmatpush1.bf16.msra.mxu1 %v11471_v47  ;;  %v13112_v49 = vrot.slane %v13033_v45, %v1045_v16  ;;  %v11479_v45 = vld [vmem:[#allocation4 + $0x244] ss:$8 sps:$4 sm:$0xff]   ;;  %v11489_v61 = vld [vmem:[#allocation4 + $0x280] ss:$8 sps:$4 sm:$0xff]  }
 0x1b8   : > { %v977_v1 = vmax.f32 %v911_v60, 0.0  ;;  %2197 = vmatprep.subr.bf16.mxu1 %v11476_v21  ;;  %v11497_v47 = vld [vmem:[#allocation4 + $0x2a4] ss:$8 sps:$4 sm:$0xff]  }
 0x1b9   : > { %v978_v0 = vmax.f32 %v913_v63, 0.0  ;;  %v11494_v63 = vld [vmem:[#allocation4 + $0x294] ss:$8 sps:$4 sm:$0xff]  }
 0x1ba   : > { %v1009_v8 = vpack.c.bf16 %v977_v1, %v975_v59 }
 0x1bb   : > { %v1010_v9 = vpack.c.bf16 %v978_v0, %v976_v62  ;;  %2198 = vmatpush1.bf16.msra.mxu1 %v11474_v5 }
 0x1bc   : > { %2199 = vmatprep.subr.bf16.mxu1 %v11479_v45 }
 0x1bd   : > { %1393 = vmatprep.mubr.bf16.mxu1 %v1010_v9 }
 0x1be   : > { %1394 = vmatmul.mubr.bf16.gmra.mrb[60].mxu1 %v1009_v8 }
 0x1bf   : > { %2200 = vmatpush1.bf16.msra.mxu1 %v11477_v28 }
 0x1c0   : > { %2201 = vmatprep.subr.bf16.mxu1 %v11482_v46  ;;  %v11498_v46 = vld [vmem:[#allocation4 + $0x2b0] ss:$8 sps:$4 sm:$0xff]  }
 0x1c3   : > { %2202 = vmatpush1.bf16.msra.mxu1 %v11480_v23 }
 0x1c4   : > { %2203 = vmatprep.subr.bf16.mxu1 %v11485_v29 }
 0x1c7   : > { %2204 = vmatpush1.bf16.msra.mxu1 %v11483_v37 }
 0x1c8   : > { %2205 = vmatprep.subr.bf16.mxu1 %v11488_v39  ;;  %v11504_v39 = vld [vmem:[#allocation4 + $0x2d0] ss:$8 sps:$4 sm:$0xff]  }
 0x1cb   : > { %2206 = vmatpush1.bf16.msra.mxu1 %v11486_v50 }
 0x1cc   : > { %2207 = vmatprep.subr.bf16.mxu1 %v11491_v53 }
 0x1cf   : > { %2208 = vmatpush1.bf16.msra.mxu1 %v11489_v61 }
 0x1d0   : > { %2209 = vmatprep.subr.bf16.mxu1 %v11494_v63 }
 0x1d3   : > { %2210 = vmatpush1.bf16.msra.mxu1 %v11492_v2 }
 0x1d4   : > { %2211 = vmatprep.subr.bf16.mxu1 %v11497_v47 }
 0x219   : > { %v1245_v20 = vpop.f32.mrb[0].mxu1 }
 0x21a   : > { %v1246_v22 = vadd.f32 %v1245_v20, %v13112_v49  ;;  %v1247_v6 = vpop.f32.mrb[1].mxu1 }
 0x21b   : > { %v1248_v26 = vadd.f32 %v1247_v6, %v13115_v4  ;;  %v1249_v7 = vpop.f32.mrb[2].mxu1 }
 0x21c   : > { %v1250_v27 = vadd.f32 %v1249_v7, %v13112_v49  ;;  %v1251_v11 = vpop.f32.mrb[3].mxu1  ;;  %v1404_v32 = vmax.f32 %v1246_v22, 0.0 }
 0x21d   : > { %v1252_v12 = vadd.f32 %v1251_v11, %v13115_v4  ;;  %v1405_v17 = vmax.f32 %v1248_v26, 0.0  ;;  %v11495_v26 = vld [vmem:[#allocation4 + $0x2a0] ss:$8 sps:$4 sm:$0xff]   ;;  %v11500_v11 = vld [vmem:[#allocation4 + $0x2b4] ss:$8 sps:$4 sm:$0xff]  }
 0x21e   : > { %v1406_v13 = vmax.f32 %v1250_v27, 0.0  ;;  %2212 = vmatpush1.bf16.msra.mxu1 %v11495_v26 }
 0x21f   : > { %v1407_v18 = vmax.f32 %v1252_v12, 0.0  ;;  %2213 = vmatprep.subr.bf16.mxu1 %v11500_v11 }
 0x220   : > { %v1468_v19 = vpack.c.bf16 %v1406_v13, %v1404_v32 }
 0x221   : > { %v1255_v24 = vpop.f32.mrb[4].mxu1  ;;  %v1469_v25 = vpack.c.bf16 %v1407_v18, %v1405_v17  ;;  %v11503_v17 = vld [vmem:[#allocation4 + $0x2c4] ss:$8 sps:$4 sm:$0xff]  }
 0x222   : > { %v1256_v30 = vadd.f32 %v1255_v24, %v13112_v49  ;;  %v1257_v31 = vpop.f32.mrb[5].mxu1  ;;  %2214 = vmatpush1.bf16.msra.mxu1 %v11498_v46 }
 0x223   : > { %v1258_v33 = vadd.f32 %v1257_v31, %v13115_v4  ;;  %v1259_v34 = vpop.f32.mrb[6].mxu1  ;;  %1733 = vmatprep.mubr.bf16.mxu0 %v1469_v25  ;;  %v11501_v31 = vld [vmem:[#allocation4 + $0x2c0] ss:$8 sps:$4 sm:$0xff]   ;;  %2215 = vmatprep.subr.bf16.mxu1 %v11503_v17 }
 0x224   : > { %v1260_v35 = vadd.f32 %v1259_v34, %v13112_v49  ;;  %v1261_v36 = vpop.f32.mrb[7].mxu1  ;;  %1734 = vmatmul.mubr.bf16.vlgmr.msra.gmra.mrb[64].mxu0 %v1468_v19  ;;  %v1408_v40 = vmax.f32 %v1256_v30, 0.0 }
 0x225   : > { %v1262_v38 = vadd.f32 %v1261_v36, %v13115_v4  ;;  %v1409_v43 = vmax.f32 %v1258_v33, 0.0 }
 0x226   : > { %v1410_v42 = vmax.f32 %v1260_v35, 0.0  ;;  %v11506_v35 = vld [vmem:[#allocation4 + $0x2d4] ss:$8 sps:$4 sm:$0xff]   ;;  %2216 = vmatpush1.bf16.msra.mxu1 %v11501_v31 }
 0x227   : > { %v1411_v44 = vmax.f32 %v1262_v38, 0.0  ;;  %2217 = vmatprep.subr.bf16.mxu1 %v11506_v35 }
 0x228   : > { %v1470_v48 = vpack.c.bf16 %v1410_v42, %v1408_v40 }
 0x229   : > { %v1265_v51 = vpop.f32.mrb[8].mxu1  ;;  %v1471_v52 = vpack.c.bf16 %v1411_v44, %v1409_v43  ;;  %v11509_v43 = vld [vmem:[#allocation4 + $0x2e4] ss:$8 sps:$4 sm:$0xff]  }
 0x22a   : > { %v1266_v54 = vadd.f32 %v1265_v51, %v13112_v49  ;;  %v1267_v56 = vpop.f32.mrb[9].mxu1  ;;  %2218 = vmatpush1.bf16.msra.mxu1 %v11504_v39 }
 0x22b   : > { %v1268_v57 = vadd.f32 %v1267_v56, %v13115_v4  ;;  %v1269_v58 = vpop.f32.mrb[10].mxu1  ;;  %1743 = vmatprep.mubr.bf16.mxu0 %v1471_v52  ;;  %v11507_v56 = vld [vmem:[#allocation4 + $0x2e0] ss:$8 sps:$4 sm:$0xff]   ;;  %2219 = vmatprep.subr.bf16.mxu1 %v11509_v43 }
 0x22c   : > { %v1270_v59 = vadd.f32 %v1269_v58, %v13112_v49  ;;  %v1271_v60 = vpop.f32.mrb[11].mxu1  ;;  %1744 = vmatmul.mubr.bf16.gmra.mrb[68].mxu0 %v1470_v48  ;;  %v1412_v1 = vmax.f32 %v1266_v54, 0.0 }
 0x22d   : > { %v1272_v62 = vadd.f32 %v1271_v60, %v13115_v4  ;;  %v1413_v8 = vmax.f32 %v1268_v57, 0.0 }
 0x22e   : > { %v1414_v0 = vmax.f32 %v1270_v59, 0.0  ;;  %2220 = vmatpush1.bf16.msra.mxu1 %v11507_v56 }
 0x22f   : > { %v1415_v9 = vmax.f32 %v1272_v62, 0.0 }
 0x230   : > { %v1472_v10 = vpack.c.bf16 %v1414_v0, %v1412_v1 }
 0x231   : > { %v1275_v14 = vpop.f32.mrb[12].mxu1  ;;  %v1473_v3 = vpack.c.bf16 %v1415_v9, %v1413_v8 }
 0x232   : > { %v1276_v15 = vadd.f32 %v1275_v14, %v13112_v49  ;;  %v1277_v16 = vpop.f32.mrb[13].mxu1 }
 0x233   : > { %v1278_v20 = vadd.f32 %v1277_v16, %v13115_v4  ;;  %1753 = vmatprep.mubr.bf16.mxu0 %v1473_v3  ;;  %v1279_v5 = vpop.f32.mrb[14].mxu1 }
 0x234   : > { %v1416_v21 = vmax.f32 %v1276_v15, 0.0  ;;  %v1280_v22 = vadd.f32 %v1279_v5, %v13112_v49  ;;  %1754 = vmatmul.mubr.bf16.gmra.mrb[72].mxu0 %v1472_v10  ;;  %v1281_v6 = vpop.f32.mrb[15].mxu1 }
 0x235   : > { %v1417_v7 = vmax.f32 %v1278_v20, 0.0  ;;  %v1282_v27 = vadd.f32 %v1281_v6, %v13115_v4 }
 0x236   : > { %v1418_v28 = vmax.f32 %v1280_v22, 0.0 }
 0x237   : > { %v1419_v45 = vmax.f32 %v1282_v27, 0.0 }
 0x238   : > { %v1474_v12 = vpack.c.bf16 %v1418_v28, %v1416_v21 }
 0x239   : > { %v1285_v32 = vpop.f32.mrb[16].mxu1  ;;  %v1475_v13 = vpack.c.bf16 %v1419_v45, %v1417_v7 }
 0x23a   : > { %v1286_v18 = vadd.f32 %v1285_v32, %v13112_v49  ;;  %v1287_v19 = vpop.f32.mrb[17].mxu1 }
 0x23b   : > { %v1288_v23 = vadd.f32 %v1287_v19, %v13115_v4  ;;  %v1289_v24 = vpop.f32.mrb[18].mxu1  ;;  %1763 = vmatprep.mubr.bf16.mxu0 %v1475_v13 }
 0x23c   : > { %v1420_v25 = vmax.f32 %v1286_v18, 0.0  ;;  %v1290_v29 = vadd.f32 %v1289_v24, %v13112_v49  ;;  %v1291_v30 = vpop.f32.mrb[19].mxu1  ;;  %1764 = vmatmul.mubr.bf16.gmra.mrb[76].mxu0 %v1474_v12 }
 0x23d   : > { %v1421_v33 = vmax.f32 %v1288_v23, 0.0  ;;  %v1292_v34 = vadd.f32 %v1291_v30, %v13115_v4 }
 0x23e   : > { %v1422_v36 = vmax.f32 %v1290_v29, 0.0 }
 0x23f   : > { %v1423_v37 = vmax.f32 %v1292_v34, 0.0 }
 0x240   : > { %v1476_v38 = vpack.c.bf16 %v1422_v36, %v1420_v25 }
 0x241   : > { %v1295_v40 = vpop.f32.mrb[20].mxu1  ;;  %v1477_v42 = vpack.c.bf16 %v1423_v37, %v1421_v33 }
 0x242   : > { %v1296_v44 = vadd.f32 %v1295_v40, %v13112_v49  ;;  %v1297_v48 = vpop.f32.mrb[21].mxu1 }
 0x243   : > { %v1298_v50 = vadd.f32 %v1297_v48, %v13115_v4  ;;  %v1299_v51 = vpop.f32.mrb[22].mxu1  ;;  %1773 = vmatprep.mubr.bf16.mxu0 %v1477_v42 }
 0x244   : > { %v1424_v52 = vmax.f32 %v1296_v44, 0.0  ;;  %v1300_v53 = vadd.f32 %v1299_v51, %v13112_v49  ;;  %v1301_v54 = vpop.f32.mrb[23].mxu1  ;;  %1774 = vmatmul.mubr.bf16.gmra.mrb[80].mxu0 %v1476_v38 }
 0x245   : > { %v1425_v57 = vmax.f32 %v1298_v50, 0.0  ;;  %v1302_v58 = vadd.f32 %v1301_v54, %v13115_v4 }
 0x246   : > { %v1426_v59 = vmax.f32 %v1300_v53, 0.0 }
 0x247   : > { %v1427_v60 = vmax.f32 %v1302_v58, 0.0 }
 0x248   : > { %v1478_v61 = vpack.c.bf16 %v1426_v59, %v1424_v52 }
 0x249   : > { %v1305_v62 = vpop.f32.mrb[24].mxu1  ;;  %v1479_v63 = vpack.c.bf16 %v1427_v60, %v1425_v57 }
 0x24a   : > { %v1306_v1 = vadd.f32 %v1305_v62, %v13112_v49  ;;  %v1307_v0 = vpop.f32.mrb[25].mxu1 }
 0x24b   : > { %v1308_v8 = vadd.f32 %v1307_v0, %v13115_v4  ;;  %v1309_v9 = vpop.f32.mrb[26].mxu1  ;;  %1783 = vmatprep.mubr.bf16.mxu0 %v1479_v63 }
 0x24c   : > { %v1428_v10 = vmax.f32 %v1306_v1, 0.0  ;;  %v1310_v2 = vadd.f32 %v1309_v9, %v13112_v49  ;;  %v1311_v14 = vpop.f32.mrb[27].mxu1  ;;  %1784 = vmatmul.mubr.bf16.gmra.mrb[84].mxu0 %v1478_v61 }
 0x24d   : > { %v1429_v3 = vmax.f32 %v1308_v8, 0.0  ;;  %v1312_v47 = vadd.f32 %v1311_v14, %v13115_v4 }
 0x24e   : > { %v1430_v15 = vmax.f32 %v1310_v2, 0.0 }
 0x24f   : > { %v1431_v16 = vmax.f32 %v1312_v47, 0.0 }
 0x250   : > { %v1480_v20 = vpack.c.bf16 %v1430_v15, %v1428_v10 }
 0x251   : > { %v1315_v5 = vpop.f32.mrb[28].mxu1  ;;  %v1481_v21 = vpack.c.bf16 %v1431_v16, %v1429_v3 }
 0x252   : > { %v1316_v22 = vadd.f32 %v1315_v5, %v13112_v49  ;;  %v1317_v6 = vpop.f32.mrb[29].mxu1 }
 0x253   : > { %v1318_v26 = vadd.f32 %v1317_v6, %v13115_v4  ;;  %v1319_v7 = vpop.f32.mrb[30].mxu1  ;;  %1793 = vmatprep.mubr.bf16.mxu0 %v1481_v21 }
 0x254   : > { %v1432_v27 = vmax.f32 %v1316_v22, 0.0  ;;  %v1320_v11 = vadd.f32 %v1319_v7, %v13112_v49  ;;  %v1321_v28 = vpop.f32.mrb[31].mxu1  ;;  %1794 = vmatmul.mubr.bf16.gmra.mrb[88].mxu0 %v1480_v20 }
 0x255   : > { %v1433_v45 = vmax.f32 %v1318_v26, 0.0  ;;  %v1322_v12 = vadd.f32 %v1321_v28, %v13115_v4 }
 0x256   : > { %v1434_v46 = vmax.f32 %v1320_v11, 0.0 }
 0x257   : > { %v1435_v32 = vmax.f32 %v1322_v12, 0.0 }
 0x258   : > { %v1482_v13 = vpack.c.bf16 %v1434_v46, %v1432_v27 }
 0x259   : > { %v1325_v17 = vpop.f32.mrb[32].mxu1  ;;  %v1483_v18 = vpack.c.bf16 %v1435_v32, %v1433_v45 }
 0x25a   : > { %v1326_v19 = vadd.f32 %v1325_v17, %v13112_v49  ;;  %v1327_v23 = vpop.f32.mrb[33].mxu1 }
 0x25b   : > { %v1328_v24 = vadd.f32 %v1327_v23, %v13115_v4  ;;  %v1329_v25 = vpop.f32.mrb[34].mxu1  ;;  %1803 = vmatprep.mubr.bf16.mxu0 %v1483_v18 }
 0x25c   : > { %v1436_v29 = vmax.f32 %v1326_v19, 0.0  ;;  %v1330_v30 = vadd.f32 %v1329_v25, %v13112_v49  ;;  %v1331_v31 = vpop.f32.mrb[35].mxu1  ;;  %1804 = vmatmul.mubr.bf16.gmra.mrb[92].mxu0 %v1482_v13  ;;  %v11512_v25 = vld [vmem:[#allocation4 + $0x2f4] ss:$8 sps:$4 sm:$0xff]  }
 0x25d   : > { %v1437_v33 = vmax.f32 %v1328_v24, 0.0  ;;  %v1332_v34 = vadd.f32 %v1331_v31, %v13115_v4  ;;  %v11510_v31 = vld [vmem:[#allocation4 + $0x2f0] ss:$8 sps:$4 sm:$0xff]   ;;  %2221 = vmatprep.subr.bf16.mxu1 %v11512_v25 }
 0x25e   : > { %v1438_v35 = vmax.f32 %v1330_v30, 0.0  ;;  %2222 = vmatpush1.bf16.msra.mxu1 %v11510_v31  ;;  %v11522_v25 = vld [vmem:[#allocation4 + $0x330] ss:$8 sps:$4 sm:$0xff]  }
 0x25f   : > { %v1439_v36 = vmax.f32 %v1332_v34, 0.0 }
 0x260   : > { %v1484_v37 = vpack.c.bf16 %v1438_v35, %v1436_v29 }
 0x261   : > { %v1335_v38 = vpop.f32.mrb[36].mxu1  ;;  %v1485_v39 = vpack.c.bf16 %v1439_v36, %v1437_v33 }
 0x262   : > { %v1336_v40 = vadd.f32 %v1335_v38, %v13112_v49  ;;  %v1337_v42 = vpop.f32.mrb[37].mxu1 }
 0x263   : > { %v1338_v43 = vadd.f32 %v1337_v42, %v13115_v4  ;;  %v1339_v44 = vpop.f32.mrb[38].mxu1  ;;  %1813 = vmatprep.mubr.bf16.mxu0 %v1485_v39 }
 0x264   : > { %v1440_v48 = vmax.f32 %v1336_v40, 0.0  ;;  %v1340_v50 = vadd.f32 %v1339_v44, %v13112_v49  ;;  %v1341_v51 = vpop.f32.mrb[39].mxu1  ;;  %1814 = vmatmul.mubr.bf16.gmra.mrb[96].mxu0 %v1484_v37 }
 0x265   : > { %v1441_v52 = vmax.f32 %v1338_v43, 0.0  ;;  %v1342_v53 = vadd.f32 %v1341_v51, %v13115_v4 }
 0x266   : > { %v1442_v54 = vmax.f32 %v1340_v50, 0.0 }
 0x267   : > { %v1443_v56 = vmax.f32 %v1342_v53, 0.0 }
 0x268   : > { %v1486_v57 = vpack.c.bf16 %v1442_v54, %v1440_v48 }
 0x269   : > { %v1345_v58 = vpop.f32.mrb[40].mxu1  ;;  %v1487_v59 = vpack.c.bf16 %v1443_v56, %v1441_v52 }
 0x26a   : > { %v1346_v60 = vadd.f32 %v1345_v58, %v13112_v49  ;;  %v1347_v61 = vpop.f32.mrb[41].mxu1 }
 0x26b   : > { %v1348_v62 = vadd.f32 %v1347_v61, %v13115_v4  ;;  %v1349_v63 = vpop.f32.mrb[42].mxu1  ;;  %1823 = vmatprep.mubr.bf16.mxu0 %v1487_v59 }
 0x26c   : > { %v1444_v1 = vmax.f32 %v1346_v60, 0.0  ;;  %v1350_v0 = vadd.f32 %v1349_v63, %v13112_v49  ;;  %v1351_v8 = vpop.f32.mrb[43].mxu1  ;;  %1824 = vmatmul.mubr.bf16.gmra.mrb[100].mxu0 %v1486_v57 }
 0x26d   : > { %v1445_v9 = vmax.f32 %v1348_v62, 0.0  ;;  %v1352_v10 = vadd.f32 %v1351_v8, %v13115_v4 }
 0x26e   : > { %v1446_v2 = vmax.f32 %v1350_v0, 0.0 }
 0x26f   : > { %v1447_v14 = vmax.f32 %v1352_v10, 0.0 }
 0x270   : > { %v1488_v3 = vpack.c.bf16 %v1446_v2, %v1444_v1 }
 0x271   : > { %v1355_v47 = vpop.f32.mrb[44].mxu1  ;;  %v1489_v15 = vpack.c.bf16 %v1447_v14, %v1445_v9 }
 0x272   : > { %v1356_v16 = vadd.f32 %v1355_v47, %v13112_v49  ;;  %v1357_v20 = vpop.f32.mrb[45].mxu1 }
 0x273   : > { %v1358_v5 = vadd.f32 %v1357_v20, %v13115_v4  ;;  %v1359_v21 = vpop.f32.mrb[46].mxu1  ;;  %1833 = vmatprep.mubr.bf16.mxu0 %v1489_v15 }
 0x274   : > { %v1448_v22 = vmax.f32 %v1356_v16, 0.0  ;;  %v1360_v6 = vadd.f32 %v1359_v21, %v13112_v49  ;;  %v1361_v26 = vpop.f32.mrb[47].mxu1  ;;  %1834 = vmatmul.mubr.bf16.gmra.mrb[104].mxu0 %v1488_v3 }
 0x275   : > { %v1449_v7 = vmax.f32 %v1358_v5, 0.0  ;;  %v1362_v27 = vadd.f32 %v1361_v26, %v13115_v4 }
 0x276   : > { %v1450_v11 = vmax.f32 %v1360_v6, 0.0 }
 0x277   : > { %v1451_v28 = vmax.f32 %v1362_v27, 0.0 }
 0x278   : > { %v1490_v45 = vpack.c.bf16 %v1450_v11, %v1448_v22 }
 0x279   : > { %v1365_v12 = vpop.f32.mrb[48].mxu1  ;;  %v1491_v46 = vpack.c.bf16 %v1451_v28, %v1449_v7 }
 0x27a   : > { %v1366_v32 = vadd.f32 %v1365_v12, %v13112_v49  ;;  %v1367_v13 = vpop.f32.mrb[49].mxu1  ;;  %v11515_v12 = vld [vmem:[#allocation4 + $0x304] ss:$8 sps:$4 sm:$0xff]  }
 0x27b   : > { %v1368_v17 = vadd.f32 %v1367_v13, %v13115_v4  ;;  %v1369_v18 = vpop.f32.mrb[50].mxu1  ;;  %1843 = vmatprep.mubr.bf16.mxu0 %v1491_v46  ;;  %2681 = vmatprep.subr.bf16.mxu0 %v11515_v12  ;;  %v11516_v46 = vld [vmem:[#allocation4 + $0x310] ss:$8 sps:$4 sm:$0xff]   ;;  %v11521_v13 = vld [vmem:[#allocation4 + $0x324] ss:$8 sps:$4 sm:$0xff]  }
 0x27c   : > { %v1452_v19 = vmax.f32 %v1366_v32, 0.0  ;;  %v1370_v23 = vadd.f32 %v1369_v18, %v13112_v49  ;;  %v1371_v24 = vpop.f32.mrb[51].mxu1  ;;  %1844 = vmatmul.mubr.bf16.gmra.mrb[108].mxu0 %v1490_v45  ;;  %v11513_v45 = vld [vmem:[#allocation4 + $0x300] ss:$8 sps:$4 sm:$0xff]   ;;  %v11518_v32 = vld [vmem:[#allocation4 + $0x314] ss:$8 sps:$4 sm:$0xff]  }
 0x27d   : > { %v1453_v29 = vmax.f32 %v1368_v17, 0.0  ;;  %v1372_v30 = vadd.f32 %v1371_v24, %v13115_v4  ;;  %2682 = vmatpush1.bf16.msra.mxu0 %v11513_v45  ;;  %v1535_v17 = vsub.s32 2, %v13027_v41 }
 0x27e   : > { %v1454_v33 = vmax.f32 %v1370_v23, 0.0  ;;  %2683 = vmatprep.subr.bf16.mxu0 %v11518_v32  ;;  %v11540_v32 = vld [vmem:[#allocation4 + $0x390] ss:$8 sps:$4 sm:$0xff]  }
 0x27f   : > { %v1455_v34 = vmax.f32 %v1372_v30, 0.0 }
 0x280   : > { %v1492_v35 = vpack.c.bf16 %v1454_v33, %v1452_v19  ;;  %v13193_v19 = vld [vmem:[%s15903_s5 + $0x8] sm:$0xff] }
 0x281   : > { %v1375_v36 = vpop.f32.mrb[52].mxu1  ;;  %v1493_v37 = vpack.c.bf16 %v1455_v34, %v1453_v29  ;;  %2684 = vmatpush1.bf16.msra.mxu0 %v11516_v46  ;;  %v13196_v23 = vrot.slane %v13193_v19, %v1535_v17  ;;  %v11524_v29 = vld [vmem:[#allocation4 + $0x334] ss:$8 sps:$4 sm:$0xff]  }
 0x282   : > { %v1376_v38 = vadd.f32 %v1375_v36, %v13112_v49  ;;  %v1377_v39 = vpop.f32.mrb[53].mxu1  ;;  %2685 = vmatprep.subr.bf16.mxu0 %v11521_v13 }
 0x283   : > { %v1378_v40 = vadd.f32 %v1377_v39, %v13115_v4  ;;  %v1379_v42 = vpop.f32.mrb[54].mxu1  ;;  %1853 = vmatprep.mubr.bf16.mxu0 %v1493_v37  ;;  %v11525_v37 = vld [vmem:[#allocation4 + $0x340] ss:$8 sps:$4 sm:$0xff]  }
 0x284   : > { %v1456_v43 = vmax.f32 %v1376_v38, 0.0  ;;  %v1380_v44 = vadd.f32 %v1379_v42, %v13112_v49  ;;  %v1381_v48 = vpop.f32.mrb[55].mxu1  ;;  %1854 = vmatmul.mubr.bf16.gmra.mrb[112].mxu0 %v1492_v35  ;;  %v11527_v38 = vld [vmem:[#allocation4 + $0x344] ss:$8 sps:$4 sm:$0xff]  }
 0x285   : > { %v1457_v50 = vmax.f32 %v1378_v40, 0.0  ;;  %v1382_v51 = vadd.f32 %v1381_v48, %v13115_v4  ;;  %v11530_v40 = vld [vmem:[#allocation4 + $0x354] ss:$8 sps:$4 sm:$0xff]  }
 0x286   : > { %v1458_v52 = vmax.f32 %v1380_v44, 0.0 }
 0x287   : > { %v1459_v53 = vmax.f32 %v1382_v51, 0.0  ;;  %v11528_v51 = vld [vmem:[#allocation4 + $0x350] ss:$8 sps:$4 sm:$0xff]  }
 0x288   : > { %v1494_v54 = vpack.c.bf16 %v1458_v52, %v1456_v43 }
 0x289   : > { %v1495_v56 = vpack.c.bf16 %v1459_v53, %v1457_v50  ;;  %v1385_v57 = vpop.f32.mrb[56].mxu1 }
 0x28a   : > { %v1386_v58 = vadd.f32 %v1385_v57, %v13112_v49  ;;  %v1387_v59 = vpop.f32.mrb[57].mxu1 }
 0x28b   : > { %v1388_v60 = vadd.f32 %v1387_v59, %v13115_v4  ;;  %v1389_v61 = vpop.f32.mrb[58].mxu1  ;;  %1863 = vmatprep.mubr.bf16.mxu0 %v1495_v56 }
 0x28c   : > { %v1460_v62 = vmax.f32 %v1386_v58, 0.0  ;;  %v1390_v63 = vadd.f32 %v1389_v61, %v13112_v49  ;;  %v1391_v1 = vpop.f32.mrb[59].mxu1  ;;  %1864 = vmatmul.mubr.bf16.gmra.mrb[116].mxu0 %v1494_v54  ;;  %v11533_v54 = vld [vmem:[#allocation4 + $0x364] ss:$8 sps:$4 sm:$0xff]  }
 0x28d   : > { %v1461_v0 = vmax.f32 %v1388_v60, 0.0  ;;  %v1392_v8 = vadd.f32 %v1391_v1, %v13115_v4  ;;  %v11536_v1 = vld [vmem:[#allocation4 + $0x374] ss:$8 sps:$4 sm:$0xff]  }
 0x28e   : > { %v1462_v9 = vmax.f32 %v1390_v63, 0.0 }
 0x28f   : > { %v1463_v10 = vmax.f32 %v1392_v8, 0.0 }
 0x290   : > { %v1496_v2 = vpack.c.bf16 %v1462_v9, %v1460_v62  ;;  %v11531_v62 = vld [vmem:[#allocation4 + $0x360] ss:$8 sps:$4 sm:$0xff]  }
 0x291   : > { %v1497_v14 = vpack.c.bf16 %v1463_v10, %v1461_v0  ;;  %v1395_v3 = vpop.f32.mrb[60].mxu1 }
 0x292   : > { %v1396_v47 = vadd.f32 %v1395_v3, %v13112_v49  ;;  %v1397_v15 = vpop.f32.mrb[61].mxu1 }
 0x293   : > { %v1398_v16 = vadd.f32 %v1397_v15, %v13115_v4  ;;  %v1399_v20 = vpop.f32.mrb[62].mxu1  ;;  %1873 = vmatprep.mubr.bf16.mxu0 %v1497_v14  ;;  %v11534_v14 = vld [vmem:[#allocation4 + $0x370] ss:$8 sps:$4 sm:$0xff]   ;;  %v11539_v15 = vld [vmem:[#allocation4 + $0x384] ss:$8 sps:$4 sm:$0xff]  }
 0x294   : > { %v1464_v5 = vmax.f32 %v1396_v47, 0.0  ;;  %v1400_v21 = vadd.f32 %v1399_v20, %v13112_v49  ;;  %v1401_v22 = vpop.f32.mrb[63].mxu1  ;;  %1874 = vmatmul.mubr.bf16.gmra.mrb[120].mxu0 %v1496_v2  ;;  %v11519_v49 = vld [vmem:[#allocation4 + $0x320] ss:$8 sps:$4 sm:$0xff]  }
 0x295   : > { %v1465_v6 = vmax.f32 %v1398_v16, 0.0  ;;  %v1402_v26 = vadd.f32 %v1401_v22, %v13115_v4  ;;  %2686 = vmatpush1.bf16.msra.mxu0 %v11519_v49  ;;  %v13185_v4 = vld [vmem:[%s15903_s5] sm:$0xff] }
 0x296   : > { %v1466_v7 = vmax.f32 %v1400_v21, 0.0  ;;  %v13188_v18 = vrot.slane %v13185_v4, %v1535_v17  ;;  %2687 = vmatprep.subr.bf16.mxu0 %v11524_v29  ;;  %v11545_v17 = vld [vmem:[#allocation4 + $0x3a4] ss:$8 sps:$4 sm:$0xff]  }
 0x297   : > { %v1467_v27 = vmax.f32 %v1402_v26, 0.0  ;;  %v11537_v26 = vld [vmem:[#allocation4 + $0x380] ss:$8 sps:$4 sm:$0xff]  }
 0x298   : > { %v1498_v11 = vpack.c.bf16 %v1466_v7, %v1464_v5 }
 0x299   : > { %v1499_v28 = vpack.c.bf16 %v1467_v27, %v1465_v6  ;;  %2688 = vmatpush1.bf16.msra.mxu0 %v11522_v25  ;;  %v11542_v27 = vld [vmem:[#allocation4 + $0x394] ss:$8 sps:$4 sm:$0xff]  }
 0x29a   : > { %2689 = vmatprep.subr.bf16.mxu0 %v11527_v38  ;;  %v11548_v38 = vld [vmem:[#allocation4 + $0x3b4] ss:$8 sps:$4 sm:$0xff]  }
 0x29b   : > { %1883 = vmatprep.mubr.bf16.mxu0 %v1499_v28 }
 0x29c   : > { %1884 = vmatmul.mubr.bf16.gmra.mrb[124].mxu0 %v1498_v11 }
 0x29d   : > { %2690 = vmatpush1.bf16.msra.mxu0 %v11525_v37 }
 0x29e   : > { %2691 = vmatprep.subr.bf16.mxu0 %v11530_v40 }
 0x2a1   : > { %2692 = vmatpush1.bf16.msra.mxu0 %v11528_v51 }
 0x2a2   : > { %2693 = vmatprep.subr.bf16.mxu0 %v11533_v54 }
 0x2a5   : > { %2694 = vmatpush1.bf16.msra.mxu0 %v11531_v62  ;;  %v11554_v62 = vld [vmem:[#allocation4 + $0x3d4] ss:$8 sps:$4 sm:$0xff]  }
 0x2a6   : > { %2695 = vmatprep.subr.bf16.mxu0 %v11536_v1 }
 0x2a9   : > { %2696 = vmatpush1.bf16.msra.mxu0 %v11534_v14 }
 0x2aa   : > { %2697 = vmatprep.subr.bf16.mxu0 %v11539_v15 }
 0x2ad   : > { %2698 = vmatpush1.bf16.msra.mxu0 %v11537_v26 }
 0x2ae   : > { %2699 = vmatprep.subr.bf16.mxu0 %v11542_v27 }
 0x2b1   : > { %2700 = vmatpush1.bf16.msra.mxu0 %v11540_v32 }
 0x2b2   : > { %2701 = vmatprep.subr.bf16.mxu0 %v11545_v17 }
 0x2f7   : > { %v1735_v24 = vpop.f32.mrb[64].mxu0 }
 0x2f8   : > { %v1736_v30 = vadd.f32 %v1735_v24, %v13188_v18  ;;  %v1737_v31 = vpop.f32.mrb[65].mxu0 }
 0x2f9   : > { %v1738_v33 = vadd.f32 %v1737_v31, %v13196_v23  ;;  %v1739_v34 = vpop.f32.mrb[66].mxu0 }
 0x2fa   : > { %v1740_v35 = vadd.f32 %v1739_v34, %v13188_v18  ;;  %v1741_v36 = vpop.f32.mrb[67].mxu0  ;;  %v1894_v42 = vmax.f32 %v1736_v30, 0.0 }
 0x2fb   : > { %v1742_v39 = vadd.f32 %v1741_v36, %v13196_v23  ;;  %v1895_v44 = vmax.f32 %v1738_v33, 0.0 }
 0x2fc   : > { %v1896_v43 = vmax.f32 %v1740_v35, 0.0  ;;  %v11543_v35 = vld [vmem:[#allocation4 + $0x3a0] ss:$8 sps:$4 sm:$0xff]  }
 0x2fd   : > { %v1897_v48 = vmax.f32 %v1742_v39, 0.0  ;;  %2702 = vmatpush1.bf16.msra.mxu0 %v11543_v35 }
 0x2fe   : > { %v1958_v50 = vpack.c.bf16 %v1896_v43, %v1894_v42  ;;  %v11546_v43 = vld [vmem:[#allocation4 + $0x3b0] ss:$8 sps:$4 sm:$0xff]   ;;  %2703 = vmatprep.subr.bf16.mxu0 %v11548_v38 }
 0x2ff   : > { %v1745_v52 = vpop.f32.mrb[68].mxu0  ;;  %v1959_v53 = vpack.c.bf16 %v1897_v48, %v1895_v44 }
 0x300   : > { %v1746_v56 = vadd.f32 %v1745_v52, %v13188_v18  ;;  %v1747_v57 = vpop.f32.mrb[69].mxu0 }
 0x301   : > { %v1748_v58 = vadd.f32 %v1747_v57, %v13196_v23  ;;  %v1749_v59 = vpop.f32.mrb[70].mxu0  ;;  %2223 = vmatprep.mubr.bf16.mxu1 %v1959_v53  ;;  %2704 = vmatpush1.bf16.msra.mxu0 %v11546_v43 }
 0x302   : > { %v1750_v60 = vadd.f32 %v1749_v59, %v13188_v18  ;;  %v1751_v61 = vpop.f32.mrb[71].mxu0  ;;  %2224 = vmatmul.mubr.bf16.vlgmr.msra.gmra.mrb[64].mxu1 %v1958_v50  ;;  %v1898_v0 = vmax.f32 %v1746_v56, 0.0  ;;  %v11551_v50 = vld [vmem:[#allocation4 + $0x3c4] ss:$8 sps:$4 sm:$0xff]   ;;  %v11549_v59 = vld [vmem:[#allocation4 + $0x3c0] ss:$8 sps:$4 sm:$0xff]  }
 0x303   : > { %v1752_v63 = vadd.f32 %v1751_v61, %v13196_v23  ;;  %v1899_v9 = vmax.f32 %v1748_v58, 0.0  ;;  %2705 = vmatprep.subr.bf16.mxu0 %v11551_v50 }
 0x304   : > { %v1900_v8 = vmax.f32 %v1750_v60, 0.0 }
 0x305   : > { %v1901_v10 = vmax.f32 %v1752_v63, 0.0  ;;  %2706 = vmatpush1.bf16.msra.mxu0 %v11549_v59 }
 0x306   : > { %v1960_v2 = vpack.c.bf16 %v1900_v8, %v1898_v0  ;;  %v11552_v8 = vld [vmem:[#allocation4 + $0x3d0] ss:$8 sps:$4 sm:$0xff]   ;;  %2707 = vmatprep.subr.bf16.mxu0 %v11554_v62 }
 0x307   : > { %v1755_v3 = vpop.f32.mrb[72].mxu0  ;;  %v1961_v47 = vpack.c.bf16 %v1901_v10, %v1899_v9 }
 0x308   : > { %v1756_v16 = vadd.f32 %v1755_v3, %v13188_v18  ;;  %v1757_v20 = vpop.f32.mrb[73].mxu0 }
 0x309   : > { %v1758_v5 = vadd.f32 %v1757_v20, %v13196_v23  ;;  %v1759_v21 = vpop.f32.mrb[74].mxu0  ;;  %2233 = vmatprep.mubr.bf16.mxu1 %v1961_v47  ;;  %2708 = vmatpush1.bf16.msra.mxu0 %v11552_v8 }
 0x30a   : > { %v1760_v22 = vadd.f32 %v1759_v21, %v13188_v18  ;;  %v1761_v6 = vpop.f32.mrb[75].mxu0  ;;  %2234 = vmatmul.mubr.bf16.gmra.mrb[68].mxu1 %v1960_v2  ;;  %v1902_v11 = vmax.f32 %v1756_v16, 0.0  ;;  %v11557_v2 = vld [vmem:[#allocation4 + $0x3e4] ss:$8 sps:$4 sm:$0xff]   ;;  %v11555_v21 = vld [vmem:[#allocation4 + $0x3e0] ss:$8 sps:$4 sm:$0xff]  }
 0x30b   : > { %v1762_v7 = vadd.f32 %v1761_v6, %v13196_v23  ;;  %v1903_v45 = vmax.f32 %v1758_v5, 0.0  ;;  %2709 = vmatprep.subr.bf16.mxu0 %v11557_v2 }
 0x30c   : > { %v1904_v28 = vmax.f32 %v1760_v22, 0.0 }
 0x30d   : > { %v1905_v12 = vmax.f32 %v1762_v7, 0.0  ;;  %2710 = vmatpush1.bf16.msra.mxu0 %v11555_v21 }
 0x30e   : > { %v1962_v46 = vpack.c.bf16 %v1904_v28, %v1902_v11 }
 0x30f   : > { %v1765_v49 = vpop.f32.mrb[76].mxu0  ;;  %v1963_v13 = vpack.c.bf16 %v1905_v12, %v1903_v45 }
 0x310   : > { %v1766_v24 = vadd.f32 %v1765_v49, %v13188_v18  ;;  %v1767_v25 = vpop.f32.mrb[77].mxu0 }
 0x311   : > { %v1768_v29 = vadd.f32 %v1767_v25, %v13196_v23  ;;  %2243 = vmatprep.mubr.bf16.mxu1 %v1963_v13  ;;  %v1769_v30 = vpop.f32.mrb[78].mxu0 }
 0x312   : > { %v1906_v31 = vmax.f32 %v1766_v24, 0.0  ;;  %v1770_v33 = vadd.f32 %v1769_v30, %v13188_v18  ;;  %2244 = vmatmul.mubr.bf16.gmra.mrb[72].mxu1 %v1962_v46  ;;  %v1771_v34 = vpop.f32.mrb[79].mxu0 }
 0x313   : > { %v1907_v36 = vmax.f32 %v1768_v29, 0.0  ;;  %v1772_v37 = vadd.f32 %v1771_v34, %v13196_v23 }
 0x314   : > { %v1908_v39 = vmax.f32 %v1770_v33, 0.0 }
 0x315   : > { %v1909_v40 = vmax.f32 %v1772_v37, 0.0 }
 0x316   : > { %v1964_v42 = vpack.c.bf16 %v1908_v39, %v1906_v31 }
 0x317   : > { %v1965_v44 = vpack.c.bf16 %v1909_v40, %v1907_v36  ;;  %v1775_v48 = vpop.f32.mrb[80].mxu0 }
 0x318   : > { %v1776_v51 = vadd.f32 %v1775_v48, %v13188_v18  ;;  %v1777_v52 = vpop.f32.mrb[81].mxu0 }
 0x319   : > { %v1778_v53 = vadd.f32 %v1777_v52, %v13196_v23  ;;  %v1779_v54 = vpop.f32.mrb[82].mxu0  ;;  %2253 = vmatprep.mubr.bf16.mxu1 %v1965_v44 }
 0x31a   : > { %v1910_v56 = vmax.f32 %v1776_v51, 0.0  ;;  %v1780_v57 = vadd.f32 %v1779_v54, %v13188_v18  ;;  %v1781_v58 = vpop.f32.mrb[83].mxu0  ;;  %2254 = vmatmul.mubr.bf16.gmra.mrb[76].mxu1 %v1964_v42 }
 0x31b   : > { %v1911_v60 = vmax.f32 %v1778_v53, 0.0  ;;  %v1782_v61 = vadd.f32 %v1781_v58, %v13196_v23 }
 0x31c   : > { %v1912_v63 = vmax.f32 %v1780_v57, 0.0 }
 0x31d   : > { %v1913_v1 = vmax.f32 %v1782_v61, 0.0 }
 0x31e   : > { %v1966_v0 = vpack.c.bf16 %v1912_v63, %v1910_v56 }
 0x31f   : > { %v1967_v9 = vpack.c.bf16 %v1913_v1, %v1911_v60  ;;  %v1785_v10 = vpop.f32.mrb[84].mxu0 }
 0x320   : > { %v1786_v14 = vadd.f32 %v1785_v10, %v13188_v18  ;;  %v1787_v3 = vpop.f32.mrb[85].mxu0 }
 0x321   : > { %v1788_v47 = vadd.f32 %v1787_v3, %v13196_v23  ;;  %v1789_v15 = vpop.f32.mrb[86].mxu0  ;;  %2263 = vmatprep.mubr.bf16.mxu1 %v1967_v9 }
 0x322   : > { %v1914_v16 = vmax.f32 %v1786_v14, 0.0  ;;  %v1790_v20 = vadd.f32 %v1789_v15, %v13188_v18  ;;  %v1791_v5 = vpop.f32.mrb[87].mxu0  ;;  %2264 = vmatmul.mubr.bf16.gmra.mrb[80].mxu1 %v1966_v0 }
 0x323   : > { %v1915_v22 = vmax.f32 %v1788_v47, 0.0  ;;  %v1792_v6 = vadd.f32 %v1791_v5, %v13196_v23 }
 0x324   : > { %v1916_v26 = vmax.f32 %v1790_v20, 0.0 }
 0x325   : > { %v1917_v7 = vmax.f32 %v1792_v6, 0.0 }
 0x326   : > { %v1968_v27 = vpack.c.bf16 %v1916_v26, %v1914_v16 }
 0x327   : > { %v1969_v11 = vpack.c.bf16 %v1917_v7, %v1915_v22  ;;  %v1795_v28 = vpop.f32.mrb[88].mxu0 }
 0x328   : > { %v1796_v45 = vadd.f32 %v1795_v28, %v13188_v18  ;;  %v1797_v12 = vpop.f32.mrb[89].mxu0 }
 0x329   : > { %v1798_v46 = vadd.f32 %v1797_v12, %v13196_v23  ;;  %v1799_v32 = vpop.f32.mrb[90].mxu0  ;;  %2273 = vmatprep.mubr.bf16.mxu1 %v1969_v11 }
 0x32a   : > { %v1918_v49 = vmax.f32 %v1796_v45, 0.0  ;;  %v1800_v13 = vadd.f32 %v1799_v32, %v13188_v18  ;;  %v1801_v17 = vpop.f32.mrb[91].mxu0  ;;  %2274 = vmatmul.mubr.bf16.gmra.mrb[84].mxu1 %v1968_v27 }
 0x32b   : > { %v1919_v24 = vmax.f32 %v1798_v46, 0.0  ;;  %v1802_v25 = vadd.f32 %v1801_v17, %v13196_v23 }
 0x32c   : > { %v1920_v29 = vmax.f32 %v1800_v13, 0.0 }
 0x32d   : > { %v1921_v30 = vmax.f32 %v1802_v25, 0.0 }
 0x32e   : > { %v1970_v31 = vpack.c.bf16 %v1920_v29, %v1918_v49 }
 0x32f   : > { %v1971_v33 = vpack.c.bf16 %v1921_v30, %v1919_v24  ;;  %v1805_v34 = vpop.f32.mrb[92].mxu0 }
 0x330   : > { %v1806_v35 = vadd.f32 %v1805_v34, %v13188_v18  ;;  %v1807_v36 = vpop.f32.mrb[93].mxu0 }
 0x331   : > { %v1808_v37 = vadd.f32 %v1807_v36, %v13196_v23  ;;  %v1809_v38 = vpop.f32.mrb[94].mxu0  ;;  %2283 = vmatprep.mubr.bf16.mxu1 %v1971_v33 }
 0x332   : > { %v1922_v39 = vmax.f32 %v1806_v35, 0.0  ;;  %v1810_v40 = vadd.f32 %v1809_v38, %v13188_v18  ;;  %v1811_v42 = vpop.f32.mrb[95].mxu0  ;;  %2284 = vmatmul.mubr.bf16.gmra.mrb[88].mxu1 %v1970_v31 }
 0x333   : > { %v1923_v43 = vmax.f32 %v1808_v37, 0.0  ;;  %v1812_v44 = vadd.f32 %v1811_v42, %v13196_v23 }
 0x334   : > { %v1924_v48 = vmax.f32 %v1810_v40, 0.0 }
 0x335   : > { %v1925_v50 = vmax.f32 %v1812_v44, 0.0 }
 0x336   : > { %v1972_v51 = vpack.c.bf16 %v1924_v48, %v1922_v39 }
 0x337   : > { %v1973_v52 = vpack.c.bf16 %v1925_v50, %v1923_v43  ;;  %v1815_v53 = vpop.f32.mrb[96].mxu0 }
 0x338   : > { %v1816_v54 = vadd.f32 %v1815_v53, %v13188_v18  ;;  %v1817_v56 = vpop.f32.mrb[97].mxu0 }
 0x339   : > { %v1818_v57 = vadd.f32 %v1817_v56, %v13196_v23  ;;  %v1819_v58 = vpop.f32.mrb[98].mxu0  ;;  %2293 = vmatprep.mubr.bf16.mxu1 %v1973_v52 }
 0x33a   : > { %v1926_v59 = vmax.f32 %v1816_v54, 0.0  ;;  %v1820_v60 = vadd.f32 %v1819_v58, %v13188_v18  ;;  %v1821_v61 = vpop.f32.mrb[99].mxu0  ;;  %2294 = vmatmul.mubr.bf16.gmra.mrb[92].mxu1 %v1972_v51 }
 0x33b   : > { %v1927_v62 = vmax.f32 %v1818_v57, 0.0  ;;  %v1822_v63 = vadd.f32 %v1821_v61, %v13196_v23 }
 0x33c   : > { %v1928_v1 = vmax.f32 %v1820_v60, 0.0  ;;  %v11560_v60 = vld [vmem:[#allocation4 + $0x3f4] ss:$8 sps:$4 sm:$0xff]  }
 0x33d   : > { %v1929_v0 = vmax.f32 %v1822_v63, 0.0  ;;  %v11558_v63 = vld [vmem:[#allocation4 + $0x3f0] ss:$8 sps:$4 sm:$0xff]   ;;  %2711 = vmatprep.subr.bf16.mxu0 %v11560_v60  ;;  %v13272_v60 = vld [vmem:[#allocation4 + $0x434] ss:$8 sps:$4 sm:$0xff]  }
 0x33e   : > { %v1974_v8 = vpack.c.bf16 %v1928_v1, %v1926_v59  ;;  %2712 = vmatpush1.bf16.msra.mxu0 %v11558_v63  ;;  %v13275_v63 = vld [vmem:[#allocation4 + $0x430] ss:$8 sps:$4 sm:$0xff]  }
 0x33f   : > { %v1975_v9 = vpack.c.bf16 %v1929_v0, %v1927_v62  ;;  %v1825_v10 = vpop.f32.mrb[100].mxu0 }
 0x340   : > { %v1826_v2 = vadd.f32 %v1825_v10, %v13188_v18  ;;  %v1827_v14 = vpop.f32.mrb[101].mxu0 }
 0x341   : > { %v1828_v3 = vadd.f32 %v1827_v14, %v13196_v23  ;;  %v1829_v47 = vpop.f32.mrb[102].mxu0  ;;  %2303 = vmatprep.mubr.bf16.mxu1 %v1975_v9 }
 0x342   : > { %v1930_v15 = vmax.f32 %v1826_v2, 0.0  ;;  %v1830_v16 = vadd.f32 %v1829_v47, %v13188_v18  ;;  %v1831_v20 = vpop.f32.mrb[103].mxu0  ;;  %2304 = vmatmul.mubr.bf16.gmra.mrb[96].mxu1 %v1974_v8 }
 0x343   : > { %v1931_v5 = vmax.f32 %v1828_v3, 0.0  ;;  %v1832_v21 = vadd.f32 %v1831_v20, %v13196_v23 }
 0x344   : > { %v1932_v22 = vmax.f32 %v1830_v16, 0.0 }
 0x345   : > { %v1933_v6 = vmax.f32 %v1832_v21, 0.0 }
 0x346   : > { %v1976_v26 = vpack.c.bf16 %v1932_v22, %v1930_v15 }
 0x347   : > { %v1977_v7 = vpack.c.bf16 %v1933_v6, %v1931_v5  ;;  %v1835_v27 = vpop.f32.mrb[104].mxu0 }
 0x348   : > { %v1836_v11 = vadd.f32 %v1835_v27, %v13188_v18  ;;  %v1837_v28 = vpop.f32.mrb[105].mxu0 }
 0x349   : > { %v1838_v45 = vadd.f32 %v1837_v28, %v13196_v23  ;;  %v1839_v12 = vpop.f32.mrb[106].mxu0  ;;  %2313 = vmatprep.mubr.bf16.mxu1 %v1977_v7 }
 0x34a   : > { %v1934_v46 = vmax.f32 %v1836_v11, 0.0  ;;  %v1840_v32 = vadd.f32 %v1839_v12, %v13188_v18  ;;  %v1841_v49 = vpop.f32.mrb[107].mxu0  ;;  %2314 = vmatmul.mubr.bf16.gmra.mrb[100].mxu1 %v1976_v26 }
 0x34b   : > { %v1935_v13 = vmax.f32 %v1838_v45, 0.0  ;;  %v1842_v17 = vadd.f32 %v1841_v49, %v13196_v23 }
 0x34c   : > { %v1936_v24 = vmax.f32 %v1840_v32, 0.0 }
 0x34d   : > { %v1937_v25 = vmax.f32 %v1842_v17, 0.0 }
 0x34e   : > { %v1978_v29 = vpack.c.bf16 %v1936_v24, %v1934_v46 }
 0x34f   : > { %v1979_v30 = vpack.c.bf16 %v1937_v25, %v1935_v13  ;;  %v1845_v31 = vpop.f32.mrb[108].mxu0 }
 0x350   : > { %v1846_v33 = vadd.f32 %v1845_v31, %v13188_v18  ;;  %v1847_v34 = vpop.f32.mrb[109].mxu0 }
 0x351   : > { %v1848_v35 = vadd.f32 %v1847_v34, %v13196_v23  ;;  %v1849_v36 = vpop.f32.mrb[110].mxu0  ;;  %2323 = vmatprep.mubr.bf16.mxu1 %v1979_v30 }
 0x352   : > { %v1938_v37 = vmax.f32 %v1846_v33, 0.0  ;;  %v1850_v38 = vadd.f32 %v1849_v36, %v13188_v18  ;;  %v1851_v39 = vpop.f32.mrb[111].mxu0  ;;  %2324 = vmatmul.mubr.bf16.gmra.mrb[104].mxu1 %v1978_v29 }
 0x353   : > { %v1939_v40 = vmax.f32 %v1848_v35, 0.0  ;;  %v1852_v42 = vadd.f32 %v1851_v39, %v13196_v23 }
 0x354   : > { %v1940_v43 = vmax.f32 %v1850_v38, 0.0 }
 0x355   : > { %v1941_v44 = vmax.f32 %v1852_v42, 0.0 }
 0x356   : > { %v1980_v48 = vpack.c.bf16 %v1940_v43, %v1938_v37 }
 0x357   : > { %v1981_v50 = vpack.c.bf16 %v1941_v44, %v1939_v40  ;;  %v1855_v51 = vpop.f32.mrb[112].mxu0 }
 0x358   : > { %v1856_v52 = vadd.f32 %v1855_v51, %v13188_v18  ;;  %v1857_v53 = vpop.f32.mrb[113].mxu0  ;;  %v11563_v51 = vld [vmem:[#allocation4 + $0x404] ss:$8 sps:$4 sm:$0xff]  }
 0x359   : > { %v1858_v54 = vadd.f32 %v1857_v53, %v13196_v23  ;;  %v1859_v56 = vpop.f32.mrb[114].mxu0  ;;  %2333 = vmatprep.mubr.bf16.mxu1 %v1981_v50  ;;  %3165 = vmatprep.subr.bf16.mxu0 %v11563_v51  ;;  %v11566_v53 = vld [vmem:[#allocation4 + $0x414] ss:$8 sps:$4 sm:$0xff]  }
 0x35a   : > { %v1942_v57 = vmax.f32 %v1856_v52, 0.0  ;;  %v1860_v58 = vadd.f32 %v1859_v56, %v13188_v18  ;;  %v1861_v59 = vpop.f32.mrb[115].mxu0  ;;  %2334 = vmatmul.mubr.bf16.gmra.mrb[108].mxu1 %v1980_v48  ;;  %v11561_v52 = vld [vmem:[#allocation4 + $0x400] ss:$8 sps:$4 sm:$0xff]   ;;  %10885 = vmatprep.subr.bf16.mxu1 %v11563_v51  ;;  %v2025_v56 = vsub.s32 3, %v13027_v41 }
 0x35b   : > { %v1943_v61 = vmax.f32 %v1858_v54, 0.0  ;;  %v1862_v62 = vadd.f32 %v1861_v59, %v13196_v23  ;;  %10901 = vmatpush1.bf16.msra.mxu1 %v11561_v52  ;;  %v11564_v54 = vld [vmem:[#allocation4 + $0x410] ss:$8 sps:$4 sm:$0xff]  }
 0x35c   : > { %v1944_v1 = vmax.f32 %v1860_v58, 0.0  ;;  %10886 = vmatprep.subr.bf16.mxu1 %v11566_v53  ;;  %v13270_v58 = vrot.slane %v13193_v19, %v2025_v56 }
 0x35d   : > { %v1945_v0 = vmax.f32 %v1862_v62, 0.0 }
 0x35e   : > { %v1982_v8 = vpack.c.bf16 %v1944_v1, %v1942_v57  ;;  %v13263_v57 = vld [vmem:[#allocation4 + $0x420] ss:$8 sps:$4 sm:$0xff]  }
 0x35f   : > { %v1983_v9 = vpack.c.bf16 %v1945_v0, %v1943_v61  ;;  %v1865_v10 = vpop.f32.mrb[116].mxu0  ;;  %10902 = vmatpush1.bf16.msra.mxu1 %v11564_v54 }
 0x360   : > { %v1866_v2 = vadd.f32 %v1865_v10, %v13188_v18  ;;  %v1867_v14 = vpop.f32.mrb[117].mxu0 }
 0x361   : > { %v1868_v3 = vadd.f32 %v1867_v14, %v13196_v23  ;;  %v1869_v47 = vpop.f32.mrb[118].mxu0  ;;  %2343 = vmatprep.mubr.bf16.mxu1 %v1983_v9  ;;  %v13280_v9 = vld [vmem:[#allocation4 + $0x444] ss:$8 sps:$4 sm:$0xff]   ;;  %v13284_v14 = vld [vmem:[#allocation4 + $0x440] ss:$8 sps:$4 sm:$0xff]  }
 0x362   : > { %v1946_v15 = vmax.f32 %v1866_v2, 0.0  ;;  %v1870_v16 = vadd.f32 %v1869_v47, %v13188_v18  ;;  %v1871_v20 = vpop.f32.mrb[119].mxu0  ;;  %2344 = vmatmul.mubr.bf16.gmra.mrb[112].mxu1 %v1982_v8 }
 0x363   : > { %v1947_v5 = vmax.f32 %v1868_v3, 0.0  ;;  %v1872_v21 = vadd.f32 %v1871_v20, %v13196_v23 }
 0x364   : > { %v1948_v22 = vmax.f32 %v1870_v16, 0.0 }
 0x365   : > { %v1949_v6 = vmax.f32 %v1872_v21, 0.0 }
 0x366   : > { %v1984_v26 = vpack.c.bf16 %v1948_v22, %v1946_v15  ;;  %v13287_v15 = vld [vmem:[#allocation4 + $0x454] ss:$8 sps:$4 sm:$0xff]  }
 0x367   : > { %v1985_v7 = vpack.c.bf16 %v1949_v6, %v1947_v5  ;;  %v1875_v27 = vpop.f32.mrb[120].mxu0  ;;  %v13292_v6 = vld [vmem:[#allocation4 + $0x450] ss:$8 sps:$4 sm:$0xff]  }
 0x368   : > { %v1876_v11 = vadd.f32 %v1875_v27, %v13188_v18  ;;  %v1877_v28 = vpop.f32.mrb[121].mxu0  ;;  %v13295_v27 = vld [vmem:[#allocation4 + $0x464] ss:$8 sps:$4 sm:$0xff]  }
 0x369   : > { %v1878_v45 = vadd.f32 %v1877_v28, %v13196_v23  ;;  %v1879_v12 = vpop.f32.mrb[122].mxu0  ;;  %2353 = vmatprep.mubr.bf16.mxu1 %v1985_v7 }
 0x36a   : > { %v1950_v46 = vmax.f32 %v1876_v11, 0.0  ;;  %v1880_v32 = vadd.f32 %v1879_v12, %v13188_v18  ;;  %v1881_v49 = vpop.f32.mrb[123].mxu0  ;;  %2354 = vmatmul.mubr.bf16.gmra.mrb[116].mxu1 %v1984_v26 }
 0x36b   : > { %v1951_v13 = vmax.f32 %v1878_v45, 0.0  ;;  %v1882_v17 = vadd.f32 %v1881_v49, %v13196_v23 }
 0x36c   : > { %v1952_v24 = vmax.f32 %v1880_v32, 0.0  ;;  %v13301_v32 = vld [vmem:[#allocation4 + $0x460] ss:$8 sps:$4 sm:$0xff]  }
 0x36d   : > { %v1953_v25 = vmax.f32 %v1882_v17, 0.0  ;;  %v13303_v17 = vld [vmem:[#allocation4 + $0x474] ss:$8 sps:$4 sm:$0xff]  }
 0x36e   : > { %v1986_v29 = vpack.c.bf16 %v1952_v24, %v1950_v46 }
 0x36f   : > { %v1987_v30 = vpack.c.bf16 %v1953_v25, %v1951_v13  ;;  %v1885_v31 = vpop.f32.mrb[124].mxu0 }
 0x370   : > { %v1886_v33 = vadd.f32 %v1885_v31, %v13188_v18  ;;  %v1887_v34 = vpop.f32.mrb[125].mxu0 }
 0x371   : > { %v1888_v35 = vadd.f32 %v1887_v34, %v13196_v23  ;;  %v1889_v36 = vpop.f32.mrb[126].mxu0  ;;  %2363 = vmatprep.mubr.bf16.mxu1 %v1987_v30 }
 0x372   : > { %v1954_v37 = vmax.f32 %v1886_v33, 0.0  ;;  %v1890_v38 = vadd.f32 %v1889_v36, %v13188_v18  ;;  %v1891_v39 = vpop.f32.mrb[127].mxu0  ;;  %2364 = vmatmul.mubr.bf16.gmra.mrb[120].mxu1 %v1986_v29  ;;  %v11569_v18 = vld [vmem:[#allocation4 + $0x424] ss:$8 sps:$4 sm:$0xff]   ;;  %v13308_v33 = vld [vmem:[#allocation4 + $0x470] ss:$8 sps:$4 sm:$0xff]  }
 0x373   : > { %v1955_v40 = vmax.f32 %v1888_v35, 0.0  ;;  %v1892_v42 = vadd.f32 %v1891_v39, %v13196_v23  ;;  %10887 = vmatprep.subr.bf16.mxu1 %v11569_v18  ;;  %v13267_v23 = vrot.slane %v13185_v4, %v2025_v56  ;;  %v13311_v36 = vld [vmem:[#allocation4 + $0x484] ss:$8 sps:$4 sm:$0xff]   ;;  %v13328_v56 = vld [vmem:[#allocation4 + $0x490] ss:$8 sps:$4 sm:$0xff]  }
 0x374   : > { %v1956_v43 = vmax.f32 %v1890_v38, 0.0  ;;  %10903 = vmatpush1.bf16.msra.mxu1 %v13263_v57 }
 0x375   : > { %v1957_v44 = vmax.f32 %v1892_v42, 0.0  ;;  %10888 = vmatprep.subr.bf16.mxu1 %v13272_v60 }
 0x376   : > { %v1988_v48 = vpack.c.bf16 %v1956_v43, %v1954_v37  ;;  %v13319_v43 = vld [vmem:[#allocation4 + $0x480] ss:$8 sps:$4 sm:$0xff]  }
 0x377   : > { %v1989_v50 = vpack.c.bf16 %v1957_v44, %v1955_v40 }
 0x378   : > { %10904 = vmatpush1.bf16.msra.mxu1 %v13275_v63 }
 0x379   : > { %2373 = vmatprep.mubr.bf16.mxu1 %v1989_v50  ;;  %10889 = vmatprep.subr.bf16.mxu1 %v13280_v9  ;;  %v13321_v50 = vld [vmem:[#allocation4 + $0x494] ss:$8 sps:$4 sm:$0xff]  }
 0x37a   : > { %2374 = vmatmul.mubr.bf16.gmra.mrb[124].mxu1 %v1988_v48 }
 0x37c   : > { %10905 = vmatpush1.bf16.msra.mxu1 %v13284_v14 }
 0x37d   : > { %10890 = vmatprep.subr.bf16.mxu1 %v13287_v15 }
 0x380   : > { %10906 = vmatpush1.bf16.msra.mxu1 %v13292_v6 }
 0x381   : > { %10891 = vmatprep.subr.bf16.mxu1 %v13295_v27 }
 0x384   : > { %10907 = vmatpush1.bf16.msra.mxu1 %v13301_v32 }
 0x385   : > { %10892 = vmatprep.subr.bf16.mxu1 %v13303_v17 }
 0x388   : > { %10908 = vmatpush1.bf16.msra.mxu1 %v13308_v33 }
 0x389   : > { %10893 = vmatprep.subr.bf16.mxu1 %v13311_v36 }
 0x38c   : > { %10909 = vmatpush1.bf16.msra.mxu1 %v13319_v43 }
 0x38d   : > { %10894 = vmatprep.subr.bf16.mxu1 %v13321_v50 }
 0x390   : > { %10910 = vmatpush1.bf16.msra.mxu1 %v13328_v56 }
 0x3d5   : > { %v2225_v59 = vpop.f32.mrb[64].mxu1 }
 0x3d6   : > { %v2226_v61 = vadd.f32 %v2225_v59, %v13267_v23  ;;  %v2227_v62 = vpop.f32.mrb[65].mxu1 }
 0x3d7   : > { %v2228_v1 = vadd.f32 %v2227_v62, %v13270_v58  ;;  %v2229_v0 = vpop.f32.mrb[66].mxu1 }
 0x3d8   : > { %v2230_v8 = vadd.f32 %v2229_v0, %v13267_v23  ;;  %v2231_v4 = vpop.f32.mrb[67].mxu1  ;;  %v2384_v10 = vmax.f32 %v2226_v61, 0.0 }
 0x3d9   : > { %v2232_v19 = vadd.f32 %v2231_v4, %v13270_v58  ;;  %v2385_v3 = vmax.f32 %v2228_v1, 0.0  ;;  %v13339_v4 = vld [vmem:[#allocation4 + $0x4a0] ss:$8 sps:$4 sm:$0xff]  }
 0x3da   : > { %v2386_v2 = vmax.f32 %v2230_v8, 0.0 }
 0x3db   : > { %v2387_v47 = vmax.f32 %v2232_v19, 0.0  ;;  %v13341_v19 = vld [vmem:[#allocation4 + $0x4b4] ss:$8 sps:$4 sm:$0xff]  }
 0x3dc   : > { %v2448_v16 = vpack.c.bf16 %v2386_v2, %v2384_v10 }
 0x3dd   : > { %v2449_v20 = vpack.c.bf16 %v2387_v47, %v2385_v3  ;;  %v2235_v5 = vpop.f32.mrb[68].mxu1 }
 0x3de   : > { %v2236_v21 = vadd.f32 %v2235_v5, %v13267_v23  ;;  %v2237_v22 = vpop.f32.mrb[69].mxu1  ;;  %v13351_v5 = vld [vmem:[#allocation4 + $0x4c4] ss:$8 sps:$4 sm:$0xff]  }
 0x3df   : > { %v2238_v26 = vadd.f32 %v2237_v22, %v13270_v58  ;;  %v2239_v7 = vpop.f32.mrb[70].mxu1  ;;  %2713 = vmatprep.mubr.bf16.mxu0 %v2449_v20 }
 0x3e0   : > { %v2240_v11 = vadd.f32 %v2239_v7, %v13267_v23  ;;  %v2241_v28 = vpop.f32.mrb[71].mxu1  ;;  %2714 = vmatmul.mubr.bf16.vlgmr.msra.gmra.mrb[128].mxu0 %v2448_v16  ;;  %v2388_v12 = vmax.f32 %v2236_v21, 0.0 }
 0x3e1   : > { %v2242_v45 = vadd.f32 %v2241_v28, %v13270_v58  ;;  %3166 = vmatpush1.bf16.msra.mxu0 %v11561_v52  ;;  %v2389_v49 = vmax.f32 %v2238_v26, 0.0 }
 0x3e2   : > { %v2390_v46 = vmax.f32 %v2240_v11, 0.0  ;;  %3167 = vmatprep.subr.bf16.mxu0 %v11566_v53  ;;  %v13359_v11 = vld [vmem:[#allocation4 + $0x4c0] ss:$8 sps:$4 sm:$0xff]  }
 0x3e3   : > { %v2391_v13 = vmax.f32 %v2242_v45, 0.0  ;;  %v13361_v45 = vld [vmem:[#allocation4 + $0x4d4] ss:$8 sps:$4 sm:$0xff]  }
 0x3e4   : > { %v2450_v24 = vpack.c.bf16 %v2390_v46, %v2388_v12 }
 0x3e5   : > { %v2451_v25 = vpack.c.bf16 %v2391_v13, %v2389_v49  ;;  %v2245_v29 = vpop.f32.mrb[72].mxu1  ;;  %3168 = vmatpush1.bf16.msra.mxu0 %v11564_v54 }
 0x3e6   : > { %v2246_v30 = vadd.f32 %v2245_v29, %v13267_v23  ;;  %v2247_v31 = vpop.f32.mrb[73].mxu1  ;;  %3169 = vmatprep.subr.bf16.mxu0 %v11569_v18  ;;  %v11605_v29 = vld [vmem:[#allocation4 + $0x4e4] ss:$8 sps:$4 sm:$0xff]  }
 0x3e7   : > { %v2248_v34 = vadd.f32 %v2247_v31, %v13270_v58  ;;  %v2249_v35 = vpop.f32.mrb[74].mxu1  ;;  %2723 = vmatprep.mubr.bf16.mxu0 %v2451_v25 }
 0x3e8   : > { %v2250_v37 = vadd.f32 %v2249_v35, %v13267_v23  ;;  %v2251_v38 = vpop.f32.mrb[75].mxu1  ;;  %2724 = vmatmul.mubr.bf16.gmra.mrb[132].mxu0 %v2450_v24  ;;  %v2392_v40 = vmax.f32 %v2246_v30, 0.0 }
 0x3e9   : > { %v2252_v39 = vadd.f32 %v2251_v38, %v13270_v58  ;;  %3170 = vmatpush1.bf16.msra.mxu0 %v13263_v57  ;;  %v2393_v44 = vmax.f32 %v2248_v34, 0.0 }
 0x3ea   : > { %v2394_v42 = vmax.f32 %v2250_v37, 0.0  ;;  %3171 = vmatprep.subr.bf16.mxu0 %v13272_v60  ;;  %v13331_v60 = vld [vmem:[#allocation4 + $0x4a4] ss:$8 sps:$4 sm:$0xff]  }
 0x3eb   : > { %v2395_v48 = vmax.f32 %v2252_v39, 0.0  ;;  %10895 = vmatprep.subr.bf16.mxu1 %v13331_v60 }
 0x3ec   : > { %v2452_v51 = vpack.c.bf16 %v2394_v42, %v2392_v40  ;;  %10911 = vmatpush1.bf16.msra.mxu1 %v13339_v4 }
 0x3ed   : > { %v2453_v52 = vpack.c.bf16 %v2395_v48, %v2393_v44  ;;  %v2255_v53 = vpop.f32.mrb[76].mxu1  ;;  %3172 = vmatpush1.bf16.msra.mxu0 %v13275_v63  ;;  %10896 = vmatprep.subr.bf16.mxu1 %v13341_v19 }
 0x3ee   : > { %v2256_v54 = vadd.f32 %v2255_v53, %v13267_v23  ;;  %v2257_v18 = vpop.f32.mrb[77].mxu1  ;;  %3173 = vmatprep.subr.bf16.mxu0 %v13280_v9 }
 0x3ef   : > { %v2258_v57 = vadd.f32 %v2257_v18, %v13270_v58  ;;  %2733 = vmatprep.mubr.bf16.mxu0 %v2453_v52  ;;  %v2259_v59 = vpop.f32.mrb[78].mxu1 }
 0x3f0   : > { %v2396_v61 = vmax.f32 %v2256_v54, 0.0  ;;  %v2260_v62 = vadd.f32 %v2259_v59, %v13267_v23  ;;  %2734 = vmatmul.mubr.bf16.gmra.mrb[136].mxu0 %v2452_v51  ;;  %v2261_v63 = vpop.f32.mrb[79].mxu1 }
 0x3f1   : > { %v2397_v1 = vmax.f32 %v2258_v57, 0.0  ;;  %v2262_v0 = vadd.f32 %v2261_v63, %v13270_v58  ;;  %3174 = vmatpush1.bf16.msra.mxu0 %v13284_v14 }
 0x3f2   : > { %v2398_v8 = vmax.f32 %v2260_v62, 0.0  ;;  %3175 = vmatprep.subr.bf16.mxu0 %v13287_v15  ;;  %v13348_v15 = vld [vmem:[#allocation4 + $0x4b0] ss:$8 sps:$4 sm:$0xff]  }
 0x3f3   : > { %v2399_v9 = vmax.f32 %v2262_v0, 0.0  ;;  %10912 = vmatpush1.bf16.msra.mxu1 %v13348_v15 }
 0x3f4   : > { %v2454_v10 = vpack.c.bf16 %v2398_v8, %v2396_v61  ;;  %10897 = vmatprep.subr.bf16.mxu1 %v13351_v5 }
 0x3f5   : > { %v2455_v2 = vpack.c.bf16 %v2399_v9, %v2397_v1  ;;  %v2265_v3 = vpop.f32.mrb[80].mxu1  ;;  %3176 = vmatpush1.bf16.msra.mxu0 %v13292_v6 }
 0x3f6   : > { %v2266_v14 = vadd.f32 %v2265_v3, %v13267_v23  ;;  %v2267_v47 = vpop.f32.mrb[81].mxu1  ;;  %3177 = vmatprep.subr.bf16.mxu0 %v13295_v27 }
 0x3f7   : > { %v2268_v16 = vadd.f32 %v2267_v47, %v13270_v58  ;;  %v2269_v20 = vpop.f32.mrb[82].mxu1  ;;  %2743 = vmatprep.mubr.bf16.mxu0 %v2455_v2  ;;  %10913 = vmatpush1.bf16.msra.mxu1 %v13359_v11 }
 0x3f8   : > { %v2400_v21 = vmax.f32 %v2266_v14, 0.0  ;;  %v2270_v22 = vadd.f32 %v2269_v20, %v13267_v23  ;;  %v2271_v26 = vpop.f32.mrb[83].mxu1  ;;  %2744 = vmatmul.mubr.bf16.gmra.mrb[140].mxu0 %v2454_v10  ;;  %10898 = vmatprep.subr.bf16.mxu1 %v13361_v45 }
 0x3f9   : > { %v2401_v6 = vmax.f32 %v2268_v16, 0.0  ;;  %v2272_v7 = vadd.f32 %v2271_v26, %v13270_v58  ;;  %3178 = vmatpush1.bf16.msra.mxu0 %v13301_v32 }
 0x3fa   : > { %v2402_v27 = vmax.f32 %v2270_v22, 0.0  ;;  %3179 = vmatprep.subr.bf16.mxu0 %v13303_v17  ;;  %v11600_v17 = vld [vmem:[#allocation4 + $0x4d0] ss:$8 sps:$4 sm:$0xff]  }
 0x3fb   : > { %v2403_v28 = vmax.f32 %v2272_v7, 0.0  ;;  %10914 = vmatpush1.bf16.msra.mxu1 %v11600_v17 }
 0x3fc   : > { %v2456_v12 = vpack.c.bf16 %v2402_v27, %v2400_v21  ;;  %10899 = vmatprep.subr.bf16.mxu1 %v11605_v29 }
 0x3fd   : > { %v2457_v46 = vpack.c.bf16 %v2403_v28, %v2401_v6  ;;  %v2275_v49 = vpop.f32.mrb[84].mxu1  ;;  %3180 = vmatpush1.bf16.msra.mxu0 %v13308_v33 }
 0x3fe   : > { %v2276_v32 = vadd.f32 %v2275_v49, %v13267_v23  ;;  %v2277_v13 = vpop.f32.mrb[85].mxu1  ;;  %3181 = vmatprep.subr.bf16.mxu0 %v13311_v36  ;;  %v11603_v36 = vld [vmem:[#allocation4 + $0x4e0] ss:$8 sps:$4 sm:$0xff]  }
 0x3ff   : > { %v2278_v24 = vadd.f32 %v2277_v13, %v13270_v58  ;;  %v2279_v25 = vpop.f32.mrb[86].mxu1  ;;  %2753 = vmatprep.mubr.bf16.mxu0 %v2457_v46  ;;  %10915 = vmatpush1.bf16.msra.mxu1 %v11603_v36 }
 0x400   : > { %v2404_v30 = vmax.f32 %v2276_v32, 0.0  ;;  %v2280_v31 = vadd.f32 %v2279_v25, %v13267_v23  ;;  %v2281_v34 = vpop.f32.mrb[87].mxu1  ;;  %2754 = vmatmul.mubr.bf16.gmra.mrb[144].mxu0 %v2456_v12 }
 0x401   : > { %v2405_v33 = vmax.f32 %v2278_v24, 0.0  ;;  %v2282_v35 = vadd.f32 %v2281_v34, %v13270_v58  ;;  %3182 = vmatpush1.bf16.msra.mxu0 %v13319_v43 }
 0x402   : > { %v2406_v37 = vmax.f32 %v2280_v31, 0.0  ;;  %3183 = vmatprep.subr.bf16.mxu0 %v13321_v50 }
 0x403   : > { %v2407_v38 = vmax.f32 %v2282_v35, 0.0 }
 0x404   : > { %v2458_v39 = vpack.c.bf16 %v2406_v37, %v2404_v30 }
 0x405   : > { %v2459_v40 = vpack.c.bf16 %v2407_v38, %v2405_v33  ;;  %v2285_v42 = vpop.f32.mrb[88].mxu1  ;;  %3184 = vmatpush1.bf16.msra.mxu0 %v13328_v56 }
 0x406   : > { %v2286_v44 = vadd.f32 %v2285_v42, %v13267_v23  ;;  %v2287_v48 = vpop.f32.mrb[89].mxu1  ;;  %3185 = vmatprep.subr.bf16.mxu0 %v13331_v60 }
 0x407   : > { %v2288_v51 = vadd.f32 %v2287_v48, %v13270_v58  ;;  %v2289_v43 = vpop.f32.mrb[90].mxu1  ;;  %2763 = vmatprep.mubr.bf16.mxu0 %v2459_v40 }
 0x408   : > { %v2408_v52 = vmax.f32 %v2286_v44, 0.0  ;;  %v2290_v50 = vadd.f32 %v2289_v43, %v13267_v23  ;;  %v2291_v53 = vpop.f32.mrb[91].mxu1  ;;  %2764 = vmatmul.mubr.bf16.gmra.mrb[148].mxu0 %v2458_v39 }
 0x409   : > { %v2409_v54 = vmax.f32 %v2288_v51, 0.0  ;;  %v2292_v18 = vadd.f32 %v2291_v53, %v13270_v58  ;;  %3186 = vmatpush1.bf16.msra.mxu0 %v13339_v4 }
 0x40a   : > { %v2410_v56 = vmax.f32 %v2290_v50, 0.0  ;;  %3187 = vmatprep.subr.bf16.mxu0 %v13341_v19 }
 0x40b   : > { %v2411_v57 = vmax.f32 %v2292_v18, 0.0 }
 0x40c   : > { %v2460_v59 = vpack.c.bf16 %v2410_v56, %v2408_v52 }
 0x40d   : > { %v2461_v60 = vpack.c.bf16 %v2411_v57, %v2409_v54  ;;  %v2295_v61 = vpop.f32.mrb[92].mxu1  ;;  %3188 = vmatpush1.bf16.msra.mxu0 %v13348_v15 }
 0x40e   : > { %v2296_v62 = vadd.f32 %v2295_v61, %v13267_v23  ;;  %v2297_v63 = vpop.f32.mrb[93].mxu1  ;;  %3189 = vmatprep.subr.bf16.mxu0 %v13351_v5 }
 0x40f   : > { %v2298_v1 = vadd.f32 %v2297_v63, %v13270_v58  ;;  %v2299_v0 = vpop.f32.mrb[94].mxu1  ;;  %2773 = vmatprep.mubr.bf16.mxu0 %v2461_v60 }
 0x410   : > { %v2412_v8 = vmax.f32 %v2296_v62, 0.0  ;;  %v2300_v4 = vadd.f32 %v2299_v0, %v13267_v23  ;;  %v2301_v9 = vpop.f32.mrb[95].mxu1  ;;  %2774 = vmatmul.mubr.bf16.gmra.mrb[152].mxu0 %v2460_v59 }
 0x411   : > { %v2413_v19 = vmax.f32 %v2298_v1, 0.0  ;;  %v2302_v10 = vadd.f32 %v2301_v9, %v13270_v58  ;;  %3190 = vmatpush1.bf16.msra.mxu0 %v13359_v11 }
 0x412   : > { %v2414_v2 = vmax.f32 %v2300_v4, 0.0  ;;  %3191 = vmatprep.subr.bf16.mxu0 %v13361_v45 }
 0x413   : > { %v2415_v3 = vmax.f32 %v2302_v10, 0.0 }
 0x414   : > { %v2462_v14 = vpack.c.bf16 %v2414_v2, %v2412_v8 }
 0x415   : > { %v2463_v47 = vpack.c.bf16 %v2415_v3, %v2413_v19  ;;  %v2305_v15 = vpop.f32.mrb[96].mxu1  ;;  %3192 = vmatpush1.bf16.msra.mxu0 %v11600_v17 }
 0x416   : > { %v2306_v16 = vadd.f32 %v2305_v15, %v13267_v23  ;;  %v2307_v20 = vpop.f32.mrb[97].mxu1  ;;  %3193 = vmatprep.subr.bf16.mxu0 %v11605_v29 }
 0x417   : > { %v2308_v5 = vadd.f32 %v2307_v20, %v13270_v58  ;;  %v2309_v21 = vpop.f32.mrb[98].mxu1  ;;  %2783 = vmatprep.mubr.bf16.mxu0 %v2463_v47 }
 0x418   : > { %v2416_v22 = vmax.f32 %v2306_v16, 0.0  ;;  %v2310_v26 = vadd.f32 %v2309_v21, %v13267_v23  ;;  %v2311_v6 = vpop.f32.mrb[99].mxu1  ;;  %2784 = vmatmul.mubr.bf16.gmra.mrb[156].mxu0 %v2462_v14  ;;  %v11608_v21 = vld [vmem:[#allocation4 + $0x4f4] ss:$8 sps:$4 sm:$0xff]  }
 0x419   : > { %v2417_v7 = vmax.f32 %v2308_v5, 0.0  ;;  %v2312_v27 = vadd.f32 %v2311_v6, %v13270_v58  ;;  %3194 = vmatpush1.bf16.msra.mxu0 %v11603_v36  ;;  %v11606_v6 = vld [vmem:[#allocation4 + $0x4f0] ss:$8 sps:$4 sm:$0xff]   ;;  %10900 = vmatprep.subr.bf16.mxu1 %v11608_v21 }
 0x41a   : > { %v2418_v11 = vmax.f32 %v2310_v26, 0.0  ;;  %3195 = vmatprep.subr.bf16.mxu0 %v11608_v21  ;;  %10916 = vmatpush1.bf16.msra.mxu1 %v11606_v6 }
 0x41b   : > { %v2419_v28 = vmax.f32 %v2312_v27, 0.0 }
 0x41c   : > { %v2464_v45 = vpack.c.bf16 %v2418_v11, %v2416_v22 }
 0x41d   : > { %v2465_v12 = vpack.c.bf16 %v2419_v28, %v2417_v7  ;;  %v2315_v46 = vpop.f32.mrb[100].mxu1  ;;  %3196 = vmatpush1.bf16.msra.mxu0 %v11606_v6 }
 0x41e   : > { %v2316_v49 = vadd.f32 %v2315_v46, %v13267_v23  ;;  %v2317_v32 = vpop.f32.mrb[101].mxu1 }
 0x41f   : > { %v2318_v13 = vadd.f32 %v2317_v32, %v13270_v58  ;;  %v2319_v17 = vpop.f32.mrb[102].mxu1  ;;  %2793 = vmatprep.mubr.bf16.mxu0 %v2465_v12 }
 0x420   : > { %v2420_v24 = vmax.f32 %v2316_v49, 0.0  ;;  %v2320_v25 = vadd.f32 %v2319_v17, %v13267_v23  ;;  %v2321_v29 = vpop.f32.mrb[103].mxu1  ;;  %2794 = vmatmul.mubr.bf16.gmra.mrb[160].mxu0 %v2464_v45 }
 0x421   : > { %v2421_v30 = vmax.f32 %v2318_v13, 0.0  ;;  %v2322_v31 = vadd.f32 %v2321_v29, %v13270_v58 }
 0x422   : > { %v2422_v34 = vmax.f32 %v2320_v25, 0.0 }
 0x423   : > { %v2423_v33 = vmax.f32 %v2322_v31, 0.0  ;;  %v2971_v31 = vld [vmem:[%s15901_s3 + $0x8] sm:$0xff] }
 0x424   : > { %v2466_v35 = vpack.c.bf16 %v2422_v34, %v2420_v24  ;;  %3454 = vmatprep.subr.mxu0 %v2971_v31 }
 0x425   : > { %v2467_v37 = vpack.c.bf16 %v2423_v33, %v2421_v30  ;;  %v2325_v36 = vpop.f32.mrb[104].mxu1 }
 0x426   : > { %v2326_v38 = vadd.f32 %v2325_v36, %v13267_v23  ;;  %v2327_v39 = vpop.f32.mrb[105].mxu1 }
 0x427   : > { %v2328_v40 = vadd.f32 %v2327_v39, %v13270_v58  ;;  %v2329_v42 = vpop.f32.mrb[106].mxu1  ;;  %2803 = vmatprep.mubr.bf16.mxu0 %v2467_v37 }
 0x428   : > { %v2424_v44 = vmax.f32 %v2326_v38, 0.0  ;;  %v2330_v48 = vadd.f32 %v2329_v42, %v13267_v23  ;;  %v2331_v51 = vpop.f32.mrb[107].mxu1  ;;  %2804 = vmatmul.mubr.bf16.gmra.mrb[164].mxu0 %v2466_v35 }
 0x429   : > { %v2425_v43 = vmax.f32 %v2328_v40, 0.0  ;;  %v2332_v52 = vadd.f32 %v2331_v51, %v13270_v58 }
 0x42a   : > { %v2426_v50 = vmax.f32 %v2330_v48, 0.0 }
 0x42b   : > { %v2427_v53 = vmax.f32 %v2332_v52, 0.0 }
 0x42c   : > { %v2468_v54 = vpack.c.bf16 %v2426_v50, %v2424_v44 }
 0x42d   : > { %v2469_v18 = vpack.c.bf16 %v2427_v53, %v2425_v43  ;;  %v2335_v56 = vpop.f32.mrb[108].mxu1 }
 0x42e   : > { %v2336_v57 = vadd.f32 %v2335_v56, %v13267_v23  ;;  %v2337_v59 = vpop.f32.mrb[109].mxu1 }
 0x42f   : > { %v2338_v60 = vadd.f32 %v2337_v59, %v13270_v58  ;;  %v2339_v61 = vpop.f32.mrb[110].mxu1  ;;  %2813 = vmatprep.mubr.bf16.mxu0 %v2469_v18 }
 0x430   : > { %v2428_v62 = vmax.f32 %v2336_v57, 0.0  ;;  %v2340_v63 = vadd.f32 %v2339_v61, %v13267_v23  ;;  %v2341_v1 = vpop.f32.mrb[111].mxu1  ;;  %2814 = vmatmul.mubr.bf16.gmra.mrb[168].mxu0 %v2468_v54 }
 0x431   : > { %v2429_v0 = vmax.f32 %v2338_v60, 0.0  ;;  %v2342_v8 = vadd.f32 %v2341_v1, %v13270_v58 }
 0x432   : > { %v2430_v4 = vmax.f32 %v2340_v63, 0.0 }
 0x433   : > { %v2431_v9 = vmax.f32 %v2342_v8, 0.0 }
 0x434   : > { %v2470_v19 = vpack.c.bf16 %v2430_v4, %v2428_v62 }
 0x435   : > { %v2471_v10 = vpack.c.bf16 %v2431_v9, %v2429_v0  ;;  %v2345_v2 = vpop.f32.mrb[112].mxu1 }
 0x436   : > { %v2346_v3 = vadd.f32 %v2345_v2, %v13267_v23  ;;  %v2347_v14 = vpop.f32.mrb[113].mxu1  ;;  %v13428_v2 = vld [vmem:[%s15903_s5] sm:$0xff] }
 0x437   : > { %v2348_v47 = vadd.f32 %v2347_v14, %v13270_v58  ;;  %v2349_v15 = vpop.f32.mrb[114].mxu1  ;;  %2823 = vmatprep.mubr.bf16.mxu0 %v2471_v10  ;;  %v2515_v10 = vsub.s32 4, %v13027_v41 }
 0x438   : > { %v2432_v16 = vmax.f32 %v2346_v3, 0.0  ;;  %v2350_v20 = vadd.f32 %v2349_v15, %v13267_v23  ;;  %v2351_v5 = vpop.f32.mrb[115].mxu1  ;;  %2824 = vmatmul.mubr.bf16.gmra.mrb[172].mxu0 %v2470_v19 }
 0x439   : > { %v2433_v22 = vmax.f32 %v2348_v47, 0.0  ;;  %v2352_v26 = vadd.f32 %v2351_v5, %v13270_v58 }
 0x43a   : > { %v2434_v7 = vmax.f32 %v2350_v20, 0.0 }
 0x43b   : > { %v2435_v27 = vmax.f32 %v2352_v26, 0.0 }
 0x43c   : > { %v2472_v11 = vpack.c.bf16 %v2434_v7, %v2432_v16 }
 0x43d   : > { %v2473_v28 = vpack.c.bf16 %v2435_v27, %v2433_v22  ;;  %v2355_v45 = vpop.f32.mrb[116].mxu1 }
 0x43e   : > { %v2356_v12 = vadd.f32 %v2355_v45, %v13267_v23  ;;  %v2357_v46 = vpop.f32.mrb[117].mxu1 }
 0x43f   : > { %v2358_v49 = vadd.f32 %v2357_v46, %v13270_v58  ;;  %v2359_v32 = vpop.f32.mrb[118].mxu1  ;;  %2833 = vmatprep.mubr.bf16.mxu0 %v2473_v28 }
 0x440   : > { %v2436_v13 = vmax.f32 %v2356_v12, 0.0  ;;  %v2360_v17 = vadd.f32 %v2359_v32, %v13267_v23  ;;  %v2361_v24 = vpop.f32.mrb[119].mxu1  ;;  %2834 = vmatmul.mubr.bf16.gmra.mrb[176].mxu0 %v2472_v11 }
 0x441   : > { %v2437_v25 = vmax.f32 %v2358_v49, 0.0  ;;  %v2362_v29 = vadd.f32 %v2361_v24, %v13270_v58  ;;  %v2970_v49 = vld [vmem:[%s15901_s3] sm:$0xff] }
 0x442   : > { %v2438_v30 = vmax.f32 %v2360_v17, 0.0 }
 0x443   : > { %v2439_v34 = vmax.f32 %v2362_v29, 0.0 }
 0x444   : > { %v2474_v33 = vpack.c.bf16 %v2438_v30, %v2436_v13 }
 0x445   : > { %v2475_v35 = vpack.c.bf16 %v2439_v34, %v2437_v25  ;;  %v2365_v37 = vpop.f32.mrb[120].mxu1 }
 0x446   : > { %v2366_v36 = vadd.f32 %v2365_v37, %v13267_v23  ;;  %v2367_v38 = vpop.f32.mrb[121].mxu1 }
 0x447   : > { %v2368_v39 = vadd.f32 %v2367_v38, %v13270_v58  ;;  %v2369_v40 = vpop.f32.mrb[122].mxu1  ;;  %2843 = vmatprep.mubr.bf16.mxu0 %v2475_v35 }
 0x448   : > { %v2440_v42 = vmax.f32 %v2366_v36, 0.0  ;;  %v2370_v44 = vadd.f32 %v2369_v40, %v13267_v23  ;;  %v2371_v48 = vpop.f32.mrb[123].mxu1  ;;  %2844 = vmatmul.mubr.bf16.gmra.mrb[180].mxu0 %v2474_v33 }
 0x449   : > { %v2441_v51 = vmax.f32 %v2368_v39, 0.0  ;;  %v2372_v43 = vadd.f32 %v2371_v48, %v13270_v58 }
 0x44a   : > { %v2442_v52 = vmax.f32 %v2370_v44, 0.0 }
 0x44b   : > { %v2443_v50 = vmax.f32 %v2372_v43, 0.0 }
 0x44c   : > { %v2476_v53 = vpack.c.bf16 %v2442_v52, %v2440_v42 }
 0x44d   : > { %v2477_v54 = vpack.c.bf16 %v2443_v50, %v2441_v51  ;;  %v2375_v18 = vpop.f32.mrb[124].mxu1 }
 0x44e   : > { %v2376_v56 = vadd.f32 %v2375_v18, %v13267_v23  ;;  %v2377_v57 = vpop.f32.mrb[125].mxu1 }
 0x44f   : > { %v2378_v59 = vadd.f32 %v2377_v57, %v13270_v58  ;;  %v2379_v60 = vpop.f32.mrb[126].mxu1  ;;  %2853 = vmatprep.mubr.bf16.mxu0 %v2477_v54 }
 0x450   : > { %v2444_v61 = vmax.f32 %v2376_v56, 0.0  ;;  %v2380_v62 = vadd.f32 %v2379_v60, %v13267_v23  ;;  %v2381_v63 = vpop.f32.mrb[127].mxu1  ;;  %2854 = vmatmul.mubr.bf16.gmra.mrb[184].mxu0 %v2476_v53  ;;  %v13431_v23 = vrot.slane %v13428_v2, %v2515_v10 }
 0x451   : > { %v2445_v1 = vmax.f32 %v2378_v59, 0.0  ;;  %v2382_v0 = vadd.f32 %v2381_v63, %v13270_v58  ;;  %v13436_v58 = vld [vmem:[%s15903_s5 + $0x8] sm:$0xff] }
 0x452   : > { %v2446_v8 = vmax.f32 %v2380_v62, 0.0  ;;  %v13439_v3 = vrot.slane %v13436_v58, %v2515_v10 }
 0x453   : > { %v2447_v4 = vmax.f32 %v2382_v0, 0.0 }
 0x454   : > { %v2478_v9 = vpack.c.bf16 %v2446_v8, %v2444_v61 }
 0x455   : > { %v2479_v19 = vpack.c.bf16 %v2447_v4, %v2445_v1  ;;  %v11611_v1 = vld [vmem:[#allocation4 + $0x504] ss:$8 sps:$4 sm:$0xff]  }
 0x456   : > { %4080 = vmatprep.subr.bf16.mxu1 %v11611_v1 }
 0x457   : > { %2863 = vmatprep.mubr.bf16.mxu0 %v2479_v19 }
 0x458   : > { %2864 = vmatmul.mubr.bf16.gmra.mrb[188].mxu0 %v2478_v9 }
 0x4b3   : > { %v2715_v14 = vpop.f32.mrb[128].mxu0 }
 0x4b4   : > { %v2716_v47 = vadd.f32 %v2715_v14, %v13431_v23  ;;  %v2717_v15 = vpop.f32.mrb[129].mxu0 }
 0x4b5   : > { %v2718_v16 = vadd.f32 %v2717_v15, %v13439_v3  ;;  %v2719_v20 = vpop.f32.mrb[130].mxu0 }
 0x4b6   : > { %v2720_v5 = vadd.f32 %v2719_v20, %v13431_v23  ;;  %v2721_v21 = vpop.f32.mrb[131].mxu0  ;;  %v2874_v26 = vmax.f32 %v2716_v47, 0.0  ;;  %v11609_v47 = vld [vmem:[#allocation4 + $0x500] ss:$8 sps:$4 sm:$0xff]   ;;  %v11614_v20 = vld [vmem:[#allocation4 + $0x514] ss:$8 sps:$4 sm:$0xff]  }
 0x4b7   : > { %v2722_v22 = vadd.f32 %v2721_v21, %v13439_v3  ;;  %v2875_v7 = vmax.f32 %v2718_v16, 0.0 }
 0x4b8   : > { %v2876_v6 = vmax.f32 %v2720_v5, 0.0 }
 0x4b9   : > { %v2877_v27 = vmax.f32 %v2722_v22, 0.0 }
 0x4ba   : > { %v2938_v11 = vpack.c.bf16 %v2876_v6, %v2874_v26  ;;  %v16006_v6 = vld [vmem:[#allocation10_spill] sm:$0xff] }
 0x4bb   : > { %v2939_v28 = vpack.c.bf16 %v2877_v27, %v2875_v7  ;;  %v2725_v45 = vpop.f32.mrb[132].mxu0 }
 0x4bc   : > { %v2726_v12 = vadd.f32 %v2725_v45, %v13431_v23  ;;  %v2727_v46 = vpop.f32.mrb[133].mxu0 }
 0x4bd   : > { %v2728_v32 = vadd.f32 %v2727_v46, %v13439_v3  ;;  %v2729_v13 = vpop.f32.mrb[134].mxu0  ;;  %3197 = vmatprep.mubr.bf16.mxu0 %v2939_v28  ;;  %v11612_v28 = vld [vmem:[#allocation4 + $0x510] ss:$8 sps:$4 sm:$0xff]  }
 0x4be   : > { %v2730_v17 = vadd.f32 %v2729_v13, %v13431_v23  ;;  %v2731_v24 = vpop.f32.mrb[135].mxu0  ;;  %3198 = vmatmul.mubr.bf16.vlgmr.msra.gmra.mrb[192].mxu0 %v2938_v11  ;;  %v2878_v29 = vmax.f32 %v2726_v12, 0.0  ;;  %v11617_v12 = vld [vmem:[#allocation4 + $0x524] ss:$8 sps:$4 sm:$0xff]  }
 0x4bf   : > { %v2732_v25 = vadd.f32 %v2731_v24, %v13439_v3  ;;  %3455 = vmatpush1.msra.mxu0 %v2970_v49  ;;  %v2879_v31 = vmax.f32 %v2728_v32, 0.0  ;;  %v16007_v32 = vld [vmem:[#allocation11_spill] sm:$0xff] }
 0x4c0   : > { %v2880_v30 = vmax.f32 %v2730_v17, 0.0  ;;  %v11615_v24 = vld [vmem:[#allocation4 + $0x520] ss:$8 sps:$4 sm:$0xff]  }
 0x4c1   : > { %v2881_v34 = vmax.f32 %v2732_v25, 0.0 }
 0x4c2   : > { %v2940_v33 = vpack.c.bf16 %v2880_v30, %v2878_v29  ;;  %v11620_v30 = vld [vmem:[#allocation4 + $0x534] ss:$8 sps:$4 sm:$0xff]  }
 0x4c3   : > { %v2941_v35 = vpack.c.bf16 %v2881_v34, %v2879_v31  ;;  %v2735_v37 = vpop.f32.mrb[136].mxu0 }
 0x4c4   : > { %v2736_v36 = vadd.f32 %v2735_v37, %v13431_v23  ;;  %v2737_v38 = vpop.f32.mrb[137].mxu0  ;;  %v16008_v37 = vld [vmem:[#allocation12_spill] sm:$0xff] }
 0x4c5   : > { %v2738_v39 = vadd.f32 %v2737_v38, %v13439_v3  ;;  %v2739_v40 = vpop.f32.mrb[138].mxu0  ;;  %3207 = vmatprep.mubr.bf16.mxu0 %v2941_v35 }
 0x4c6   : > { %v2740_v42 = vadd.f32 %v2739_v40, %v13431_v23  ;;  %v2741_v44 = vpop.f32.mrb[139].mxu0  ;;  %3208 = vmatmul.mubr.bf16.gmra.mrb[196].mxu0 %v2940_v33  ;;  %v2882_v51 = vmax.f32 %v2736_v36, 0.0  ;;  %v11618_v40 = vld [vmem:[#allocation4 + $0x530] ss:$8 sps:$4 sm:$0xff]  }
 0x4c7   : > { %v2742_v48 = vadd.f32 %v2741_v44, %v13439_v3  ;;  %v2883_v52 = vmax.f32 %v2738_v39, 0.0  ;;  %v11623_v44 = vld [vmem:[#allocation4 + $0x544] ss:$8 sps:$4 sm:$0xff]  }
 0x4c8   : > { %v2884_v43 = vmax.f32 %v2740_v42, 0.0 }
 0x4c9   : > { %v2885_v50 = vmax.f32 %v2742_v48, 0.0 }
 0x4ca   : > { %v2942_v53 = vpack.c.bf16 %v2884_v43, %v2882_v51  ;;  %v16009_v43 = vld [vmem:[#allocation13_spill] sm:$0xff] }
 0x4cb   : > { %v2943_v54 = vpack.c.bf16 %v2885_v50, %v2883_v52  ;;  %v2745_v18 = vpop.f32.mrb[140].mxu0 }
 0x4cc   : > { %v2746_v56 = vadd.f32 %v2745_v18, %v13431_v23  ;;  %v2747_v57 = vpop.f32.mrb[141].mxu0 }
 0x4cd   : > { %v2748_v59 = vadd.f32 %v2747_v57, %v13439_v3  ;;  %3217 = vmatprep.mubr.bf16.mxu0 %v2943_v54  ;;  %v2749_v60 = vpop.f32.mrb[142].mxu0 }
 0x4ce   : > { %v2886_v61 = vmax.f32 %v2746_v56, 0.0  ;;  %v2750_v62 = vadd.f32 %v2749_v60, %v13431_v23  ;;  %3218 = vmatmul.mubr.bf16.gmra.mrb[200].mxu0 %v2942_v53  ;;  %v2751_v63 = vpop.f32.mrb[143].mxu0  ;;  %v11621_v53 = vld [vmem:[#allocation4 + $0x540] ss:$8 sps:$4 sm:$0xff]   ;;  %v11626_v56 = vld [vmem:[#allocation4 + $0x554] ss:$8 sps:$4 sm:$0xff]  }
 0x4cf   : > { %v2887_v0 = vmax.f32 %v2748_v59, 0.0  ;;  %v2752_v8 = vadd.f32 %v2751_v63, %v13439_v3  ;;  %3518 = vmatprep.mubr.f32.mxu0 %v12417_v55 }
 0x4d0   : > { %v2888_v4 = vmax.f32 %v2750_v62, 0.0  ;;  %v16010_v62 = vld [vmem:[#allocation14_spill] sm:$0xff] }
 0x4d1   : > { %v2889_v9 = vmax.f32 %v2752_v8, 0.0  ;;  %v11624_v8 = vld [vmem:[#allocation4 + $0x550] ss:$8 sps:$4 sm:$0xff]  }
 0x4d2   : > { %v2944_v19 = vpack.c.bf16 %v2888_v4, %v2886_v61 }
 0x4d3   : > { %v2945_v10 = vpack.c.bf16 %v2889_v9, %v2887_v0  ;;  %v2755_v14 = vpop.f32.mrb[144].mxu0  ;;  %v11629_v9 = vld [vmem:[#allocation4 + $0x564] ss:$8 sps:$4 sm:$0xff]  }
 0x4d4   : > { %v2756_v15 = vadd.f32 %v2755_v14, %v13431_v23  ;;  %v2757_v16 = vpop.f32.mrb[145].mxu0  ;;  %v16011_v14 = vld [vmem:[#allocation15_spill] sm:$0xff] }
 0x4d5   : > { %v2758_v5 = vadd.f32 %v2757_v16, %v13439_v3  ;;  %v2759_v21 = vpop.f32.mrb[146].mxu0  ;;  %3227 = vmatprep.mubr.bf16.mxu1 %v2945_v10  ;;  %v11627_v16 = vld [vmem:[#allocation4 + $0x560] ss:$8 sps:$4 sm:$0xff]  }
 0x4d6   : > { %v2890_v22 = vmax.f32 %v2756_v15, 0.0  ;;  %v2760_v26 = vadd.f32 %v2759_v21, %v13431_v23  ;;  %10241 = vmatmul.mubr.msk.f32.vlgmr.msra.gmra.mrb[204].mxu0 %vm561_vm1, %v16006_v6  ;;  %v2761_v7 = vpop.f32.mrb[147].mxu0  ;;  %3228 = vmatmul.mubr.bf16.vlgmr.msra.gmra.mrb[128].mxu1 %v2944_v19  ;;  %v11632_v21 = vld [vmem:[#allocation4 + $0x574] ss:$8 sps:$4 sm:$0xff]  }
 0x4d7   : > { %v2891_v27 = vmax.f32 %v2758_v5, 0.0  ;;  %v2762_v11 = vadd.f32 %v2761_v7, %v13439_v3  ;;  %3524 = vmatprep.mubr.f32.mxu0 %v12417_v55  ;;  %4081 = vmatpush1.bf16.msra.mxu1 %v11609_v47 }
 0x4d8   : > { %v2892_v45 = vmax.f32 %v2760_v26, 0.0  ;;  %4082 = vmatprep.subr.bf16.mxu1 %v11614_v20 }
 0x4d9   : > { %v2893_v46 = vmax.f32 %v2762_v11, 0.0 }
 0x4da   : > { %v2946_v49 = vpack.c.bf16 %v2892_v45, %v2890_v22  ;;  %10242 = vmatmul.mubr.msk.f32.gmra.mrb[206].mxu0 %vm561_vm1, %v16007_v32 }
 0x4db   : > { %v2947_v13 = vpack.c.bf16 %v2893_v46, %v2891_v27  ;;  %v2765_v17 = vpop.f32.mrb[148].mxu0  ;;  %3530 = vmatprep.mubr.f32.mxu0 %v12417_v55  ;;  %4083 = vmatpush1.bf16.msra.mxu1 %v11612_v28  ;;  %v16012_v27 = vld [vmem:[#allocation16_spill] sm:$0xff] }
 0x4dc   : > { %v2766_v25 = vadd.f32 %v2765_v17, %v13431_v23  ;;  %v2767_v29 = vpop.f32.mrb[149].mxu0  ;;  %4084 = vmatprep.subr.bf16.mxu1 %v11617_v12  ;;  %v11630_v12 = vld [vmem:[#allocation4 + $0x570] ss:$8 sps:$4 sm:$0xff]  }
 0x4dd   : > { %v2768_v31 = vadd.f32 %v2767_v29, %v13439_v3  ;;  %v2769_v34 = vpop.f32.mrb[150].mxu0  ;;  %3237 = vmatprep.mubr.bf16.mxu1 %v2947_v13  ;;  %v16013_v17 = vld [vmem:[#allocation17_spill] sm:$0xff]  ;;  %v11633_v29 = vld [vmem:[#allocation4 + $0x580] ss:$8 sps:$4 sm:$0xff]  }
 0x4de   : > { %v2894_v33 = vmax.f32 %v2766_v25, 0.0  ;;  %v2770_v35 = vadd.f32 %v2769_v34, %v13431_v23  ;;  %10243 = vmatmul.mubr.msk.f32.gmra.mrb[208].mxu0 %vm561_vm1, %v16008_v37  ;;  %v2771_v36 = vpop.f32.mrb[151].mxu0  ;;  %3238 = vmatmul.mubr.bf16.gmra.mrb[132].mxu1 %v2946_v49  ;;  %v11635_v49 = vld [vmem:[#allocation4 + $0x584] ss:$8 sps:$4 sm:$0xff]   ;;  %v11638_v34 = vld [vmem:[#allocation4 + $0x594] ss:$8 sps:$4 sm:$0xff]  }
 0x4df   : > { %v2895_v38 = vmax.f32 %v2768_v31, 0.0  ;;  %v2772_v39 = vadd.f32 %v2771_v36, %v13439_v3  ;;  %3536 = vmatprep.mubr.f32.mxu0 %v12417_v55  ;;  %4085 = vmatpush1.bf16.msra.mxu1 %v11615_v24 }
 0x4e0   : > { %v2896_v42 = vmax.f32 %v2770_v35, 0.0  ;;  %4086 = vmatprep.subr.bf16.mxu1 %v11620_v30 }
 0x4e1   : > { %v2897_v48 = vmax.f32 %v2772_v39, 0.0 }
 0x4e2   : > { %v2948_v51 = vpack.c.bf16 %v2896_v42, %v2894_v33  ;;  %10244 = vmatmul.mubr.msk.f32.gmra.mrb[210].mxu0 %vm561_vm1, %v16009_v43 }
 0x4e3   : > { %v2949_v52 = vpack.c.bf16 %v2897_v48, %v2895_v38  ;;  %v2775_v50 = vpop.f32.mrb[152].mxu0  ;;  %3542 = vmatprep.mubr.f32.mxu0 %v12417_v55  ;;  %4087 = vmatpush1.bf16.msra.mxu1 %v11618_v40  ;;  %v16014_v38 = vld [vmem:[#allocation18_spill] sm:$0xff] }
 0x4e4   : > { %v2776_v54 = vadd.f32 %v2775_v50, %v13431_v23  ;;  %v2777_v18 = vpop.f32.mrb[153].mxu0  ;;  %4088 = vmatprep.subr.bf16.mxu1 %v11623_v44  ;;  %v11636_v44 = vld [vmem:[#allocation4 + $0x590] ss:$8 sps:$4 sm:$0xff]   ;;  %v16015_v50 = vld [vmem:[#allocation19_spill] sm:$0xff] }
 0x4e5   : > { %v2778_v57 = vadd.f32 %v2777_v18, %v13439_v3  ;;  %v2779_v59 = vpop.f32.mrb[154].mxu0  ;;  %3247 = vmatprep.mubr.bf16.mxu1 %v2949_v52  ;;  %v11639_v18 = vld [vmem:[#allocation4 + $0x5a0] ss:$8 sps:$4 sm:$0xff]  }
 0x4e6   : > { %v2898_v60 = vmax.f32 %v2776_v54, 0.0  ;;  %v2780_v61 = vadd.f32 %v2779_v59, %v13431_v23  ;;  %10245 = vmatmul.mubr.msk.f32.gmra.mrb[212].mxu0 %vm561_vm1, %v16010_v62  ;;  %v2781_v63 = vpop.f32.mrb[155].mxu0  ;;  %3248 = vmatmul.mubr.bf16.gmra.mrb[136].mxu1 %v2948_v51  ;;  %v11641_v51 = vld [vmem:[#allocation4 + $0x5a4] ss:$8 sps:$4 sm:$0xff]  }
 0x4e7   : > { %v2899_v1 = vmax.f32 %v2778_v57, 0.0  ;;  %v2782_v0 = vadd.f32 %v2781_v63, %v13439_v3  ;;  %3548 = vmatprep.mubr.f32.mxu0 %v12417_v55  ;;  %4089 = vmatpush1.bf16.msra.mxu1 %v11621_v53  ;;  %v16016_v63 = vld [vmem:[#allocation20_spill] sm:$0xff] }
 0x4e8   : > { %v2900_v4 = vmax.f32 %v2780_v61, 0.0  ;;  %4090 = vmatprep.subr.bf16.mxu1 %v11626_v56 }
 0x4e9   : > { %v2901_v19 = vmax.f32 %v2782_v0, 0.0 }
 0x4ea   : > { %v2950_v10 = vpack.c.bf16 %v2900_v4, %v2898_v60  ;;  %10246 = vmatmul.mubr.msk.f32.gmra.mrb[214].mxu0 %vm561_vm1, %v16011_v14 }
 0x4eb   : > { %v2951_v47 = vpack.c.bf16 %v2901_v19, %v2899_v1  ;;  %v2785_v15 = vpop.f32.mrb[156].mxu0  ;;  %3554 = vmatprep.mubr.f32.mxu0 %v12417_v55  ;;  %4091 = vmatpush1.bf16.msra.mxu1 %v11624_v8 }
 0x4ec   : > { %v2786_v20 = vadd.f32 %v2785_v15, %v13431_v23  ;;  %v2787_v5 = vpop.f32.mrb[157].mxu0  ;;  %4092 = vmatprep.subr.bf16.mxu1 %v11629_v9 }
 0x4ed   : > { %v2788_v22 = vadd.f32 %v2787_v5, %v13439_v3  ;;  %v2789_v26 = vpop.f32.mrb[158].mxu0  ;;  %3257 = vmatprep.mubr.bf16.mxu1 %v2951_v47 }
 0x4ee   : > { %v2902_v6 = vmax.f32 %v2786_v20, 0.0  ;;  %v2790_v7 = vadd.f32 %v2789_v26, %v13431_v23  ;;  %10247 = vmatmul.mubr.msk.f32.gmra.mrb[216].mxu0 %vm561_vm1, %v16012_v27  ;;  %v2791_v11 = vpop.f32.mrb[159].mxu0  ;;  %3258 = vmatmul.mubr.bf16.gmra.mrb[140].mxu1 %v2950_v10  ;;  %v16017_v10 = vld [vmem:[#allocation21_spill] sm:$0xff]  ;;  %v16018_v26 = vld [vmem:[#allocation22_spill] sm:$0xff] }
 0x4ef   : > { %v2903_v28 = vmax.f32 %v2788_v22, 0.0  ;;  %v2792_v45 = vadd.f32 %v2791_v11, %v13439_v3  ;;  %3560 = vmatprep.mubr.f32.mxu0 %v12417_v55  ;;  %4093 = vmatpush1.bf16.msra.mxu1 %v11627_v16 }
 0x4f0   : > { %v2904_v46 = vmax.f32 %v2790_v7, 0.0  ;;  %4094 = vmatprep.subr.bf16.mxu1 %v11632_v21 }
 0x4f1   : > { %v2905_v32 = vmax.f32 %v2792_v45, 0.0 }
 0x4f2   : > { %v2952_v13 = vpack.c.bf16 %v2904_v46, %v2902_v6  ;;  %10248 = vmatmul.mubr.msk.f32.gmra.mrb[218].mxu0 %vm561_vm1, %v16013_v17 }
 0x4f3   : > { %v2953_v24 = vpack.c.bf16 %v2905_v32, %v2903_v28  ;;  %v2795_v25 = vpop.f32.mrb[160].mxu0  ;;  %3566 = vmatprep.mubr.f32.mxu0 %v12417_v55  ;;  %4095 = vmatpush1.bf16.msra.mxu1 %v11630_v12  ;;  %v16019_v12 = vld [vmem:[#allocation23_spill] sm:$0xff] }
 0x4f4   : > { %v2796_v30 = vadd.f32 %v2795_v25, %v13431_v23  ;;  %v2797_v31 = vpop.f32.mrb[161].mxu0  ;;  %4096 = vmatprep.subr.bf16.mxu1 %v11635_v49 }
 0x4f5   : > { %v2798_v33 = vadd.f32 %v2797_v31, %v13439_v3  ;;  %v2799_v35 = vpop.f32.mrb[162].mxu0  ;;  %3267 = vmatprep.mubr.bf16.mxu1 %v2953_v24 }
 0x4f6   : > { %v2906_v37 = vmax.f32 %v2796_v30, 0.0  ;;  %v2800_v36 = vadd.f32 %v2799_v35, %v13431_v23  ;;  %10249 = vmatmul.mubr.msk.f32.gmra.mrb[220].mxu0 %vm561_vm1, %v16014_v38  ;;  %v2801_v39 = vpop.f32.mrb[163].mxu0  ;;  %3268 = vmatmul.mubr.bf16.gmra.mrb[144].mxu1 %v2952_v13  ;;  %v16020_v30 = vld [vmem:[#allocation24_spill] sm:$0xff]  ;;  %v16021_v38 = vld [vmem:[#allocation25_spill] sm:$0xff] }
 0x4f7   : > { %v2907_v40 = vmax.f32 %v2798_v33, 0.0  ;;  %v2802_v42 = vadd.f32 %v2801_v39, %v13439_v3  ;;  %3572 = vmatprep.mubr.f32.mxu0 %v12417_v55  ;;  %4097 = vmatpush1.bf16.msra.mxu1 %v11633_v29 }
 0x4f8   : > { %v2908_v48 = vmax.f32 %v2800_v36, 0.0  ;;  %4098 = vmatprep.subr.bf16.mxu1 %v11638_v34 }
 0x4f9   : > { %v2909_v43 = vmax.f32 %v2802_v42, 0.0 }
 0x4fa   : > { %v2954_v52 = vpack.c.bf16 %v2908_v48, %v2906_v37  ;;  %10250 = vmatmul.mubr.msk.f32.gmra.mrb[222].mxu0 %vm561_vm1, %v16015_v50  ;;  %v11642_v48 = vld [vmem:[#allocation4 + $0x5b0] ss:$8 sps:$4 sm:$0xff]  }
 0x4fb   : > { %v2955_v53 = vpack.c.bf16 %v2909_v43, %v2907_v40  ;;  %v2805_v54 = vpop.f32.mrb[164].mxu0  ;;  %3578 = vmatprep.mubr.f32.mxu0 %v12417_v55  ;;  %4099 = vmatpush1.bf16.msra.mxu1 %v11636_v44 }
 0x4fc   : > { %v2806_v56 = vadd.f32 %v2805_v54, %v13431_v23  ;;  %v2807_v57 = vpop.f32.mrb[165].mxu0  ;;  %4100 = vmatprep.subr.bf16.mxu1 %v11641_v51  ;;  %v11644_v51 = vld [vmem:[#allocation4 + $0x5b4] ss:$8 sps:$4 sm:$0xff]   ;;  %v16022_v54 = vld [vmem:[#allocation26_spill] sm:$0xff] }
 0x4fd   : > { %v2808_v59 = vadd.f32 %v2807_v57, %v13439_v3  ;;  %v2809_v60 = vpop.f32.mrb[166].mxu0  ;;  %3277 = vmatprep.mubr.bf16.mxu1 %v2955_v53 }
 0x4fe   : > { %v2910_v61 = vmax.f32 %v2806_v56, 0.0  ;;  %v2810_v62 = vadd.f32 %v2809_v60, %v13431_v23  ;;  %10251 = vmatmul.mubr.msk.f32.gmra.mrb[224].mxu0 %vm561_vm1, %v16016_v63  ;;  %v2811_v1 = vpop.f32.mrb[167].mxu0  ;;  %3278 = vmatmul.mubr.bf16.gmra.mrb[148].mxu1 %v2954_v52 }
 0x4ff   : > { %v2911_v0 = vmax.f32 %v2808_v59, 0.0  ;;  %v2812_v8 = vadd.f32 %v2811_v1, %v13439_v3  ;;  %3584 = vmatprep.mubr.f32.mxu0 %v12417_v55  ;;  %4101 = vmatpush1.bf16.msra.mxu1 %v11639_v18 }
 0x500   : > { %v2912_v4 = vmax.f32 %v2810_v62, 0.0  ;;  %4102 = vmatprep.subr.bf16.mxu1 %v11644_v51  ;;  %v16023_v62 = vld [vmem:[#allocation27_spill] sm:$0xff] }
 0x501   : > { %v2913_v9 = vmax.f32 %v2812_v8, 0.0 }
 0x502   : > { %v2956_v19 = vpack.c.bf16 %v2912_v4, %v2910_v61  ;;  %10252 = vmatmul.mubr.msk.f32.gmra.mrb[226].mxu0 %vm561_vm1, %v16017_v10  ;;  %v11645_v4 = vld [vmem:[#allocation4 + $0x5c0] ss:$8 sps:$4 sm:$0xff]  }
 0x503   : > { %v2957_v14 = vpack.c.bf16 %v2913_v9, %v2911_v0  ;;  %v2815_v47 = vpop.f32.mrb[168].mxu0  ;;  %3590 = vmatprep.mubr.f32.mxu0 %v12417_v55  ;;  %4103 = vmatpush1.bf16.msra.mxu1 %v11642_v48  ;;  %v11647_v9 = vld [vmem:[#allocation4 + $0x5c4] ss:$8 sps:$4 sm:$0xff]   ;;  %v16028_v48 = vld [vmem:[#allocation33_spill] sm:$0xff] }
 0x504   : > { %v2816_v15 = vadd.f32 %v2815_v47, %v13431_v23  ;;  %v2817_v16 = vpop.f32.mrb[169].mxu0  ;;  %4104 = vmatprep.subr.bf16.mxu1 %v11647_v9 }
 0x505   : > { %v2818_v20 = vadd.f32 %v2817_v16, %v13439_v3  ;;  %v2819_v5 = vpop.f32.mrb[170].mxu0  ;;  %3287 = vmatprep.mubr.bf16.mxu1 %v2957_v14 }
 0x506   : > { %v2914_v21 = vmax.f32 %v2816_v15, 0.0  ;;  %v2820_v22 = vadd.f32 %v2819_v5, %v13431_v23  ;;  %10253 = vmatmul.mubr.msk.f32.gmra.mrb[228].mxu0 %vm561_vm1, %v16018_v26  ;;  %v2821_v6 = vpop.f32.mrb[171].mxu0  ;;  %3288 = vmatmul.mubr.bf16.gmra.mrb[152].mxu1 %v2956_v19  ;;  %v16024_v15 = vld [vmem:[#allocation28_spill] sm:$0xff] }
 0x507   : > { %v2915_v7 = vmax.f32 %v2818_v20, 0.0  ;;  %v2822_v27 = vadd.f32 %v2821_v6, %v13439_v3  ;;  %3596 = vmatprep.mubr.f32.mxu0 %v12417_v55  ;;  %4105 = vmatpush1.bf16.msra.mxu1 %v11645_v4  ;;  %v16025_v6 = vld [vmem:[#allocation29_spill] sm:$0xff]  ;;  %v16037_v4 = vld [vmem:[#allocation47_spill] sm:$0xff] }
 0x508   : > { %v2916_v11 = vmax.f32 %v2820_v22, 0.0 }
 0x509   : > { %v2917_v28 = vmax.f32 %v2822_v27, 0.0 }
 0x50a   : > { %v2958_v45 = vpack.c.bf16 %v2916_v11, %v2914_v21  ;;  %10254 = vmatmul.mubr.msk.f32.gmra.mrb[230].mxu0 %vm561_vm1, %v16019_v12  ;;  %v11650_v12 = vld [vmem:[#allocation4 + $0x5d4] ss:$8 sps:$4 sm:$0xff]  }
 0x50b   : > { %v2959_v46 = vpack.c.bf16 %v2917_v28, %v2915_v7  ;;  %v2825_v49 = vpop.f32.mrb[172].mxu0  ;;  %3602 = vmatprep.mubr.f32.mxu0 %v12417_v55  ;;  %4106 = vmatprep.subr.bf16.mxu1 %v11650_v12 }
 0x50c   : > { %v2826_v32 = vadd.f32 %v2825_v49, %v13431_v23  ;;  %v2827_v13 = vpop.f32.mrb[173].mxu0 }
 0x50d   : > { %v2828_v17 = vadd.f32 %v2827_v13, %v13439_v3  ;;  %v2829_v24 = vpop.f32.mrb[174].mxu0  ;;  %3297 = vmatprep.mubr.bf16.mxu1 %v2959_v46 }
 0x50e   : > { %v2918_v25 = vmax.f32 %v2826_v32, 0.0  ;;  %v2830_v29 = vadd.f32 %v2829_v24, %v13431_v23  ;;  %10255 = vmatmul.mubr.msk.f32.gmra.mrb[232].mxu0 %vm561_vm1, %v16020_v30  ;;  %v2831_v31 = vpop.f32.mrb[175].mxu0  ;;  %3298 = vmatmul.mubr.bf16.gmra.mrb[156].mxu1 %v2958_v45  ;;  %v11648_v45 = vld [vmem:[#allocation4 + $0x5d0] ss:$8 sps:$4 sm:$0xff]  }
 0x50f   : > { %v2919_v34 = vmax.f32 %v2828_v17, 0.0  ;;  %v2832_v33 = vadd.f32 %v2831_v31, %v13439_v3  ;;  %3608 = vmatprep.mubr.f32.mxu0 %v12417_v55  ;;  %v16026_v17 = vld [vmem:[#allocation30_spill] sm:$0xff]  ;;  %4107 = vmatpush1.bf16.msra.mxu1 %v11648_v45 }
 0x510   : > { %v2920_v35 = vmax.f32 %v2830_v29, 0.0 }
 0x511   : > { %v2921_v37 = vmax.f32 %v2832_v33, 0.0  ;;  %v16027_v33 = vld [vmem:[#allocation32_spill] sm:$0xff] }
 0x512   : > { %v2960_v36 = vpack.c.bf16 %v2920_v35, %v2918_v25  ;;  %10256 = vmatmul.mubr.msk.f32.gmra.mrb[234].mxu0 %vm561_vm1, %v16021_v38 }
 0x513   : > { %v2961_v39 = vpack.c.bf16 %v2921_v37, %v2919_v34  ;;  %v2835_v40 = vpop.f32.mrb[176].mxu0  ;;  %3614 = vmatprep.mubr.f32.mxu0 %v12417_v55 }
 0x514   : > { %v2836_v42 = vadd.f32 %v2835_v40, %v13431_v23  ;;  %v2837_v44 = vpop.f32.mrb[177].mxu0 }
 0x515   : > { %v2838_v43 = vadd.f32 %v2837_v44, %v13439_v3  ;;  %v2839_v52 = vpop.f32.mrb[178].mxu0  ;;  %3307 = vmatprep.mubr.bf16.mxu1 %v2961_v39 }
 0x516   : > { %v2922_v50 = vmax.f32 %v2836_v42, 0.0  ;;  %v2840_v53 = vadd.f32 %v2839_v52, %v13431_v23  ;;  %10257 = vmatmul.mubr.msk.f32.gmra.mrb[236].mxu0 %vm561_vm1, %v16022_v54  ;;  %v2841_v18 = vpop.f32.mrb[179].mxu0  ;;  %3308 = vmatmul.mubr.bf16.gmra.mrb[160].mxu1 %v2960_v36 }
 0x517   : > { %v2923_v56 = vmax.f32 %v2838_v43, 0.0  ;;  %v2842_v57 = vadd.f32 %v2841_v18, %v13439_v3  ;;  %3620 = vmatprep.mubr.f32.mxu0 %v12417_v55  ;;  %v11653_v43 = vld [vmem:[#allocation4 + $0x5e4] ss:$8 sps:$4 sm:$0xff]  }
 0x518   : > { %v2924_v59 = vmax.f32 %v2840_v53, 0.0  ;;  %v11651_v53 = vld [vmem:[#allocation4 + $0x5e0] ss:$8 sps:$4 sm:$0xff]   ;;  %4108 = vmatprep.subr.bf16.mxu1 %v11653_v43 }
 0x519   : > { %v2925_v60 = vmax.f32 %v2842_v57, 0.0  ;;  %4109 = vmatpush1.bf16.msra.mxu1 %v11651_v53  ;;  %v16029_v57 = vld [vmem:[#allocation34_spill] sm:$0xff] }
 0x51a   : > { %v2962_v61 = vpack.c.bf16 %v2924_v59, %v2922_v50  ;;  %10258 = vmatmul.mubr.msk.f32.gmra.mrb[238].mxu0 %vm561_vm1, %v16023_v62  ;;  %v16032_v62 = vld [vmem:[#allocation40_spill] sm:$0xff] }
 0x51b   : > { %v2963_v63 = vpack.c.bf16 %v2925_v60, %v2923_v56  ;;  %v2845_v1 = vpop.f32.mrb[180].mxu0  ;;  %3626 = vmatprep.mubr.f32.mxu0 %v12417_v55  ;;  %v11654_v60 = vld [vmem:[#allocation4 + $0x5f0] ss:$8 sps:$4 sm:$0xff]  }
 0x51c   : > { %v2846_v0 = vadd.f32 %v2845_v1, %v13431_v23  ;;  %v2847_v8 = vpop.f32.mrb[181].mxu0  ;;  %v16034_v1 = vld [vmem:[#allocation44_spill] sm:$0xff] }
 0x51d   : > { %v2848_v19 = vadd.f32 %v2847_v8, %v13439_v3  ;;  %v2849_v10 = vpop.f32.mrb[182].mxu0  ;;  %3317 = vmatprep.mubr.bf16.mxu1 %v2963_v63  ;;  %v16033_v63 = vld [vmem:[#allocation43_spill] sm:$0xff]  ;;  %v16036_v8 = vld [vmem:[#allocation46_spill] sm:$0xff] }
 0x51e   : > { %v2926_v14 = vmax.f32 %v2846_v0, 0.0  ;;  %v2850_v47 = vadd.f32 %v2849_v10, %v13431_v23  ;;  %10259 = vmatmul.mubr.msk.f32.gmra.mrb[240].mxu0 %vm561_vm1, %v16024_v15  ;;  %v2851_v16 = vpop.f32.mrb[183].mxu0  ;;  %3318 = vmatmul.mubr.bf16.gmra.mrb[164].mxu1 %v2962_v61  ;;  %v16031_v61 = vld [vmem:[#allocation39_spill] sm:$0xff]  ;;  %v16035_v0 = vld [vmem:[#allocation45_spill] sm:$0xff] }
 0x51f   : > { %v2927_v20 = vmax.f32 %v2848_v19, 0.0  ;;  %v2852_v5 = vadd.f32 %v2851_v16, %v13439_v3  ;;  %3632 = vmatprep.mubr.f32.mxu0 %v12417_v55  ;;  %v11657_v16 = vld [vmem:[#allocation4 + $0x600] ss:$8 sps:$4 sm:$0xff]  }
 0x520   : > { %v2928_v21 = vmax.f32 %v2850_v47, 0.0 }
 0x521   : > { %v2929_v22 = vmax.f32 %v2852_v5, 0.0 }
 0x522   : > { %v2964_v26 = vpack.c.bf16 %v2928_v21, %v2926_v14  ;;  %10260 = vmatmul.mubr.msk.f32.gmra.mrb[242].mxu0 %vm561_vm1, %v16025_v6  ;;  %v11662_v6 = vld [vmem:[#allocation4 + $0x614] ss:$8 sps:$4 sm:$0xff]  }
 0x523   : > { %v2965_v7 = vpack.c.bf16 %v2929_v22, %v2927_v20  ;;  %v2855_v27 = vpop.f32.mrb[184].mxu0  ;;  %3638 = vmatprep.mubr.f32.mxu0 %v12417_v55  ;;  %v11659_v20 = vld [vmem:[#allocation4 + $0x604] ss:$8 sps:$4 sm:$0xff]  }
 0x524   : > { %v2856_v11 = vadd.f32 %v2855_v27, %v13431_v23  ;;  %v2857_v28 = vpop.f32.mrb[185].mxu0  ;;  %4570 = vmatprep.subr.bf16.mxu0 %v11659_v20 }
 0x525   : > { %v2858_v46 = vadd.f32 %v2857_v28, %v13439_v3  ;;  %v2859_v49 = vpop.f32.mrb[186].mxu0  ;;  %3327 = vmatprep.mubr.bf16.mxu1 %v2965_v7  ;;  %4571 = vmatpush1.bf16.msra.mxu0 %v11657_v16 }
 0x526   : > { %v2930_v32 = vmax.f32 %v2856_v11, 0.0  ;;  %v2860_v13 = vadd.f32 %v2859_v49, %v13431_v23  ;;  %10261 = vmatmul.mubr.msk.f32.gmra.mrb[244].mxu0 %vm561_vm1, %v16026_v17  ;;  %v2861_v24 = vpop.f32.mrb[187].mxu0  ;;  %3328 = vmatmul.mubr.bf16.gmra.mrb[168].mxu1 %v2964_v26  ;;  %v3713_v11 = vsub.s32 5, %v13027_v41  ;;  %v11665_v17 = vld [vmem:[#allocation4 + $0x624] ss:$8 sps:$4 sm:$0xff]  }
 0x527   : > { %v2931_v25 = vmax.f32 %v2858_v46, 0.0  ;;  %v2862_v29 = vadd.f32 %v2861_v24, %v13439_v3  ;;  %3644 = vmatprep.mubr.f32.mxu0 %v12417_v55  ;;  %4572 = vmatprep.subr.bf16.mxu0 %v11662_v6 }
 0x528   : > { %v2932_v30 = vmax.f32 %v2860_v13, 0.0  ;;  %v13618_v46 = vrot.slane %v13428_v2, %v3713_v11  ;;  %v11663_v13 = vld [vmem:[#allocation4 + $0x620] ss:$8 sps:$4 sm:$0xff]  }
 0x529   : > { %v2933_v31 = vmax.f32 %v2862_v29, 0.0 }
 0x52a   : > { %v2966_v34 = vpack.c.bf16 %v2932_v30, %v2930_v32  ;;  %10262 = vmatmul.mubr.msk.f32.gmra.mrb[246].mxu0 %vm561_vm1, %v16027_v33  ;;  %v11668_v30 = vld [vmem:[#allocation4 + $0x634] ss:$8 sps:$4 sm:$0xff]   ;;  %v11666_v33 = vld [vmem:[#allocation4 + $0x630] ss:$8 sps:$4 sm:$0xff]  }
 0x52b   : > { %v2967_v35 = vpack.c.bf16 %v2933_v31, %v2931_v25  ;;  %v2865_v37 = vpop.f32.mrb[188].mxu0  ;;  %3650 = vmatprep.mubr.f32.mxu0 %v12417_v55  ;;  %v13623_v25 = vrot.slane %v13436_v58, %v3713_v11 }
 0x52c   : > { %v2866_v36 = vadd.f32 %v2865_v37, %v13431_v23  ;;  %v2867_v38 = vpop.f32.mrb[189].mxu0 }
 0x52d   : > { %v2868_v39 = vadd.f32 %v2867_v38, %v13439_v3  ;;  %v2869_v40 = vpop.f32.mrb[190].mxu0  ;;  %3337 = vmatprep.mubr.bf16.mxu1 %v2967_v35 }
 0x52e   : > { %v2934_v42 = vmax.f32 %v2866_v36, 0.0  ;;  %v2870_v44 = vadd.f32 %v2869_v40, %v13431_v23  ;;  %10263 = vmatmul.mubr.msk.f32.gmra.mrb[248].mxu0 %vm561_vm1, %v16028_v48  ;;  %v2871_v51 = vpop.f32.mrb[191].mxu0  ;;  %3338 = vmatmul.mubr.bf16.gmra.mrb[172].mxu1 %v2966_v34  ;;  %v11656_v23 = vld [vmem:[#allocation4 + $0x5f4] ss:$8 sps:$4 sm:$0xff]   ;;  %v11669_v48 = vld [vmem:[#allocation4 + $0x640] ss:$8 sps:$4 sm:$0xff]  }
 0x52f   : > { %v2935_v52 = vmax.f32 %v2868_v39, 0.0  ;;  %v2872_v50 = vadd.f32 %v2871_v51, %v13439_v3  ;;  %3656 = vmatprep.mubr.f32.mxu0 %v12417_v55  ;;  %4110 = vmatprep.subr.bf16.mxu1 %v11656_v23  ;;  %v16030_v3 = vld [vmem:[#allocation38_spill] sm:$0xff] }
 0x530   : > { %v2936_v54 = vmax.f32 %v2870_v44, 0.0  ;;  %4111 = vmatpush1.bf16.msra.mxu1 %v11654_v60  ;;  %v11671_v39 = vld [vmem:[#allocation4 + $0x644] ss:$8 sps:$4 sm:$0xff]  }
 0x531   : > { %v2937_v18 = vmax.f32 %v2872_v50, 0.0 }
 0x532   : > { %v2968_v56 = vpack.c.bf16 %v2936_v54, %v2934_v42  ;;  %10264 = vmatmul.mubr.msk.f32.gmra.mrb[250].mxu0 %vm561_vm1, %v16029_v57  ;;  %v11674_v54 = vld [vmem:[#allocation4 + $0x654] ss:$8 sps:$4 sm:$0xff]  }
 0x533   : > { %v2969_v59 = vpack.c.bf16 %v2937_v18, %v2935_v52  ;;  %3662 = vmatprep.mubr.f32.mxu0 %v12417_v55 }
 0x535   : > { %3347 = vmatprep.mubr.bf16.mxu1 %v2969_v59 }
 0x536   : > { %10265 = vmatmul.mubr.msk.f32.gmra.mrb[252].mxu0 %vm561_vm1, %v16030_v3  ;;  %3348 = vmatmul.mubr.bf16.gmra.mrb[176].mxu1 %v2968_v56 }
 0x537   : > { %3668 = vmatprep.mubr.f32.mxu0 %v12417_v55 }
 0x53a   : > { %10266 = vmatmul.mubr.msk.f32.gmra.mrb[254].mxu0 %vm561_vm1, %v16031_v61 }
 0x53b   : > { %3674 = vmatprep.mubr.f32.mxu0 %v12417_v55 }
 0x53e   : > { %10267 = vmatmul.mubr.msk.f32.gmra.mrb[0].mxu0 %vm561_vm1, %v16032_v62  ;;  %v11672_v62 = vld [vmem:[#allocation4 + $0x650] ss:$8 sps:$4 sm:$0xff]  }
 0x53f   : > { %3680 = vmatprep.mubr.f32.mxu0 %v12417_v55 }
 0x542   : > { %10268 = vmatmul.mubr.msk.f32.gmra.mrb[2].mxu0 %vm561_vm1, %v16033_v63 }
 0x543   : > { %3686 = vmatprep.mubr.f32.mxu0 %v12417_v55 }
 0x546   : > { %10269 = vmatmul.mubr.msk.f32.gmra.mrb[4].mxu0 %vm561_vm1, %v16034_v1 }
 0x547   : > { %3692 = vmatprep.mubr.f32.mxu0 %v12417_v55 }
 0x54a   : > { %10270 = vmatmul.mubr.msk.f32.gmra.mrb[6].mxu0 %vm561_vm1, %v16035_v0 }
 0x54b   : > { %3698 = vmatprep.mubr.f32.mxu0 %v12417_v55 }
 0x54e   : > { %10271 = vmatmul.mubr.msk.f32.gmra.mrb[8].mxu0 %vm561_vm1, %v16036_v8  ;;  %v11677_v8 = vld [vmem:[#allocation4 + $0x664] ss:$8 sps:$4 sm:$0xff]  }
 0x54f   : > { %3704 = vmatprep.mubr.f32.mxu0 %v12417_v55  ;;  %v11660_v55 = vld [vmem:[#allocation4 + $0x610] ss:$8 sps:$4 sm:$0xff]  }
 0x550   : > { %4573 = vmatpush1.bf16.msra.mxu0 %v11660_v55 }
 0x551   : > { %4574 = vmatprep.subr.bf16.mxu0 %v11665_v17 }
 0x552   : > { %10272 = vmatmul.mubr.msk.f32.gmra.mrb[10].mxu0 %vm561_vm1, %v16037_v4 }
 0x554   : > { %4575 = vmatpush1.bf16.msra.mxu0 %v11663_v13 }
 0x555   : > { %4576 = vmatprep.subr.bf16.mxu0 %v11668_v30 }
 0x558   : > { %4577 = vmatpush1.bf16.msra.mxu0 %v11666_v33 }
 0x559   : > { %4578 = vmatprep.subr.bf16.mxu0 %v11671_v39 }
 0x55c   : > { %4579 = vmatpush1.bf16.msra.mxu0 %v11669_v48 }
 0x55d   : > { %4580 = vmatprep.subr.bf16.mxu0 %v11674_v54 }
 0x560   : > { %4581 = vmatpush1.bf16.msra.mxu0 %v11672_v62 }
 0x561   : > { %4582 = vmatprep.subr.bf16.mxu0 %v11677_v8 }
 0x591   : > { %v3199_v9 = vpop.f32.mrb[192].mxu0 }
 0x592   : > { %v3201_v19 = vpop.f32.mrb[193].mxu0 }
 0x593   : > { %v3203_v10 = vpop.f32.mrb[194].mxu0 }
 0x594   : > { %v3205_v14 = vpop.f32.mrb[195].mxu0 }
 0x599   : > { %v3209_v47 = vpop.f32.mrb[196].mxu0 }
 0x59a   : > { %v3211_v15 = vpop.f32.mrb[197].mxu0 }
 0x59b   : > { %v3213_v5 = vpop.f32.mrb[198].mxu0 }
 0x59c   : > { %v13604_v21 = vpop.f32.mrb[199].mxu0 }
 0x5a1   : > { %v13606_v22 = vpop.f32.mrb[200].mxu0 }
 0x5a2   : > { %v13608_v26 = vpop.f32.mrb[201].mxu0 }
 0x5a3   : > { %v13610_v7 = vpop.f32.mrb[202].mxu0 }
 0x5a4   : > { %v13612_v27 = vpop.f32.mrb[203].mxu0 }
 0x5a9   : > { %v3520_v28 = vpop.f32.mrb[204].mxu0  ;;  %v13615_v45 = vpop.f32.mrb[128].mxu1 }
 0x5aa   : > { %v3521_v12 = vadd.f32 %v3520_v28, %v3199_v9  ;;  %v3522_v49 = vpop.f32.mrb[205].mxu0  ;;  %v13620_v32 = vpop.f32.mrb[129].mxu1 }
 0x5ab   : > { %v3523_v24 = vadd.f32 %v3522_v49, %v3201_v19  ;;  %v13625_v29 = vpop.f32.mrb[130].mxu1 }
 0x5ac   : > { %v13627_v31 = vpop.f32.mrb[131].mxu1  ;;  %v3719_v2 = vadd.f32 %v13618_v46, %v3521_v12 }
 0x5ad   : > { %v3526_v34 = vpop.f32.mrb[206].mxu0  ;;  %v3720_v36 = vadd.f32 %v13623_v25, %v3523_v24 }
 0x5ae   : > { %v3527_v35 = vadd.f32 %v3526_v34, %v3203_v10  ;;  %v3528_v37 = vpop.f32.mrb[207].mxu0  ;;  %v3783_v51 = vmax.f32 %v3719_v2, 0.0  ;;  %v11678_v34 = vld [vmem:[#allocation4 + $0x670] ss:$8 sps:$4 sm:$0xff]  }
 0x5af   : > { %v3529_v38 = vadd.f32 %v3528_v37, %v3205_v14  ;;  %v3784_v18 = vmax.f32 %v3720_v36, 0.0 }
 0x5b0   : > { %v3721_v58 = vadd.f32 %v13618_v46, %v3527_v35  ;;  %v11683_v35 = vld [vmem:[#allocation4 + $0x684] ss:$8 sps:$4 sm:$0xff]  }
 0x5b1   : > { %v3722_v40 = vadd.f32 %v13623_v25, %v3529_v38  ;;  %v3532_v42 = vpop.f32.mrb[208].mxu0  ;;  %v13633_v44 = vpop.f32.mrb[132].mxu1 }
 0x5b2   : > { %v3785_v43 = vmax.f32 %v3721_v58, 0.0  ;;  %v3533_v52 = vadd.f32 %v3532_v42, %v3209_v47  ;;  %v3534_v50 = vpop.f32.mrb[209].mxu0  ;;  %v13635_v53 = vpop.f32.mrb[133].mxu1 }
 0x5b3   : > { %v3786_v56 = vmax.f32 %v3722_v40, 0.0  ;;  %v3535_v57 = vadd.f32 %v3534_v50, %v3211_v15  ;;  %v13637_v23 = vpop.f32.mrb[134].mxu1  ;;  %v11675_v15 = vld [vmem:[#allocation4 + $0x660] ss:$8 sps:$4 sm:$0xff]  }
 0x5b4   : > { %v3847_v59 = vpack.c.bf16 %v3785_v43, %v3783_v51  ;;  %v13639_v60 = vpop.f32.mrb[135].mxu1  ;;  %v3723_v63 = vadd.f32 %v13618_v46, %v3533_v52  ;;  %4583 = vmatpush1.bf16.msra.mxu0 %v11675_v15  ;;  %v11681_v40 = vld [vmem:[#allocation4 + $0x680] ss:$8 sps:$4 sm:$0xff]  }
 0x5b5   : > { %v3538_v3 = vpop.f32.mrb[210].mxu0  ;;  %v3848_v61 = vpack.c.bf16 %v3786_v56, %v3784_v18  ;;  %v3724_v4 = vadd.f32 %v13623_v25, %v3535_v57 }
 0x5b6   : > { %v3539_v1 = vadd.f32 %v3538_v3, %v3213_v5  ;;  %v3540_v0 = vpop.f32.mrb[211].mxu0  ;;  %v3787_v16 = vmax.f32 %v3723_v63, 0.0 }
 0x5b7   : > { %v3541_v9 = vadd.f32 %v3540_v0, %v13604_v21  ;;  %4112 = vmatprep.mubr.bf16.mxu1 %v3848_v61  ;;  %v11680_v21 = vld [vmem:[#allocation4 + $0x674] ss:$8 sps:$4 sm:$0xff]   ;;  %v3788_v11 = vmax.f32 %v3724_v4, 0.0  ;;  %v11684_v61 = vld [vmem:[#allocation4 + $0x690] ss:$8 sps:$4 sm:$0xff]  }
 0x5b8   : > { %v3725_v19 = vadd.f32 %v13618_v46, %v3539_v1  ;;  %4113 = vmatmul.mubr.bf16.vlgmr.msra.gmra.mrb[180].mxu1 %v3847_v59  ;;  %4584 = vmatprep.subr.bf16.mxu0 %v11680_v21  ;;  %v11689_v1 = vld [vmem:[#allocation4 + $0x6a4] ss:$8 sps:$4 sm:$0xff]  }
 0x5b9   : > { %v3726_v10 = vadd.f32 %v13623_v25, %v3541_v9  ;;  %v3544_v14 = vpop.f32.mrb[212].mxu0  ;;  %v13646_v47 = vpop.f32.mrb[136].mxu1  ;;  %4585 = vmatpush1.bf16.msra.mxu0 %v11678_v34 }
 0x5ba   : > { %v3789_v20 = vmax.f32 %v3725_v19, 0.0  ;;  %v3545_v5 = vadd.f32 %v3544_v14, %v13606_v22  ;;  %v3546_v55 = vpop.f32.mrb[213].mxu0  ;;  %v13649_v6 = vpop.f32.mrb[137].mxu1  ;;  %4586 = vmatprep.subr.bf16.mxu0 %v11683_v35 }
 0x5bb   : > { %v3790_v28 = vmax.f32 %v3726_v10, 0.0  ;;  %v3547_v12 = vadd.f32 %v3546_v55, %v13608_v26  ;;  %v13652_v49 = vpop.f32.mrb[138].mxu1  ;;  %v11687_v10 = vld [vmem:[#allocation4 + $0x6a0] ss:$8 sps:$4 sm:$0xff]  }
 0x5bc   : > { %v13654_v13 = vpop.f32.mrb[139].mxu1  ;;  %v3849_v17 = vpack.c.bf16 %v3789_v20, %v3787_v16  ;;  %v3727_v22 = vadd.f32 %v13618_v46, %v3545_v5 }
 0x5bd   : > { %v3550_v24 = vpop.f32.mrb[214].mxu0  ;;  %v3850_v30 = vpack.c.bf16 %v3790_v28, %v3788_v11  ;;  %v3728_v37 = vadd.f32 %v13623_v25, %v3547_v12  ;;  %4587 = vmatpush1.bf16.msra.mxu0 %v11681_v40 }
 0x5be   : > { %v3551_v33 = vadd.f32 %v3550_v24, %v13610_v7  ;;  %v3552_v2 = vpop.f32.mrb[215].mxu0  ;;  %v3791_v42 = vmax.f32 %v3727_v22, 0.0 }
 0x5bf   : > { %v3553_v26 = vadd.f32 %v3552_v2, %v13612_v27  ;;  %4122 = vmatprep.mubr.bf16.mxu1 %v3850_v30  ;;  %v11686_v27 = vld [vmem:[#allocation4 + $0x694] ss:$8 sps:$4 sm:$0xff]   ;;  %v3792_v52 = vmax.f32 %v3728_v37, 0.0  ;;  %v11690_v30 = vld [vmem:[#allocation4 + $0x6b0] ss:$8 sps:$4 sm:$0xff]  }
 0x5c0   : > { %v3729_v36 = vadd.f32 %v13618_v46, %v3551_v33  ;;  %4123 = vmatmul.mubr.bf16.gmra.mrb[184].mxu1 %v3849_v17  ;;  %4588 = vmatprep.subr.bf16.mxu0 %v11686_v27  ;;  %v11695_v33 = vld [vmem:[#allocation4 + $0x6c4] ss:$8 sps:$4 sm:$0xff]  }
 0x5c1   : > { %v3730_v38 = vadd.f32 %v13623_v25, %v3553_v26  ;;  %v3556_v58 = vpop.f32.mrb[216].mxu0  ;;  %v13662_v39 = vpop.f32.mrb[140].mxu1  ;;  %4589 = vmatpush1.bf16.msra.mxu0 %v11684_v61 }
 0x5c2   : > { %v3793_v7 = vmax.f32 %v3729_v36, 0.0  ;;  %v3557_v48 = vadd.f32 %v3556_v58, %v13615_v45  ;;  %v3558_v51 = vpop.f32.mrb[217].mxu0  ;;  %v13665_v43 = vpop.f32.mrb[141].mxu1  ;;  %4590 = vmatprep.subr.bf16.mxu0 %v11689_v1 }
 0x5c3   : > { %v3794_v50 = vmax.f32 %v3730_v38, 0.0  ;;  %v3559_v54 = vadd.f32 %v3558_v51, %v13620_v32  ;;  %v13668_v18 = vpop.f32.mrb[142].mxu1  ;;  %v11693_v38 = vld [vmem:[#allocation4 + $0x6c0] ss:$8 sps:$4 sm:$0xff]  }
 0x5c4   : > { %v13670_v56 = vpop.f32.mrb[143].mxu1  ;;  %v3851_v57 = vpack.c.bf16 %v3793_v7, %v3791_v42  ;;  %v3731_v45 = vadd.f32 %v13618_v46, %v3557_v48 }
 0x5c5   : > { %v3562_v59 = vpop.f32.mrb[218].mxu0  ;;  %v3852_v3 = vpack.c.bf16 %v3794_v50, %v3792_v52  ;;  %v3732_v0 = vadd.f32 %v13623_v25, %v3559_v54  ;;  %4591 = vmatpush1.bf16.msra.mxu0 %v11687_v10 }
 0x5c6   : > { %v3563_v62 = vadd.f32 %v3562_v59, %v13625_v29  ;;  %v3564_v63 = vpop.f32.mrb[219].mxu0  ;;  %v3795_v14 = vmax.f32 %v3731_v45, 0.0 }
 0x5c7   : > { %v3565_v32 = vadd.f32 %v3564_v63, %v13627_v31  ;;  %4132 = vmatprep.mubr.bf16.mxu1 %v3852_v3  ;;  %v11692_v31 = vld [vmem:[#allocation4 + $0x6b4] ss:$8 sps:$4 sm:$0xff]   ;;  %v3796_v5 = vmax.f32 %v3732_v0, 0.0  ;;  %v11696_v3 = vld [vmem:[#allocation4 + $0x6d0] ss:$8 sps:$4 sm:$0xff]  }
 0x5c8   : > { %v3733_v8 = vadd.f32 %v13618_v46, %v3563_v62  ;;  %4133 = vmatmul.mubr.bf16.gmra.mrb[188].mxu1 %v3851_v57  ;;  %4592 = vmatprep.subr.bf16.mxu0 %v11692_v31  ;;  %v11701_v62 = vld [vmem:[#allocation4 + $0x6e4] ss:$8 sps:$4 sm:$0xff]  }
 0x5c9   : > { %v3734_v4 = vadd.f32 %v13623_v25, %v3565_v32  ;;  %v3568_v9 = vpop.f32.mrb[220].mxu0  ;;  %v13678_v19 = vpop.f32.mrb[144].mxu1  ;;  %4593 = vmatpush1.bf16.msra.mxu0 %v11690_v30 }
 0x5ca   : > { %v3797_v29 = vmax.f32 %v3733_v8, 0.0  ;;  %v3569_v15 = vadd.f32 %v3568_v9, %v13633_v44  ;;  %v3570_v16 = vpop.f32.mrb[221].mxu0  ;;  %v13681_v20 = vpop.f32.mrb[145].mxu1  ;;  %4594 = vmatprep.subr.bf16.mxu0 %v11695_v33 }
 0x5cb   : > { %v3798_v55 = vmax.f32 %v3734_v4, 0.0  ;;  %v3571_v21 = vadd.f32 %v3570_v16, %v13635_v53  ;;  %v13684_v11 = vpop.f32.mrb[146].mxu1  ;;  %v11699_v4 = vld [vmem:[#allocation4 + $0x6e0] ss:$8 sps:$4 sm:$0xff]  }
 0x5cc   : > { %v13686_v28 = vpop.f32.mrb[147].mxu1  ;;  %v3853_v12 = vpack.c.bf16 %v3797_v29, %v3795_v14  ;;  %v3735_v44 = vadd.f32 %v13618_v46, %v3569_v15 }
 0x5cd   : > { %v3574_v17 = vpop.f32.mrb[222].mxu0  ;;  %v3854_v24 = vpack.c.bf16 %v3798_v55, %v3796_v5  ;;  %v3736_v2 = vadd.f32 %v13623_v25, %v3571_v21  ;;  %4595 = vmatpush1.bf16.msra.mxu0 %v11693_v38 }
 0x5ce   : > { %v3575_v34 = vadd.f32 %v3574_v17, %v13637_v23  ;;  %v3576_v22 = vpop.f32.mrb[223].mxu0  ;;  %v3799_v58 = vmax.f32 %v3735_v44, 0.0 }
 0x5cf   : > { %v3577_v53 = vadd.f32 %v3576_v22, %v13639_v60  ;;  %4142 = vmatprep.mubr.bf16.mxu1 %v3854_v24  ;;  %v11698_v60 = vld [vmem:[#allocation4 + $0x6d4] ss:$8 sps:$4 sm:$0xff]   ;;  %v3800_v48 = vmax.f32 %v3736_v2, 0.0 }
 0x5d0   : > { %v3737_v35 = vadd.f32 %v13618_v46, %v3575_v34  ;;  %4143 = vmatmul.mubr.bf16.gmra.mrb[192].mxu1 %v3853_v12  ;;  %4596 = vmatprep.subr.bf16.mxu0 %v11698_v60 }
 0x5d1   : > { %v3738_v37 = vadd.f32 %v13623_v25, %v3577_v53  ;;  %v3580_v26 = vpop.f32.mrb[224].mxu0  ;;  %v13694_v36 = vpop.f32.mrb[148].mxu1  ;;  %4597 = vmatpush1.bf16.msra.mxu0 %v11696_v3 }
 0x5d2   : > { %v3801_v23 = vmax.f32 %v3737_v35, 0.0  ;;  %v3581_v40 = vadd.f32 %v3580_v26, %v13646_v47  ;;  %v3582_v42 = vpop.f32.mrb[225].mxu0  ;;  %v13697_v7 = vpop.f32.mrb[149].mxu1  ;;  %4598 = vmatprep.subr.bf16.mxu0 %v11701_v62 }
 0x5d3   : > { %v3802_v51 = vmax.f32 %v3738_v37, 0.0  ;;  %v3583_v27 = vadd.f32 %v3582_v42, %v13649_v6  ;;  %v13700_v52 = vpop.f32.mrb[150].mxu1 }
 0x5d4   : > { %v13702_v50 = vpop.f32.mrb[151].mxu1  ;;  %v3855_v54 = vpack.c.bf16 %v3801_v23, %v3799_v58  ;;  %v3739_v47 = vadd.f32 %v13618_v46, %v3581_v40 }
 0x5d5   : > { %v3586_v57 = vpop.f32.mrb[226].mxu0  ;;  %v3856_v59 = vpack.c.bf16 %v3802_v51, %v3800_v48  ;;  %v3740_v63 = vadd.f32 %v13623_v25, %v3583_v27  ;;  %4599 = vmatpush1.bf16.msra.mxu0 %v11699_v4 }
 0x5d6   : > { %v3587_v61 = vadd.f32 %v3586_v57, %v13652_v49  ;;  %v3588_v45 = vpop.f32.mrb[227].mxu0  ;;  %v3803_v9 = vmax.f32 %v3739_v47, 0.0 }
 0x5d7   : > { %v3589_v6 = vadd.f32 %v3588_v45, %v13654_v13  ;;  %4152 = vmatprep.mubr.bf16.mxu1 %v3856_v59  ;;  %v3804_v13 = vmax.f32 %v3740_v63, 0.0 }
 0x5d8   : > { %v3741_v1 = vadd.f32 %v13618_v46, %v3587_v61  ;;  %4153 = vmatmul.mubr.bf16.gmra.mrb[196].mxu1 %v3855_v54 }
 0x5d9   : > { %v3742_v0 = vadd.f32 %v13623_v25, %v3589_v6  ;;  %v3592_v32 = vpop.f32.mrb[228].mxu0  ;;  %v13710_v8 = vpop.f32.mrb[152].mxu1 }
 0x5da   : > { %v3805_v49 = vmax.f32 %v3741_v1, 0.0  ;;  %v3593_v10 = vadd.f32 %v3592_v32, %v13662_v39  ;;  %v3594_v14 = vpop.f32.mrb[229].mxu0  ;;  %v13713_v29 = vpop.f32.mrb[153].mxu1 }
 0x5db   : > { %v3806_v15 = vmax.f32 %v3742_v0, 0.0  ;;  %v3595_v16 = vadd.f32 %v3594_v14, %v13665_v43  ;;  %v13716_v31 = vpop.f32.mrb[154].mxu1 }
 0x5dc   : > { %v13718_v5 = vpop.f32.mrb[155].mxu1  ;;  %v3857_v55 = vpack.c.bf16 %v3805_v49, %v3803_v9  ;;  %v3743_v17 = vadd.f32 %v13618_v46, %v3593_v10 }
 0x5dd   : > { %v3598_v21 = vpop.f32.mrb[230].mxu0  ;;  %v3858_v12 = vpack.c.bf16 %v3806_v15, %v3804_v13  ;;  %v3744_v30 = vadd.f32 %v13623_v25, %v3595_v16 }
 0x5de   : > { %v3599_v39 = vadd.f32 %v3598_v21, %v13668_v18  ;;  %v3600_v24 = vpop.f32.mrb[231].mxu0  ;;  %v3807_v2 = vmax.f32 %v3743_v17, 0.0 }
 0x5df   : > { %v3601_v44 = vadd.f32 %v3600_v24, %v13670_v56  ;;  %4162 = vmatprep.mubr.bf16.mxu1 %v3858_v12  ;;  %v3808_v26 = vmax.f32 %v3744_v30, 0.0 }
 0x5e0   : > { %v3745_v43 = vadd.f32 %v13618_v46, %v3599_v39  ;;  %4163 = vmatmul.mubr.bf16.gmra.mrb[200].mxu1 %v3857_v55 }
 0x5e1   : > { %v3746_v34 = vadd.f32 %v13623_v25, %v3601_v44  ;;  %v3604_v22 = vpop.f32.mrb[232].mxu0  ;;  %v13726_v33 = vpop.f32.mrb[156].mxu1 }
 0x5e2   : > { %v3809_v53 = vmax.f32 %v3745_v43, 0.0  ;;  %v3605_v35 = vadd.f32 %v3604_v22, %v13678_v19  ;;  %v3606_v37 = vpop.f32.mrb[233].mxu0  ;;  %v13729_v18 = vpop.f32.mrb[157].mxu1 }
 0x5e3   : > { %v3810_v38 = vmax.f32 %v3746_v34, 0.0  ;;  %v3607_v56 = vadd.f32 %v3606_v37, %v13681_v20  ;;  %v13732_v58 = vpop.f32.mrb[158].mxu1 }
 0x5e4   : > { %v13734_v23 = vpop.f32.mrb[159].mxu1  ;;  %v3859_v40 = vpack.c.bf16 %v3809_v53, %v3807_v2  ;;  %v3747_v48 = vadd.f32 %v13618_v46, %v3605_v35 }
 0x5e5   : > { %v3610_v42 = vpop.f32.mrb[234].mxu0  ;;  %v3860_v60 = vpack.c.bf16 %v3810_v38, %v3808_v26  ;;  %v3748_v19 = vadd.f32 %v13623_v25, %v3607_v56 }
 0x5e6   : > { %v3611_v51 = vadd.f32 %v3610_v42, %v13684_v11  ;;  %v3612_v27 = vpop.f32.mrb[235].mxu0  ;;  %v3811_v47 = vmax.f32 %v3747_v48, 0.0 }
 0x5e7   : > { %v3613_v54 = vadd.f32 %v3612_v27, %v13686_v28  ;;  %4172 = vmatprep.mubr.bf16.mxu1 %v3860_v60  ;;  %v3812_v63 = vmax.f32 %v3748_v19, 0.0 }
 0x5e8   : > { %v3749_v57 = vadd.f32 %v13618_v46, %v3611_v51  ;;  %4173 = vmatmul.mubr.bf16.gmra.mrb[204].mxu1 %v3859_v40 }
 0x5e9   : > { %v3750_v20 = vadd.f32 %v13623_v25, %v3613_v54  ;;  %v3616_v59 = vpop.f32.mrb[236].mxu0  ;;  %v13742_v3 = vpop.f32.mrb[160].mxu1 }
 0x5ea   : > { %v3813_v61 = vmax.f32 %v3749_v57, 0.0  ;;  %v3617_v45 = vadd.f32 %v3616_v59, %v13694_v36  ;;  %v3618_v62 = vpop.f32.mrb[237].mxu0  ;;  %v13745_v11 = vpop.f32.mrb[161].mxu1 }
 0x5eb   : > { %v3814_v6 = vmax.f32 %v3750_v20, 0.0  ;;  %v3619_v28 = vadd.f32 %v3618_v62, %v13697_v7  ;;  %v13748_v1 = vpop.f32.mrb[162].mxu1 }
 0x5ec   : > { %v13750_v0 = vpop.f32.mrb[163].mxu1  ;;  %v3861_v32 = vpack.c.bf16 %v3813_v61, %v3811_v47  ;;  %v3751_v49 = vadd.f32 %v13618_v46, %v3617_v45 }
 0x5ed   : > { %v3622_v4 = vpop.f32.mrb[238].mxu0  ;;  %v3862_v9 = vpack.c.bf16 %v3814_v6, %v3812_v63  ;;  %v3752_v36 = vadd.f32 %v13623_v25, %v3619_v28 }
 0x5ee   : > { %v3623_v10 = vadd.f32 %v3622_v4, %v13700_v52  ;;  %v3624_v14 = vpop.f32.mrb[239].mxu0  ;;  %v3815_v21 = vmax.f32 %v3751_v49, 0.0 }
 0x5ef   : > { %v3625_v13 = vadd.f32 %v3624_v14, %v13702_v50  ;;  %4182 = vmatprep.mubr.bf16.mxu1 %v3862_v9  ;;  %v3816_v24 = vmax.f32 %v3752_v36, 0.0 }
 0x5f0   : > { %v3753_v15 = vadd.f32 %v13618_v46, %v3623_v10  ;;  %4183 = vmatmul.mubr.bf16.gmra.mrb[208].mxu1 %v3861_v32 }
 0x5f1   : > { %v3754_v7 = vadd.f32 %v13623_v25, %v3625_v13  ;;  %v3628_v16 = vpop.f32.mrb[240].mxu0  ;;  %v13758_v55 = vpop.f32.mrb[164].mxu1 }
 0x5f2   : > { %v3817_v12 = vmax.f32 %v3753_v15, 0.0  ;;  %v3629_v17 = vadd.f32 %v3628_v16, %v13710_v8  ;;  %v3630_v39 = vpop.f32.mrb[241].mxu0  ;;  %v13761_v52 = vpop.f32.mrb[165].mxu1 }
 0x5f3   : > { %v3818_v30 = vmax.f32 %v3754_v7, 0.0  ;;  %v3631_v50 = vadd.f32 %v3630_v39, %v13713_v29  ;;  %v13764_v44 = vpop.f32.mrb[166].mxu1 }
 0x5f4   : > { %v13766_v43 = vpop.f32.mrb[167].mxu1  ;;  %v3863_v34 = vpack.c.bf16 %v3817_v12, %v3815_v21  ;;  %v3755_v53 = vadd.f32 %v13618_v46, %v3629_v17 }
 0x5f5   : > { %v3634_v22 = vpop.f32.mrb[242].mxu0  ;;  %v3864_v2 = vpack.c.bf16 %v3818_v30, %v3816_v24  ;;  %v3756_v8 = vadd.f32 %v13623_v25, %v3631_v50 }
 0x5f6   : > { %v3635_v35 = vadd.f32 %v3634_v22, %v13716_v31  ;;  %v3636_v37 = vpop.f32.mrb[243].mxu0  ;;  %v3819_v42 = vmax.f32 %v3755_v53, 0.0 }
 0x5f7   : > { %v3637_v26 = vadd.f32 %v3636_v37, %v13718_v5  ;;  %4192 = vmatprep.mubr.bf16.mxu1 %v3864_v2  ;;  %v3820_v27 = vmax.f32 %v3756_v8, 0.0 }
 0x5f8   : > { %v3757_v38 = vadd.f32 %v13618_v46, %v3635_v35  ;;  %4193 = vmatmul.mubr.bf16.gmra.mrb[212].mxu1 %v3863_v34 }
 0x5f9   : > { %v3758_v29 = vadd.f32 %v13623_v25, %v3637_v26  ;;  %v3640_v56 = vpop.f32.mrb[244].mxu0  ;;  %v13774_v40 = vpop.f32.mrb[168].mxu1 }
 0x5fa   : > { %v3821_v60 = vmax.f32 %v3757_v38, 0.0  ;;  %v3641_v48 = vadd.f32 %v3640_v56, %v13726_v33  ;;  %v3642_v51 = vpop.f32.mrb[245].mxu0  ;;  %v13777_v31 = vpop.f32.mrb[169].mxu1 }
 0x5fb   : > { %v3822_v19 = vmax.f32 %v3758_v29, 0.0  ;;  %v3643_v5 = vadd.f32 %v3642_v51, %v13729_v18  ;;  %v13780_v54 = vpop.f32.mrb[170].mxu1 }
 0x5fc   : > { %v13782_v57 = vpop.f32.mrb[171].mxu1  ;;  %v3865_v20 = vpack.c.bf16 %v3821_v60, %v3819_v42  ;;  %v3759_v61 = vadd.f32 %v13618_v46, %v3641_v48 }
 0x5fd   : > { %v3646_v59 = vpop.f32.mrb[246].mxu0  ;;  %v3866_v47 = vpack.c.bf16 %v3822_v19, %v3820_v27  ;;  %v3760_v33 = vadd.f32 %v13623_v25, %v3643_v5 }
 0x5fe   : > { %v3647_v45 = vadd.f32 %v3646_v59, %v13732_v58  ;;  %v3648_v62 = vpop.f32.mrb[247].mxu0  ;;  %v3823_v4 = vmax.f32 %v3759_v61, 0.0  ;;  %v11702_v59 = vld [vmem:[#allocation4 + $0x6f0] ss:$8 sps:$4 sm:$0xff]  }
 0x5ff   : > { %v3649_v63 = vadd.f32 %v3648_v62, %v13734_v23  ;;  %4202 = vmatprep.mubr.bf16.mxu1 %v3866_v47  ;;  %v3824_v14 = vmax.f32 %v3760_v33, 0.0 }
 0x600   : > { %v3761_v6 = vadd.f32 %v13618_v46, %v3647_v45  ;;  %4203 = vmatmul.mubr.bf16.gmra.mrb[216].mxu1 %v3865_v20 }
 0x601   : > { %v3762_v18 = vadd.f32 %v13623_v25, %v3649_v63  ;;  %v3652_v28 = vpop.f32.mrb[248].mxu0  ;;  %v13790_v32 = vpop.f32.mrb[172].mxu1 }
 0x602   : > { %v3825_v9 = vmax.f32 %v3761_v6, 0.0  ;;  %v3653_v49 = vadd.f32 %v3652_v28, %v13742_v3  ;;  %v3654_v10 = vpop.f32.mrb[249].mxu0  ;;  %v13793_v58 = vpop.f32.mrb[173].mxu1 }
 0x603   : > { %v3826_v36 = vmax.f32 %v3762_v18, 0.0  ;;  %v3655_v23 = vadd.f32 %v3654_v10, %v13745_v11  ;;  %v13796_v13 = vpop.f32.mrb[174].mxu1 }
 0x604   : > { %v13798_v15 = vpop.f32.mrb[175].mxu1  ;;  %v3867_v7 = vpack.c.bf16 %v3825_v9, %v3823_v4  ;;  %v3763_v12 = vadd.f32 %v13618_v46, %v3653_v49 }
 0x605   : > { %v3658_v16 = vpop.f32.mrb[250].mxu0  ;;  %v3868_v21 = vpack.c.bf16 %v3826_v36, %v3824_v14  ;;  %v3764_v3 = vadd.f32 %v13623_v25, %v3655_v23 }
 0x606   : > { %v3659_v17 = vadd.f32 %v3658_v16, %v13748_v1  ;;  %v3660_v39 = vpop.f32.mrb[251].mxu0  ;;  %v3827_v22 = vmax.f32 %v3763_v12, 0.0 }
 0x607   : > { %v3661_v24 = vadd.f32 %v3660_v39, %v13750_v0  ;;  %4212 = vmatprep.mubr.bf16.mxu1 %v3868_v21  ;;  %v3828_v37 = vmax.f32 %v3764_v3, 0.0 }
 0x608   : > { %v3765_v30 = vadd.f32 %v13618_v46, %v3659_v17  ;;  %4213 = vmatmul.mubr.bf16.gmra.mrb[220].mxu1 %v3867_v7 }
 0x609   : > { %v3766_v11 = vadd.f32 %v13623_v25, %v3661_v24  ;;  %v3664_v50 = vpop.f32.mrb[252].mxu0  ;;  %v13806_v34 = vpop.f32.mrb[176].mxu1 }
 0x60a   : > { %v3829_v2 = vmax.f32 %v3765_v30, 0.0  ;;  %v3665_v53 = vadd.f32 %v3664_v50, %v13758_v55  ;;  %v3666_v35 = vpop.f32.mrb[253].mxu0  ;;  %v13809_v1 = vpop.f32.mrb[177].mxu1 }
 0x60b   : > { %v3830_v8 = vmax.f32 %v3766_v11, 0.0  ;;  %v3667_v0 = vadd.f32 %v3666_v35, %v13761_v52  ;;  %v13812_v26 = vpop.f32.mrb[178].mxu1  ;;  %v11704_v52 = vld [vmem:[#allocation4 + $0x6f4] ss:$8 sps:$4 sm:$0xff]  }
 0x60c   : > { %v13814_v38 = vpop.f32.mrb[179].mxu1  ;;  %v3869_v29 = vpack.c.bf16 %v3829_v2, %v3827_v22  ;;  %v3767_v60 = vadd.f32 %v13618_v46, %v3665_v53  ;;  %4600 = vmatprep.subr.bf16.mxu0 %v11704_v52 }
 0x60d   : > { %v3670_v56 = vpop.f32.mrb[254].mxu0  ;;  %v3870_v42 = vpack.c.bf16 %v3830_v8, %v3828_v37  ;;  %v3768_v55 = vadd.f32 %v13623_v25, %v3667_v0  ;;  %4601 = vmatpush1.bf16.msra.mxu0 %v11702_v59 }
 0x60e   : > { %v3671_v48 = vadd.f32 %v3670_v56, %v13764_v44  ;;  %v3672_v51 = vpop.f32.mrb[255].mxu0  ;;  %v3831_v47 = vmax.f32 %v3767_v60, 0.0 }
 0x60f   : > { %v3673_v27 = vadd.f32 %v3672_v51, %v13766_v43  ;;  %4222 = vmatprep.mubr.bf16.mxu1 %v3870_v42  ;;  %v3832_v44 = vmax.f32 %v3768_v55, 0.0 }
 0x610   : > { %v3769_v19 = vadd.f32 %v13618_v46, %v3671_v48  ;;  %4223 = vmatmul.mubr.bf16.gmra.mrb[224].mxu1 %v3869_v29 }
 0x611   : > { %v3770_v5 = vadd.f32 %v13623_v25, %v3673_v27  ;;  %v3676_v20 = vpop.f32.mrb[0].mxu0 }
 0x612   : > { %v3833_v61 = vmax.f32 %v3769_v19, 0.0  ;;  %v3677_v45 = vadd.f32 %v3676_v20, %v13774_v40  ;;  %v3678_v62 = vpop.f32.mrb[1].mxu0 }
 0x613   : > { %v3834_v33 = vmax.f32 %v3770_v5, 0.0  ;;  %v3679_v63 = vadd.f32 %v3678_v62, %v13777_v31  ;;  %v13870_v62 = vld [vmem:[%s15903_s5 + $0x8] sm:$0xff] }
 0x614   : > { %v3871_v43 = vpack.c.bf16 %v3833_v61, %v3831_v47  ;;  %v3771_v28 = vadd.f32 %v13618_v46, %v3677_v45  ;;  %v11708_v47 = vld [vmem:[%s15904_s6 + $0x8] sm:$0xff]   ;;  %v13862_v61 = vld [vmem:[%s15903_s5] sm:$0xff] }
 0x615   : > { %v3682_v6 = vpop.f32.mrb[2].mxu0  ;;  %v3872_v18 = vpack.c.bf16 %v3834_v33, %v3832_v44  ;;  %v3772_v49 = vadd.f32 %v13623_v25, %v3679_v63 }
 0x616   : > { %v3683_v4 = vadd.f32 %v3682_v6, %v13780_v54  ;;  %v3684_v9 = vpop.f32.mrb[3].mxu0  ;;  %v3835_v36 = vmax.f32 %v3771_v28, 0.0 }
 0x617   : > { %v3685_v10 = vadd.f32 %v3684_v9, %v13782_v57  ;;  %4232 = vmatprep.mubr.bf16.mxu1 %v3872_v18  ;;  %v3836_v21 = vmax.f32 %v3772_v49, 0.0  ;;  %v11709_v9 = vld [vmem:[%s15904_s6 + $0x50] sm:$0xff]  }
 0x618   : > { %v3773_v40 = vadd.f32 %v13618_v46, %v3683_v4  ;;  %4233 = vmatmul.mubr.bf16.gmra.mrb[228].mxu1 %v3871_v43  ;;  %v11710_v49 = vld [vmem:[%s15904_s6 + $0x10] sm:$0xff]  }
 0x619   : > { %v3774_v14 = vadd.f32 %v13623_v25, %v3685_v10  ;;  %v3688_v31 = vpop.f32.mrb[4].mxu0  ;;  %v11711_v10 = vld [vmem:[%s15904_s6 + $0x58] sm:$0xff]  }
 0x61a   : > { %v3837_v23 = vmax.f32 %v3773_v40, 0.0  ;;  %v3689_v7 = vadd.f32 %v3688_v31, %v13790_v32  ;;  %v3690_v16 = vpop.f32.mrb[5].mxu0 }
 0x61b   : > { %v3838_v12 = vmax.f32 %v3774_v14, 0.0  ;;  %v3691_v54 = vadd.f32 %v3690_v16, %v13793_v58 }
 0x61c   : > { %v3873_v17 = vpack.c.bf16 %v3837_v23, %v3835_v36  ;;  %v3775_v57 = vadd.f32 %v13618_v46, %v3689_v7  ;;  %v11712_v7 = vld [vmem:[%s15904_s6 + $0x18] sm:$0xff]  }
 0x61d   : > { %v3694_v39 = vpop.f32.mrb[6].mxu0  ;;  %v3874_v3 = vpack.c.bf16 %v3838_v12, %v3836_v21  ;;  %v3776_v11 = vadd.f32 %v13623_v25, %v3691_v54  ;;  %v11713_v21 = vld [vmem:[%s15904_s6 + $0x60] sm:$0xff]  }
 0x61e   : > { %v3695_v24 = vadd.f32 %v3694_v39, %v13796_v13  ;;  %v3696_v30 = vpop.f32.mrb[7].mxu0  ;;  %v3839_v58 = vmax.f32 %v3775_v57, 0.0 }
 0x61f   : > { %v3697_v50 = vadd.f32 %v3696_v30, %v13798_v15  ;;  %4242 = vmatprep.mubr.bf16.mxu1 %v3874_v3  ;;  %v3840_v8 = vmax.f32 %v3776_v11, 0.0 }
 0x620   : > { %v3777_v32 = vadd.f32 %v13618_v46, %v3695_v24  ;;  %4243 = vmatmul.mubr.bf16.gmra.mrb[232].mxu1 %v3873_v17  ;;  %v11714_v24 = vld [vmem:[%s15904_s6 + $0x20] sm:$0xff]  }
 0x621   : > { %v3778_v22 = vadd.f32 %v13623_v25, %v3697_v50  ;;  %v3700_v2 = vpop.f32.mrb[8].mxu0  ;;  %v11715_v50 = vld [vmem:[%s15904_s6 + $0x68] sm:$0xff]  }
 0x622   : > { %v3841_v53 = vmax.f32 %v3777_v32, 0.0  ;;  %v3701_v35 = vadd.f32 %v3700_v2, %v13806_v34  ;;  %v3702_v37 = vpop.f32.mrb[9].mxu0 }
 0x623   : > { %v3842_v0 = vmax.f32 %v3778_v22, 0.0  ;;  %v3703_v13 = vadd.f32 %v3702_v37, %v13809_v1 }
 0x624   : > { %v3875_v29 = vpack.c.bf16 %v3841_v53, %v3839_v58  ;;  %v3779_v15 = vadd.f32 %v13618_v46, %v3701_v35  ;;  %v11716_v35 = vld [vmem:[%s15904_s6 + $0x28] sm:$0xff]  }
 0x625   : > { %v3706_v56 = vpop.f32.mrb[10].mxu0  ;;  %v3876_v42 = vpack.c.bf16 %v3842_v0, %v3840_v8  ;;  %v3780_v51 = vadd.f32 %v13623_v25, %v3703_v13  ;;  %v11717_v8 = vld [vmem:[%s15904_s6 + $0x70] sm:$0xff]  }
 0x626   : > { %v3707_v60 = vadd.f32 %v3706_v56, %v13812_v26  ;;  %v3708_v48 = vpop.f32.mrb[11].mxu0  ;;  %v3843_v19 = vmax.f32 %v3779_v15, 0.0  ;;  %v11705_v26 = vld [vmem:[%s15904_s6 + $0x40] sm:$0xff]  }
 0x627   : > { %v3709_v55 = vadd.f32 %v3708_v48, %v13814_v38  ;;  %4252 = vmatprep.mubr.bf16.mxu1 %v3876_v42  ;;  %v3844_v52 = vmax.f32 %v3780_v51, 0.0  ;;  %v11706_v38 = vld [vmem:[%s15904_s6] sm:$0xff]   ;;  %10661 = vmatprep.subr.bf16.mxu1 %v11705_v26 }
 0x628   : > { %v3781_v34 = vadd.f32 %v13618_v46, %v3707_v60  ;;  %4253 = vmatmul.mubr.bf16.gmra.mrb[236].mxu1 %v3875_v29  ;;  %v3914_v46 = vsub.s32 6, %v13027_v41  ;;  %v11718_v60 = vld [vmem:[%s15904_s6 + $0x30] sm:$0xff]  }
 0x629   : > { %v3782_v27 = vadd.f32 %v13623_v25, %v3709_v55  ;;  %10662 = vmatpush3.bf16.msra.mxu1 %v11706_v38  ;;  %v11707_v25 = vld [vmem:[%s15904_s6 + $0x48] sm:$0xff]   ;;  %v11719_v55 = vld [vmem:[%s15904_s6 + $0x78] sm:$0xff]  }
 0x62a   : > { %v3845_v1 = vmax.f32 %v3781_v34, 0.0  ;;  %v13865_v45 = vrot.slane %v13862_v61, %v3914_v46  ;;  %10663 = vmatprep.subr.bf16.mxu1 %v11707_v25  ;;  %v13873_v44 = vrot.slane %v13870_v62, %v3914_v46 }
 0x62b   : > { %v3846_v5 = vmax.f32 %v3782_v27, 0.0 }
 0x62c   : > { %v3877_v20 = vpack.c.bf16 %v3845_v1, %v3843_v19 }
 0x62d   : > { %v3878_v59 = vpack.c.bf16 %v3846_v5, %v3844_v52  ;;  %10664 = vmatpush3.bf16.msra.mxu1 %v11708_v47  ;;  %v11720_v5 = vld [vmem:[%s15904_s6 + $0x38] sm:$0xff]  }
 0x62e   : > { %10665 = vmatprep.subr.bf16.mxu1 %v11709_v9 }
 0x62f   : > { %4262 = vmatprep.mubr.bf16.mxu1 %v3878_v59 }
 0x630   : > { %4263 = vmatmul.mubr.bf16.gmra.mrb[240].mxu1 %v3877_v20 }
 0x631   : > { %10666 = vmatpush3.bf16.msra.mxu1 %v11710_v49 }
 0x632   : > { %10667 = vmatprep.subr.bf16.mxu1 %v11711_v10 }
 0x635   : > { %10668 = vmatpush3.bf16.msra.mxu1 %v11712_v7 }
 0x636   : > { %10669 = vmatprep.subr.bf16.mxu1 %v11713_v21 }
 0x639   : > { %10670 = vmatpush3.bf16.msra.mxu1 %v11714_v24 }
 0x63a   : > { %10671 = vmatprep.subr.bf16.mxu1 %v11715_v50 }
 0x63d   : > { %10672 = vmatpush3.bf16.msra.mxu1 %v11716_v35 }
 0x63e   : > { %10673 = vmatprep.subr.bf16.mxu1 %v11717_v8 }
 0x641   : > { %10674 = vmatpush3.bf16.msra.mxu1 %v11718_v60 }
 0x642   : > { %10675 = vmatprep.subr.bf16.mxu1 %v11719_v55 }
 0x645   : > { %10676 = vmatpush3.bf16.msra.mxu1 %v11720_v5 }
 0x68b   : > { %v4114_v33 = vpop.f32.mrb[180].mxu1 }
 0x68c   : > { %v4115_v63 = vadd.f32 %v4114_v33, %v13865_v45  ;;  %v4116_v43 = vpop.f32.mrb[181].mxu1 }
 0x68d   : > { %v4117_v6 = vadd.f32 %v4116_v43, %v13873_v44  ;;  %v4118_v18 = vpop.f32.mrb[182].mxu1 }
 0x68e   : > { %v4119_v28 = vadd.f32 %v4118_v18, %v13865_v45  ;;  %v4120_v4 = vpop.f32.mrb[183].mxu1  ;;  %v4273_v14 = vmax.f32 %v4115_v63, 0.0 }
 0x68f   : > { %v4121_v40 = vadd.f32 %v4120_v4, %v13873_v44  ;;  %v4274_v36 = vmax.f32 %v4117_v6, 0.0 }
 0x690   : > { %v4275_v31 = vmax.f32 %v4119_v28, 0.0 }
 0x691   : > { %v4276_v23 = vmax.f32 %v4121_v40, 0.0 }
 0x692   : > { %v4337_v16 = vpack.c.bf16 %v4275_v31, %v4273_v14 }
 0x693   : > { %v4338_v12 = vpack.c.bf16 %v4276_v23, %v4274_v36  ;;  %v4124_v54 = vpop.f32.mrb[184].mxu1 }
 0x694   : > { %v4125_v17 = vadd.f32 %v4124_v54, %v13865_v45  ;;  %v4126_v39 = vpop.f32.mrb[185].mxu1 }
 0x695   : > { %v4127_v3 = vadd.f32 %v4126_v39, %v13873_v44  ;;  %v4128_v57 = vpop.f32.mrb[186].mxu1  ;;  %4602 = vmatprep.mubr.bf16.mxu0 %v4338_v12 }
 0x696   : > { %v4129_v30 = vadd.f32 %v4128_v57, %v13865_v45  ;;  %v4130_v11 = vpop.f32.mrb[187].mxu1  ;;  %4603 = vmatmul.mubr.bf16.vlgmr.msra.gmra.mrb[12].mxu0 %v4337_v16  ;;  %v4277_v22 = vmax.f32 %v4125_v17, 0.0 }
 0x697   : > { %v4131_v32 = vadd.f32 %v4130_v11, %v13873_v44  ;;  %v4278_v58 = vmax.f32 %v4127_v3, 0.0 }
 0x698   : > { %v4279_v2 = vmax.f32 %v4129_v30, 0.0 }
 0x699   : > { %v4280_v53 = vmax.f32 %v4131_v32, 0.0 }
 0x69a   : > { %v4339_v37 = vpack.c.bf16 %v4279_v2, %v4277_v22 }
 0x69b   : > { %v4340_v0 = vpack.c.bf16 %v4280_v53, %v4278_v58  ;;  %v4134_v13 = vpop.f32.mrb[188].mxu1 }
 0x69c   : > { %v4135_v29 = vadd.f32 %v4134_v13, %v13865_v45  ;;  %v4136_v56 = vpop.f32.mrb[189].mxu1 }
 0x69d   : > { %v4137_v42 = vadd.f32 %v4136_v56, %v13873_v44  ;;  %v4138_v15 = vpop.f32.mrb[190].mxu1  ;;  %4612 = vmatprep.mubr.bf16.mxu0 %v4340_v0 }
 0x69e   : > { %v4139_v48 = vadd.f32 %v4138_v15, %v13865_v45  ;;  %v4140_v51 = vpop.f32.mrb[191].mxu1  ;;  %4613 = vmatmul.mubr.bf16.gmra.mrb[16].mxu0 %v4339_v37  ;;  %v4281_v27 = vmax.f32 %v4135_v29, 0.0 }
 0x69f   : > { %v4141_v34 = vadd.f32 %v4140_v51, %v13873_v44  ;;  %v4282_v1 = vmax.f32 %v4137_v42, 0.0 }
 0x6a0   : > { %v4283_v19 = vmax.f32 %v4139_v48, 0.0 }
 0x6a1   : > { %v4284_v52 = vmax.f32 %v4141_v34, 0.0 }
 0x6a2   : > { %v4341_v20 = vpack.c.bf16 %v4283_v19, %v4281_v27 }
 0x6a3   : > { %v4342_v59 = vpack.c.bf16 %v4284_v52, %v4282_v1  ;;  %v4144_v26 = vpop.f32.mrb[192].mxu1 }
 0x6a4   : > { %v4145_v38 = vadd.f32 %v4144_v26, %v13865_v45  ;;  %v4146_v46 = vpop.f32.mrb[193].mxu1 }
 0x6a5   : > { %v4147_v25 = vadd.f32 %v4146_v46, %v13873_v44  ;;  %v4148_v47 = vpop.f32.mrb[194].mxu1  ;;  %4622 = vmatprep.mubr.bf16.mxu0 %v4342_v59 }
 0x6a6   : > { %v4149_v33 = vadd.f32 %v4148_v47, %v13865_v45  ;;  %v4150_v63 = vpop.f32.mrb[195].mxu1  ;;  %4623 = vmatmul.mubr.bf16.gmra.mrb[20].mxu0 %v4341_v20  ;;  %v4285_v6 = vmax.f32 %v4145_v38, 0.0 }
 0x6a7   : > { %v4151_v43 = vadd.f32 %v4150_v63, %v13873_v44  ;;  %v4286_v28 = vmax.f32 %v4147_v25, 0.0 }
 0x6a8   : > { %v4287_v18 = vmax.f32 %v4149_v33, 0.0 }
 0x6a9   : > { %v4288_v4 = vmax.f32 %v4151_v43, 0.0 }
 0x6aa   : > { %v4343_v9 = vpack.c.bf16 %v4287_v18, %v4285_v6 }
 0x6ab   : > { %v4344_v49 = vpack.c.bf16 %v4288_v4, %v4286_v28  ;;  %v4154_v10 = vpop.f32.mrb[196].mxu1 }
 0x6ac   : > { %v4155_v40 = vadd.f32 %v4154_v10, %v13865_v45  ;;  %v4156_v14 = vpop.f32.mrb[197].mxu1 }
 0x6ad   : > { %v4157_v31 = vadd.f32 %v4156_v14, %v13873_v44  ;;  %v4158_v36 = vpop.f32.mrb[198].mxu1  ;;  %4632 = vmatprep.mubr.bf16.mxu0 %v4344_v49 }
 0x6ae   : > { %v4159_v23 = vadd.f32 %v4158_v36, %v13865_v45  ;;  %v4160_v7 = vpop.f32.mrb[199].mxu1  ;;  %4633 = vmatmul.mubr.bf16.gmra.mrb[24].mxu0 %v4343_v9  ;;  %v4289_v21 = vmax.f32 %v4155_v40, 0.0 }
 0x6af   : > { %v4161_v16 = vadd.f32 %v4160_v7, %v13873_v44  ;;  %v4290_v54 = vmax.f32 %v4157_v31, 0.0 }
 0x6b0   : > { %v4291_v12 = vmax.f32 %v4159_v23, 0.0 }
 0x6b1   : > { %v4292_v17 = vmax.f32 %v4161_v16, 0.0 }
 0x6b2   : > { %v4345_v39 = vpack.c.bf16 %v4291_v12, %v4289_v21 }
 0x6b3   : > { %v4346_v3 = vpack.c.bf16 %v4292_v17, %v4290_v54  ;;  %v4164_v57 = vpop.f32.mrb[200].mxu1 }
 0x6b4   : > { %v4165_v24 = vadd.f32 %v4164_v57, %v13865_v45  ;;  %v4166_v30 = vpop.f32.mrb[201].mxu1 }
 0x6b5   : > { %v4167_v11 = vadd.f32 %v4166_v30, %v13873_v44  ;;  %v4168_v50 = vpop.f32.mrb[202].mxu1  ;;  %4642 = vmatprep.mubr.bf16.mxu0 %v4346_v3 }
 0x6b6   : > { %v4169_v32 = vadd.f32 %v4168_v50, %v13865_v45  ;;  %v4170_v22 = vpop.f32.mrb[203].mxu1  ;;  %4643 = vmatmul.mubr.bf16.gmra.mrb[28].mxu0 %v4345_v39  ;;  %v4293_v58 = vmax.f32 %v4165_v24, 0.0 }
 0x6b7   : > { %v4171_v2 = vadd.f32 %v4170_v22, %v13873_v44  ;;  %v4294_v35 = vmax.f32 %v4167_v11, 0.0 }
 0x6b8   : > { %v4295_v53 = vmax.f32 %v4169_v32, 0.0 }
 0x6b9   : > { %v4296_v37 = vmax.f32 %v4171_v2, 0.0 }
 0x6ba   : > { %v4347_v8 = vpack.c.bf16 %v4295_v53, %v4293_v58 }
 0x6bb   : > { %v4348_v0 = vpack.c.bf16 %v4296_v37, %v4294_v35  ;;  %v4174_v13 = vpop.f32.mrb[204].mxu1 }
 0x6bc   : > { %v4175_v29 = vadd.f32 %v4174_v13, %v13865_v45  ;;  %v4176_v56 = vpop.f32.mrb[205].mxu1 }
 0x6bd   : > { %v4177_v42 = vadd.f32 %v4176_v56, %v13873_v44  ;;  %v4178_v15 = vpop.f32.mrb[206].mxu1  ;;  %4652 = vmatprep.mubr.bf16.mxu0 %v4348_v0 }
 0x6be   : > { %v4179_v60 = vadd.f32 %v4178_v15, %v13865_v45  ;;  %v4180_v48 = vpop.f32.mrb[207].mxu1  ;;  %4653 = vmatmul.mubr.bf16.gmra.mrb[32].mxu0 %v4347_v8  ;;  %v4297_v55 = vmax.f32 %v4175_v29, 0.0 }
 0x6bf   : > { %v4181_v51 = vadd.f32 %v4180_v48, %v13873_v44  ;;  %v4298_v27 = vmax.f32 %v4177_v42, 0.0 }
 0x6c0   : > { %v4299_v34 = vmax.f32 %v4179_v60, 0.0 }
 0x6c1   : > { %v4300_v19 = vmax.f32 %v4181_v51, 0.0 }
 0x6c2   : > { %v4349_v1 = vpack.c.bf16 %v4299_v34, %v4297_v55 }
 0x6c3   : > { %v4350_v52 = vpack.c.bf16 %v4300_v19, %v4298_v27  ;;  %v4184_v5 = vpop.f32.mrb[208].mxu1 }
 0x6c4   : > { %v4185_v20 = vadd.f32 %v4184_v5, %v13865_v45  ;;  %v4186_v59 = vpop.f32.mrb[209].mxu1 }
 0x6c5   : > { %v4187_v26 = vadd.f32 %v4186_v59, %v13873_v44  ;;  %v4188_v38 = vpop.f32.mrb[210].mxu1  ;;  %4662 = vmatprep.mubr.bf16.mxu0 %v4350_v52 }
 0x6c6   : > { %v4189_v46 = vadd.f32 %v4188_v38, %v13865_v45  ;;  %v4190_v25 = vpop.f32.mrb[211].mxu1  ;;  %4663 = vmatmul.mubr.bf16.gmra.mrb[36].mxu0 %v4349_v1  ;;  %v4301_v33 = vmax.f32 %v4185_v20, 0.0 }
 0x6c7   : > { %v4191_v47 = vadd.f32 %v4190_v25, %v13873_v44  ;;  %v4302_v43 = vmax.f32 %v4187_v26, 0.0 }
 0x6c8   : > { %v4303_v63 = vmax.f32 %v4189_v46, 0.0 }
 0x6c9   : > { %v4304_v6 = vmax.f32 %v4191_v47, 0.0 }
 0x6ca   : > { %v4351_v18 = vpack.c.bf16 %v4303_v63, %v4301_v33 }
 0x6cb   : > { %v4352_v28 = vpack.c.bf16 %v4304_v6, %v4302_v43  ;;  %v4194_v4 = vpop.f32.mrb[212].mxu1 }
 0x6cc   : > { %v4195_v9 = vadd.f32 %v4194_v4, %v13865_v45  ;;  %v4196_v49 = vpop.f32.mrb[213].mxu1 }
 0x6cd   : > { %v4197_v10 = vadd.f32 %v4196_v49, %v13873_v44  ;;  %v4198_v40 = vpop.f32.mrb[214].mxu1  ;;  %4672 = vmatprep.mubr.bf16.mxu0 %v4352_v28 }
 0x6ce   : > { %v4199_v14 = vadd.f32 %v4198_v40, %v13865_v45  ;;  %v4200_v31 = vpop.f32.mrb[215].mxu1  ;;  %4673 = vmatmul.mubr.bf16.gmra.mrb[40].mxu0 %v4351_v18  ;;  %v4305_v23 = vmax.f32 %v4195_v9, 0.0 }
 0x6cf   : > { %v4201_v36 = vadd.f32 %v4200_v31, %v13873_v44  ;;  %v4306_v16 = vmax.f32 %v4197_v10, 0.0 }
 0x6d0   : > { %v4307_v7 = vmax.f32 %v4199_v14, 0.0 }
 0x6d1   : > { %v4308_v21 = vmax.f32 %v4201_v36, 0.0 }
 0x6d2   : > { %v4353_v12 = vpack.c.bf16 %v4307_v7, %v4305_v23 }
 0x6d3   : > { %v4354_v54 = vpack.c.bf16 %v4308_v21, %v4306_v16  ;;  %v4204_v17 = vpop.f32.mrb[216].mxu1 }
 0x6d4   : > { %v4205_v39 = vadd.f32 %v4204_v17, %v13865_v45  ;;  %v4206_v3 = vpop.f32.mrb[217].mxu1 }
 0x6d5   : > { %v4207_v57 = vadd.f32 %v4206_v3, %v13873_v44  ;;  %v4208_v24 = vpop.f32.mrb[218].mxu1  ;;  %4682 = vmatprep.mubr.bf16.mxu0 %v4354_v54 }
 0x6d6   : > { %v4209_v30 = vadd.f32 %v4208_v24, %v13865_v45  ;;  %v4210_v11 = vpop.f32.mrb[219].mxu1  ;;  %4683 = vmatmul.mubr.bf16.gmra.mrb[44].mxu0 %v4353_v12  ;;  %v4309_v32 = vmax.f32 %v4205_v39, 0.0 }
 0x6d7   : > { %v4211_v50 = vadd.f32 %v4210_v11, %v13873_v44  ;;  %v4310_v2 = vmax.f32 %v4207_v57, 0.0 }
 0x6d8   : > { %v4311_v22 = vmax.f32 %v4209_v30, 0.0 }
 0x6d9   : > { %v4312_v58 = vmax.f32 %v4211_v50, 0.0 }
 0x6da   : > { %v4355_v53 = vpack.c.bf16 %v4311_v22, %v4309_v32 }
 0x6db   : > { %v4356_v35 = vpack.c.bf16 %v4312_v58, %v4310_v2  ;;  %v4214_v37 = vpop.f32.mrb[220].mxu1 }
 0x6dc   : > { %v4215_v8 = vadd.f32 %v4214_v37, %v13865_v45  ;;  %v4216_v0 = vpop.f32.mrb[221].mxu1 }
 0x6dd   : > { %v4217_v13 = vadd.f32 %v4216_v0, %v13873_v44  ;;  %v4218_v29 = vpop.f32.mrb[222].mxu1  ;;  %4692 = vmatprep.mubr.bf16.mxu0 %v4356_v35 }
 0x6de   : > { %v4219_v56 = vadd.f32 %v4218_v29, %v13865_v45  ;;  %v4220_v42 = vpop.f32.mrb[223].mxu1  ;;  %4693 = vmatmul.mubr.bf16.gmra.mrb[48].mxu0 %v4355_v53  ;;  %v4313_v60 = vmax.f32 %v4215_v8, 0.0 }
 0x6df   : > { %v4221_v15 = vadd.f32 %v4220_v42, %v13873_v44  ;;  %v4314_v51 = vmax.f32 %v4217_v13, 0.0 }
 0x6e0   : > { %v4315_v48 = vmax.f32 %v4219_v56, 0.0 }
 0x6e1   : > { %v4316_v55 = vmax.f32 %v4221_v15, 0.0 }
 0x6e2   : > { %v4357_v34 = vpack.c.bf16 %v4315_v48, %v4313_v60 }
 0x6e3   : > { %v4358_v27 = vpack.c.bf16 %v4316_v55, %v4314_v51  ;;  %v4224_v19 = vpop.f32.mrb[224].mxu1 }
 0x6e4   : > { %v4225_v1 = vadd.f32 %v4224_v19, %v13865_v45  ;;  %v4226_v52 = vpop.f32.mrb[225].mxu1 }
 0x6e5   : > { %v4227_v5 = vadd.f32 %v4226_v52, %v13873_v44  ;;  %v4228_v20 = vpop.f32.mrb[226].mxu1  ;;  %4702 = vmatprep.mubr.bf16.mxu0 %v4358_v27 }
 0x6e6   : > { %v4229_v59 = vadd.f32 %v4228_v20, %v13865_v45  ;;  %v4230_v26 = vpop.f32.mrb[227].mxu1  ;;  %4703 = vmatmul.mubr.bf16.gmra.mrb[52].mxu0 %v4357_v34  ;;  %v4317_v46 = vmax.f32 %v4225_v1, 0.0 }
 0x6e7   : > { %v4231_v38 = vadd.f32 %v4230_v26, %v13873_v44  ;;  %v4318_v47 = vmax.f32 %v4227_v5, 0.0 }
 0x6e8   : > { %v4319_v25 = vmax.f32 %v4229_v59, 0.0 }
 0x6e9   : > { %v4320_v33 = vmax.f32 %v4231_v38, 0.0 }
 0x6ea   : > { %v4359_v63 = vpack.c.bf16 %v4319_v25, %v4317_v46 }
 0x6eb   : > { %v4360_v43 = vpack.c.bf16 %v4320_v33, %v4318_v47  ;;  %v4234_v6 = vpop.f32.mrb[228].mxu1  ;;  %v4404_v33 = vsub.s32 7, %v13027_v41 }
 0x6ec   : > { %v4235_v18 = vadd.f32 %v4234_v6, %v13865_v45  ;;  %v4236_v28 = vpop.f32.mrb[229].mxu1 }
 0x6ed   : > { %v4237_v4 = vadd.f32 %v4236_v28, %v13873_v44  ;;  %v4238_v9 = vpop.f32.mrb[230].mxu1  ;;  %4712 = vmatprep.mubr.bf16.mxu0 %v4360_v43  ;;  %v13980_v43 = vrot.slane %v13870_v62, %v4404_v33 }
 0x6ee   : > { %v4239_v49 = vadd.f32 %v4238_v9, %v13865_v45  ;;  %v4240_v10 = vpop.f32.mrb[231].mxu1  ;;  %4713 = vmatmul.mubr.bf16.gmra.mrb[56].mxu0 %v4359_v63  ;;  %v4321_v14 = vmax.f32 %v4235_v18, 0.0  ;;  %v13977_v63 = vrot.slane %v13862_v61, %v4404_v33 }
 0x6ef   : > { %v4241_v40 = vadd.f32 %v4240_v10, %v13873_v44  ;;  %v4322_v36 = vmax.f32 %v4237_v4, 0.0 }
 0x6f0   : > { %v4323_v31 = vmax.f32 %v4239_v49, 0.0 }
 0x6f1   : > { %v4324_v23 = vmax.f32 %v4241_v40, 0.0 }
 0x6f2   : > { %v4361_v7 = vpack.c.bf16 %v4323_v31, %v4321_v14 }
 0x6f3   : > { %v4362_v16 = vpack.c.bf16 %v4324_v23, %v4322_v36  ;;  %v4244_v21 = vpop.f32.mrb[232].mxu1 }
 0x6f4   : > { %v4245_v12 = vadd.f32 %v4244_v21, %v13865_v45  ;;  %v4246_v54 = vpop.f32.mrb[233].mxu1 }
 0x6f5   : > { %v4247_v17 = vadd.f32 %v4246_v54, %v13873_v44  ;;  %v4248_v39 = vpop.f32.mrb[234].mxu1  ;;  %4722 = vmatprep.mubr.bf16.mxu0 %v4362_v16 }
 0x6f6   : > { %v4249_v3 = vadd.f32 %v4248_v39, %v13865_v45  ;;  %v4250_v57 = vpop.f32.mrb[235].mxu1  ;;  %4723 = vmatmul.mubr.bf16.gmra.mrb[60].mxu0 %v4361_v7  ;;  %v4325_v30 = vmax.f32 %v4245_v12, 0.0 }
 0x6f7   : > { %v4251_v24 = vadd.f32 %v4250_v57, %v13873_v44  ;;  %v4326_v50 = vmax.f32 %v4247_v17, 0.0 }
 0x6f8   : > { %v4327_v11 = vmax.f32 %v4249_v3, 0.0 }
 0x6f9   : > { %v4328_v32 = vmax.f32 %v4251_v24, 0.0 }
 0x6fa   : > { %v4363_v22 = vpack.c.bf16 %v4327_v11, %v4325_v30 }
 0x6fb   : > { %v4364_v2 = vpack.c.bf16 %v4328_v32, %v4326_v50  ;;  %v4254_v58 = vpop.f32.mrb[236].mxu1 }
 0x6fc   : > { %v4255_v53 = vadd.f32 %v4254_v58, %v13865_v45  ;;  %v4256_v35 = vpop.f32.mrb[237].mxu1 }
 0x6fd   : > { %v4257_v37 = vadd.f32 %v4256_v35, %v13873_v44  ;;  %v4258_v8 = vpop.f32.mrb[238].mxu1  ;;  %4732 = vmatprep.mubr.bf16.mxu0 %v4364_v2 }
 0x6fe   : > { %v4259_v0 = vadd.f32 %v4258_v8, %v13865_v45  ;;  %v4260_v13 = vpop.f32.mrb[239].mxu1  ;;  %4733 = vmatmul.mubr.bf16.gmra.mrb[64].mxu0 %v4363_v22  ;;  %v4329_v56 = vmax.f32 %v4255_v53, 0.0 }
 0x6ff   : > { %v4261_v29 = vadd.f32 %v4260_v13, %v13873_v44  ;;  %v4330_v15 = vmax.f32 %v4257_v37, 0.0 }
 0x700   : > { %v4331_v42 = vmax.f32 %v4259_v0, 0.0 }
 0x701   : > { %v4332_v60 = vmax.f32 %v4261_v29, 0.0 }
 0x702   : > { %v4365_v48 = vpack.c.bf16 %v4331_v42, %v4329_v56 }
 0x703   : > { %v4366_v51 = vpack.c.bf16 %v4332_v60, %v4330_v15  ;;  %v4264_v55 = vpop.f32.mrb[240].mxu1 }
 0x704   : > { %v4265_v34 = vadd.f32 %v4264_v55, %v13865_v45  ;;  %v4266_v27 = vpop.f32.mrb[241].mxu1 }
 0x705   : > { %v4267_v19 = vadd.f32 %v4266_v27, %v13873_v44  ;;  %v4268_v1 = vpop.f32.mrb[242].mxu1  ;;  %4742 = vmatprep.mubr.bf16.mxu0 %v4366_v51 }
 0x706   : > { %v4269_v52 = vadd.f32 %v4268_v1, %v13865_v45  ;;  %v4270_v5 = vpop.f32.mrb[243].mxu1  ;;  %4743 = vmatmul.mubr.bf16.gmra.mrb[68].mxu0 %v4365_v48  ;;  %v4333_v59 = vmax.f32 %v4265_v34, 0.0 }
 0x707   : > { %v4271_v20 = vadd.f32 %v4270_v5, %v13873_v44  ;;  %v4334_v38 = vmax.f32 %v4267_v19, 0.0 }
 0x708   : > { %v4335_v26 = vmax.f32 %v4269_v52, 0.0 }
 0x709   : > { %v4336_v46 = vmax.f32 %v4271_v20, 0.0 }
 0x70a   : > { %v4367_v25 = vpack.c.bf16 %v4335_v26, %v4333_v59 }
 0x70b   : > { %v4368_v47 = vpack.c.bf16 %v4336_v46, %v4334_v38 }
 0x70d   : > { %4752 = vmatprep.mubr.bf16.mxu0 %v4368_v47 }
 0x70e   : > { %4753 = vmatmul.mubr.bf16.gmra.mrb[72].mxu0 %v4367_v25 }
 0x769   : > { %v4604_v45 = vpop.f32.mrb[12].mxu0 }
 0x76a   : > { %v4605_v6 = vadd.f32 %v4604_v45, %v13977_v63  ;;  %v4606_v44 = vpop.f32.mrb[13].mxu0 }
 0x76b   : > { %v4607_v18 = vadd.f32 %v4606_v44, %v13980_v43  ;;  %v4608_v28 = vpop.f32.mrb[14].mxu0 }
 0x76c   : > { %v4609_v4 = vadd.f32 %v4608_v28, %v13977_v63  ;;  %v4610_v9 = vpop.f32.mrb[15].mxu0  ;;  %v4763_v10 = vmax.f32 %v4605_v6, 0.0 }
 0x76d   : > { %v4611_v49 = vadd.f32 %v4610_v9, %v13980_v43  ;;  %v4764_v40 = vmax.f32 %v4607_v18, 0.0 }
 0x76e   : > { %v4765_v41 = vmax.f32 %v4609_v4, 0.0 }
 0x76f   : > { %v4766_v61 = vmax.f32 %v4611_v49, 0.0 }
 0x770   : > { %v4827_v14 = vpack.c.bf16 %v4765_v41, %v4763_v10 }
 0x771   : > { %v4828_v31 = vpack.c.bf16 %v4766_v61, %v4764_v40  ;;  %v4614_v62 = vpop.f32.mrb[16].mxu0 }
 0x772   : > { %v4615_v36 = vadd.f32 %v4614_v62, %v13977_v63  ;;  %v4616_v23 = vpop.f32.mrb[17].mxu0 }
 0x773   : > { %v4617_v7 = vadd.f32 %v4616_v23, %v13980_v43  ;;  %v4618_v16 = vpop.f32.mrb[18].mxu0  ;;  %5026 = vmatprep.mubr.bf16.mxu1 %v4828_v31 }
 0x774   : > { %v4619_v21 = vadd.f32 %v4618_v16, %v13977_v63  ;;  %v4620_v12 = vpop.f32.mrb[19].mxu0  ;;  %5027 = vmatmul.mubr.bf16.vlgmr.msra.gmra.mrb[244].mxu1 %v4827_v14  ;;  %v4767_v17 = vmax.f32 %v4615_v36, 0.0 }
 0x775   : > { %v4621_v54 = vadd.f32 %v4620_v12, %v13980_v43  ;;  %v4768_v3 = vmax.f32 %v4617_v7, 0.0 }
 0x776   : > { %v4769_v39 = vmax.f32 %v4619_v21, 0.0 }
 0x777   : > { %v4770_v57 = vmax.f32 %v4621_v54, 0.0 }
 0x778   : > { %v4829_v24 = vpack.c.bf16 %v4769_v39, %v4767_v17 }
 0x779   : > { %v4830_v30 = vpack.c.bf16 %v4770_v57, %v4768_v3  ;;  %v4624_v11 = vpop.f32.mrb[20].mxu0 }
 0x77a   : > { %v4625_v50 = vadd.f32 %v4624_v11, %v13977_v63  ;;  %v4626_v32 = vpop.f32.mrb[21].mxu0 }
 0x77b   : > { %v4627_v22 = vadd.f32 %v4626_v32, %v13980_v43  ;;  %v4628_v2 = vpop.f32.mrb[22].mxu0  ;;  %5034 = vmatprep.mubr.bf16.mxu1 %v4830_v30 }
 0x77c   : > { %v4629_v58 = vadd.f32 %v4628_v2, %v13977_v63  ;;  %v4630_v53 = vpop.f32.mrb[23].mxu0  ;;  %5035 = vmatmul.mubr.bf16.gmra.mrb[248].mxu1 %v4829_v24  ;;  %v4771_v37 = vmax.f32 %v4625_v50, 0.0 }
 0x77d   : > { %v4631_v35 = vadd.f32 %v4630_v53, %v13980_v43  ;;  %v4772_v0 = vmax.f32 %v4627_v22, 0.0 }
 0x77e   : > { %v4773_v8 = vmax.f32 %v4629_v58, 0.0 }
 0x77f   : > { %v4774_v13 = vmax.f32 %v4631_v35, 0.0 }
 0x780   : > { %v4831_v29 = vpack.c.bf16 %v4773_v8, %v4771_v37 }
 0x781   : > { %v4832_v56 = vpack.c.bf16 %v4774_v13, %v4772_v0  ;;  %v4634_v42 = vpop.f32.mrb[24].mxu0 }
 0x782   : > { %v4635_v15 = vadd.f32 %v4634_v42, %v13977_v63  ;;  %v4636_v60 = vpop.f32.mrb[25].mxu0 }
 0x783   : > { %v4637_v48 = vadd.f32 %v4636_v60, %v13980_v43  ;;  %v4638_v51 = vpop.f32.mrb[26].mxu0  ;;  %5042 = vmatprep.mubr.bf16.mxu1 %v4832_v56 }
 0x784   : > { %v4639_v55 = vadd.f32 %v4638_v51, %v13977_v63  ;;  %v4640_v34 = vpop.f32.mrb[27].mxu0  ;;  %5043 = vmatmul.mubr.bf16.gmra.mrb[252].mxu1 %v4831_v29  ;;  %v4775_v19 = vmax.f32 %v4635_v15, 0.0 }
 0x785   : > { %v4641_v27 = vadd.f32 %v4640_v34, %v13980_v43  ;;  %v4776_v52 = vmax.f32 %v4637_v48, 0.0 }
 0x786   : > { %v4777_v1 = vmax.f32 %v4639_v55, 0.0 }
 0x787   : > { %v4778_v5 = vmax.f32 %v4641_v27, 0.0 }
 0x788   : > { %v4833_v20 = vpack.c.bf16 %v4777_v1, %v4775_v19 }
 0x789   : > { %v4834_v59 = vpack.c.bf16 %v4778_v5, %v4776_v52  ;;  %v4644_v26 = vpop.f32.mrb[28].mxu0 }
 0x78a   : > { %v4645_v38 = vadd.f32 %v4644_v26, %v13977_v63  ;;  %v4646_v46 = vpop.f32.mrb[29].mxu0 }
 0x78b   : > { %v4647_v25 = vadd.f32 %v4646_v46, %v13980_v43  ;;  %v4648_v47 = vpop.f32.mrb[30].mxu0  ;;  %5050 = vmatprep.mubr.bf16.mxu1 %v4834_v59 }
 0x78c   : > { %v4649_v33 = vadd.f32 %v4648_v47, %v13977_v63  ;;  %v4650_v45 = vpop.f32.mrb[31].mxu0  ;;  %5051 = vmatmul.mubr.bf16.gmra.mrb[0].mxu1 %v4833_v20  ;;  %v4779_v44 = vmax.f32 %v4645_v38, 0.0 }
 0x78d   : > { %v4651_v6 = vadd.f32 %v4650_v45, %v13980_v43  ;;  %v4780_v28 = vmax.f32 %v4647_v25, 0.0 }
 0x78e   : > { %v4781_v18 = vmax.f32 %v4649_v33, 0.0 }
 0x78f   : > { %v4782_v4 = vmax.f32 %v4651_v6, 0.0 }
 0x790   : > { %v4835_v9 = vpack.c.bf16 %v4781_v18, %v4779_v44 }
 0x791   : > { %v4836_v49 = vpack.c.bf16 %v4782_v4, %v4780_v28  ;;  %v4654_v10 = vpop.f32.mrb[32].mxu0 }
 0x792   : > { %v4655_v41 = vadd.f32 %v4654_v10, %v13977_v63  ;;  %v4656_v40 = vpop.f32.mrb[33].mxu0 }
 0x793   : > { %v4657_v61 = vadd.f32 %v4656_v40, %v13980_v43  ;;  %v4658_v14 = vpop.f32.mrb[34].mxu0  ;;  %5058 = vmatprep.mubr.bf16.mxu1 %v4836_v49 }
 0x794   : > { %v4659_v31 = vadd.f32 %v4658_v14, %v13977_v63  ;;  %v4660_v62 = vpop.f32.mrb[35].mxu0  ;;  %5059 = vmatmul.mubr.bf16.gmra.mrb[4].mxu1 %v4835_v9  ;;  %v4783_v23 = vmax.f32 %v4655_v41, 0.0 }
 0x795   : > { %v4661_v36 = vadd.f32 %v4660_v62, %v13980_v43  ;;  %v4784_v16 = vmax.f32 %v4657_v61, 0.0 }
 0x796   : > { %v4785_v7 = vmax.f32 %v4659_v31, 0.0 }
 0x797   : > { %v4786_v21 = vmax.f32 %v4661_v36, 0.0 }
 0x798   : > { %v4837_v12 = vpack.c.bf16 %v4785_v7, %v4783_v23 }
 0x799   : > { %v4838_v54 = vpack.c.bf16 %v4786_v21, %v4784_v16  ;;  %v4664_v17 = vpop.f32.mrb[36].mxu0 }
 0x79a   : > { %v4665_v39 = vadd.f32 %v4664_v17, %v13977_v63  ;;  %v4666_v3 = vpop.f32.mrb[37].mxu0 }
 0x79b   : > { %v4667_v57 = vadd.f32 %v4666_v3, %v13980_v43  ;;  %v4668_v24 = vpop.f32.mrb[38].mxu0  ;;  %5066 = vmatprep.mubr.bf16.mxu1 %v4838_v54 }
 0x79c   : > { %v4669_v30 = vadd.f32 %v4668_v24, %v13977_v63  ;;  %v4670_v11 = vpop.f32.mrb[39].mxu0  ;;  %5067 = vmatmul.mubr.bf16.gmra.mrb[8].mxu1 %v4837_v12  ;;  %v4787_v32 = vmax.f32 %v4665_v39, 0.0 }
 0x79d   : > { %v4671_v50 = vadd.f32 %v4670_v11, %v13980_v43  ;;  %v4788_v2 = vmax.f32 %v4667_v57, 0.0 }
 0x79e   : > { %v4789_v22 = vmax.f32 %v4669_v30, 0.0 }
 0x79f   : > { %v4790_v58 = vmax.f32 %v4671_v50, 0.0 }
 0x7a0   : > { %v4839_v53 = vpack.c.bf16 %v4789_v22, %v4787_v32 }
 0x7a1   : > { %v4840_v35 = vpack.c.bf16 %v4790_v58, %v4788_v2  ;;  %v4674_v37 = vpop.f32.mrb[40].mxu0 }
 0x7a2   : > { %v4675_v8 = vadd.f32 %v4674_v37, %v13977_v63  ;;  %v4676_v0 = vpop.f32.mrb[41].mxu0 }
 0x7a3   : > { %v4677_v13 = vadd.f32 %v4676_v0, %v13980_v43  ;;  %v4678_v29 = vpop.f32.mrb[42].mxu0  ;;  %5074 = vmatprep.mubr.bf16.mxu1 %v4840_v35 }
 0x7a4   : > { %v4679_v56 = vadd.f32 %v4678_v29, %v13977_v63  ;;  %v4680_v42 = vpop.f32.mrb[43].mxu0  ;;  %5075 = vmatmul.mubr.bf16.gmra.mrb[12].mxu1 %v4839_v53  ;;  %v4791_v60 = vmax.f32 %v4675_v8, 0.0 }
 0x7a5   : > { %v4681_v15 = vadd.f32 %v4680_v42, %v13980_v43  ;;  %v4792_v51 = vmax.f32 %v4677_v13, 0.0 }
 0x7a6   : > { %v4793_v48 = vmax.f32 %v4679_v56, 0.0 }
 0x7a7   : > { %v4794_v55 = vmax.f32 %v4681_v15, 0.0 }
 0x7a8   : > { %v4841_v34 = vpack.c.bf16 %v4793_v48, %v4791_v60 }
 0x7a9   : > { %v4842_v27 = vpack.c.bf16 %v4794_v55, %v4792_v51  ;;  %v4684_v19 = vpop.f32.mrb[44].mxu0 }
 0x7aa   : > { %v4685_v1 = vadd.f32 %v4684_v19, %v13977_v63  ;;  %v4686_v52 = vpop.f32.mrb[45].mxu0 }
 0x7ab   : > { %v4687_v5 = vadd.f32 %v4686_v52, %v13980_v43  ;;  %v4688_v20 = vpop.f32.mrb[46].mxu0  ;;  %5082 = vmatprep.mubr.bf16.mxu1 %v4842_v27 }
 0x7ac   : > { %v4689_v59 = vadd.f32 %v4688_v20, %v13977_v63  ;;  %v4690_v26 = vpop.f32.mrb[47].mxu0  ;;  %5083 = vmatmul.mubr.bf16.gmra.mrb[16].mxu1 %v4841_v34  ;;  %v4795_v46 = vmax.f32 %v4685_v1, 0.0 }
 0x7ad   : > { %v4691_v38 = vadd.f32 %v4690_v26, %v13980_v43  ;;  %v4796_v47 = vmax.f32 %v4687_v5, 0.0 }
 0x7ae   : > { %v4797_v25 = vmax.f32 %v4689_v59, 0.0 }
 0x7af   : > { %v4798_v33 = vmax.f32 %v4691_v38, 0.0 }
 0x7b0   : > { %v4843_v45 = vpack.c.bf16 %v4797_v25, %v4795_v46 }
 0x7b1   : > { %v4844_v6 = vpack.c.bf16 %v4798_v33, %v4796_v47  ;;  %v4694_v44 = vpop.f32.mrb[48].mxu0 }
 0x7b2   : > { %v4695_v18 = vadd.f32 %v4694_v44, %v13977_v63  ;;  %v4696_v28 = vpop.f32.mrb[49].mxu0 }
 0x7b3   : > { %v4697_v4 = vadd.f32 %v4696_v28, %v13980_v43  ;;  %v4698_v9 = vpop.f32.mrb[50].mxu0  ;;  %5090 = vmatprep.mubr.bf16.mxu1 %v4844_v6 }
 0x7b4   : > { %v4699_v49 = vadd.f32 %v4698_v9, %v13977_v63  ;;  %v4700_v10 = vpop.f32.mrb[51].mxu0  ;;  %5091 = vmatmul.mubr.bf16.gmra.mrb[20].mxu1 %v4843_v45  ;;  %v4799_v40 = vmax.f32 %v4695_v18, 0.0 }
 0x7b5   : > { %v4701_v41 = vadd.f32 %v4700_v10, %v13980_v43  ;;  %v4800_v14 = vmax.f32 %v4697_v4, 0.0 }
 0x7b6   : > { %v4801_v61 = vmax.f32 %v4699_v49, 0.0 }
 0x7b7   : > { %v4802_v31 = vmax.f32 %v4701_v41, 0.0 }
 0x7b8   : > { %v4845_v62 = vpack.c.bf16 %v4801_v61, %v4799_v40 }
 0x7b9   : > { %v4846_v36 = vpack.c.bf16 %v4802_v31, %v4800_v14  ;;  %v4704_v23 = vpop.f32.mrb[52].mxu0 }
 0x7ba   : > { %v4705_v7 = vadd.f32 %v4704_v23, %v13977_v63  ;;  %v4706_v16 = vpop.f32.mrb[53].mxu0 }
 0x7bb   : > { %v4707_v21 = vadd.f32 %v4706_v16, %v13980_v43  ;;  %v4708_v12 = vpop.f32.mrb[54].mxu0  ;;  %5098 = vmatprep.mubr.bf16.mxu1 %v4846_v36 }
 0x7bc   : > { %v4709_v54 = vadd.f32 %v4708_v12, %v13977_v63  ;;  %v4710_v17 = vpop.f32.mrb[55].mxu0  ;;  %5099 = vmatmul.mubr.bf16.gmra.mrb[24].mxu1 %v4845_v62  ;;  %v4803_v3 = vmax.f32 %v4705_v7, 0.0 }
 0x7bd   : > { %v4711_v39 = vadd.f32 %v4710_v17, %v13980_v43  ;;  %v4804_v24 = vmax.f32 %v4707_v21, 0.0 }
 0x7be   : > { %v4805_v57 = vmax.f32 %v4709_v54, 0.0 }
 0x7bf   : > { %v4806_v30 = vmax.f32 %v4711_v39, 0.0 }
 0x7c0   : > { %v4847_v11 = vpack.c.bf16 %v4805_v57, %v4803_v3 }
 0x7c1   : > { %v4848_v50 = vpack.c.bf16 %v4806_v30, %v4804_v24  ;;  %v4714_v32 = vpop.f32.mrb[56].mxu0 }
 0x7c2   : > { %v4715_v22 = vadd.f32 %v4714_v32, %v13977_v63  ;;  %v4716_v2 = vpop.f32.mrb[57].mxu0 }
 0x7c3   : > { %v4717_v58 = vadd.f32 %v4716_v2, %v13980_v43  ;;  %v4718_v53 = vpop.f32.mrb[58].mxu0  ;;  %5106 = vmatprep.mubr.bf16.mxu1 %v4848_v50 }
 0x7c4   : > { %v4719_v35 = vadd.f32 %v4718_v53, %v13977_v63  ;;  %v4720_v37 = vpop.f32.mrb[59].mxu0  ;;  %5107 = vmatmul.mubr.bf16.gmra.mrb[28].mxu1 %v4847_v11  ;;  %v4807_v0 = vmax.f32 %v4715_v22, 0.0 }
 0x7c5   : > { %v4721_v8 = vadd.f32 %v4720_v37, %v13980_v43  ;;  %v4808_v29 = vmax.f32 %v4717_v58, 0.0 }
 0x7c6   : > { %v4809_v13 = vmax.f32 %v4719_v35, 0.0 }
 0x7c7   : > { %v4810_v56 = vmax.f32 %v4721_v8, 0.0 }
 0x7c8   : > { %v4849_v42 = vpack.c.bf16 %v4809_v13, %v4807_v0  ;;  %v14049_v13 = vld [vmem:[%s15905_s7] ss:$0 sm:$0xff] }
 0x7c9   : > { %v4850_v15 = vpack.c.bf16 %v4810_v56, %v4808_v29  ;;  %v4724_v60 = vpop.f32.mrb[60].mxu0 }
 0x7ca   : > { %v4725_v48 = vadd.f32 %v4724_v60, %v13977_v63  ;;  %v4726_v51 = vpop.f32.mrb[61].mxu0 }
 0x7cb   : > { %v4727_v55 = vadd.f32 %v4726_v51, %v13980_v43  ;;  %v4728_v34 = vpop.f32.mrb[62].mxu0  ;;  %5114 = vmatprep.mubr.bf16.mxu1 %v4850_v15 }
 0x7cc   : > { %v4729_v27 = vadd.f32 %v4728_v34, %v13977_v63  ;;  %v4730_v19 = vpop.f32.mrb[63].mxu0  ;;  %5115 = vmatmul.mubr.bf16.gmra.mrb[32].mxu1 %v4849_v42  ;;  %v4811_v52 = vmax.f32 %v4725_v48, 0.0 }
 0x7cd   : > { %v4731_v1 = vadd.f32 %v4730_v19, %v13980_v43  ;;  %v4812_v20 = vmax.f32 %v4727_v55, 0.0 }
 0x7ce   : > { %v4813_v5 = vmax.f32 %v4729_v27, 0.0 }
 0x7cf   : > { %v4814_v59 = vmax.f32 %v4731_v1, 0.0 }
 0x7d0   : > { %v4851_v26 = vpack.c.bf16 %v4813_v5, %v4811_v52 }
 0x7d1   : > { %v4852_v38 = vpack.c.bf16 %v4814_v59, %v4812_v20  ;;  %v4734_v46 = vpop.f32.mrb[64].mxu0 }
 0x7d2   : > { %v4735_v25 = vadd.f32 %v4734_v46, %v13977_v63  ;;  %v4736_v47 = vpop.f32.mrb[65].mxu0 }
 0x7d3   : > { %v4737_v33 = vadd.f32 %v4736_v47, %v13980_v43  ;;  %v4738_v45 = vpop.f32.mrb[66].mxu0  ;;  %5122 = vmatprep.mubr.bf16.mxu1 %v4852_v38 }
 0x7d4   : > { %v4739_v6 = vadd.f32 %v4738_v45, %v13977_v63  ;;  %v4740_v44 = vpop.f32.mrb[67].mxu0  ;;  %5123 = vmatmul.mubr.bf16.gmra.mrb[36].mxu1 %v4851_v26  ;;  %v4815_v28 = vmax.f32 %v4735_v25, 0.0 }
 0x7d5   : > { %v4741_v18 = vadd.f32 %v4740_v44, %v13980_v43  ;;  %v4816_v9 = vmax.f32 %v4737_v33, 0.0 }
 0x7d6   : > { %v4817_v4 = vmax.f32 %v4739_v6, 0.0 }
 0x7d7   : > { %v4818_v49 = vmax.f32 %v4741_v18, 0.0 }
 0x7d8   : > { %v4853_v10 = vpack.c.bf16 %v4817_v4, %v4815_v28 }
 0x7d9   : > { %v4854_v41 = vpack.c.bf16 %v4818_v49, %v4816_v9  ;;  %v4744_v40 = vpop.f32.mrb[68].mxu0 }
 0x7da   : > { %v4745_v61 = vadd.f32 %v4744_v40, %v13977_v63  ;;  %v4746_v14 = vpop.f32.mrb[69].mxu0 }
 0x7db   : > { %v4747_v31 = vadd.f32 %v4746_v14, %v13980_v43  ;;  %v4748_v62 = vpop.f32.mrb[70].mxu0  ;;  %5130 = vmatprep.mubr.bf16.mxu1 %v4854_v41 }
 0x7dc   : > { %v4749_v36 = vadd.f32 %v4748_v62, %v13977_v63  ;;  %v4750_v23 = vpop.f32.mrb[71].mxu0  ;;  %5131 = vmatmul.mubr.bf16.gmra.mrb[40].mxu1 %v4853_v10  ;;  %v4819_v16 = vmax.f32 %v4745_v61, 0.0 }
 0x7dd   : > { %v4751_v7 = vadd.f32 %v4750_v23, %v13980_v43  ;;  %v4820_v12 = vmax.f32 %v4747_v31, 0.0 }
 0x7de   : > { %v4821_v21 = vmax.f32 %v4749_v36, 0.0 }
 0x7df   : > { %v4822_v54 = vmax.f32 %v4751_v7, 0.0 }
 0x7e0   : > { %v4855_v17 = vpack.c.bf16 %v4821_v21, %v4819_v16 }
 0x7e1   : > { %v4856_v39 = vpack.c.bf16 %v4822_v54, %v4820_v12  ;;  %v4754_v3 = vpop.f32.mrb[72].mxu0 }
 0x7e2   : > { %v4755_v57 = vadd.f32 %v4754_v3, %v13977_v63  ;;  %v4756_v24 = vpop.f32.mrb[73].mxu0 }
 0x7e3   : > { %v4757_v30 = vadd.f32 %v4756_v24, %v13980_v43  ;;  %v4758_v11 = vpop.f32.mrb[74].mxu0  ;;  %5138 = vmatprep.mubr.bf16.mxu1 %v4856_v39 }
 0x7e4   : > { %v4759_v50 = vadd.f32 %v4758_v11, %v13977_v63  ;;  %v4760_v32 = vpop.f32.mrb[75].mxu0  ;;  %5139 = vmatmul.mubr.bf16.gmra.mrb[44].mxu1 %v4855_v17  ;;  %v4823_v2 = vmax.f32 %v4755_v57, 0.0 }
 0x7e5   : > { %v4761_v22 = vadd.f32 %v4760_v32, %v13980_v43  ;;  %v4824_v53 = vmax.f32 %v4757_v30, 0.0 }
 0x7e6   : > { %v4825_v58 = vmax.f32 %v4759_v50, 0.0 }
 0x7e7   : > { %v4826_v35 = vmax.f32 %v4761_v22, 0.0 }
 0x7e8   : > { %v4857_v37 = vpack.c.bf16 %v4825_v58, %v4823_v2 }
 0x7e9   : > { %v4858_v8 = vpack.c.bf16 %v4826_v35, %v4824_v53 }
 0x7eb   : > { %5146 = vmatprep.mubr.bf16.mxu1 %v4858_v8 }
 0x7ec   : > { %5147 = vmatmul.mubr.bf16.gmra.mrb[48].mxu1 %v4857_v37 }
 0x847   : > { %v10677_v0 = vpop.f32.mrb[244].mxu1 }
 0x848   : > { %v10678_v29 = vpop.f32.mrb[245].mxu1 }
 0x849   : > { %v10679_v63 = vadd.f32 %v10678_v29, %v10677_v0  ;;  %v10680_v56 = vpop.f32.mrb[246].mxu1 }
 0x84a   : > { %v10681_v42 = vpop.f32.mrb[247].mxu1 }
 0x84b   : > { %v14052_v8 = vadd.f32 %v10679_v63, %v14049_v13   ;;  %v10682_v43 = vadd.f32 %v10681_v42, %v10680_v56 }
 0x84d   : > { %v14055_v9 = vadd.f32 %v10682_v43, %v14049_v13  }
 0x84f   : > { %v10683_v15 = vpop.f32.mrb[248].mxu1 }
 0x850   : > { %v10684_v60 = vpop.f32.mrb[249].mxu1 }
 0x851   : > { %v10685_v48 = vadd.f32 %v10684_v60, %v10683_v15  ;;  %v10686_v51 = vpop.f32.mrb[250].mxu1 }
 0x852   : > { %v10687_v55 = vpop.f32.mrb[251].mxu1 }
 0x853   : > { %v14058_v10 = vadd.f32 %v10685_v48, %v14049_v13   ;;  %v10688_v34 = vadd.f32 %v10687_v55, %v10686_v51 }
 0x855   : > { %v14061_v14 = vadd.f32 %v10688_v34, %v14049_v13  }
 0x857   : > { %v10689_v27 = vpop.f32.mrb[252].mxu1 }
 0x858   : > { %v10690_v19 = vpop.f32.mrb[253].mxu1 }
 0x859   : > { %v10691_v1 = vadd.f32 %v10690_v19, %v10689_v27  ;;  %v10692_v52 = vpop.f32.mrb[254].mxu1 }
 0x85a   : > { %v10693_v5 = vpop.f32.mrb[255].mxu1 }
 0x85b   : > { %v14064_v15 = vadd.f32 %v10691_v1, %v14049_v13   ;;  %v10694_v20 = vadd.f32 %v10693_v5, %v10692_v52 }
 0x85d   : > { %v14067_v16 = vadd.f32 %v10694_v20, %v14049_v13  }
 0x85f   : > { %v10695_v59 = vpop.f32.mrb[0].mxu1 }
 0x860   : > { %v10696_v26 = vpop.f32.mrb[1].mxu1 }
 0x861   : > { %v10697_v38 = vadd.f32 %v10696_v26, %v10695_v59  ;;  %v10698_v46 = vpop.f32.mrb[2].mxu1 }
 0x862   : > { %v10699_v25 = vpop.f32.mrb[3].mxu1 }
 0x863   : > { %v14070_v20 = vadd.f32 %v10697_v38, %v14049_v13   ;;  %v10700_v47 = vadd.f32 %v10699_v25, %v10698_v46 }
 0x865   : > { %v14073_v21 = vadd.f32 %v10700_v47, %v14049_v13  }
 0x867   : > { %v10701_v33 = vpop.f32.mrb[4].mxu1 }
 0x868   : > { %v10702_v45 = vpop.f32.mrb[5].mxu1 }
 0x869   : > { %v10703_v6 = vadd.f32 %v10702_v45, %v10701_v33  ;;  %v10704_v44 = vpop.f32.mrb[6].mxu1 }
 0x86a   : > { %v10705_v18 = vpop.f32.mrb[7].mxu1 }
 0x86b   : > { %v14076_v22 = vadd.f32 %v10703_v6, %v14049_v13   ;;  %v10706_v28 = vadd.f32 %v10705_v18, %v10704_v44 }
 0x86d   : > { %v14079_v26 = vadd.f32 %v10706_v28, %v14049_v13  }
 0x86f   : > { %v10707_v4 = vpop.f32.mrb[8].mxu1 }
 0x870   : > { %v10708_v49 = vpop.f32.mrb[9].mxu1 }
 0x871   : > { %v10709_v41 = vadd.f32 %v10708_v49, %v10707_v4  ;;  %v10710_v40 = vpop.f32.mrb[10].mxu1 }
 0x872   : > { %v10711_v61 = vpop.f32.mrb[11].mxu1 }
 0x873   : > { %v14082_v27 = vadd.f32 %v10709_v41, %v14049_v13   ;;  %v10712_v31 = vadd.f32 %v10711_v61, %v10710_v40 }
 0x875   : > { %v14085_v28 = vadd.f32 %v10712_v31, %v14049_v13  }
 0x877   : > { %v10713_v62 = vpop.f32.mrb[12].mxu1 }
 0x878   : > { %v10714_v36 = vpop.f32.mrb[13].mxu1 }
 0x879   : > { %v10715_v23 = vadd.f32 %v10714_v36, %v10713_v62  ;;  %v10716_v7 = vpop.f32.mrb[14].mxu1 }
 0x87a   : > { %v10717_v12 = vpop.f32.mrb[15].mxu1 }
 0x87b   : > { %v14088_v32 = vadd.f32 %v10715_v23, %v14049_v13   ;;  %v10718_v54 = vadd.f32 %v10717_v12, %v10716_v7 }
 0x87d   : > { %v14091_v33 = vadd.f32 %v10718_v54, %v14049_v13  }
 0x87f   : > { %v10719_v17 = vpop.f32.mrb[16].mxu1 }
 0x880   : > { %v10720_v39 = vpop.f32.mrb[17].mxu1 }
 0x881   : > { %v10721_v3 = vadd.f32 %v10720_v39, %v10719_v17  ;;  %v10722_v57 = vpop.f32.mrb[18].mxu1 }
 0x882   : > { %v10723_v24 = vpop.f32.mrb[19].mxu1 }
 0x883   : > { %v14094_v34 = vadd.f32 %v10721_v3, %v14049_v13   ;;  %v10724_v30 = vadd.f32 %v10723_v24, %v10722_v57 }
 0x885   : > { %v14097_v38 = vadd.f32 %v10724_v30, %v14049_v13  }
 0x887   : > { %v10725_v11 = vpop.f32.mrb[20].mxu1 }
 0x888   : > { %v10726_v50 = vpop.f32.mrb[21].mxu1 }
 0x889   : > { %v10727_v2 = vadd.f32 %v10726_v50, %v10725_v11  ;;  %v10728_v58 = vpop.f32.mrb[22].mxu1 }
 0x88a   : > { %v10729_v53 = vpop.f32.mrb[23].mxu1 }
 0x88b   : > { %v14100_v39 = vadd.f32 %v10727_v2, %v14049_v13   ;;  %v10730_v35 = vadd.f32 %v10729_v53, %v10728_v58 }
 0x88d   : > { %v14103_v40 = vadd.f32 %v10730_v35, %v14049_v13  }
 0x88f   : > { %v10731_v37 = vpop.f32.mrb[24].mxu1 }
 0x890   : > { %v10732_v0 = vpop.f32.mrb[25].mxu1 }
 0x891   : > { %v10733_v29 = vadd.f32 %v10732_v0, %v10731_v37  ;;  %v10734_v63 = vpop.f32.mrb[26].mxu1 }
 0x892   : > { %v10735_v56 = vpop.f32.mrb[27].mxu1 }
 0x893   : > { %v14106_v44 = vadd.f32 %v10733_v29, %v14049_v13   ;;  %v10736_v42 = vadd.f32 %v10735_v56, %v10734_v63 }
 0x895   : > { %v5104_v45 = vadd.f32 %v10736_v42, %v14049_v13  }
 0x897   : > { %v10737_v43 = vpop.f32.mrb[28].mxu1 }
 0x898   : > { %v10738_v60 = vpop.f32.mrb[29].mxu1 }
 0x899   : > { %v10739_v48 = vadd.f32 %v10738_v60, %v10737_v43  ;;  %v10740_v51 = vpop.f32.mrb[30].mxu1 }
 0x89a   : > { %v10741_v55 = vpop.f32.mrb[31].mxu1 }
 0x89b   : > { %v5109_v46 = vadd.f32 %v10739_v48, %v14049_v13   ;;  %v10742_v19 = vadd.f32 %v10741_v55, %v10740_v51 }
 0x89d   : > { %v5112_v50 = vadd.f32 %v10742_v19, %v14049_v13  }
 0x89f   : > { %v10743_v1 = vpop.f32.mrb[32].mxu1 }
 0x8a0   : > { %v10744_v52 = vpop.f32.mrb[33].mxu1 }
 0x8a1   : > { %v10745_v5 = vadd.f32 %v10744_v52, %v10743_v1  ;;  %v10746_v59 = vpop.f32.mrb[34].mxu1 }
 0x8a2   : > { %v10747_v25 = vpop.f32.mrb[35].mxu1 }
 0x8a3   : > { %v5117_v58 = vadd.f32 %v10745_v5, %v14049_v13   ;;  %v10748_v47 = vadd.f32 %v10747_v25, %v10746_v59 }
 0x8a5   : > { %v5120_v1 = vadd.f32 %v10748_v47, %v14049_v13  }
 0x8a7   : > { %v10749_v6 = vpop.f32.mrb[36].mxu1 }
 0x8a8   : > { %v10750_v18 = vpop.f32.mrb[37].mxu1 }
 0x8a9   : > { %v10751_v4 = vadd.f32 %v10750_v18, %v10749_v6  ;;  %v10752_v49 = vpop.f32.mrb[38].mxu1 }
 0x8aa   : > { %v10753_v41 = vpop.f32.mrb[39].mxu1 }
 0x8ab   : > { %v5125_v51 = vadd.f32 %v10751_v4, %v14049_v13   ;;  %v10754_v61 = vadd.f32 %v10753_v41, %v10752_v49 }
 0x8ad   : > { %v5128_v0 = vadd.f32 %v10754_v61, %v14049_v13  }
 0x8af   : > { %v10755_v31 = vpop.f32.mrb[40].mxu1 }
 0x8b0   : > { %v10756_v62 = vpop.f32.mrb[41].mxu1 }
 0x8b1   : > { %v10757_v36 = vadd.f32 %v10756_v62, %v10755_v31  ;;  %v10758_v23 = vpop.f32.mrb[42].mxu1 }
 0x8b2   : > { %v10759_v7 = vpop.f32.mrb[43].mxu1 }
 0x8b3   : > { %v5133_v52 = vadd.f32 %v10757_v36, %v14049_v13   ;;  %v10760_v12 = vadd.f32 %v10759_v7, %v10758_v23 }
 0x8b5   : > { %v5136_v63 = vadd.f32 %v10760_v12, %v14049_v13  }
 0x8b7   : > { %v10761_v54 = vpop.f32.mrb[44].mxu1 }
 0x8b8   : > { %v10762_v17 = vpop.f32.mrb[45].mxu1 }
 0x8b9   : > { %v10763_v3 = vadd.f32 %v10762_v17, %v10761_v54  ;;  %v10764_v57 = vpop.f32.mrb[46].mxu1 }
 0x8ba   : > { %v10765_v24 = vpop.f32.mrb[47].mxu1 }
 0x8bb   : > { %v5141_v56 = vadd.f32 %v10763_v3, %v14049_v13   ;;  %v10766_v30 = vadd.f32 %v10765_v24, %v10764_v57 }
 0x8bd   : > { %v5144_v57 = vadd.f32 %v10766_v30, %v14049_v13  }
 0x8bf   : > { %v10767_v11 = vpop.f32.mrb[48].mxu1 }
 0x8c0   : > { %v10768_v2 = vpop.f32.mrb[49].mxu1 }
 0x8c1   : > { %v10769_v53 = vadd.f32 %v10768_v2, %v10767_v11  ;;  %v10770_v35 = vpop.f32.mrb[50].mxu1 }
 0x8c2   : > { %v10771_v37 = vpop.f32.mrb[51].mxu1 }
 0x8c3   : > { %v5149_v62 = vadd.f32 %v10769_v53, %v14049_v13   ;;  %v10772_v29 = vadd.f32 %v10771_v37, %v10770_v35 }
 0x8c5   : > { %v5152_v61 = vadd.f32 %v10772_v29, %v14049_v13  }
 0x8c6 PF: > { %v5257_v13 = vld [vmem:[%s15906_s8 + $0x8] sm:$0xff]  ;;  %v5256_v42 = vld [vmem:[%s15906_s8] sm:$0xff]  ;;  %s10958_s22 = scalar_select %p10048_p7, 1, 0  ;;  %v15934_v43 = vmov 0.0   ;;  %vm5266_vm3 = vcmask 64512   ;;  %v12411_v8 = vphi %v12920_v8, %v14052_v8   ;;  %v12407_v9 = vphi %v12918_v9, %v14055_v9   ;;  %v12403_v10 = vphi %v12916_v10, %v14058_v10   ;;  %v12399_v14 = vphi %v12914_v14, %v14061_v14   ;;  %v12395_v15 = vphi %v12912_v15, %v14064_v15   ;;  %v12391_v16 = vphi %v12910_v16, %v14067_v16   ;;  %v12387_v20 = vphi %v12908_v20, %v14070_v20   ;;  %v12383_v21 = vphi %v12906_v21, %v14073_v21   ;;  %v12379_v22 = vphi %v12904_v22, %v14076_v22   ;;  %v12375_v26 = vphi %v12902_v26, %v14079_v26   ;;  %v12371_v27 = vphi %v12900_v27, %v14082_v27   ;;  %v12367_v28 = vphi %v12898_v28, %v14085_v28   ;;  %v12363_v32 = vphi %v12896_v32, %v14088_v32   ;;  %v12359_v33 = vphi %v12894_v33, %v14091_v33   ;;  %v12355_v34 = vphi %v12892_v34, %v14094_v34   ;;  %v12351_v38 = vphi %v12890_v38, %v14097_v38   ;;  %v12347_v39 = vphi %v12888_v39, %v14100_v39   ;;  %v12343_v40 = vphi %v12886_v40, %v14103_v40   ;;  %v12339_v44 = vphi %v12884_v44, %v14106_v44   ;;  %v12335_v45 = vphi %v12882_v45, %v5104_v45   ;;  %v12331_v46 = vphi %v12880_v46, %v5109_v46   ;;  %v12327_v50 = vphi %v12878_v50, %v5112_v50   ;;  %v12323_v58 = vphi %v12876_v58, %v5117_v58   ;;  %v12319_v1 = vphi %v12874_v1, %v5120_v1   ;;  %v12315_v51 = vphi %v12872_v51, %v5125_v51   ;;  %v12311_v0 = vphi %v12870_v0, %v5128_v0   ;;  %v12307_v52 = vphi %v12868_v52, %v5133_v52   ;;  %v12303_v63 = vphi %v12866_v63, %v5136_v63   ;;  %v12299_v56 = vphi %v12864_v56, %v5141_v56   ;;  %v12295_v57 = vphi %v12862_v57, %v5144_v57   ;;  %v12291_v62 = vphi %v12860_v62, %v5149_v62   ;;  %v12287_v61 = vphi %v12858_v61, %v5152_v61  }
 0x8c7   : > { %5363 = vmatprep.subr.mxu0 %v5257_v13  ;;  %5427 = vmatprep.mubr.f32.mxu0 %v15934_v43  ;;  %v11727_v55 = vld [vmem:[#allocation6 + $0x4] ss:$8 sps:$4 sm:$0xff]   ;;  %v11729_v19 = vld [vmem:[#allocation6] ss:$8 sps:$4 sm:$0xff]   ;;  %v11730_v25 = vld [vmem:[#allocation6 + $0x14] ss:$8 sps:$4 sm:$0xff]  }
 0x8c8   : > { %5364 = vmatpush1.msra.mxu0 %v5256_v42  ;;  %v10959_v60 = vstv %s10958_s22  ;;  %v16040_v47 = vld [vmem:[#allocation10_spill] sm:$0xff]  ;;  %5916 = vmatprep.subr.bf16.mxu1 %v11727_v55  ;;  %v11732_v18 = vld [vmem:[#allocation6 + $0x10] ss:$8 sps:$4 sm:$0xff]   ;;  %v16041_v4 = vld [vmem:[#allocation11_spill] sm:$0xff]  ;;  %s12419_s26 = smov 8   ;;  %vm9924_vm4 = vcmask 130048  }
 0x8c9   : > { %vm14297_vm2 = vcmp.ne.s32.totalorder %v10959_v60, 0  ;;  %5917 = vmatpush1.bf16.msra.mxu1 %v11729_v19  ;;  %v11733_v49 = vld [vmem:[#allocation6 + $0x24] ss:$8 sps:$4 sm:$0xff]   ;;  %v11735_v41 = vld [vmem:[#allocation6 + $0x20] ss:$8 sps:$4 sm:$0xff]   ;;  %v16042_v31 = vld [vmem:[#allocation12_spill] sm:$0xff] }
 0x8ca   : > { %v14303_v5 = vsel %vm14297_vm2, 0.0, %v12411_v8  ;;  %v14307_v59 = vsel %vm14297_vm2, 0.0, %v12407_v9  ;;  %v14322_v9 = vsel %vm14297_vm2, 0.0, %v12403_v10  ;;  %5918 = vmatprep.subr.bf16.mxu1 %v11730_v25  ;;  %v14333_v23 = vsel %vm14297_vm2, 0.0, %v12399_v14  ;;  %v11736_v10 = vld [vmem:[#allocation6 + $0x34] ss:$8 sps:$4 sm:$0xff]  }
 0x8cb   : > { %v14311_v6 = vadd.f32 %v14303_v5, %v16040_v47  ;;  %v14317_v8 = vadd.f32 %v14307_v59, %v16041_v4  ;;  %v14328_v36 = vadd.f32 %v14322_v9, %v16042_v31  ;;  %16043 = vst [vmem:[#allocation31_spill] sm:$0xff] %v14333_v23  ;;  %v11738_v7 = vld [vmem:[#allocation6 + $0x30] ss:$8 sps:$4 sm:$0xff]   ;;  %v14344_v17 = vsel %vm14297_vm2, 0.0, %v12395_v15  ;;  %v11739_v14 = vld [vmem:[#allocation6 + $0x44] ss:$8 sps:$4 sm:$0xff]   ;;  %9796 = vrot.lane.b32.xlu0 %v14303_v5, %s12419_s26 }
 0x8cc   : > { %v16044_v12 = vld [vmem:[#allocation13_spill] sm:$0xff]  ;;  %16045 = vst [vmem:[#allocation35_spill] sm:$0xff] %v14344_v17  ;;  %v11741_v3 = vld [vmem:[#allocation6 + $0x40] ss:$8 sps:$4 sm:$0xff]   ;;  %v14355_v2 = vsel %vm14297_vm2, 0.0, %v12391_v16  ;;  %v14367_v29 = vsel %vm14297_vm2, 0.0, %v12387_v20  ;;  %9800 = vrot.lane.b32.xlu1 %v14322_v9, %s12419_s26 }
 0x8cd   : > { %10354 = vmatmul.mubr.msk.f32.vlgmr.msra.gmra.mrb[0].mxu0 %vm5266_vm3, %v14311_v6  ;;  %5919 = vmatpush1.bf16.msra.mxu1 %v11732_v18  ;;  %v14339_v54 = vadd.f32 %v14333_v23, %v16044_v12  ;;  %v16046_v24 = vld [vmem:[#allocation14_spill] sm:$0xff]  ;;  %v11742_v11 = vld [vmem:[#allocation6 + $0x54] ss:$8 sps:$4 sm:$0xff]   ;;  %16047 = vst [vmem:[#allocation36_spill] sm:$0xff] %v14355_v2  ;;  %v11744_v15 = vld [vmem:[#allocation6 + $0x50] ss:$8 sps:$4 sm:$0xff]  }
 0x8ce   : > { %5433 = vmatprep.mubr.f32.mxu0 %v15934_v43  ;;  %5920 = vmatprep.subr.bf16.mxu1 %v11733_v49  ;;  %v14350_v30 = vadd.f32 %v14344_v17, %v16046_v24  ;;  %v16048_v53 = vld [vmem:[#allocation15_spill] sm:$0xff]  ;;  %16049 = vst [vmem:[#allocation37_spill] sm:$0xff] %v14367_v29  ;;  %v11748_v13 = vld [vmem:[#allocation6 + $0x74] ss:$8 sps:$4 sm:$0xff]   ;;  %v14379_v55 = vsel %vm14297_vm2, 0.0, %v12383_v21  ;;  %v14391_v18 = vsel %vm14297_vm2, 0.0, %v12379_v22 }
 0x8cf   : > { %v14361_v35 = vadd.f32 %v14355_v2, %v16048_v53  ;;  %v11745_v37 = vld [vmem:[#allocation6 + $0x64] ss:$8 sps:$4 sm:$0xff]   ;;  %v11747_v16 = vld [vmem:[#allocation6 + $0x60] ss:$8 sps:$4 sm:$0xff]   ;;  %v16050_v42 = vld [vmem:[#allocation16_spill] sm:$0xff]  ;;  %16051 = vst [vmem:[#allocation41_spill] sm:$0xff] %v14379_v55  ;;  %9798 = vrot.lane.b32.xlu0 %v14307_v59, %s12419_s26 }
 0x8d0   : > { %v14373_v60 = vadd.f32 %v14367_v29, %v16050_v42  ;;  %v11750_v20 = vld [vmem:[#allocation6 + $0x70] ss:$8 sps:$4 sm:$0xff]   ;;  %v11751_v19 = vld [vmem:[#allocation6 + $0x84] ss:$8 sps:$4 sm:$0xff]   ;;  %16053 = vst [vmem:[#allocation42_spill] sm:$0xff] %v14391_v18  ;;  %v14403_v31 = vsel %vm14297_vm2, 0.0, %v12375_v26 }
 0x8d1   : > { %10355 = vmatmul.mubr.msk.f32.gmra.mrb[2].mxu0 %vm5266_vm3, %v14317_v8  ;;  %5921 = vmatpush1.bf16.msra.mxu1 %v11735_v41  ;;  %v16052_v25 = vld [vmem:[#allocation17_spill] sm:$0xff]  ;;  %v11753_v21 = vld [vmem:[#allocation6 + $0x80] ss:$8 sps:$4 sm:$0xff]   ;;  %16055 = vst [vmem:[#allocation10_spill] sm:$0xff] %v14403_v31  ;;  %v16058_v24 = vld [vmem:[#allocation20_spill] sm:$0xff] }
 0x8d2   : > { %5439 = vmatprep.mubr.f32.mxu0 %v15934_v43  ;;  %5922 = vmatprep.subr.bf16.mxu1 %v11736_v10  ;;  %v14385_v47 = vadd.f32 %v14379_v55, %v16052_v25  ;;  %v11754_v4 = vld [vmem:[#allocation6 + $0x94] ss:$8 sps:$4 sm:$0xff]   ;;  %v16054_v49 = vld [vmem:[#allocation18_spill] sm:$0xff]  ;;  %v11756_v22 = vld [vmem:[#allocation6 + $0x90] ss:$8 sps:$4 sm:$0xff]  }
 0x8d3   : > { %v14397_v41 = vadd.f32 %v14391_v18, %v16054_v49  ;;  %v11757_v10 = vld [vmem:[#allocation6 + $0xa4] ss:$8 sps:$4 sm:$0xff]   ;;  %v11759_v26 = vld [vmem:[#allocation6 + $0xa0] ss:$8 sps:$4 sm:$0xff]   ;;  %v14475_v49 = vsel %vm14297_vm2, 0.0, %v12351_v38 }
 0x8d4   : > { %v11763_v53 = vld [vmem:[#allocation6 + $0xc4] ss:$8 sps:$4 sm:$0xff]   ;;  %16067 = vst [vmem:[#allocation16_spill] sm:$0xff] %v14475_v49  ;;  %v11780_v48 = vld [vmem:[#allocation6 + $0x114] ss:$8 sps:$4 sm:$0xff]  }
 0x8d5   : > { %10356 = vmatmul.mubr.msk.f32.gmra.mrb[4].mxu0 %vm5266_vm3, %v14328_v36  ;;  %5923 = vmatpush1.bf16.msra.mxu1 %v11738_v7  ;;  %v16056_v7 = vld [vmem:[#allocation19_spill] sm:$0xff]  ;;  %v16062_v42 = vld [vmem:[#allocation22_spill] sm:$0xff]  ;;  %v14955_v17 = vld [vmem:[#allocation6 + $0x474] ss:$8 sps:$4 sm:$0xff]  }
 0x8d6   : > { %5445 = vmatprep.mubr.f32.mxu0 %v15934_v43  ;;  %5924 = vmatprep.subr.bf16.mxu1 %v11739_v14  ;;  %v14409_v12 = vadd.f32 %v14403_v31, %v16056_v7  ;;  %v14415_v14 = vsel %vm14297_vm2, 0.0, %v12371_v27  ;;  %v11762_v27 = vld [vmem:[#allocation6 + $0xb0] ss:$8 sps:$4 sm:$0xff]   ;;  %v16070_v7 = vld [vmem:[#allocation26_spill] sm:$0xff] }
 0x8d7   : > { %16057 = vst [vmem:[#allocation11_spill] sm:$0xff] %v14415_v14  ;;  %v16107_v5 = vld [vmem:[#allocation41_spill] sm:$0xff] }
 0x8d9   : > { %10357 = vmatmul.mubr.msk.f32.gmra.mrb[6].mxu0 %vm5266_vm3, %v14339_v54  ;;  %5925 = vmatpush1.bf16.msra.mxu1 %v11741_v3  ;;  %v11760_v3 = vld [vmem:[#allocation6 + $0xb4] ss:$8 sps:$4 sm:$0xff]  }
 0x8da   : > { %5451 = vmatprep.mubr.f32.mxu0 %v15934_v43  ;;  %5926 = vmatprep.subr.bf16.mxu1 %v11742_v11  ;;  %v14421_v11 = vadd.f32 %v14415_v14, %v16058_v24  ;;  %v14511_v24 = vsel %vm14297_vm2, 0.0, %v12339_v44 }
 0x8db   : > { %16073 = vst [vmem:[#allocation19_spill] sm:$0xff] %v14511_v24 }
 0x8dd   : > { %10358 = vmatmul.mubr.msk.f32.gmra.mrb[8].mxu0 %vm5266_vm3, %v14350_v30  ;;  %5927 = vmatpush1.bf16.msra.mxu1 %v11744_v15  ;;  %v14427_v15 = vsel %vm14297_vm2, 0.0, %v12367_v28  ;;  %v11765_v28 = vld [vmem:[#allocation6 + $0xc0] ss:$8 sps:$4 sm:$0xff]  }
 0x8de   : > { %5457 = vmatprep.mubr.f32.mxu0 %v15934_v43  ;;  %5928 = vmatprep.subr.bf16.mxu1 %v11745_v37  ;;  %16059 = vst [vmem:[#allocation12_spill] sm:$0xff] %v14427_v15  ;;  %v16060_v37 = vld [vmem:[#allocation21_spill] sm:$0xff] }
 0x8e1   : > { %10359 = vmatmul.mubr.msk.f32.gmra.mrb[10].mxu0 %vm5266_vm3, %v14361_v35  ;;  %5929 = vmatpush1.bf16.msra.mxu1 %v11747_v16  ;;  %v14433_v16 = vadd.f32 %v14427_v15, %v16060_v37  ;;  %v16076_v37 = vld [vmem:[#allocation29_spill] sm:$0xff] }
 0x8e2   : > { %5463 = vmatprep.mubr.f32.mxu0 %v15934_v43  ;;  %5930 = vmatprep.subr.bf16.mxu1 %v11748_v13  ;;  %v14439_v13 = vsel %vm14297_vm2, 0.0, %v12363_v32  ;;  %v16064_v32 = vld [vmem:[#allocation23_spill] sm:$0xff] }
 0x8e3   : > { %16061 = vst [vmem:[#allocation13_spill] sm:$0xff] %v14439_v13 }
 0x8e5   : > { %10360 = vmatmul.mubr.msk.f32.gmra.mrb[12].mxu0 %vm5266_vm3, %v14373_v60  ;;  %5931 = vmatpush1.bf16.msra.mxu1 %v11750_v20  ;;  %v14445_v20 = vadd.f32 %v14439_v13, %v16062_v42  ;;  %v16078_v42 = vld [vmem:[#allocation30_spill] sm:$0xff] }
 0x8e6   : > { %5469 = vmatprep.mubr.f32.mxu0 %v15934_v43  ;;  %5932 = vmatprep.subr.bf16.mxu1 %v11751_v19  ;;  %v14451_v19 = vsel %vm14297_vm2, 0.0, %v12359_v33  ;;  %v16066_v33 = vld [vmem:[#allocation24_spill] sm:$0xff] }
 0x8e7   : > { %16063 = vst [vmem:[#allocation14_spill] sm:$0xff] %v14451_v19  ;;  %v14457_v25 = vadd.f32 %v14451_v19, %v16064_v32  ;;  %v14547_v32 = vsel %vm14297_vm2, 0.0, %v12327_v50  ;;  %v14569_v50 = vsel %vm14297_vm2, 0.0, %v12315_v51  ;;  %v11769_v51 = vld [vmem:[#allocation6 + $0xe4] ss:$8 sps:$4 sm:$0xff]  }
 0x8e8   : > { %16079 = vst [vmem:[#allocation22_spill] sm:$0xff] %v14547_v32  ;;  %v11792_v19 = vld [vmem:[#allocation6 + $0x154] ss:$8 sps:$4 sm:$0xff]  }
 0x8e9   : > { %10361 = vmatmul.mubr.msk.f32.gmra.mrb[14].mxu0 %vm5266_vm3, %v14385_v47  ;;  %5933 = vmatpush1.bf16.msra.mxu1 %v11753_v21  ;;  %v14463_v21 = vsel %vm14297_vm2, 0.0, %v12355_v34 }
 0x8ea   : > { %5475 = vmatprep.mubr.f32.mxu0 %v15934_v43  ;;  %5934 = vmatprep.subr.bf16.mxu1 %v11754_v4  ;;  %16065 = vst [vmem:[#allocation15_spill] sm:$0xff] %v14463_v21  ;;  %v14469_v4 = vadd.f32 %v14463_v21, %v16066_v33  ;;  %v16080_v33 = vld [vmem:[#allocation32_spill] sm:$0xff] }
 0x8ed   : > { %10362 = vmatmul.mubr.msk.f32.gmra.mrb[16].mxu0 %vm5266_vm3, %v14397_v41  ;;  %5935 = vmatpush1.bf16.msra.mxu1 %v11756_v22  ;;  %v16068_v22 = vld [vmem:[#allocation25_spill] sm:$0xff] }
 0x8ee   : > { %5481 = vmatprep.mubr.f32.mxu0 %v15934_v43  ;;  %5936 = vmatprep.subr.bf16.mxu1 %v11757_v10  ;;  %v14481_v34 = vadd.f32 %v14475_v49, %v16068_v22  ;;  %v14487_v10 = vsel %vm14297_vm2, 0.0, %v12347_v39  ;;  %v14559_v22 = vsel %vm14297_vm2, 0.0, %v12323_v58  ;;  %16083 = vst [vmem:[#allocation25_spill] sm:$0xff] %v14569_v50  ;;  %v16085_v58 = vld [vmem:[#allocation33_spill] sm:$0xff]  ;;  %v11789_v49 = vld [vmem:[#allocation6 + $0x144] ss:$8 sps:$4 sm:$0xff]  }
 0x8ef   : > { %16069 = vst [vmem:[#allocation17_spill] sm:$0xff] %v14487_v10  ;;  %v14493_v38 = vadd.f32 %v14487_v10, %v16070_v7  ;;  %16081 = vst [vmem:[#allocation23_spill] sm:$0xff] %v14559_v22  ;;  %v14564_v7 = vsel %vm14297_vm2, 0.0, %v12319_v1  ;;  %v11771_v1 = vld [vmem:[#allocation6 + $0xe0] ss:$8 sps:$4 sm:$0xff]  }
 0x8f0   : > { %16082 = vst [vmem:[#allocation24_spill] sm:$0xff] %v14564_v7  ;;  %v11787_v10 = vld [vmem:[#allocation6 + $0x140] ss:$8 sps:$4 sm:$0xff]  }
 0x8f1   : > { %10363 = vmatmul.mubr.msk.f32.gmra.mrb[18].mxu0 %vm5266_vm3, %v14409_v12  ;;  %5937 = vmatpush1.bf16.msra.mxu1 %v11759_v26  ;;  %v14499_v26 = vsel %vm14297_vm2, 0.0, %v12343_v40 }
 0x8f2   : > { %5487 = vmatprep.mubr.f32.mxu0 %v15934_v43  ;;  %5938 = vmatprep.subr.bf16.mxu1 %v11760_v3  ;;  %16071 = vst [vmem:[#allocation18_spill] sm:$0xff] %v14499_v26  ;;  %v16072_v3 = vld [vmem:[#allocation27_spill] sm:$0xff] }
 0x8f3   : > { %v14505_v39 = vadd.f32 %v14499_v26, %v16072_v3  ;;  %v11766_v3 = vld [vmem:[#allocation6 + $0xd4] ss:$8 sps:$4 sm:$0xff]  }
 0x8f5   : > { %10364 = vmatmul.mubr.msk.f32.gmra.mrb[20].mxu0 %vm5266_vm3, %v14421_v11  ;;  %5939 = vmatpush1.bf16.msra.mxu1 %v11762_v27  ;;  %v16074_v27 = vld [vmem:[#allocation28_spill] sm:$0xff] }
 0x8f6   : > { %5493 = vmatprep.mubr.f32.mxu0 %v15934_v43  ;;  %5940 = vmatprep.subr.bf16.mxu1 %v11763_v53  ;;  %v14517_v40 = vadd.f32 %v14511_v24, %v16074_v27  ;;  %v14523_v53 = vsel %vm14297_vm2, 0.0, %v12335_v45  ;;  %v14574_v27 = vsel %vm14297_vm2, 0.0, %v12311_v0 }
 0x8f7   : > { %16075 = vst [vmem:[#allocation20_spill] sm:$0xff] %v14523_v53  ;;  %v14529_v44 = vadd.f32 %v14523_v53, %v16076_v37  ;;  %16084 = vst [vmem:[#allocation26_spill] sm:$0xff] %v14574_v27  ;;  %v11768_v37 = vld [vmem:[#allocation6 + $0xd0] ss:$8 sps:$4 sm:$0xff]  }
 0x8f9   : > { %10365 = vmatmul.mubr.msk.f32.gmra.mrb[22].mxu0 %vm5266_vm3, %v14433_v16  ;;  %5941 = vmatpush1.bf16.msra.mxu1 %v11765_v28  ;;  %v14535_v28 = vsel %vm14297_vm2, 0.0, %v12331_v46  ;;  %v14553_v46 = vadd.f32 %v14547_v32, %v16080_v33  ;;  %v16086_v33 = vld [vmem:[#allocation34_spill] sm:$0xff]  ;;  %v11772_v32 = vld [vmem:[#allocation6 + $0xf4] ss:$8 sps:$4 sm:$0xff]  }
 0x8fa   : > { %5499 = vmatprep.mubr.f32.mxu0 %v15934_v43  ;;  %16077 = vst [vmem:[#allocation21_spill] sm:$0xff] %v14535_v28  ;;  %v14541_v45 = vadd.f32 %v14535_v28, %v16078_v42  ;;  %v14580_v42 = vadd.f32 %v14559_v22, %v16085_v58  ;;  %5942 = vmatprep.subr.bf16.mxu1 %v11766_v3  ;;  %v11774_v58 = vld [vmem:[#allocation6 + $0xf0] ss:$8 sps:$4 sm:$0xff]   ;;  %v16087_v3 = vld [vmem:[#allocation38_spill] sm:$0xff] }
 0x8fb   : > { %v14587_v0 = vadd.f32 %v14564_v7, %v16086_v33  ;;  %v11781_v7 = vld [vmem:[#allocation6 + $0x120] ss:$8 sps:$4 sm:$0xff]   ;;  %v11783_v22 = vld [vmem:[#allocation6 + $0x124] ss:$8 sps:$4 sm:$0xff]  }
 0x8fd   : > { %10366 = vmatmul.mubr.msk.f32.gmra.mrb[24].mxu0 %vm5266_vm3, %v14445_v20  ;;  %5943 = vmatpush1.bf16.msra.mxu1 %v11768_v37  ;;  %v14594_v37 = vadd.f32 %v14569_v50, %v16087_v3  ;;  %v14619_v3 = vsel %vm14297_vm2, 0.0, %v12303_v63 }
 0x8fe   : > { %5505 = vmatprep.mubr.f32.mxu0 %v15934_v43  ;;  %5944 = vmatprep.subr.bf16.mxu1 %v11769_v51  ;;  %v16088_v51 = vld [vmem:[#allocation39_spill] sm:$0xff]  ;;  %16091 = vst [vmem:[#allocation28_spill] sm:$0xff] %v14619_v3 }
 0x8ff   : > { %v14601_v33 = vadd.f32 %v14574_v27, %v16088_v51  ;;  %v16092_v51 = vld [vmem:[#allocation43_spill] sm:$0xff]  ;;  %v11778_v27 = vld [vmem:[#allocation6 + $0x110] ss:$8 sps:$4 sm:$0xff]  }
 0x901   : > { %10367 = vmatmul.mubr.msk.f32.gmra.mrb[26].mxu0 %vm5266_vm3, %v14457_v25  ;;  %5945 = vmatpush1.bf16.msra.mxu1 %v11771_v1  ;;  %v14607_v1 = vsel %vm14297_vm2, 0.0, %v12307_v52  ;;  %v14625_v52 = vadd.f32 %v14619_v3, %v16092_v51  ;;  %v14643_v51 = vsel %vm14297_vm2, 0.0, %v12295_v57  ;;  %v16096_v3 = vld [vmem:[#allocation45_spill] sm:$0xff] }
 0x902   : > { %5511 = vmatprep.mubr.f32.mxu0 %v15934_v43  ;;  %5946 = vmatprep.subr.bf16.mxu1 %v11772_v32  ;;  %16089 = vst [vmem:[#allocation27_spill] sm:$0xff] %v14607_v1  ;;  %v16090_v32 = vld [vmem:[#allocation40_spill] sm:$0xff]  ;;  %16095 = vst [vmem:[#allocation30_spill] sm:$0xff] %v14643_v51 }
 0x905   : > { %10368 = vmatmul.mubr.msk.f32.gmra.mrb[28].mxu0 %vm5266_vm3, %v14469_v4  ;;  %5947 = vmatpush1.bf16.msra.mxu1 %v11774_v58  ;;  %v14613_v58 = vadd.f32 %v14607_v1, %v16090_v32  ;;  %v14631_v32 = vsel %vm14297_vm2, 0.0, %v12299_v56  ;;  %v16094_v1 = vld [vmem:[#allocation44_spill] sm:$0xff]  ;;  %v14649_v56 = vadd.f32 %v14643_v51, %v16096_v3  ;;  %v14667_v3 = vsel %vm14297_vm2, 0.0, %v12287_v61  ;;  %v16100_v51 = vld [vmem:[#allocation47_spill] sm:$0xff] }
 0x906   : > { %5517 = vmatprep.mubr.f32.mxu0 %v15934_v43  ;;  %16093 = vst [vmem:[#allocation29_spill] sm:$0xff] %v14631_v32  ;;  %v14637_v63 = vadd.f32 %v14631_v32, %v16094_v1  ;;  %v14655_v1 = vsel %vm14297_vm2, 0.0, %v12291_v62  ;;  %v16098_v32 = vld [vmem:[#allocation46_spill] sm:$0xff]  ;;  %16099 = vst [vmem:[#allocation33_spill] sm:$0xff] %v14667_v3  ;;  %v14673_v62 = vadd.f32 %v14667_v3, %v16100_v51  ;;  %v16101_v61 = vlaneseq }
 0x907   : > { %16097 = vst [vmem:[#allocation32_spill] sm:$0xff] %v14655_v1  ;;  %v14661_v57 = vadd.f32 %v14655_v1, %v16098_v32  ;;  %v11775_v32 = vld [vmem:[#allocation6 + $0x100] ss:$8 sps:$4 sm:$0xff]   ;;  %v11777_v1 = vld [vmem:[#allocation6 + $0x104] ss:$8 sps:$4 sm:$0xff]  }
 0x908   : > { %6406 = vmatprep.subr.bf16.mxu0 %v11777_v1  ;;  %v14679_v50 = vshrl.u32 %v16101_v61, 7  ;;  %v14690_v1 = vld [vmem:[%s15909_s11 + $0x8] sm:$0xff]  ;;  %v11786_v61 = vld [vmem:[#allocation6 + $0x134] ss:$8 sps:$4 sm:$0xff]  }
 0x909   : > { %10369 = vmatmul.mubr.msk.f32.gmra.mrb[30].mxu0 %vm5266_vm3, %v14481_v34 }
 0x90a   : > { %5523 = vmatprep.mubr.f32.mxu0 %v15934_v43  ;;  %6407 = vmatpush1.bf16.msra.mxu0 %v11775_v32  ;;  %v5260_v51 = vsub.s32 0, %v14679_v50 }
 0x90b   : > { %6408 = vmatprep.subr.bf16.mxu0 %v11780_v48 }
 0x90c   : > { %v14696_v48 = vrot.slane %v14690_v1, %v5260_v51 }
 0x90d   : > { %10370 = vmatmul.mubr.msk.f32.gmra.mrb[32].mxu0 %vm5266_vm3, %v14493_v38 }
 0x90e   : > { %5529 = vmatprep.mubr.f32.mxu0 %v15934_v43  ;;  %6409 = vmatpush1.bf16.msra.mxu0 %v11778_v27 }
 0x90f   : > { %6410 = vmatprep.subr.bf16.mxu0 %v11783_v22  ;;  %v11784_v22 = vld [vmem:[#allocation6 + $0x130] ss:$8 sps:$4 sm:$0xff]  }
 0x911   : > { %10371 = vmatmul.mubr.msk.f32.gmra.mrb[34].mxu0 %vm5266_vm3, %v14505_v39 }
 0x912   : > { %5535 = vmatprep.mubr.f32.mxu0 %v15934_v43  ;;  %6411 = vmatpush1.bf16.msra.mxu0 %v11781_v7 }
 0x913   : > { %6412 = vmatprep.subr.bf16.mxu0 %v11786_v61 }
 0x915   : > { %10372 = vmatmul.mubr.msk.f32.gmra.mrb[36].mxu0 %vm5266_vm3, %v14517_v40 }
 0x916   : > { %5541 = vmatprep.mubr.f32.mxu0 %v15934_v43  ;;  %6413 = vmatpush1.bf16.msra.mxu0 %v11784_v22 }
 0x917   : > { %6414 = vmatprep.subr.bf16.mxu0 %v11789_v49 }
 0x919   : > { %10373 = vmatmul.mubr.msk.f32.gmra.mrb[38].mxu0 %vm5266_vm3, %v14529_v44 }
 0x91a   : > { %5547 = vmatprep.mubr.f32.mxu0 %v15934_v43  ;;  %6415 = vmatpush1.bf16.msra.mxu0 %v11787_v10 }
 0x91b   : > { %6416 = vmatprep.subr.bf16.mxu0 %v11792_v19 }
 0x91d   : > { %10374 = vmatmul.mubr.msk.f32.gmra.mrb[40].mxu0 %vm5266_vm3, %v14541_v45 }
 0x91e   : > { %5553 = vmatprep.mubr.f32.mxu0 %v15934_v43 }
 0x921   : > { %10375 = vmatmul.mubr.msk.f32.gmra.mrb[42].mxu0 %vm5266_vm3, %v14553_v46 }
 0x922   : > { %5559 = vmatprep.mubr.f32.mxu0 %v15934_v43 }
 0x925   : > { %10376 = vmatmul.mubr.msk.f32.gmra.mrb[44].mxu0 %vm5266_vm3, %v14580_v42 }
 0x926   : > { %5565 = vmatprep.mubr.f32.mxu0 %v15934_v43 }
 0x929   : > { %10377 = vmatmul.mubr.msk.f32.gmra.mrb[46].mxu0 %vm5266_vm3, %v14587_v0 }
 0x92a   : > { %5571 = vmatprep.mubr.f32.mxu0 %v15934_v43 }
 0x92d   : > { %10378 = vmatmul.mubr.msk.f32.gmra.mrb[48].mxu0 %vm5266_vm3, %v14594_v37 }
 0x92e   : > { %5577 = vmatprep.mubr.f32.mxu0 %v15934_v43 }
 0x931   : > { %10379 = vmatmul.mubr.msk.f32.gmra.mrb[50].mxu0 %vm5266_vm3, %v14601_v33 }
 0x932   : > { %5583 = vmatprep.mubr.f32.mxu0 %v15934_v43 }
 0x935   : > { %10380 = vmatmul.mubr.msk.f32.gmra.mrb[52].mxu0 %vm5266_vm3, %v14613_v58 }
 0x936   : > { %5589 = vmatprep.mubr.f32.mxu0 %v15934_v43 }
 0x939   : > { %10381 = vmatmul.mubr.msk.f32.gmra.mrb[54].mxu0 %vm5266_vm3, %v14625_v52 }
 0x93a   : > { %5595 = vmatprep.mubr.f32.mxu0 %v15934_v43 }
 0x93d   : > { %10382 = vmatmul.mubr.msk.f32.gmra.mrb[56].mxu0 %vm5266_vm3, %v14637_v63 }
 0x93e   : > { %5601 = vmatprep.mubr.f32.mxu0 %v15934_v43 }
 0x941   : > { %10383 = vmatmul.mubr.msk.f32.gmra.mrb[58].mxu0 %vm5266_vm3, %v14649_v56 }
 0x942   : > { %5607 = vmatprep.mubr.f32.mxu0 %v15934_v43 }
 0x945   : > { %10384 = vmatmul.mubr.msk.f32.gmra.mrb[60].mxu0 %vm5266_vm3, %v14661_v57 }
 0x946   : > { %5613 = vmatprep.mubr.f32.mxu0 %v15934_v43  ;;  %v14685_v43 = vld [vmem:[%s15909_s11] sm:$0xff] }
 0x947   : > { %v14693_v27 = vrot.slane %v14685_v43, %v5260_v51 }
 0x949   : > { %10385 = vmatmul.mubr.msk.f32.gmra.mrb[62].mxu0 %vm5266_vm3, %v14673_v62 }
 0x9a0   : > { %v5429_v32 = vpop.f32.mrb[0].mxu0 }
 0x9a1   : > { %v5431_v7 = vpop.f32.mrb[1].mxu0  ;;  %v5430_v3 = vadd.f32 %v5429_v32, %v14693_v27  ;;  %v11790_v32 = vld [vmem:[#allocation6 + $0x150] ss:$8 sps:$4 sm:$0xff]  }
 0x9a2   : > { %v5432_v53 = vadd.f32 %v5431_v7, %v14696_v48  ;;  %v11795_v7 = vld [vmem:[#allocation6 + $0x164] ss:$8 sps:$4 sm:$0xff]   ;;  %6417 = vmatpush1.bf16.msra.mxu0 %v11790_v32 }
 0x9a3   : > { %v5620_v51 = vmax.f32 %v5430_v3, 0.0  ;;  %6418 = vmatprep.subr.bf16.mxu0 %v11795_v7  ;;  %v11799_v7 = vld [vmem:[#allocation6 + $0x180] ss:$8 sps:$4 sm:$0xff]  }
 0x9a4   : > { %v5435_v28 = vpop.f32.mrb[2].mxu0  ;;  %v5621_v14 = vmax.f32 %v5432_v53, 0.0 }
 0x9a5   : > { %v5436_v24 = vadd.f32 %v5435_v28, %v14693_v27  ;;  %v5437_v26 = vpop.f32.mrb[3].mxu0 }
 0x9a6   : > { %v5438_v21 = vadd.f32 %v5437_v26, %v14696_v48  ;;  %v11793_v26 = vld [vmem:[#allocation6 + $0x160] ss:$8 sps:$4 sm:$0xff]  }
 0x9a7   : > { %v5622_v13 = vmax.f32 %v5436_v24, 0.0  ;;  %6419 = vmatpush1.bf16.msra.mxu0 %v11793_v26  ;;  %v11804_v26 = vld [vmem:[#allocation6 + $0x194] ss:$8 sps:$4 sm:$0xff]  }
 0x9a8   : > { %v5441_v15 = vpop.f32.mrb[4].mxu0  ;;  %v5623_v61 = vmax.f32 %v5438_v21, 0.0  ;;  %v11798_v21 = vld [vmem:[#allocation6 + $0x174] ss:$8 sps:$4 sm:$0xff]  }
 0x9a9   : > { %v5443_v22 = vpop.f32.mrb[5].mxu0  ;;  %v5684_v31 = vpack.c.bf16 %v5622_v13, %v5620_v51  ;;  %v5442_v28 = vadd.f32 %v5441_v15, %v14693_v27  ;;  %v11796_v15 = vld [vmem:[#allocation6 + $0x170] ss:$8 sps:$4 sm:$0xff]   ;;  %6420 = vmatprep.subr.bf16.mxu0 %v11798_v21 }
 0x9aa   : > { %v5685_v18 = vpack.c.bf16 %v5623_v61, %v5621_v14  ;;  %v5444_v55 = vadd.f32 %v5443_v22, %v14696_v48 }
 0x9ab   : > { %v5624_v13 = vmax.f32 %v5442_v28, 0.0  ;;  %6421 = vmatpush1.bf16.msra.mxu0 %v11796_v15 }
 0x9ac   : > { %v5447_v29 = vpop.f32.mrb[6].mxu0  ;;  %5948 = vmatprep.mubr.bf16.mxu1 %v5685_v18  ;;  %v5625_v53 = vmax.f32 %v5444_v55, 0.0  ;;  %v11801_v18 = vld [vmem:[#allocation6 + $0x184] ss:$8 sps:$4 sm:$0xff]  }
 0x9ad   : > { %v5448_v49 = vadd.f32 %v5447_v29, %v14693_v27  ;;  %v5449_v24 = vpop.f32.mrb[7].mxu0  ;;  %5949 = vmatmul.mubr.bf16.vlgmr.msra.gmra.mrb[0].mxu1 %v5684_v31  ;;  %6422 = vmatprep.subr.bf16.mxu0 %v11801_v18 }
 0x9ae   : > { %v5450_v10 = vadd.f32 %v5449_v24, %v14696_v48 }
 0x9af   : > { %v5626_v19 = vmax.f32 %v5448_v49, 0.0  ;;  %6423 = vmatpush1.bf16.msra.mxu0 %v11799_v7  ;;  %v11810_v7 = vld [vmem:[#allocation6 + $0x1b4] ss:$8 sps:$4 sm:$0xff]  }
 0x9b0   : > { %v5627_v14 = vmax.f32 %v5450_v10, 0.0  ;;  %v5453_v3 = vpop.f32.mrb[8].mxu0  ;;  %6424 = vmatprep.subr.bf16.mxu0 %v11804_v26 }
 0x9b1   : > { %v5455_v51 = vpop.f32.mrb[9].mxu0  ;;  %v5686_v61 = vpack.c.bf16 %v5626_v19, %v5624_v13  ;;  %v5454_v29 = vadd.f32 %v5453_v3, %v14693_v27 }
 0x9b2   : > { %v5687_v32 = vpack.c.bf16 %v5627_v14, %v5625_v53  ;;  %v5456_v31 = vadd.f32 %v5455_v51, %v14696_v48  ;;  %v11802_v53 = vld [vmem:[#allocation6 + $0x190] ss:$8 sps:$4 sm:$0xff]   ;;  %v11807_v51 = vld [vmem:[#allocation6 + $0x1a4] ss:$8 sps:$4 sm:$0xff]  }
 0x9b3   : > { %v5628_v24 = vmax.f32 %v5454_v29, 0.0  ;;  %6425 = vmatpush1.bf16.msra.mxu0 %v11802_v53 }
 0x9b4   : > { %v5459_v22 = vpop.f32.mrb[10].mxu0  ;;  %5958 = vmatprep.mubr.bf16.mxu1 %v5687_v32  ;;  %v5629_v10 = vmax.f32 %v5456_v31, 0.0  ;;  %6426 = vmatprep.subr.bf16.mxu0 %v11807_v51  ;;  %v11811_v51 = vld [vmem:[#allocation6 + $0x1c0] ss:$8 sps:$4 sm:$0xff]  }
 0x9b5   : > { %v5460_v28 = vadd.f32 %v5459_v22, %v14693_v27  ;;  %v5461_v55 = vpop.f32.mrb[11].mxu0  ;;  %5959 = vmatmul.mubr.bf16.gmra.mrb[4].mxu1 %v5686_v61  ;;  %v11805_v22 = vld [vmem:[#allocation6 + $0x1a0] ss:$8 sps:$4 sm:$0xff]  }
 0x9b6   : > { %v5462_v49 = vadd.f32 %v5461_v55, %v14696_v48 }
 0x9b7   : > { %v5630_v21 = vmax.f32 %v5460_v28, 0.0  ;;  %6427 = vmatpush1.bf16.msra.mxu0 %v11805_v22  ;;  %v11816_v22 = vld [vmem:[#allocation6 + $0x1d4] ss:$8 sps:$4 sm:$0xff]  }
 0x9b8   : > { %v5631_v13 = vmax.f32 %v5462_v49, 0.0  ;;  %v5465_v19 = vpop.f32.mrb[12].mxu0  ;;  %6428 = vmatprep.subr.bf16.mxu0 %v11810_v7 }
 0x9b9   : > { %v5466_v14 = vadd.f32 %v5465_v19, %v14693_v27  ;;  %v5467_v3 = vpop.f32.mrb[13].mxu0  ;;  %v5688_v15 = vpack.c.bf16 %v5630_v21, %v5628_v24  ;;  %v11808_v19 = vld [vmem:[#allocation6 + $0x1b0] ss:$8 sps:$4 sm:$0xff]  }
 0x9ba   : > { %v5468_v32 = vadd.f32 %v5467_v3, %v14696_v48  ;;  %v5689_v61 = vpack.c.bf16 %v5631_v13, %v5629_v10 }
 0x9bb   : > { %v5632_v29 = vmax.f32 %v5466_v14, 0.0  ;;  %v11813_v14 = vld [vmem:[#allocation6 + $0x1c4] ss:$8 sps:$4 sm:$0xff]   ;;  %6429 = vmatpush1.bf16.msra.mxu0 %v11808_v19 }
 0x9bc   : > { %5968 = vmatprep.mubr.bf16.mxu1 %v5689_v61  ;;  %v5471_v18 = vpop.f32.mrb[14].mxu0  ;;  %v5633_v55 = vmax.f32 %v5468_v32, 0.0  ;;  %6430 = vmatprep.subr.bf16.mxu0 %v11813_v14  ;;  %v11817_v14 = vld [vmem:[#allocation6 + $0x1e0] ss:$8 sps:$4 sm:$0xff]  }
 0x9bd   : > { %v5472_v31 = vadd.f32 %v5471_v18, %v14693_v27  ;;  %5969 = vmatmul.mubr.bf16.gmra.mrb[8].mxu1 %v5688_v15  ;;  %v5473_v28 = vpop.f32.mrb[15].mxu0 }
 0x9be   : > { %v5474_v49 = vadd.f32 %v5473_v28, %v14696_v48 }
 0x9bf   : > { %v5634_v24 = vmax.f32 %v5472_v31, 0.0  ;;  %6431 = vmatpush1.bf16.msra.mxu0 %v11811_v51 }
 0x9c0   : > { %v5635_v26 = vmax.f32 %v5474_v49, 0.0  ;;  %v5477_v21 = vpop.f32.mrb[16].mxu0  ;;  %6432 = vmatprep.subr.bf16.mxu0 %v11816_v22 }
 0x9c1   : > { %v5478_v10 = vadd.f32 %v5477_v21, %v14693_v27  ;;  %v5479_v13 = vpop.f32.mrb[17].mxu0  ;;  %v5690_v53 = vpack.c.bf16 %v5634_v24, %v5632_v29  ;;  %v11814_v21 = vld [vmem:[#allocation6 + $0x1d0] ss:$8 sps:$4 sm:$0xff]  }
 0x9c2   : > { %v5480_v3 = vadd.f32 %v5479_v13, %v14696_v48  ;;  %v5691_v15 = vpack.c.bf16 %v5635_v26, %v5633_v55 }
 0x9c3   : > { %v5636_v32 = vmax.f32 %v5478_v10, 0.0  ;;  %v11819_v10 = vld [vmem:[#allocation6 + $0x1e4] ss:$8 sps:$4 sm:$0xff]   ;;  %6433 = vmatpush1.bf16.msra.mxu0 %v11814_v21 }
 0x9c4   : > { %v5483_v61 = vpop.f32.mrb[18].mxu0  ;;  %5978 = vmatprep.mubr.bf16.mxu1 %v5691_v15  ;;  %v5637_v28 = vmax.f32 %v5480_v3, 0.0  ;;  %6434 = vmatprep.subr.bf16.mxu0 %v11819_v10 }
 0x9c5   : > { %v5484_v18 = vadd.f32 %v5483_v61, %v14693_v27  ;;  %v5485_v31 = vpop.f32.mrb[19].mxu0  ;;  %5979 = vmatmul.mubr.bf16.gmra.mrb[12].mxu1 %v5690_v53 }
 0x9c6   : > { %v5486_v49 = vadd.f32 %v5485_v31, %v14696_v48 }
 0x9c7   : > { %v5638_v29 = vmax.f32 %v5484_v18, 0.0  ;;  %6435 = vmatpush1.bf16.msra.mxu0 %v11817_v14 }
 0x9c8   : > { %v5639_v7 = vmax.f32 %v5486_v49, 0.0  ;;  %v5489_v24 = vpop.f32.mrb[20].mxu0 }
 0x9c9   : > { %v5490_v55 = vadd.f32 %v5489_v24, %v14693_v27  ;;  %v5491_v26 = vpop.f32.mrb[21].mxu0  ;;  %v5692_v19 = vpack.c.bf16 %v5638_v29, %v5636_v32 }
 0x9ca   : > { %v5492_v13 = vadd.f32 %v5491_v26, %v14696_v48  ;;  %v5693_v15 = vpack.c.bf16 %v5639_v7, %v5637_v28 }
 0x9cb   : > { %v5640_v3 = vmax.f32 %v5490_v55, 0.0 }
 0x9cc   : > { %v5495_v53 = vpop.f32.mrb[22].mxu0  ;;  %5988 = vmatprep.mubr.bf16.mxu1 %v5693_v15  ;;  %v5641_v51 = vmax.f32 %v5492_v13, 0.0 }
 0x9cd   : > { %v5496_v61 = vadd.f32 %v5495_v53, %v14693_v27  ;;  %v5497_v18 = vpop.f32.mrb[23].mxu0  ;;  %5989 = vmatmul.mubr.bf16.gmra.mrb[16].mxu1 %v5692_v19 }
 0x9ce   : > { %v5498_v31 = vadd.f32 %v5497_v18, %v14696_v48 }
 0x9cf   : > { %v5642_v49 = vmax.f32 %v5496_v61, 0.0 }
 0x9d0   : > { %v5643_v32 = vmax.f32 %v5498_v31, 0.0  ;;  %v5501_v22 = vpop.f32.mrb[24].mxu0 }
 0x9d1   : > { %v5502_v29 = vadd.f32 %v5501_v22, %v14693_v27  ;;  %v5503_v28 = vpop.f32.mrb[25].mxu0  ;;  %v5694_v7 = vpack.c.bf16 %v5642_v49, %v5640_v3 }
 0x9d2   : > { %v5504_v24 = vadd.f32 %v5503_v28, %v14696_v48  ;;  %v5695_v21 = vpack.c.bf16 %v5643_v32, %v5641_v51 }
 0x9d3   : > { %v5644_v26 = vmax.f32 %v5502_v29, 0.0 }
 0x9d4   : > { %v5507_v55 = vpop.f32.mrb[26].mxu0  ;;  %5998 = vmatprep.mubr.bf16.mxu1 %v5695_v21  ;;  %v5645_v13 = vmax.f32 %v5504_v24, 0.0 }
 0x9d5   : > { %v5508_v19 = vadd.f32 %v5507_v55, %v14693_v27  ;;  %v5509_v10 = vpop.f32.mrb[27].mxu0  ;;  %5999 = vmatmul.mubr.bf16.gmra.mrb[20].mxu1 %v5694_v7 }
 0x9d6   : > { %v5510_v15 = vadd.f32 %v5509_v10, %v14696_v48 }
 0x9d7   : > { %v5646_v53 = vmax.f32 %v5508_v19, 0.0 }
 0x9d8   : > { %v5647_v61 = vmax.f32 %v5510_v15, 0.0  ;;  %v5513_v14 = vpop.f32.mrb[28].mxu0 }
 0x9d9   : > { %v5514_v18 = vadd.f32 %v5513_v14, %v14693_v27  ;;  %v5515_v31 = vpop.f32.mrb[29].mxu0  ;;  %v5696_v3 = vpack.c.bf16 %v5646_v53, %v5644_v26 }
 0x9da   : > { %v5516_v49 = vadd.f32 %v5515_v31, %v14696_v48  ;;  %v5697_v51 = vpack.c.bf16 %v5647_v61, %v5645_v13 }
 0x9db   : > { %v5648_v22 = vmax.f32 %v5514_v18, 0.0 }
 0x9dc   : > { %v5519_v32 = vpop.f32.mrb[30].mxu0  ;;  %6008 = vmatprep.mubr.bf16.mxu1 %v5697_v51  ;;  %v5649_v7 = vmax.f32 %v5516_v49, 0.0 }
 0x9dd   : > { %v5520_v29 = vadd.f32 %v5519_v32, %v14693_v27  ;;  %v5521_v28 = vpop.f32.mrb[31].mxu0  ;;  %6009 = vmatmul.mubr.bf16.gmra.mrb[24].mxu1 %v5696_v3 }
 0x9de   : > { %v5522_v24 = vadd.f32 %v5521_v28, %v14696_v48 }
 0x9df   : > { %v5650_v21 = vmax.f32 %v5520_v29, 0.0 }
 0x9e0   : > { %v5651_v55 = vmax.f32 %v5522_v24, 0.0  ;;  %v5525_v19 = vpop.f32.mrb[32].mxu0 }
 0x9e1   : > { %v5526_v10 = vadd.f32 %v5525_v19, %v14693_v27  ;;  %v5527_v15 = vpop.f32.mrb[33].mxu0  ;;  %v5698_v26 = vpack.c.bf16 %v5650_v21, %v5648_v22 }
 0x9e2   : > { %v5528_v53 = vadd.f32 %v5527_v15, %v14696_v48  ;;  %v5699_v13 = vpack.c.bf16 %v5651_v55, %v5649_v7 }
 0x9e3   : > { %v5652_v14 = vmax.f32 %v5526_v10, 0.0 }
 0x9e4   : > { %v5531_v61 = vpop.f32.mrb[34].mxu0  ;;  %6018 = vmatprep.mubr.bf16.mxu1 %v5699_v13  ;;  %v5653_v3 = vmax.f32 %v5528_v53, 0.0 }
 0x9e5   : > { %v5532_v18 = vadd.f32 %v5531_v61, %v14693_v27  ;;  %v5533_v31 = vpop.f32.mrb[35].mxu0  ;;  %6019 = vmatmul.mubr.bf16.gmra.mrb[28].mxu1 %v5698_v26 }
 0x9e6   : > { %v5534_v49 = vadd.f32 %v5533_v31, %v14696_v48 }
 0x9e7   : > { %v5654_v51 = vmax.f32 %v5532_v18, 0.0 }
 0x9e8   : > { %v5655_v32 = vmax.f32 %v5534_v49, 0.0  ;;  %v5537_v29 = vpop.f32.mrb[36].mxu0 }
 0x9e9   : > { %v5538_v28 = vadd.f32 %v5537_v29, %v14693_v27  ;;  %v5539_v24 = vpop.f32.mrb[37].mxu0  ;;  %v5700_v22 = vpack.c.bf16 %v5654_v51, %v5652_v14 }
 0x9ea   : > { %v5540_v21 = vadd.f32 %v5539_v24, %v14696_v48  ;;  %v5701_v7 = vpack.c.bf16 %v5655_v32, %v5653_v3 }
 0x9eb   : > { %v5656_v19 = vmax.f32 %v5538_v28, 0.0 }
 0x9ec   : > { %v5543_v55 = vpop.f32.mrb[38].mxu0  ;;  %6028 = vmatprep.mubr.bf16.mxu1 %v5701_v7  ;;  %v5657_v26 = vmax.f32 %v5540_v21, 0.0 }
 0x9ed   : > { %v5544_v10 = vadd.f32 %v5543_v55, %v14693_v27  ;;  %v5545_v15 = vpop.f32.mrb[39].mxu0  ;;  %6029 = vmatmul.mubr.bf16.gmra.mrb[32].mxu1 %v5700_v22 }
 0x9ee   : > { %v5546_v53 = vadd.f32 %v5545_v15, %v14696_v48 }
 0x9ef   : > { %v5658_v13 = vmax.f32 %v5544_v10, 0.0 }
 0x9f0   : > { %v5659_v61 = vmax.f32 %v5546_v53, 0.0  ;;  %v5549_v18 = vpop.f32.mrb[40].mxu0 }
 0x9f1   : > { %v5550_v31 = vadd.f32 %v5549_v18, %v14693_v27  ;;  %v5551_v49 = vpop.f32.mrb[41].mxu0  ;;  %v5702_v14 = vpack.c.bf16 %v5658_v13, %v5656_v19 }
 0x9f2   : > { %v5552_v51 = vadd.f32 %v5551_v49, %v14696_v48  ;;  %v5703_v3 = vpack.c.bf16 %v5659_v61, %v5657_v26 }
 0x9f3   : > { %v5660_v29 = vmax.f32 %v5550_v31, 0.0 }
 0x9f4   : > { %v5555_v32 = vpop.f32.mrb[42].mxu0  ;;  %6038 = vmatprep.mubr.bf16.mxu1 %v5703_v3  ;;  %v5661_v22 = vmax.f32 %v5552_v51, 0.0 }
 0x9f5   : > { %v5556_v28 = vadd.f32 %v5555_v32, %v14693_v27  ;;  %v5557_v24 = vpop.f32.mrb[43].mxu0  ;;  %6039 = vmatmul.mubr.bf16.gmra.mrb[36].mxu1 %v5702_v14 }
 0x9f6   : > { %v5558_v21 = vadd.f32 %v5557_v24, %v14696_v48 }
 0x9f7   : > { %v5662_v7 = vmax.f32 %v5556_v28, 0.0 }
 0x9f8   : > { %v5663_v55 = vmax.f32 %v5558_v21, 0.0  ;;  %v5561_v10 = vpop.f32.mrb[44].mxu0 }
 0x9f9   : > { %v5562_v15 = vadd.f32 %v5561_v10, %v14693_v27  ;;  %v5563_v53 = vpop.f32.mrb[45].mxu0  ;;  %v5704_v19 = vpack.c.bf16 %v5662_v7, %v5660_v29 }
 0x9fa   : > { %v5564_v13 = vadd.f32 %v5563_v53, %v14696_v48  ;;  %v5705_v26 = vpack.c.bf16 %v5663_v55, %v5661_v22 }
 0x9fb   : > { %v5664_v18 = vmax.f32 %v5562_v15, 0.0 }
 0x9fc   : > { %v5567_v61 = vpop.f32.mrb[46].mxu0  ;;  %6048 = vmatprep.mubr.bf16.mxu1 %v5705_v26  ;;  %v5665_v14 = vmax.f32 %v5564_v13, 0.0 }
 0x9fd   : > { %v5568_v31 = vadd.f32 %v5567_v61, %v14693_v27  ;;  %v5569_v49 = vpop.f32.mrb[47].mxu0  ;;  %6049 = vmatmul.mubr.bf16.gmra.mrb[40].mxu1 %v5704_v19  ;;  %v11822_v19 = vld [vmem:[#allocation6 + $0x1f4] ss:$8 sps:$4 sm:$0xff]   ;;  %v11820_v61 = vld [vmem:[#allocation6 + $0x1f0] ss:$8 sps:$4 sm:$0xff]  }
 0x9fe   : > { %v5570_v51 = vadd.f32 %v5569_v49, %v14696_v48  ;;  %6436 = vmatprep.subr.bf16.mxu0 %v11822_v19 }
 0x9ff   : > { %v5666_v3 = vmax.f32 %v5568_v31, 0.0  ;;  %6437 = vmatpush1.bf16.msra.mxu0 %v11820_v61 }
 0xa00   : > { %v5667_v32 = vmax.f32 %v5570_v51, 0.0  ;;  %v5573_v28 = vpop.f32.mrb[48].mxu0 }
 0xa01   : > { %v5574_v24 = vadd.f32 %v5573_v28, %v14693_v27  ;;  %v5575_v21 = vpop.f32.mrb[49].mxu0  ;;  %v5706_v29 = vpack.c.bf16 %v5666_v3, %v5664_v18 }
 0xa02   : > { %v5576_v7 = vadd.f32 %v5575_v21, %v14696_v48  ;;  %v5707_v22 = vpack.c.bf16 %v5667_v32, %v5665_v14 }
 0xa03   : > { %v5668_v10 = vmax.f32 %v5574_v24, 0.0 }
 0xa04   : > { %v5579_v55 = vpop.f32.mrb[50].mxu0  ;;  %6058 = vmatprep.mubr.bf16.mxu1 %v5707_v22  ;;  %v5669_v13 = vmax.f32 %v5576_v7, 0.0 }
 0xa05   : > { %v5580_v15 = vadd.f32 %v5579_v55, %v14693_v27  ;;  %v5581_v53 = vpop.f32.mrb[51].mxu0  ;;  %6059 = vmatmul.mubr.bf16.gmra.mrb[44].mxu1 %v5706_v29 }
 0xa06   : > { %v5582_v26 = vadd.f32 %v5581_v53, %v14696_v48 }
 0xa07   : > { %v5670_v31 = vmax.f32 %v5580_v15, 0.0 }
 0xa08   : > { %v5671_v49 = vmax.f32 %v5582_v26, 0.0  ;;  %v5585_v51 = vpop.f32.mrb[52].mxu0 }
 0xa09   : > { %v5586_v18 = vadd.f32 %v5585_v51, %v14693_v27  ;;  %v5587_v14 = vpop.f32.mrb[53].mxu0  ;;  %v5708_v3 = vpack.c.bf16 %v5670_v31, %v5668_v10 }
 0xa0a   : > { %v5588_v32 = vadd.f32 %v5587_v14, %v14696_v48  ;;  %v5709_v28 = vpack.c.bf16 %v5671_v49, %v5669_v13 }
 0xa0b   : > { %v5672_v21 = vmax.f32 %v5586_v18, 0.0 }
 0xa0c   : > { %v5591_v24 = vpop.f32.mrb[54].mxu0  ;;  %6068 = vmatprep.mubr.bf16.mxu1 %v5709_v28  ;;  %v5673_v22 = vmax.f32 %v5588_v32, 0.0 }
 0xa0d   : > { %v5592_v29 = vadd.f32 %v5591_v24, %v14693_v27  ;;  %v5593_v7 = vpop.f32.mrb[55].mxu0  ;;  %6069 = vmatmul.mubr.bf16.gmra.mrb[48].mxu1 %v5708_v3 }
 0xa0e   : > { %v5594_v55 = vadd.f32 %v5593_v7, %v14696_v48 }
 0xa0f   : > { %v5674_v15 = vmax.f32 %v5592_v29, 0.0 }
 0xa10   : > { %v5675_v53 = vmax.f32 %v5594_v55, 0.0  ;;  %v5597_v19 = vpop.f32.mrb[56].mxu0 }
 0xa11   : > { %v5598_v26 = vadd.f32 %v5597_v19, %v14693_v27  ;;  %v5599_v61 = vpop.f32.mrb[57].mxu0  ;;  %v5710_v10 = vpack.c.bf16 %v5674_v15, %v5672_v21 }
 0xa12   : > { %v5600_v31 = vadd.f32 %v5599_v61, %v14696_v48  ;;  %v5711_v13 = vpack.c.bf16 %v5675_v53, %v5673_v22 }
 0xa13   : > { %v5676_v51 = vmax.f32 %v5598_v26, 0.0 }
 0xa14   : > { %v5603_v49 = vpop.f32.mrb[58].mxu0  ;;  %6078 = vmatprep.mubr.bf16.mxu1 %v5711_v13  ;;  %v5677_v3 = vmax.f32 %v5600_v31, 0.0 }
 0xa15   : > { %v5604_v18 = vadd.f32 %v5603_v49, %v14693_v27  ;;  %v5605_v14 = vpop.f32.mrb[59].mxu0  ;;  %6079 = vmatmul.mubr.bf16.gmra.mrb[52].mxu1 %v5710_v10 }
 0xa16   : > { %v5606_v32 = vadd.f32 %v5605_v14, %v14696_v48 }
 0xa17   : > { %v5678_v28 = vmax.f32 %v5604_v18, 0.0 }
 0xa18   : > { %v5679_v24 = vmax.f32 %v5606_v32, 0.0  ;;  %v5609_v29 = vpop.f32.mrb[60].mxu0  ;;  %v11825_v32 = vld [vmem:[#allocation6 + $0x204] ss:$8 sps:$4 sm:$0xff]  }
 0xa19   : > { %v5610_v7 = vadd.f32 %v5609_v29, %v14693_v27  ;;  %v5611_v55 = vpop.f32.mrb[61].mxu0  ;;  %v5712_v21 = vpack.c.bf16 %v5678_v28, %v5676_v51  ;;  %v11823_v51 = vld [vmem:[#allocation6 + $0x200] ss:$8 sps:$4 sm:$0xff]   ;;  %6896 = vmatprep.subr.bf16.mxu1 %v11825_v32  ;;  %v11828_v28 = vld [vmem:[#allocation6 + $0x214] ss:$8 sps:$4 sm:$0xff]   ;;  %v5750_v29 = vsub.s32 1, %v14679_v50 }
 0xa1a   : > { %v5612_v15 = vadd.f32 %v5611_v55, %v14696_v48  ;;  %v5713_v22 = vpack.c.bf16 %v5679_v24, %v5677_v3  ;;  %6897 = vmatpush1.bf16.msra.mxu1 %v11823_v51  ;;  %v11826_v3 = vld [vmem:[#allocation6 + $0x210] ss:$8 sps:$4 sm:$0xff]   ;;  %v11831_v24 = vld [vmem:[#allocation6 + $0x224] ss:$8 sps:$4 sm:$0xff]  }
 0xa1b   : > { %v5680_v19 = vmax.f32 %v5610_v7, 0.0  ;;  %6898 = vmatprep.subr.bf16.mxu1 %v11828_v28  ;;  %v14767_v7 = vrot.slane %v14690_v1, %v5750_v29  ;;  %v11840_v1 = vld [vmem:[#allocation6 + $0x254] ss:$8 sps:$4 sm:$0xff]  }
 0xa1c   : > { %v5615_v53 = vpop.f32.mrb[62].mxu0  ;;  %6088 = vmatprep.mubr.bf16.mxu1 %v5713_v22  ;;  %v5681_v10 = vmax.f32 %v5612_v15, 0.0  ;;  %v11834_v15 = vld [vmem:[#allocation6 + $0x234] ss:$8 sps:$4 sm:$0xff]  }
 0xa1d   : > { %v5616_v26 = vadd.f32 %v5615_v53, %v14693_v27  ;;  %v5617_v61 = vpop.f32.mrb[63].mxu0  ;;  %6089 = vmatmul.mubr.bf16.gmra.mrb[56].mxu1 %v5712_v21  ;;  %v11829_v27 = vld [vmem:[#allocation6 + $0x220] ss:$8 sps:$4 sm:$0xff]   ;;  %v11832_v21 = vld [vmem:[#allocation6 + $0x230] ss:$8 sps:$4 sm:$0xff]  }
 0xa1e   : > { %v5618_v31 = vadd.f32 %v5617_v61, %v14696_v48  ;;  %6899 = vmatpush1.bf16.msra.mxu1 %v11826_v3  ;;  %v14764_v48 = vrot.slane %v14685_v43, %v5750_v29  ;;  %v11837_v43 = vld [vmem:[#allocation6 + $0x244] ss:$8 sps:$4 sm:$0xff]   ;;  %v11838_v3 = vld [vmem:[#allocation6 + $0x250] ss:$8 sps:$4 sm:$0xff]  }
 0xa1f   : > { %v5682_v13 = vmax.f32 %v5616_v26, 0.0  ;;  %6900 = vmatprep.subr.bf16.mxu1 %v11831_v24  ;;  %v11843_v24 = vld [vmem:[#allocation6 + $0x264] ss:$8 sps:$4 sm:$0xff]  }
 0xa20   : > { %v5683_v49 = vmax.f32 %v5618_v31, 0.0  ;;  %v11835_v31 = vld [vmem:[#allocation6 + $0x240] ss:$8 sps:$4 sm:$0xff]  }
 0xa21   : > { %v5714_v18 = vpack.c.bf16 %v5682_v13, %v5680_v19 }
 0xa22   : > { %v5715_v14 = vpack.c.bf16 %v5683_v49, %v5681_v10  ;;  %6901 = vmatpush1.bf16.msra.mxu1 %v11829_v27 }
 0xa23   : > { %6902 = vmatprep.subr.bf16.mxu1 %v11834_v15 }
 0xa24   : > { %6098 = vmatprep.mubr.bf16.mxu1 %v5715_v14 }
 0xa25   : > { %6099 = vmatmul.mubr.bf16.gmra.mrb[60].mxu1 %v5714_v18 }
 0xa26   : > { %6903 = vmatpush1.bf16.msra.mxu1 %v11832_v21 }
 0xa27   : > { %6904 = vmatprep.subr.bf16.mxu1 %v11837_v43 }
 0xa2a   : > { %6905 = vmatpush1.bf16.msra.mxu1 %v11835_v31 }
 0xa2b   : > { %6906 = vmatprep.subr.bf16.mxu1 %v11840_v1 }
 0xa2e   : > { %6907 = vmatpush1.bf16.msra.mxu1 %v11838_v3 }
 0xa2f   : > { %6908 = vmatprep.subr.bf16.mxu1 %v11843_v24 }
 0xa80   : > { %v5950_v55 = vpop.f32.mrb[0].mxu1 }
 0xa81   : > { %v5951_v22 = vadd.f32 %v5950_v55, %v14764_v48  ;;  %v5952_v53 = vpop.f32.mrb[1].mxu1 }
 0xa82   : > { %v5953_v19 = vadd.f32 %v5952_v53, %v14767_v7  ;;  %v5954_v26 = vpop.f32.mrb[2].mxu1 }
 0xa83   : > { %v5955_v61 = vadd.f32 %v5954_v26, %v14764_v48  ;;  %v5956_v10 = vpop.f32.mrb[3].mxu1  ;;  %v6109_v49 = vmax.f32 %v5951_v22, 0.0 }
 0xa84   : > { %v5957_v13 = vadd.f32 %v5956_v10, %v14767_v7  ;;  %v6110_v14 = vmax.f32 %v5953_v19, 0.0  ;;  %v11841_v19 = vld [vmem:[#allocation6 + $0x260] ss:$8 sps:$4 sm:$0xff]  }
 0xa85   : > { %v6111_v18 = vmax.f32 %v5955_v61, 0.0  ;;  %v11846_v61 = vld [vmem:[#allocation6 + $0x274] ss:$8 sps:$4 sm:$0xff]   ;;  %6909 = vmatpush1.bf16.msra.mxu1 %v11841_v19 }
 0xa86   : > { %v6112_v51 = vmax.f32 %v5957_v13, 0.0  ;;  %6910 = vmatprep.subr.bf16.mxu1 %v11846_v61 }
 0xa87   : > { %v6173_v32 = vpack.c.bf16 %v6111_v18, %v6109_v49  ;;  %v11844_v49 = vld [vmem:[#allocation6 + $0x270] ss:$8 sps:$4 sm:$0xff]  }
 0xa88   : > { %v5960_v28 = vpop.f32.mrb[4].mxu1  ;;  %v6174_v27 = vpack.c.bf16 %v6112_v51, %v6110_v14  ;;  %v11849_v51 = vld [vmem:[#allocation6 + $0x284] ss:$8 sps:$4 sm:$0xff]  }
 0xa89   : > { %v5961_v29 = vadd.f32 %v5960_v28, %v14764_v48  ;;  %v5962_v55 = vpop.f32.mrb[5].mxu1  ;;  %6911 = vmatpush1.bf16.msra.mxu1 %v11844_v49 }
 0xa8a   : > { %v5963_v21 = vadd.f32 %v5962_v55, %v14767_v7  ;;  %v5964_v15 = vpop.f32.mrb[6].mxu1  ;;  %6438 = vmatprep.mubr.bf16.mxu0 %v6174_v27  ;;  %v11847_v55 = vld [vmem:[#allocation6 + $0x280] ss:$8 sps:$4 sm:$0xff]   ;;  %6912 = vmatprep.subr.bf16.mxu1 %v11849_v51 }
 0xa8b   : > { %v5965_v22 = vadd.f32 %v5964_v15, %v14764_v48  ;;  %v5966_v53 = vpop.f32.mrb[7].mxu1  ;;  %6439 = vmatmul.mubr.bf16.vlgmr.msra.gmra.mrb[64].mxu0 %v6173_v32  ;;  %v6113_v10 = vmax.f32 %v5961_v29, 0.0  ;;  %v11852_v15 = vld [vmem:[#allocation6 + $0x294] ss:$8 sps:$4 sm:$0xff]  }
 0xa8c   : > { %v5967_v26 = vadd.f32 %v5966_v53, %v14767_v7  ;;  %v6114_v43 = vmax.f32 %v5963_v21, 0.0 }
 0xa8d   : > { %v6115_v31 = vmax.f32 %v5965_v22, 0.0  ;;  %6913 = vmatpush1.bf16.msra.mxu1 %v11847_v55 }
 0xa8e   : > { %v6116_v13 = vmax.f32 %v5967_v26, 0.0  ;;  %6914 = vmatprep.subr.bf16.mxu1 %v11852_v15 }
 0xa8f   : > { %v6175_v1 = vpack.c.bf16 %v6115_v31, %v6113_v10  ;;  %v11850_v10 = vld [vmem:[#allocation6 + $0x290] ss:$8 sps:$4 sm:$0xff]  }
 0xa90   : > { %v5970_v18 = vpop.f32.mrb[8].mxu1  ;;  %v6176_v14 = vpack.c.bf16 %v6116_v13, %v6114_v43  ;;  %v11855_v13 = vld [vmem:[#allocation6 + $0x2a4] ss:$8 sps:$4 sm:$0xff]  }
 0xa91   : > { %v5971_v28 = vadd.f32 %v5970_v18, %v14764_v48  ;;  %v5972_v32 = vpop.f32.mrb[9].mxu1  ;;  %6915 = vmatpush1.bf16.msra.mxu1 %v11850_v10 }
 0xa92   : > { %v5973_v3 = vadd.f32 %v5972_v32, %v14767_v7  ;;  %v5974_v27 = vpop.f32.mrb[10].mxu1  ;;  %6448 = vmatprep.mubr.bf16.mxu0 %v6176_v14  ;;  %6916 = vmatprep.subr.bf16.mxu1 %v11855_v13 }
 0xa93   : > { %v5975_v24 = vadd.f32 %v5974_v27, %v14764_v48  ;;  %v5976_v29 = vpop.f32.mrb[11].mxu1  ;;  %6449 = vmatmul.mubr.bf16.gmra.mrb[68].mxu0 %v6175_v1  ;;  %v6117_v22 = vmax.f32 %v5971_v28, 0.0 }
 0xa94   : > { %v5977_v21 = vadd.f32 %v5976_v29, %v14767_v7  ;;  %v6118_v19 = vmax.f32 %v5973_v3, 0.0  ;;  %v11853_v3 = vld [vmem:[#allocation6 + $0x2a0] ss:$8 sps:$4 sm:$0xff]   ;;  %v11858_v29 = vld [vmem:[#allocation6 + $0x2b4] ss:$8 sps:$4 sm:$0xff]  }
 0xa95   : > { %v6119_v53 = vmax.f32 %v5975_v24, 0.0  ;;  %6917 = vmatpush1.bf16.msra.mxu1 %v11853_v3 }
 0xa96   : > { %v6120_v26 = vmax.f32 %v5977_v21, 0.0  ;;  %6918 = vmatprep.subr.bf16.mxu1 %v11858_v29 }
 0xa97   : > { %v6177_v61 = vpack.c.bf16 %v6119_v53, %v6117_v22  ;;  %v11856_v22 = vld [vmem:[#allocation6 + $0x2b0] ss:$8 sps:$4 sm:$0xff]  }
 0xa98   : > { %v5980_v31 = vpop.f32.mrb[12].mxu1  ;;  %v6178_v43 = vpack.c.bf16 %v6120_v26, %v6118_v19  ;;  %v11861_v26 = vld [vmem:[#allocation6 + $0x2c4] ss:$8 sps:$4 sm:$0xff]  }
 0xa99   : > { %v5981_v18 = vadd.f32 %v5980_v31, %v14764_v48  ;;  %v5982_v1 = vpop.f32.mrb[13].mxu1  ;;  %6919 = vmatpush1.bf16.msra.mxu1 %v11856_v22 }
 0xa9a   : > { %v5983_v49 = vadd.f32 %v5982_v1, %v14767_v7  ;;  %6458 = vmatprep.mubr.bf16.mxu0 %v6178_v43  ;;  %v5984_v14 = vpop.f32.mrb[14].mxu1  ;;  %6920 = vmatprep.subr.bf16.mxu1 %v11861_v26 }
 0xa9b   : > { %v6121_v51 = vmax.f32 %v5981_v18, 0.0  ;;  %v5985_v28 = vadd.f32 %v5984_v14, %v14764_v48  ;;  %6459 = vmatmul.mubr.bf16.gmra.mrb[72].mxu0 %v6177_v61  ;;  %v5986_v32 = vpop.f32.mrb[15].mxu1 }
 0xa9c   : > { %v6122_v27 = vmax.f32 %v5983_v49, 0.0  ;;  %v5987_v24 = vadd.f32 %v5986_v32, %v14767_v7  ;;  %v11859_v49 = vld [vmem:[#allocation6 + $0x2c0] ss:$8 sps:$4 sm:$0xff]  }
 0xa9d   : > { %v6123_v55 = vmax.f32 %v5985_v28, 0.0  ;;  %v11864_v28 = vld [vmem:[#allocation6 + $0x2d4] ss:$8 sps:$4 sm:$0xff]   ;;  %6921 = vmatpush1.bf16.msra.mxu1 %v11859_v49 }
 0xa9e   : > { %v6124_v21 = vmax.f32 %v5987_v24, 0.0  ;;  %v11862_v24 = vld [vmem:[#allocation6 + $0x2d0] ss:$8 sps:$4 sm:$0xff]   ;;  %6922 = vmatprep.subr.bf16.mxu1 %v11864_v28 }
 0xa9f   : > { %v6179_v15 = vpack.c.bf16 %v6123_v55, %v6121_v51 }
 0xaa0   : > { %v5990_v53 = vpop.f32.mrb[16].mxu1  ;;  %v6180_v19 = vpack.c.bf16 %v6124_v21, %v6122_v27  ;;  %v11867_v21 = vld [vmem:[#allocation6 + $0x2e4] ss:$8 sps:$4 sm:$0xff]  }
 0xaa1   : > { %v5991_v31 = vadd.f32 %v5990_v53, %v14764_v48  ;;  %v5992_v61 = vpop.f32.mrb[17].mxu1  ;;  %6923 = vmatpush1.bf16.msra.mxu1 %v11862_v24 }
 0xaa2   : > { %v5993_v10 = vadd.f32 %v5992_v61, %v14767_v7  ;;  %v5994_v43 = vpop.f32.mrb[18].mxu1  ;;  %6468 = vmatprep.mubr.bf16.mxu0 %v6180_v19  ;;  %6924 = vmatprep.subr.bf16.mxu1 %v11867_v21 }
 0xaa3   : > { %v6125_v18 = vmax.f32 %v5991_v31, 0.0  ;;  %v5995_v13 = vadd.f32 %v5994_v43, %v14764_v48  ;;  %v5996_v1 = vpop.f32.mrb[19].mxu1  ;;  %6469 = vmatmul.mubr.bf16.gmra.mrb[76].mxu0 %v6179_v15 }
 0xaa4   : > { %v6126_v14 = vmax.f32 %v5993_v10, 0.0  ;;  %v5997_v51 = vadd.f32 %v5996_v1, %v14767_v7  ;;  %v11865_v10 = vld [vmem:[#allocation6 + $0x2e0] ss:$8 sps:$4 sm:$0xff]  }
 0xaa5   : > { %v6127_v32 = vmax.f32 %v5995_v13, 0.0  ;;  %6925 = vmatpush1.bf16.msra.mxu1 %v11865_v10 }
 0xaa6   : > { %v6128_v3 = vmax.f32 %v5997_v51, 0.0 }
 0xaa7   : > { %v6181_v27 = vpack.c.bf16 %v6127_v32, %v6125_v18 }
 0xaa8   : > { %v6000_v29 = vpop.f32.mrb[20].mxu1  ;;  %v6182_v55 = vpack.c.bf16 %v6128_v3, %v6126_v14 }
 0xaa9   : > { %v6001_v53 = vadd.f32 %v6000_v29, %v14764_v48  ;;  %v6002_v19 = vpop.f32.mrb[21].mxu1 }
 0xaaa   : > { %v6003_v15 = vadd.f32 %v6002_v19, %v14767_v7  ;;  %v6004_v22 = vpop.f32.mrb[22].mxu1  ;;  %6478 = vmatprep.mubr.bf16.mxu0 %v6182_v55 }
 0xaab   : > { %v6129_v31 = vmax.f32 %v6001_v53, 0.0  ;;  %v6005_v26 = vadd.f32 %v6004_v22, %v14764_v48  ;;  %v6006_v61 = vpop.f32.mrb[23].mxu1  ;;  %6479 = vmatmul.mubr.bf16.gmra.mrb[80].mxu0 %v6181_v27 }
 0xaac   : > { %v6130_v43 = vmax.f32 %v6003_v15, 0.0  ;;  %v6007_v18 = vadd.f32 %v6006_v61, %v14767_v7 }
 0xaad   : > { %v6131_v13 = vmax.f32 %v6005_v26, 0.0 }
 0xaae   : > { %v6132_v1 = vmax.f32 %v6007_v18, 0.0 }
 0xaaf   : > { %v6183_v49 = vpack.c.bf16 %v6131_v13, %v6129_v31 }
 0xab0   : > { %v6010_v14 = vpop.f32.mrb[24].mxu1  ;;  %v6184_v51 = vpack.c.bf16 %v6132_v1, %v6130_v43 }
 0xab1   : > { %v6011_v28 = vadd.f32 %v6010_v14, %v14764_v48  ;;  %v6012_v32 = vpop.f32.mrb[25].mxu1 }
 0xab2   : > { %v6013_v3 = vadd.f32 %v6012_v32, %v14767_v7  ;;  %v6014_v29 = vpop.f32.mrb[26].mxu1  ;;  %6488 = vmatprep.mubr.bf16.mxu0 %v6184_v51 }
 0xab3   : > { %v6133_v27 = vmax.f32 %v6011_v28, 0.0  ;;  %v6015_v24 = vadd.f32 %v6014_v29, %v14764_v48  ;;  %v6016_v55 = vpop.f32.mrb[27].mxu1  ;;  %6489 = vmatmul.mubr.bf16.gmra.mrb[84].mxu0 %v6183_v49 }
 0xab4   : > { %v6134_v53 = vmax.f32 %v6013_v3, 0.0  ;;  %v6017_v21 = vadd.f32 %v6016_v55, %v14767_v7 }
 0xab5   : > { %v6135_v19 = vmax.f32 %v6015_v24, 0.0 }
 0xab6   : > { %v6136_v15 = vmax.f32 %v6017_v21, 0.0 }
 0xab7   : > { %v6185_v22 = vpack.c.bf16 %v6135_v19, %v6133_v27 }
 0xab8   : > { %v6020_v31 = vpop.f32.mrb[28].mxu1  ;;  %v6186_v26 = vpack.c.bf16 %v6136_v15, %v6134_v53 }
 0xab9   : > { %v6021_v61 = vadd.f32 %v6020_v31, %v14764_v48  ;;  %v6022_v10 = vpop.f32.mrb[29].mxu1 }
 0xaba   : > { %v6023_v43 = vadd.f32 %v6022_v10, %v14767_v7  ;;  %v6024_v18 = vpop.f32.mrb[30].mxu1  ;;  %6498 = vmatprep.mubr.bf16.mxu0 %v6186_v26 }
 0xabb   : > { %v6137_v13 = vmax.f32 %v6021_v61, 0.0  ;;  %v6025_v1 = vadd.f32 %v6024_v18, %v14764_v48  ;;  %v6026_v14 = vpop.f32.mrb[31].mxu1  ;;  %6499 = vmatmul.mubr.bf16.gmra.mrb[88].mxu0 %v6185_v22 }
 0xabc   : > { %v6138_v49 = vmax.f32 %v6023_v43, 0.0  ;;  %v6027_v51 = vadd.f32 %v6026_v14, %v14767_v7 }
 0xabd   : > { %v6139_v28 = vmax.f32 %v6025_v1, 0.0 }
 0xabe   : > { %v6140_v32 = vmax.f32 %v6027_v51, 0.0 }
 0xabf   : > { %v6187_v3 = vpack.c.bf16 %v6139_v28, %v6137_v13 }
 0xac0   : > { %v6030_v29 = vpop.f32.mrb[32].mxu1  ;;  %v6188_v27 = vpack.c.bf16 %v6140_v32, %v6138_v49 }
 0xac1   : > { %v6031_v24 = vadd.f32 %v6030_v29, %v14764_v48  ;;  %v6032_v55 = vpop.f32.mrb[33].mxu1 }
 0xac2   : > { %v6033_v53 = vadd.f32 %v6032_v55, %v14767_v7  ;;  %v6034_v21 = vpop.f32.mrb[34].mxu1  ;;  %6508 = vmatprep.mubr.bf16.mxu0 %v6188_v27 }
 0xac3   : > { %v6141_v19 = vmax.f32 %v6031_v24, 0.0  ;;  %v6035_v15 = vadd.f32 %v6034_v21, %v14764_v48  ;;  %v6036_v31 = vpop.f32.mrb[35].mxu1  ;;  %6509 = vmatmul.mubr.bf16.gmra.mrb[92].mxu0 %v6187_v3 }
 0xac4   : > { %v6142_v22 = vmax.f32 %v6033_v53, 0.0  ;;  %v6037_v26 = vadd.f32 %v6036_v31, %v14767_v7 }
 0xac5   : > { %v6143_v61 = vmax.f32 %v6035_v15, 0.0 }
 0xac6   : > { %v6144_v10 = vmax.f32 %v6037_v26, 0.0 }
 0xac7   : > { %v6189_v43 = vpack.c.bf16 %v6143_v61, %v6141_v19 }
 0xac8   : > { %v6040_v18 = vpop.f32.mrb[36].mxu1  ;;  %v6190_v13 = vpack.c.bf16 %v6144_v10, %v6142_v22 }
 0xac9   : > { %v6041_v1 = vadd.f32 %v6040_v18, %v14764_v48  ;;  %v6042_v14 = vpop.f32.mrb[37].mxu1 }
 0xaca   : > { %v6043_v49 = vadd.f32 %v6042_v14, %v14767_v7  ;;  %v6044_v51 = vpop.f32.mrb[38].mxu1  ;;  %6518 = vmatprep.mubr.bf16.mxu0 %v6190_v13 }
 0xacb   : > { %v6145_v28 = vmax.f32 %v6041_v1, 0.0  ;;  %v6045_v32 = vadd.f32 %v6044_v51, %v14764_v48  ;;  %v6046_v29 = vpop.f32.mrb[39].mxu1  ;;  %6519 = vmatmul.mubr.bf16.gmra.mrb[96].mxu0 %v6189_v43 }
 0xacc   : > { %v6146_v3 = vmax.f32 %v6043_v49, 0.0  ;;  %v6047_v27 = vadd.f32 %v6046_v29, %v14767_v7 }
 0xacd   : > { %v6147_v24 = vmax.f32 %v6045_v32, 0.0 }
 0xace   : > { %v6148_v55 = vmax.f32 %v6047_v27, 0.0 }
 0xacf   : > { %v6191_v53 = vpack.c.bf16 %v6147_v24, %v6145_v28 }
 0xad0   : > { %v6050_v21 = vpop.f32.mrb[40].mxu1  ;;  %v6192_v19 = vpack.c.bf16 %v6148_v55, %v6146_v3 }
 0xad1   : > { %v6051_v15 = vadd.f32 %v6050_v21, %v14764_v48  ;;  %v6052_v31 = vpop.f32.mrb[41].mxu1 }
 0xad2   : > { %v6053_v22 = vadd.f32 %v6052_v31, %v14767_v7  ;;  %v6054_v26 = vpop.f32.mrb[42].mxu1  ;;  %6528 = vmatprep.mubr.bf16.mxu0 %v6192_v19 }
 0xad3   : > { %v6149_v61 = vmax.f32 %v6051_v15, 0.0  ;;  %v6055_v10 = vadd.f32 %v6054_v26, %v14764_v48  ;;  %v6056_v18 = vpop.f32.mrb[43].mxu1  ;;  %6529 = vmatmul.mubr.bf16.gmra.mrb[100].mxu0 %v6191_v53 }
 0xad4   : > { %v6150_v43 = vmax.f32 %v6053_v22, 0.0  ;;  %v6057_v13 = vadd.f32 %v6056_v18, %v14767_v7 }
 0xad5   : > { %v6151_v1 = vmax.f32 %v6055_v10, 0.0 }
 0xad6   : > { %v6152_v14 = vmax.f32 %v6057_v13, 0.0 }
 0xad7   : > { %v6193_v49 = vpack.c.bf16 %v6151_v1, %v6149_v61 }
 0xad8   : > { %v6060_v51 = vpop.f32.mrb[44].mxu1  ;;  %v6194_v28 = vpack.c.bf16 %v6152_v14, %v6150_v43 }
 0xad9   : > { %v6061_v32 = vadd.f32 %v6060_v51, %v14764_v48  ;;  %v6062_v29 = vpop.f32.mrb[45].mxu1 }
 0xada   : > { %v6063_v3 = vadd.f32 %v6062_v29, %v14767_v7  ;;  %v6064_v27 = vpop.f32.mrb[46].mxu1  ;;  %6538 = vmatprep.mubr.bf16.mxu0 %v6194_v28  ;;  %v11868_v29 = vld [vmem:[#allocation6 + $0x2f0] ss:$8 sps:$4 sm:$0xff]  }
 0xadb   : > { %v6153_v24 = vmax.f32 %v6061_v32, 0.0  ;;  %v6065_v55 = vadd.f32 %v6064_v27, %v14764_v48  ;;  %v6066_v21 = vpop.f32.mrb[47].mxu1  ;;  %6539 = vmatmul.mubr.bf16.gmra.mrb[104].mxu0 %v6193_v49  ;;  %v11870_v49 = vld [vmem:[#allocation6 + $0x2f4] ss:$8 sps:$4 sm:$0xff]  }
 0xadc   : > { %v6154_v53 = vmax.f32 %v6063_v3, 0.0  ;;  %v6067_v19 = vadd.f32 %v6066_v21, %v14767_v7  ;;  %6926 = vmatprep.subr.bf16.mxu1 %v11870_v49 }
 0xadd   : > { %v6155_v15 = vmax.f32 %v6065_v55, 0.0  ;;  %6927 = vmatpush1.bf16.msra.mxu1 %v11868_v29 }
 0xade   : > { %v6156_v31 = vmax.f32 %v6067_v19, 0.0 }
 0xadf   : > { %v6195_v22 = vpack.c.bf16 %v6155_v15, %v6153_v24 }
 0xae0   : > { %v6070_v26 = vpop.f32.mrb[48].mxu1  ;;  %v6196_v61 = vpack.c.bf16 %v6156_v31, %v6154_v53 }
 0xae1   : > { %v6071_v10 = vadd.f32 %v6070_v26, %v14764_v48  ;;  %v6072_v18 = vpop.f32.mrb[49].mxu1 }
 0xae2   : > { %v6073_v43 = vadd.f32 %v6072_v18, %v14767_v7  ;;  %v6074_v13 = vpop.f32.mrb[50].mxu1  ;;  %6548 = vmatprep.mubr.bf16.mxu0 %v6196_v61 }
 0xae3   : > { %v6157_v1 = vmax.f32 %v6071_v10, 0.0  ;;  %v6075_v14 = vadd.f32 %v6074_v13, %v14764_v48  ;;  %v6076_v51 = vpop.f32.mrb[51].mxu1  ;;  %6549 = vmatmul.mubr.bf16.gmra.mrb[108].mxu0 %v6195_v22 }
 0xae4   : > { %v6158_v28 = vmax.f32 %v6073_v43, 0.0  ;;  %v6077_v32 = vadd.f32 %v6076_v51, %v14767_v7 }
 0xae5   : > { %v6159_v3 = vmax.f32 %v6075_v14, 0.0 }
 0xae6   : > { %v6160_v27 = vmax.f32 %v6077_v32, 0.0 }
 0xae7   : > { %v6197_v24 = vpack.c.bf16 %v6159_v3, %v6157_v1 }
 0xae8   : > { %v6080_v55 = vpop.f32.mrb[52].mxu1  ;;  %v6198_v21 = vpack.c.bf16 %v6160_v27, %v6158_v28 }
 0xae9   : > { %v6081_v53 = vadd.f32 %v6080_v55, %v14764_v48  ;;  %v6082_v19 = vpop.f32.mrb[53].mxu1 }
 0xaea   : > { %v6083_v15 = vadd.f32 %v6082_v19, %v14767_v7  ;;  %v6084_v31 = vpop.f32.mrb[54].mxu1  ;;  %6558 = vmatprep.mubr.bf16.mxu0 %v6198_v21 }
 0xaeb   : > { %v6161_v22 = vmax.f32 %v6081_v53, 0.0  ;;  %v6085_v26 = vadd.f32 %v6084_v31, %v14764_v48  ;;  %v6086_v61 = vpop.f32.mrb[55].mxu1  ;;  %6559 = vmatmul.mubr.bf16.gmra.mrb[112].mxu0 %v6197_v24 }
 0xaec   : > { %v6162_v10 = vmax.f32 %v6083_v15, 0.0  ;;  %v6087_v18 = vadd.f32 %v6086_v61, %v14767_v7 }
 0xaed   : > { %v6163_v43 = vmax.f32 %v6085_v26, 0.0 }
 0xaee   : > { %v6164_v13 = vmax.f32 %v6087_v18, 0.0 }
 0xaef   : > { %v6199_v1 = vpack.c.bf16 %v6163_v43, %v6161_v22 }
 0xaf0   : > { %v6200_v14 = vpack.c.bf16 %v6164_v13, %v6162_v10  ;;  %v6090_v51 = vpop.f32.mrb[56].mxu1 }
 0xaf1   : > { %v6091_v49 = vadd.f32 %v6090_v51, %v14764_v48  ;;  %v6092_v28 = vpop.f32.mrb[57].mxu1 }
 0xaf2   : > { %v6093_v32 = vadd.f32 %v6092_v28, %v14767_v7  ;;  %v6094_v29 = vpop.f32.mrb[58].mxu1  ;;  %6568 = vmatprep.mubr.bf16.mxu0 %v6200_v14 }
 0xaf3   : > { %v6165_v3 = vmax.f32 %v6091_v49, 0.0  ;;  %v6095_v27 = vadd.f32 %v6094_v29, %v14764_v48  ;;  %v6096_v55 = vpop.f32.mrb[59].mxu1  ;;  %6569 = vmatmul.mubr.bf16.gmra.mrb[116].mxu0 %v6199_v1 }
 0xaf4   : > { %v6166_v24 = vmax.f32 %v6093_v32, 0.0  ;;  %v6097_v21 = vadd.f32 %v6096_v55, %v14767_v7  ;;  %v11874_v55 = vld [vmem:[#allocation6 + $0x310] ss:$8 sps:$4 sm:$0xff]  }
 0xaf5   : > { %v6167_v53 = vmax.f32 %v6095_v27, 0.0  ;;  %v11873_v27 = vld [vmem:[#allocation6 + $0x304] ss:$8 sps:$4 sm:$0xff]  }
 0xaf6   : > { %v6168_v19 = vmax.f32 %v6097_v21, 0.0  ;;  %7386 = vmatprep.subr.bf16.mxu0 %v11873_v27  ;;  %v11879_v21 = vld [vmem:[#allocation6 + $0x324] ss:$8 sps:$4 sm:$0xff]  }
 0xaf7   : > { %v6201_v15 = vpack.c.bf16 %v6167_v53, %v6165_v3  ;;  %v11871_v3 = vld [vmem:[#allocation6 + $0x300] ss:$8 sps:$4 sm:$0xff]   ;;  %v6240_v53 = vsub.s32 2, %v14679_v50 }
 0xaf8   : > { %v6202_v31 = vpack.c.bf16 %v6168_v19, %v6166_v24  ;;  %v6100_v22 = vpop.f32.mrb[60].mxu1  ;;  %7387 = vmatpush1.bf16.msra.mxu0 %v11871_v3  ;;  %v11876_v24 = vld [vmem:[#allocation6 + $0x314] ss:$8 sps:$4 sm:$0xff]  }
 0xaf9   : > { %v6101_v26 = vadd.f32 %v6100_v22, %v14764_v48  ;;  %v6102_v61 = vpop.f32.mrb[61].mxu1  ;;  %7388 = vmatprep.subr.bf16.mxu0 %v11876_v24 }
 0xafa   : > { %v6103_v10 = vadd.f32 %v6102_v61, %v14767_v7  ;;  %v6104_v18 = vpop.f32.mrb[62].mxu1  ;;  %6578 = vmatprep.mubr.bf16.mxu0 %v6202_v31  ;;  %v11882_v61 = vld [vmem:[#allocation6 + $0x334] ss:$8 sps:$4 sm:$0xff]  }
 0xafb   : > { %v6169_v43 = vmax.f32 %v6101_v26, 0.0  ;;  %v6105_v13 = vadd.f32 %v6104_v18, %v14764_v48  ;;  %v6106_v14 = vpop.f32.mrb[63].mxu1  ;;  %6579 = vmatmul.mubr.bf16.gmra.mrb[120].mxu0 %v6201_v15  ;;  %v11877_v48 = vld [vmem:[#allocation6 + $0x320] ss:$8 sps:$4 sm:$0xff]   ;;  %v11880_v26 = vld [vmem:[#allocation6 + $0x330] ss:$8 sps:$4 sm:$0xff]  }
 0xafc   : > { %v6170_v1 = vmax.f32 %v6103_v10, 0.0  ;;  %v6107_v51 = vadd.f32 %v6106_v14, %v14767_v7  ;;  %7389 = vmatpush1.bf16.msra.mxu0 %v11874_v55  ;;  %v14837_v7 = vld [vmem:[%s15909_s11] sm:$0xff]  ;;  %v14845_v15 = vld [vmem:[%s15909_s11 + $0x8] sm:$0xff] }
 0xafd   : > { %v6171_v49 = vmax.f32 %v6105_v13, 0.0  ;;  %7390 = vmatprep.subr.bf16.mxu0 %v11879_v21  ;;  %v14840_v19 = vrot.slane %v14837_v7, %v6240_v53  ;;  %v14848_v31 = vrot.slane %v14845_v15, %v6240_v53 }
 0xafe   : > { %v6172_v28 = vmax.f32 %v6107_v51, 0.0  ;;  %v11883_v51 = vld [vmem:[#allocation6 + $0x340] ss:$8 sps:$4 sm:$0xff]  }
 0xaff   : > { %v6203_v32 = vpack.c.bf16 %v6171_v49, %v6169_v43  ;;  %v11885_v49 = vld [vmem:[#allocation6 + $0x344] ss:$8 sps:$4 sm:$0xff]  }
 0xb00   : > { %v6204_v29 = vpack.c.bf16 %v6172_v28, %v6170_v1  ;;  %7391 = vmatpush1.bf16.msra.mxu0 %v11877_v48  ;;  %v11886_v48 = vld [vmem:[#allocation6 + $0x350] ss:$8 sps:$4 sm:$0xff]  }
 0xb01   : > { %7392 = vmatprep.subr.bf16.mxu0 %v11882_v61 }
 0xb02   : > { %6588 = vmatprep.mubr.bf16.mxu0 %v6204_v29 }
 0xb03   : > { %6589 = vmatmul.mubr.bf16.gmra.mrb[124].mxu0 %v6203_v32  ;;  %v11888_v32 = vld [vmem:[#allocation6 + $0x354] ss:$8 sps:$4 sm:$0xff]  }
 0xb04   : > { %7393 = vmatpush1.bf16.msra.mxu0 %v11880_v26 }
 0xb05   : > { %7394 = vmatprep.subr.bf16.mxu0 %v11885_v49 }
 0xb08   : > { %7395 = vmatpush1.bf16.msra.mxu0 %v11883_v51  ;;  %v11894_v51 = vld [vmem:[#allocation6 + $0x374] ss:$8 sps:$4 sm:$0xff]  }
 0xb09   : > { %7396 = vmatprep.subr.bf16.mxu0 %v11888_v32 }
 0xb0c   : > { %7397 = vmatpush1.bf16.msra.mxu0 %v11886_v48 }
 0xb5e   : > { %v6440_v22 = vpop.f32.mrb[64].mxu0 }
 0xb5f   : > { %v6441_v10 = vadd.f32 %v6440_v22, %v14840_v19  ;;  %v6442_v18 = vpop.f32.mrb[65].mxu0  ;;  %v11891_v22 = vld [vmem:[#allocation6 + $0x364] ss:$8 sps:$4 sm:$0xff]  }
 0xb60   : > { %v6443_v43 = vadd.f32 %v6442_v18, %v14848_v31  ;;  %v6444_v13 = vpop.f32.mrb[66].mxu0  ;;  %7398 = vmatprep.subr.bf16.mxu0 %v11891_v22 }
 0xb61   : > { %v6445_v14 = vadd.f32 %v6444_v13, %v14840_v19  ;;  %v6446_v1 = vpop.f32.mrb[67].mxu0  ;;  %v6599_v29 = vmax.f32 %v6441_v10, 0.0 }
 0xb62   : > { %v6447_v28 = vadd.f32 %v6446_v1, %v14848_v31  ;;  %v6600_v27 = vmax.f32 %v6443_v43, 0.0  ;;  %v11889_v43 = vld [vmem:[#allocation6 + $0x360] ss:$8 sps:$4 sm:$0xff]  }
 0xb63   : > { %v6601_v3 = vmax.f32 %v6445_v14, 0.0  ;;  %7399 = vmatpush1.bf16.msra.mxu0 %v11889_v43 }
 0xb64   : > { %v6602_v55 = vmax.f32 %v6447_v28, 0.0  ;;  %7400 = vmatprep.subr.bf16.mxu0 %v11894_v51 }
 0xb65   : > { %v6663_v24 = vpack.c.bf16 %v6601_v3, %v6599_v29 }
 0xb66   : > { %v6450_v21 = vpop.f32.mrb[68].mxu0  ;;  %v6664_v53 = vpack.c.bf16 %v6602_v55, %v6600_v27  ;;  %v11892_v27 = vld [vmem:[#allocation6 + $0x370] ss:$8 sps:$4 sm:$0xff]  }
 0xb67   : > { %v6451_v61 = vadd.f32 %v6450_v21, %v14840_v19  ;;  %v6452_v26 = vpop.f32.mrb[69].mxu0  ;;  %7401 = vmatpush1.bf16.msra.mxu0 %v11892_v27 }
 0xb68   : > { %v6453_v18 = vadd.f32 %v6452_v26, %v14848_v31  ;;  %v6454_v13 = vpop.f32.mrb[70].mxu0  ;;  %6928 = vmatprep.mubr.bf16.mxu1 %v6664_v53  ;;  %v11897_v53 = vld [vmem:[#allocation6 + $0x384] ss:$8 sps:$4 sm:$0xff]  }
 0xb69   : > { %v6455_v10 = vadd.f32 %v6454_v13, %v14840_v19  ;;  %v6456_v14 = vpop.f32.mrb[71].mxu0  ;;  %6929 = vmatmul.mubr.bf16.vlgmr.msra.gmra.mrb[64].mxu1 %v6663_v24  ;;  %v6603_v49 = vmax.f32 %v6451_v61, 0.0  ;;  %7402 = vmatprep.subr.bf16.mxu0 %v11897_v53 }
 0xb6a   : > { %v6457_v1 = vadd.f32 %v6456_v14, %v14848_v31  ;;  %v6604_v32 = vmax.f32 %v6453_v18, 0.0  ;;  %v11895_v18 = vld [vmem:[#allocation6 + $0x380] ss:$8 sps:$4 sm:$0xff]   ;;  %v11900_v14 = vld [vmem:[#allocation6 + $0x394] ss:$8 sps:$4 sm:$0xff]  }
 0xb6b   : > { %v6605_v28 = vmax.f32 %v6455_v10, 0.0  ;;  %7403 = vmatpush1.bf16.msra.mxu0 %v11895_v18 }
 0xb6c   : > { %v6606_v29 = vmax.f32 %v6457_v1, 0.0  ;;  %7404 = vmatprep.subr.bf16.mxu0 %v11900_v14 }
 0xb6d   : > { %v6665_v3 = vpack.c.bf16 %v6605_v28, %v6603_v49 }
 0xb6e   : > { %v6460_v55 = vpop.f32.mrb[72].mxu0  ;;  %v6666_v21 = vpack.c.bf16 %v6606_v29, %v6604_v32  ;;  %v11898_v32 = vld [vmem:[#allocation6 + $0x390] ss:$8 sps:$4 sm:$0xff]  }
 0xb6f   : > { %v6461_v26 = vadd.f32 %v6460_v55, %v14840_v19  ;;  %v6462_v24 = vpop.f32.mrb[73].mxu0  ;;  %7405 = vmatpush1.bf16.msra.mxu0 %v11898_v32 }
 0xb70   : > { %v6463_v48 = vadd.f32 %v6462_v24, %v14848_v31  ;;  %v6464_v13 = vpop.f32.mrb[74].mxu0  ;;  %6938 = vmatprep.mubr.bf16.mxu1 %v6666_v21  ;;  %v11903_v21 = vld [vmem:[#allocation6 + $0x3a4] ss:$8 sps:$4 sm:$0xff]  }
 0xb71   : > { %v6465_v22 = vadd.f32 %v6464_v13, %v14840_v19  ;;  %v6466_v61 = vpop.f32.mrb[75].mxu0  ;;  %6939 = vmatmul.mubr.bf16.gmra.mrb[68].mxu1 %v6665_v3  ;;  %v6607_v43 = vmax.f32 %v6461_v26, 0.0  ;;  %7406 = vmatprep.subr.bf16.mxu0 %v11903_v21 }
 0xb72   : > { %v6467_v10 = vadd.f32 %v6466_v61, %v14848_v31  ;;  %v6608_v51 = vmax.f32 %v6463_v48, 0.0 }
 0xb73   : > { %v6609_v1 = vmax.f32 %v6465_v22, 0.0  ;;  %v11901_v22 = vld [vmem:[#allocation6 + $0x3a0] ss:$8 sps:$4 sm:$0xff]  }
 0xb74   : > { %v6610_v49 = vmax.f32 %v6467_v10, 0.0  ;;  %v11906_v10 = vld [vmem:[#allocation6 + $0x3b4] ss:$8 sps:$4 sm:$0xff]   ;;  %7407 = vmatpush1.bf16.msra.mxu0 %v11901_v22 }
 0xb75   : > { %v6667_v28 = vpack.c.bf16 %v6609_v1, %v6607_v43  ;;  %7408 = vmatprep.subr.bf16.mxu0 %v11906_v10  ;;  %v11912_v22 = vld [vmem:[#allocation6 + $0x3d4] ss:$8 sps:$4 sm:$0xff]  }
 0xb76   : > { %v6470_v29 = vpop.f32.mrb[76].mxu0  ;;  %v6668_v55 = vpack.c.bf16 %v6610_v49, %v6608_v51  ;;  %v11904_v51 = vld [vmem:[#allocation6 + $0x3b0] ss:$8 sps:$4 sm:$0xff]  }
 0xb77   : > { %v6471_v24 = vadd.f32 %v6470_v29, %v14840_v19  ;;  %v6472_v3 = vpop.f32.mrb[77].mxu0 }
 0xb78   : > { %v6473_v27 = vadd.f32 %v6472_v3, %v14848_v31  ;;  %6948 = vmatprep.mubr.bf16.mxu1 %v6668_v55  ;;  %v6474_v13 = vpop.f32.mrb[78].mxu0  ;;  %v11909_v55 = vld [vmem:[#allocation6 + $0x3c4] ss:$8 sps:$4 sm:$0xff]   ;;  %7409 = vmatpush1.bf16.msra.mxu0 %v11904_v51 }
 0xb79   : > { %v6611_v53 = vmax.f32 %v6471_v24, 0.0  ;;  %v6475_v26 = vadd.f32 %v6474_v13, %v14840_v19  ;;  %6949 = vmatmul.mubr.bf16.gmra.mrb[72].mxu1 %v6667_v28  ;;  %v6476_v48 = vpop.f32.mrb[79].mxu0  ;;  %7410 = vmatprep.subr.bf16.mxu0 %v11909_v55 }
 0xb7a   : > { %v6612_v61 = vmax.f32 %v6473_v27, 0.0  ;;  %v6477_v18 = vadd.f32 %v6476_v48, %v14848_v31 }
 0xb7b   : > { %v6613_v14 = vmax.f32 %v6475_v26, 0.0 }
 0xb7c   : > { %v6614_v43 = vmax.f32 %v6477_v18, 0.0 }
 0xb7d   : > { %v6669_v1 = vpack.c.bf16 %v6613_v14, %v6611_v53  ;;  %v11907_v53 = vld [vmem:[#allocation6 + $0x3c0] ss:$8 sps:$4 sm:$0xff]   ;;  %v11910_v14 = vld [vmem:[#allocation6 + $0x3d0] ss:$8 sps:$4 sm:$0xff]  }
 0xb7e   : > { %v6670_v49 = vpack.c.bf16 %v6614_v43, %v6612_v61  ;;  %v6480_v29 = vpop.f32.mrb[80].mxu0  ;;  %7411 = vmatpush1.bf16.msra.mxu0 %v11907_v53 }
 0xb7f   : > { %v6481_v24 = vadd.f32 %v6480_v29, %v14840_v19  ;;  %v6482_v28 = vpop.f32.mrb[81].mxu0  ;;  %7412 = vmatprep.subr.bf16.mxu0 %v11912_v22 }
 0xb80   : > { %v6483_v32 = vadd.f32 %v6482_v28, %v14848_v31  ;;  %v6484_v3 = vpop.f32.mrb[82].mxu0  ;;  %6958 = vmatprep.mubr.bf16.mxu1 %v6670_v49  ;;  %v11915_v49 = vld [vmem:[#allocation6 + $0x3e4] ss:$8 sps:$4 sm:$0xff]  }
 0xb81   : > { %v6615_v27 = vmax.f32 %v6481_v24, 0.0  ;;  %v6485_v21 = vadd.f32 %v6484_v3, %v14840_v19  ;;  %v6486_v13 = vpop.f32.mrb[83].mxu0  ;;  %6959 = vmatmul.mubr.bf16.gmra.mrb[76].mxu1 %v6669_v1 }
 0xb82   : > { %v6616_v26 = vmax.f32 %v6483_v32, 0.0  ;;  %v6487_v48 = vadd.f32 %v6486_v13, %v14848_v31  ;;  %7413 = vmatpush1.bf16.msra.mxu0 %v11910_v14 }
 0xb83   : > { %v6617_v61 = vmax.f32 %v6485_v21, 0.0  ;;  %7414 = vmatprep.subr.bf16.mxu0 %v11915_v49 }
 0xb84   : > { %v6618_v18 = vmax.f32 %v6487_v48, 0.0 }
 0xb85   : > { %v6671_v10 = vpack.c.bf16 %v6617_v61, %v6615_v27  ;;  %v11913_v27 = vld [vmem:[#allocation6 + $0x3e0] ss:$8 sps:$4 sm:$0xff]  }
 0xb86   : > { %v6672_v43 = vpack.c.bf16 %v6618_v18, %v6616_v26  ;;  %v6490_v29 = vpop.f32.mrb[84].mxu0  ;;  %7415 = vmatpush1.bf16.msra.mxu0 %v11913_v27 }
 0xb87   : > { %v6491_v24 = vadd.f32 %v6490_v29, %v14840_v19  ;;  %v6492_v28 = vpop.f32.mrb[85].mxu0 }
 0xb88   : > { %v6493_v1 = vadd.f32 %v6492_v28, %v14848_v31  ;;  %v6494_v51 = vpop.f32.mrb[86].mxu0  ;;  %6968 = vmatprep.mubr.bf16.mxu1 %v6672_v43 }
 0xb89   : > { %v6619_v32 = vmax.f32 %v6491_v24, 0.0  ;;  %v6495_v55 = vadd.f32 %v6494_v51, %v14840_v19  ;;  %v6496_v3 = vpop.f32.mrb[87].mxu0  ;;  %6969 = vmatmul.mubr.bf16.gmra.mrb[80].mxu1 %v6671_v10 }
 0xb8a   : > { %v6620_v21 = vmax.f32 %v6493_v1, 0.0  ;;  %v6497_v13 = vadd.f32 %v6496_v3, %v14848_v31 }
 0xb8b   : > { %v6621_v53 = vmax.f32 %v6495_v55, 0.0 }
 0xb8c   : > { %v6622_v26 = vmax.f32 %v6497_v13, 0.0 }
 0xb8d   : > { %v6673_v48 = vpack.c.bf16 %v6621_v53, %v6619_v32 }
 0xb8e   : > { %v6674_v22 = vpack.c.bf16 %v6622_v26, %v6620_v21  ;;  %v6500_v61 = vpop.f32.mrb[88].mxu0 }
 0xb8f   : > { %v6501_v18 = vadd.f32 %v6500_v61, %v14840_v19  ;;  %v6502_v43 = vpop.f32.mrb[89].mxu0 }
 0xb90   : > { %v6503_v29 = vadd.f32 %v6502_v43, %v14848_v31  ;;  %v6504_v24 = vpop.f32.mrb[90].mxu0  ;;  %6978 = vmatprep.mubr.bf16.mxu1 %v6674_v22 }
 0xb91   : > { %v6623_v10 = vmax.f32 %v6501_v18, 0.0  ;;  %v6505_v14 = vadd.f32 %v6504_v24, %v14840_v19  ;;  %v6506_v28 = vpop.f32.mrb[91].mxu0  ;;  %6979 = vmatmul.mubr.bf16.gmra.mrb[84].mxu1 %v6673_v48 }
 0xb92   : > { %v6624_v1 = vmax.f32 %v6503_v29, 0.0  ;;  %v6507_v49 = vadd.f32 %v6506_v28, %v14848_v31 }
 0xb93   : > { %v6625_v51 = vmax.f32 %v6505_v14, 0.0 }
 0xb94   : > { %v6626_v32 = vmax.f32 %v6507_v49, 0.0 }
 0xb95   : > { %v6675_v55 = vpack.c.bf16 %v6625_v51, %v6623_v10 }
 0xb96   : > { %v6676_v3 = vpack.c.bf16 %v6626_v32, %v6624_v1  ;;  %v6510_v27 = vpop.f32.mrb[92].mxu0 }
 0xb97   : > { %v6511_v21 = vadd.f32 %v6510_v27, %v14840_v19  ;;  %v6512_v13 = vpop.f32.mrb[93].mxu0 }
 0xb98   : > { %v6513_v53 = vadd.f32 %v6512_v13, %v14848_v31  ;;  %v6514_v26 = vpop.f32.mrb[94].mxu0  ;;  %6988 = vmatprep.mubr.bf16.mxu1 %v6676_v3 }
 0xb99   : > { %v6627_v22 = vmax.f32 %v6511_v21, 0.0  ;;  %v6515_v61 = vadd.f32 %v6514_v26, %v14840_v19  ;;  %v6516_v18 = vpop.f32.mrb[95].mxu0  ;;  %6989 = vmatmul.mubr.bf16.gmra.mrb[88].mxu1 %v6675_v55 }
 0xb9a   : > { %v6628_v48 = vmax.f32 %v6513_v53, 0.0  ;;  %v6517_v43 = vadd.f32 %v6516_v18, %v14848_v31 }
 0xb9b   : > { %v6629_v29 = vmax.f32 %v6515_v61, 0.0 }
 0xb9c   : > { %v6630_v24 = vmax.f32 %v6517_v43, 0.0 }
 0xb9d   : > { %v6677_v10 = vpack.c.bf16 %v6629_v29, %v6627_v22 }
 0xb9e   : > { %v6678_v14 = vpack.c.bf16 %v6630_v24, %v6628_v48  ;;  %v6520_v28 = vpop.f32.mrb[96].mxu0 }
 0xb9f   : > { %v6521_v1 = vadd.f32 %v6520_v28, %v14840_v19  ;;  %v6522_v49 = vpop.f32.mrb[97].mxu0 }
 0xba0   : > { %v6523_v51 = vadd.f32 %v6522_v49, %v14848_v31  ;;  %v6524_v32 = vpop.f32.mrb[98].mxu0  ;;  %6998 = vmatprep.mubr.bf16.mxu1 %v6678_v14 }
 0xba1   : > { %v6631_v3 = vmax.f32 %v6521_v1, 0.0  ;;  %v6525_v27 = vadd.f32 %v6524_v32, %v14840_v19  ;;  %v6526_v21 = vpop.f32.mrb[99].mxu0  ;;  %6999 = vmatmul.mubr.bf16.gmra.mrb[92].mxu1 %v6677_v10 }
 0xba2   : > { %v6632_v55 = vmax.f32 %v6523_v51, 0.0  ;;  %v6527_v13 = vadd.f32 %v6526_v21, %v14848_v31 }
 0xba3   : > { %v6633_v53 = vmax.f32 %v6525_v27, 0.0 }
 0xba4   : > { %v6634_v26 = vmax.f32 %v6527_v13, 0.0 }
 0xba5   : > { %v6679_v22 = vpack.c.bf16 %v6633_v53, %v6631_v3 }
 0xba6   : > { %v6680_v61 = vpack.c.bf16 %v6634_v26, %v6632_v55  ;;  %v6530_v18 = vpop.f32.mrb[100].mxu0 }
 0xba7   : > { %v6531_v48 = vadd.f32 %v6530_v18, %v14840_v19  ;;  %v6532_v43 = vpop.f32.mrb[101].mxu0 }
 0xba8   : > { %v6533_v29 = vadd.f32 %v6532_v43, %v14848_v31  ;;  %v6534_v24 = vpop.f32.mrb[102].mxu0  ;;  %7008 = vmatprep.mubr.bf16.mxu1 %v6680_v61 }
 0xba9   : > { %v6635_v14 = vmax.f32 %v6531_v48, 0.0  ;;  %v6535_v28 = vadd.f32 %v6534_v24, %v14840_v19  ;;  %v6536_v1 = vpop.f32.mrb[103].mxu0  ;;  %7009 = vmatmul.mubr.bf16.gmra.mrb[96].mxu1 %v6679_v22 }
 0xbaa   : > { %v6636_v10 = vmax.f32 %v6533_v29, 0.0  ;;  %v6537_v49 = vadd.f32 %v6536_v1, %v14848_v31 }
 0xbab   : > { %v6637_v51 = vmax.f32 %v6535_v28, 0.0 }
 0xbac   : > { %v6638_v32 = vmax.f32 %v6537_v49, 0.0 }
 0xbad   : > { %v6681_v3 = vpack.c.bf16 %v6637_v51, %v6635_v14 }
 0xbae   : > { %v6682_v27 = vpack.c.bf16 %v6638_v32, %v6636_v10  ;;  %v6540_v21 = vpop.f32.mrb[104].mxu0 }
 0xbaf   : > { %v6541_v55 = vadd.f32 %v6540_v21, %v14840_v19  ;;  %v6542_v13 = vpop.f32.mrb[105].mxu0 }
 0xbb0   : > { %v6543_v53 = vadd.f32 %v6542_v13, %v14848_v31  ;;  %v6544_v26 = vpop.f32.mrb[106].mxu0  ;;  %7018 = vmatprep.mubr.bf16.mxu1 %v6682_v27 }
 0xbb1   : > { %v6639_v61 = vmax.f32 %v6541_v55, 0.0  ;;  %v6545_v18 = vadd.f32 %v6544_v26, %v14840_v19  ;;  %v6546_v48 = vpop.f32.mrb[107].mxu0  ;;  %7019 = vmatmul.mubr.bf16.gmra.mrb[100].mxu1 %v6681_v3 }
 0xbb2   : > { %v6640_v22 = vmax.f32 %v6543_v53, 0.0  ;;  %v6547_v43 = vadd.f32 %v6546_v48, %v14848_v31 }
 0xbb3   : > { %v6641_v29 = vmax.f32 %v6545_v18, 0.0 }
 0xbb4   : > { %v6642_v24 = vmax.f32 %v6547_v43, 0.0 }
 0xbb5   : > { %v6683_v14 = vpack.c.bf16 %v6641_v29, %v6639_v61 }
 0xbb6   : > { %v6684_v28 = vpack.c.bf16 %v6642_v24, %v6640_v22  ;;  %v6550_v1 = vpop.f32.mrb[108].mxu0 }
 0xbb7   : > { %v6551_v10 = vadd.f32 %v6550_v1, %v14840_v19  ;;  %v6552_v49 = vpop.f32.mrb[109].mxu0 }
 0xbb8   : > { %v6553_v51 = vadd.f32 %v6552_v49, %v14848_v31  ;;  %v6554_v32 = vpop.f32.mrb[110].mxu0  ;;  %7028 = vmatprep.mubr.bf16.mxu1 %v6684_v28 }
 0xbb9   : > { %v6643_v27 = vmax.f32 %v6551_v10, 0.0  ;;  %v6555_v21 = vadd.f32 %v6554_v32, %v14840_v19  ;;  %v6556_v55 = vpop.f32.mrb[111].mxu0  ;;  %7029 = vmatmul.mubr.bf16.gmra.mrb[104].mxu1 %v6683_v14  ;;  %v11918_v14 = vld [vmem:[#allocation6 + $0x3f4] ss:$8 sps:$4 sm:$0xff]   ;;  %v11916_v32 = vld [vmem:[#allocation6 + $0x3f0] ss:$8 sps:$4 sm:$0xff]  }
 0xbba   : > { %v6644_v3 = vmax.f32 %v6553_v51, 0.0  ;;  %v6557_v13 = vadd.f32 %v6556_v55, %v14848_v31  ;;  %7416 = vmatprep.subr.bf16.mxu0 %v11918_v14 }
 0xbbb   : > { %v6645_v53 = vmax.f32 %v6555_v21, 0.0  ;;  %7417 = vmatpush1.bf16.msra.mxu0 %v11916_v32 }
 0xbbc   : > { %v6646_v26 = vmax.f32 %v6557_v13, 0.0 }
 0xbbd   : > { %v6685_v61 = vpack.c.bf16 %v6645_v53, %v6643_v27 }
 0xbbe   : > { %v6686_v18 = vpack.c.bf16 %v6646_v26, %v6644_v3  ;;  %v6560_v48 = vpop.f32.mrb[112].mxu0 }
 0xbbf   : > { %v6561_v22 = vadd.f32 %v6560_v48, %v14840_v19  ;;  %v6562_v43 = vpop.f32.mrb[113].mxu0 }
 0xbc0   : > { %v6563_v29 = vadd.f32 %v6562_v43, %v14848_v31  ;;  %v6564_v24 = vpop.f32.mrb[114].mxu0  ;;  %7038 = vmatprep.mubr.bf16.mxu1 %v6686_v18 }
 0xbc1   : > { %v6647_v28 = vmax.f32 %v6561_v22, 0.0  ;;  %v6565_v1 = vadd.f32 %v6564_v24, %v14840_v19  ;;  %v6566_v10 = vpop.f32.mrb[115].mxu0  ;;  %7039 = vmatmul.mubr.bf16.gmra.mrb[108].mxu1 %v6685_v61 }
 0xbc2   : > { %v6648_v49 = vmax.f32 %v6563_v29, 0.0  ;;  %v6567_v51 = vadd.f32 %v6566_v10, %v14848_v31 }
 0xbc3   : > { %v6649_v27 = vmax.f32 %v6565_v1, 0.0 }
 0xbc4   : > { %v6650_v21 = vmax.f32 %v6567_v51, 0.0 }
 0xbc5   : > { %v6687_v55 = vpack.c.bf16 %v6649_v27, %v6647_v28 }
 0xbc6   : > { %v6688_v3 = vpack.c.bf16 %v6650_v21, %v6648_v49  ;;  %v6570_v13 = vpop.f32.mrb[116].mxu0 }
 0xbc7   : > { %v6571_v53 = vadd.f32 %v6570_v13, %v14840_v19  ;;  %v6572_v26 = vpop.f32.mrb[117].mxu0 }
 0xbc8   : > { %v6573_v18 = vadd.f32 %v6572_v26, %v14848_v31  ;;  %v6574_v48 = vpop.f32.mrb[118].mxu0  ;;  %7048 = vmatprep.mubr.bf16.mxu1 %v6688_v3 }
 0xbc9   : > { %v6651_v61 = vmax.f32 %v6571_v53, 0.0  ;;  %v6575_v22 = vadd.f32 %v6574_v48, %v14840_v19  ;;  %v6576_v43 = vpop.f32.mrb[119].mxu0  ;;  %7049 = vmatmul.mubr.bf16.gmra.mrb[112].mxu1 %v6687_v55 }
 0xbca   : > { %v6652_v29 = vmax.f32 %v6573_v18, 0.0  ;;  %v6577_v24 = vadd.f32 %v6576_v43, %v14848_v31 }
 0xbcb   : > { %v6653_v1 = vmax.f32 %v6575_v22, 0.0 }
 0xbcc   : > { %v6654_v10 = vmax.f32 %v6577_v24, 0.0 }
 0xbcd   : > { %v6689_v28 = vpack.c.bf16 %v6653_v1, %v6651_v61 }
 0xbce   : > { %v6690_v14 = vpack.c.bf16 %v6654_v10, %v6652_v29  ;;  %v6580_v49 = vpop.f32.mrb[120].mxu0 }
 0xbcf   : > { %v6581_v51 = vadd.f32 %v6580_v49, %v14840_v19  ;;  %v6582_v32 = vpop.f32.mrb[121].mxu0 }
 0xbd0   : > { %v6583_v27 = vadd.f32 %v6582_v32, %v14848_v31  ;;  %v6584_v21 = vpop.f32.mrb[122].mxu0  ;;  %7058 = vmatprep.mubr.bf16.mxu1 %v6690_v14 }
 0xbd1   : > { %v6655_v3 = vmax.f32 %v6581_v51, 0.0  ;;  %v6585_v13 = vadd.f32 %v6584_v21, %v14840_v19  ;;  %v6586_v53 = vpop.f32.mrb[123].mxu0  ;;  %7059 = vmatmul.mubr.bf16.gmra.mrb[116].mxu1 %v6689_v28 }
 0xbd2   : > { %v6656_v55 = vmax.f32 %v6583_v27, 0.0  ;;  %v6587_v26 = vadd.f32 %v6586_v53, %v14848_v31  ;;  %v11921_v53 = vld [vmem:[#allocation6 + $0x404] ss:$8 sps:$4 sm:$0xff]  }
 0xbd3   : > { %v6657_v18 = vmax.f32 %v6585_v13, 0.0  ;;  %7870 = vmatprep.subr.bf16.mxu0 %v11921_v53  ;;  %10917 = vmatprep.subr.bf16.mxu1 %v11921_v53  ;;  %v14939_v53 = vld [vmem:[#allocation6 + $0x454] ss:$8 sps:$4 sm:$0xff]  }
 0xbd4   : > { %v6658_v48 = vmax.f32 %v6587_v26, 0.0  ;;  %v11924_v26 = vld [vmem:[#allocation6 + $0x414] ss:$8 sps:$4 sm:$0xff]  }
 0xbd5   : > { %v6691_v61 = vpack.c.bf16 %v6657_v18, %v6655_v3  ;;  %v11922_v18 = vld [vmem:[#allocation6 + $0x410] ss:$8 sps:$4 sm:$0xff]  }
 0xbd6   : > { %v6692_v22 = vpack.c.bf16 %v6658_v48, %v6656_v55  ;;  %v6590_v43 = vpop.f32.mrb[124].mxu0  ;;  %v11919_v55 = vld [vmem:[#allocation6 + $0x400] ss:$8 sps:$4 sm:$0xff]   ;;  %v6730_v48 = vsub.s32 3, %v14679_v50 }
 0xbd7   : > { %v6591_v29 = vadd.f32 %v6590_v43, %v14840_v19  ;;  %v6592_v24 = vpop.f32.mrb[125].mxu0  ;;  %10933 = vmatpush1.bf16.msra.mxu1 %v11919_v55 }
 0xbd8   : > { %v6593_v1 = vadd.f32 %v6592_v24, %v14848_v31  ;;  %v6594_v10 = vpop.f32.mrb[126].mxu0  ;;  %7068 = vmatprep.mubr.bf16.mxu1 %v6692_v22  ;;  %10918 = vmatprep.subr.bf16.mxu1 %v11924_v26  ;;  %v14922_v22 = vrot.slane %v14845_v15, %v6730_v48 }
 0xbd9   : > { %v6659_v14 = vmax.f32 %v6591_v29, 0.0  ;;  %v6595_v49 = vadd.f32 %v6594_v10, %v14840_v19  ;;  %v6596_v51 = vpop.f32.mrb[127].mxu0  ;;  %7069 = vmatmul.mubr.bf16.gmra.mrb[120].mxu1 %v6691_v61  ;;  %v11927_v19 = vld [vmem:[#allocation6 + $0x424] ss:$8 sps:$4 sm:$0xff]   ;;  %v14915_v61 = vld [vmem:[#allocation6 + $0x420] ss:$8 sps:$4 sm:$0xff]  }
 0xbda   : > { %v6660_v28 = vmax.f32 %v6593_v1, 0.0  ;;  %v6597_v32 = vadd.f32 %v6596_v51, %v14848_v31  ;;  %v14919_v31 = vrot.slane %v14837_v7, %v6730_v48  ;;  %v14924_v29 = vld [vmem:[#allocation6 + $0x434] ss:$8 sps:$4 sm:$0xff]   ;;  %v14927_v10 = vld [vmem:[#allocation6 + $0x430] ss:$8 sps:$4 sm:$0xff]  }
 0xbdb   : > { %v6661_v27 = vmax.f32 %v6595_v49, 0.0  ;;  %10934 = vmatpush1.bf16.msra.mxu1 %v11922_v18 }
 0xbdc   : > { %v6662_v21 = vmax.f32 %v6597_v32, 0.0  ;;  %10919 = vmatprep.subr.bf16.mxu1 %v11927_v19 }
 0xbdd   : > { %v6693_v3 = vpack.c.bf16 %v6661_v27, %v6659_v14 }
 0xbde   : > { %v6694_v13 = vpack.c.bf16 %v6662_v21, %v6660_v28  ;;  %v14932_v28 = vld [vmem:[#allocation6 + $0x444] ss:$8 sps:$4 sm:$0xff]   ;;  %v14936_v21 = vld [vmem:[#allocation6 + $0x440] ss:$8 sps:$4 sm:$0xff]  }
 0xbdf   : > { %10935 = vmatpush1.bf16.msra.mxu1 %v14915_v61 }
 0xbe0   : > { %7078 = vmatprep.mubr.bf16.mxu1 %v6694_v13  ;;  %10920 = vmatprep.subr.bf16.mxu1 %v14924_v29 }
 0xbe1   : > { %7079 = vmatmul.mubr.bf16.gmra.mrb[124].mxu1 %v6693_v3 }
 0xbe3   : > { %10936 = vmatpush1.bf16.msra.mxu1 %v14927_v10 }
 0xbe4   : > { %10921 = vmatprep.subr.bf16.mxu1 %v14932_v28 }
 0xbe7   : > { %10937 = vmatpush1.bf16.msra.mxu1 %v14936_v21 }
 0xbe8   : > { %10922 = vmatprep.subr.bf16.mxu1 %v14939_v53 }
 0xc3c   : > { %v6930_v43 = vpop.f32.mrb[64].mxu1 }
 0xc3d   : > { %v6931_v24 = vadd.f32 %v6930_v43, %v14919_v31  ;;  %v6932_v1 = vpop.f32.mrb[65].mxu1 }
 0xc3e   : > { %v6933_v14 = vadd.f32 %v6932_v1, %v14922_v22  ;;  %v6934_v49 = vpop.f32.mrb[66].mxu1 }
 0xc3f   : > { %v6935_v51 = vadd.f32 %v6934_v49, %v14919_v31  ;;  %v6936_v7 = vpop.f32.mrb[67].mxu1  ;;  %v7089_v32 = vmax.f32 %v6931_v24, 0.0  ;;  %v14944_v24 = vld [vmem:[#allocation6 + $0x450] ss:$8 sps:$4 sm:$0xff]  }
 0xc40   : > { %v6937_v15 = vadd.f32 %v6936_v7, %v14922_v22  ;;  %v7090_v3 = vmax.f32 %v6933_v14, 0.0  ;;  %v14947_v14 = vld [vmem:[#allocation6 + $0x464] ss:$8 sps:$4 sm:$0xff]   ;;  %10938 = vmatpush1.bf16.msra.mxu1 %v14944_v24 }
 0xc41   : > { %v7091_v27 = vmax.f32 %v6935_v51, 0.0  ;;  %10923 = vmatprep.subr.bf16.mxu1 %v14947_v14 }
 0xc42   : > { %v7092_v13 = vmax.f32 %v6937_v15, 0.0 }
 0xc43   : > { %v7153_v48 = vpack.c.bf16 %v7091_v27, %v7089_v32 }
 0xc44   : > { %v7154_v43 = vpack.c.bf16 %v7092_v13, %v7090_v3  ;;  %v6940_v1 = vpop.f32.mrb[68].mxu1 }
 0xc45   : > { %v6941_v49 = vadd.f32 %v6940_v1, %v14919_v31  ;;  %v6942_v7 = vpop.f32.mrb[69].mxu1  ;;  %v14953_v1 = vld [vmem:[#allocation6 + $0x460] ss:$8 sps:$4 sm:$0xff]  }
 0xc46   : > { %v6943_v51 = vadd.f32 %v6942_v7, %v14922_v22  ;;  %v6944_v2 = vpop.f32.mrb[70].mxu1  ;;  %7418 = vmatprep.mubr.bf16.mxu0 %v7154_v43  ;;  %10939 = vmatpush1.bf16.msra.mxu1 %v14953_v1 }
 0xc47   : > { %v6945_v15 = vadd.f32 %v6944_v2, %v14919_v31  ;;  %v6946_v32 = vpop.f32.mrb[71].mxu1  ;;  %7419 = vmatmul.mubr.bf16.vlgmr.msra.gmra.mrb[128].mxu0 %v7153_v48  ;;  %v7093_v3 = vmax.f32 %v6941_v49, 0.0  ;;  %10924 = vmatprep.subr.bf16.mxu1 %v14955_v17  ;;  %v14960_v49 = vld [vmem:[#allocation6 + $0x470] ss:$8 sps:$4 sm:$0xff]  }
 0xc48   : > { %v6947_v27 = vadd.f32 %v6946_v32, %v14922_v22  ;;  %7871 = vmatpush1.bf16.msra.mxu0 %v11919_v55  ;;  %v7094_v7 = vmax.f32 %v6943_v51, 0.0 }
 0xc49   : > { %v7095_v13 = vmax.f32 %v6945_v15, 0.0  ;;  %7872 = vmatprep.subr.bf16.mxu0 %v11924_v26  ;;  %v14963_v15 = vld [vmem:[#allocation6 + $0x484] ss:$8 sps:$4 sm:$0xff]  }
 0xc4a   : > { %v7096_v43 = vmax.f32 %v6947_v27, 0.0  ;;  %10940 = vmatpush1.bf16.msra.mxu1 %v14960_v49 }
 0xc4b   : > { %v7155_v23 = vpack.c.bf16 %v7095_v13, %v7093_v3  ;;  %10925 = vmatprep.subr.bf16.mxu1 %v14963_v15 }
 0xc4c   : > { %v7156_v2 = vpack.c.bf16 %v7096_v43, %v7094_v7  ;;  %v6950_v48 = vpop.f32.mrb[72].mxu1  ;;  %7873 = vmatpush1.bf16.msra.mxu0 %v11922_v18  ;;  %v14971_v7 = vld [vmem:[#allocation6 + $0x480] ss:$8 sps:$4 sm:$0xff]  }
 0xc4d   : > { %v6951_v55 = vadd.f32 %v6950_v48, %v14919_v31  ;;  %v6952_v32 = vpop.f32.mrb[73].mxu1  ;;  %7874 = vmatprep.subr.bf16.mxu0 %v11927_v19  ;;  %v14973_v48 = vld [vmem:[#allocation6 + $0x494] ss:$8 sps:$4 sm:$0xff]  }
 0xc4e   : > { %v6953_v26 = vadd.f32 %v6952_v32, %v14922_v22  ;;  %v6954_v51 = vpop.f32.mrb[74].mxu1  ;;  %7428 = vmatprep.mubr.bf16.mxu0 %v7156_v2  ;;  %10941 = vmatpush1.bf16.msra.mxu1 %v14971_v7 }
 0xc4f   : > { %v6955_v27 = vadd.f32 %v6954_v51, %v14919_v31  ;;  %v6956_v3 = vpop.f32.mrb[75].mxu1  ;;  %7429 = vmatmul.mubr.bf16.gmra.mrb[132].mxu0 %v7155_v23  ;;  %v7097_v19 = vmax.f32 %v6951_v55, 0.0  ;;  %10926 = vmatprep.subr.bf16.mxu1 %v14973_v48 }
 0xc50   : > { %v6957_v18 = vadd.f32 %v6956_v3, %v14922_v22  ;;  %7875 = vmatpush1.bf16.msra.mxu0 %v14915_v61  ;;  %v7098_v43 = vmax.f32 %v6953_v26, 0.0  ;;  %v14983_v3 = vld [vmem:[#allocation6 + $0x4a4] ss:$8 sps:$4 sm:$0xff]  }
 0xc51   : > { %v7099_v13 = vmax.f32 %v6955_v27, 0.0  ;;  %7876 = vmatprep.subr.bf16.mxu0 %v14924_v29  ;;  %v14980_v29 = vld [vmem:[#allocation6 + $0x490] ss:$8 sps:$4 sm:$0xff]  }
 0xc52   : > { %v7100_v2 = vmax.f32 %v6957_v18, 0.0  ;;  %10942 = vmatpush1.bf16.msra.mxu1 %v14980_v29 }
 0xc53   : > { %v7157_v32 = vpack.c.bf16 %v7099_v13, %v7097_v19  ;;  %10927 = vmatprep.subr.bf16.mxu1 %v14983_v3 }
 0xc54   : > { %v7158_v23 = vpack.c.bf16 %v7100_v2, %v7098_v43  ;;  %v6960_v51 = vpop.f32.mrb[76].mxu1  ;;  %7877 = vmatpush1.bf16.msra.mxu0 %v14927_v10  ;;  %v14991_v2 = vld [vmem:[#allocation6 + $0x4a0] ss:$8 sps:$4 sm:$0xff]  }
 0xc55   : > { %v6961_v61 = vadd.f32 %v6960_v51, %v14919_v31  ;;  %v6962_v55 = vpop.f32.mrb[77].mxu1  ;;  %7878 = vmatprep.subr.bf16.mxu0 %v14932_v28  ;;  %v14993_v51 = vld [vmem:[#allocation6 + $0x4b4] ss:$8 sps:$4 sm:$0xff]  }
 0xc56   : > { %v6963_v26 = vadd.f32 %v6962_v55, %v14922_v22  ;;  %7438 = vmatprep.mubr.bf16.mxu0 %v7158_v23  ;;  %v6964_v27 = vpop.f32.mrb[78].mxu1  ;;  %10943 = vmatpush1.bf16.msra.mxu1 %v14991_v2 }
 0xc57   : > { %v7101_v18 = vmax.f32 %v6961_v61, 0.0  ;;  %v6965_v19 = vadd.f32 %v6964_v27, %v14919_v31  ;;  %7439 = vmatmul.mubr.bf16.gmra.mrb[136].mxu0 %v7157_v32  ;;  %v6966_v10 = vpop.f32.mrb[79].mxu1  ;;  %10928 = vmatprep.subr.bf16.mxu1 %v14993_v51 }
 0xc58   : > { %v7102_v13 = vmax.f32 %v6963_v26, 0.0  ;;  %v6967_v43 = vadd.f32 %v6966_v10, %v14922_v22  ;;  %7879 = vmatpush1.bf16.msra.mxu0 %v14936_v21 }
 0xc59   : > { %v7103_v28 = vmax.f32 %v6965_v19, 0.0  ;;  %7880 = vmatprep.subr.bf16.mxu0 %v14939_v53  ;;  %v15000_v53 = vld [vmem:[#allocation6 + $0x4b0] ss:$8 sps:$4 sm:$0xff]  }
 0xc5a   : > { %v7104_v23 = vmax.f32 %v6967_v43, 0.0  ;;  %10944 = vmatpush1.bf16.msra.mxu1 %v15000_v53 }
 0xc5b   : > { %v7159_v61 = vpack.c.bf16 %v7103_v28, %v7101_v18  ;;  %v15003_v18 = vld [vmem:[#allocation6 + $0x4c4] ss:$8 sps:$4 sm:$0xff]  }
 0xc5c   : > { %v7160_v32 = vpack.c.bf16 %v7104_v23, %v7102_v13  ;;  %v6970_v55 = vpop.f32.mrb[80].mxu1  ;;  %7881 = vmatpush1.bf16.msra.mxu0 %v14944_v24  ;;  %10929 = vmatprep.subr.bf16.mxu1 %v15003_v18  ;;  %v15011_v23 = vld [vmem:[#allocation6 + $0x4c0] ss:$8 sps:$4 sm:$0xff]  }
 0xc5d   : > { %v6971_v21 = vadd.f32 %v6970_v55, %v14919_v31  ;;  %v6972_v26 = vpop.f32.mrb[81].mxu1  ;;  %7882 = vmatprep.subr.bf16.mxu0 %v14947_v14  ;;  %v15013_v55 = vld [vmem:[#allocation6 + $0x4d4] ss:$8 sps:$4 sm:$0xff]  }
 0xc5e   : > { %v6973_v27 = vadd.f32 %v6972_v26, %v14922_v22  ;;  %v6974_v19 = vpop.f32.mrb[82].mxu1  ;;  %7448 = vmatprep.mubr.bf16.mxu0 %v7160_v32  ;;  %10945 = vmatpush1.bf16.msra.mxu1 %v15011_v23 }
 0xc5f   : > { %v7105_v10 = vmax.f32 %v6971_v21, 0.0  ;;  %v6975_v13 = vadd.f32 %v6974_v19, %v14919_v31  ;;  %v6976_v43 = vpop.f32.mrb[83].mxu1  ;;  %7449 = vmatmul.mubr.bf16.gmra.mrb[140].mxu0 %v7159_v61  ;;  %10930 = vmatprep.subr.bf16.mxu1 %v15013_v55 }
 0xc60   : > { %v7106_v24 = vmax.f32 %v6973_v27, 0.0  ;;  %v6977_v28 = vadd.f32 %v6976_v43, %v14922_v22  ;;  %7883 = vmatpush1.bf16.msra.mxu0 %v14953_v1  ;;  %v11963_v43 = vld [vmem:[#allocation6 + $0x4e4] ss:$8 sps:$4 sm:$0xff]  }
 0xc61   : > { %v7107_v14 = vmax.f32 %v6975_v13, 0.0  ;;  %7884 = vmatprep.subr.bf16.mxu0 %v14955_v17  ;;  %v11958_v17 = vld [vmem:[#allocation6 + $0x4d0] ss:$8 sps:$4 sm:$0xff]  }
 0xc62   : > { %v7108_v32 = vmax.f32 %v6977_v28, 0.0  ;;  %10946 = vmatpush1.bf16.msra.mxu1 %v11958_v17 }
 0xc63   : > { %v7161_v21 = vpack.c.bf16 %v7107_v14, %v7105_v10  ;;  %10931 = vmatprep.subr.bf16.mxu1 %v11963_v43 }
 0xc64   : > { %v7162_v61 = vpack.c.bf16 %v7108_v32, %v7106_v24  ;;  %v6980_v26 = vpop.f32.mrb[84].mxu1  ;;  %7885 = vmatpush1.bf16.msra.mxu0 %v14960_v49 }
 0xc65   : > { %v6981_v1 = vadd.f32 %v6980_v26, %v14919_v31  ;;  %v6982_v27 = vpop.f32.mrb[85].mxu1  ;;  %7886 = vmatprep.subr.bf16.mxu0 %v14963_v15  ;;  %v11961_v15 = vld [vmem:[#allocation6 + $0x4e0] ss:$8 sps:$4 sm:$0xff]  }
 0xc66   : > { %v6983_v19 = vadd.f32 %v6982_v27, %v14922_v22  ;;  %v6984_v13 = vpop.f32.mrb[86].mxu1  ;;  %7458 = vmatprep.mubr.bf16.mxu0 %v7162_v61  ;;  %10947 = vmatpush1.bf16.msra.mxu1 %v11961_v15 }
 0xc67   : > { %v7109_v10 = vmax.f32 %v6981_v1, 0.0  ;;  %v6985_v28 = vadd.f32 %v6984_v13, %v14919_v31  ;;  %v6986_v24 = vpop.f32.mrb[87].mxu1  ;;  %7459 = vmatmul.mubr.bf16.gmra.mrb[144].mxu0 %v7161_v21 }
 0xc68   : > { %v7110_v49 = vmax.f32 %v6983_v19, 0.0  ;;  %v6987_v14 = vadd.f32 %v6986_v24, %v14922_v22  ;;  %7887 = vmatpush1.bf16.msra.mxu0 %v14971_v7 }
 0xc69   : > { %v7111_v32 = vmax.f32 %v6985_v28, 0.0  ;;  %7888 = vmatprep.subr.bf16.mxu0 %v14973_v48 }
 0xc6a   : > { %v7112_v26 = vmax.f32 %v6987_v14, 0.0 }
 0xc6b   : > { %v7163_v27 = vpack.c.bf16 %v7111_v32, %v7109_v10 }
 0xc6c   : > { %v7164_v61 = vpack.c.bf16 %v7112_v26, %v7110_v49  ;;  %v6990_v1 = vpop.f32.mrb[88].mxu1  ;;  %7889 = vmatpush1.bf16.msra.mxu0 %v14980_v29 }
 0xc6d   : > { %v6991_v21 = vadd.f32 %v6990_v1, %v14919_v31  ;;  %v6992_v13 = vpop.f32.mrb[89].mxu1  ;;  %7890 = vmatprep.subr.bf16.mxu0 %v14983_v3 }
 0xc6e   : > { %v6993_v19 = vadd.f32 %v6992_v13, %v14922_v22  ;;  %v6994_v7 = vpop.f32.mrb[90].mxu1  ;;  %7468 = vmatprep.mubr.bf16.mxu0 %v7164_v61 }
 0xc6f   : > { %v7113_v28 = vmax.f32 %v6991_v21, 0.0  ;;  %v6995_v48 = vadd.f32 %v6994_v7, %v14919_v31  ;;  %v6996_v24 = vpop.f32.mrb[91].mxu1  ;;  %7469 = vmatmul.mubr.bf16.gmra.mrb[148].mxu0 %v7163_v27 }
 0xc70   : > { %v7114_v10 = vmax.f32 %v6993_v19, 0.0  ;;  %v6997_v49 = vadd.f32 %v6996_v24, %v14922_v22  ;;  %7891 = vmatpush1.bf16.msra.mxu0 %v14991_v2 }
 0xc71   : > { %v7115_v29 = vmax.f32 %v6995_v48, 0.0  ;;  %7892 = vmatprep.subr.bf16.mxu0 %v14993_v51 }
 0xc72   : > { %v7116_v14 = vmax.f32 %v6997_v49, 0.0 }
 0xc73   : > { %v7165_v32 = vpack.c.bf16 %v7115_v29, %v7113_v28 }
 0xc74   : > { %v7166_v3 = vpack.c.bf16 %v7116_v14, %v7114_v10  ;;  %v7000_v26 = vpop.f32.mrb[92].mxu1  ;;  %7893 = vmatpush1.bf16.msra.mxu0 %v15000_v53 }
 0xc75   : > { %v7001_v61 = vadd.f32 %v7000_v26, %v14919_v31  ;;  %v7002_v1 = vpop.f32.mrb[93].mxu1  ;;  %7894 = vmatprep.subr.bf16.mxu0 %v15003_v18 }
 0xc76   : > { %v7003_v27 = vadd.f32 %v7002_v1, %v14922_v22  ;;  %v7004_v21 = vpop.f32.mrb[94].mxu1  ;;  %7478 = vmatprep.mubr.bf16.mxu0 %v7166_v3 }
 0xc77   : > { %v7117_v13 = vmax.f32 %v7001_v61, 0.0  ;;  %v7005_v2 = vadd.f32 %v7004_v21, %v14919_v31  ;;  %v7006_v19 = vpop.f32.mrb[95].mxu1  ;;  %7479 = vmatmul.mubr.bf16.gmra.mrb[152].mxu0 %v7165_v32 }
 0xc78   : > { %v7118_v51 = vmax.f32 %v7003_v27, 0.0  ;;  %v7007_v7 = vadd.f32 %v7006_v19, %v14922_v22  ;;  %7895 = vmatpush1.bf16.msra.mxu0 %v15011_v23 }
 0xc79   : > { %v7119_v53 = vmax.f32 %v7005_v2, 0.0  ;;  %7896 = vmatprep.subr.bf16.mxu0 %v15013_v55 }
 0xc7a   : > { %v7120_v28 = vmax.f32 %v7007_v7, 0.0 }
 0xc7b   : > { %v7167_v48 = vpack.c.bf16 %v7119_v53, %v7117_v13 }
 0xc7c   : > { %v7168_v18 = vpack.c.bf16 %v7120_v28, %v7118_v51  ;;  %v7010_v24 = vpop.f32.mrb[96].mxu1  ;;  %7897 = vmatpush1.bf16.msra.mxu0 %v11958_v17 }
 0xc7d   : > { %v7011_v10 = vadd.f32 %v7010_v24, %v14919_v31  ;;  %v7012_v49 = vpop.f32.mrb[97].mxu1  ;;  %7898 = vmatprep.subr.bf16.mxu0 %v11963_v43 }
 0xc7e   : > { %v7013_v29 = vadd.f32 %v7012_v49, %v14922_v22  ;;  %v7014_v14 = vpop.f32.mrb[98].mxu1  ;;  %7488 = vmatprep.mubr.bf16.mxu0 %v7168_v18 }
 0xc7f   : > { %v7121_v32 = vmax.f32 %v7011_v10, 0.0  ;;  %v7015_v3 = vadd.f32 %v7014_v14, %v14919_v31  ;;  %v7016_v23 = vpop.f32.mrb[99].mxu1  ;;  %7489 = vmatmul.mubr.bf16.gmra.mrb[156].mxu0 %v7167_v48 }
 0xc80   : > { %v7122_v26 = vmax.f32 %v7013_v29, 0.0  ;;  %v7017_v55 = vadd.f32 %v7016_v23, %v14922_v22  ;;  %7899 = vmatpush1.bf16.msra.mxu0 %v11961_v15 }
 0xc81   : > { %v7123_v61 = vmax.f32 %v7015_v3, 0.0 }
 0xc82   : > { %v7124_v1 = vmax.f32 %v7017_v55, 0.0 }
 0xc83   : > { %v7169_v17 = vpack.c.bf16 %v7123_v61, %v7121_v32 }
 0xc84   : > { %v7170_v27 = vpack.c.bf16 %v7124_v1, %v7122_v26  ;;  %v7020_v21 = vpop.f32.mrb[100].mxu1 }
 0xc85   : > { %v7021_v43 = vadd.f32 %v7020_v21, %v14919_v31  ;;  %v7022_v13 = vpop.f32.mrb[101].mxu1 }
 0xc86   : > { %v7023_v2 = vadd.f32 %v7022_v13, %v14922_v22  ;;  %v7024_v19 = vpop.f32.mrb[102].mxu1  ;;  %7498 = vmatprep.mubr.bf16.mxu0 %v7170_v27 }
 0xc87   : > { %v7125_v51 = vmax.f32 %v7021_v43, 0.0  ;;  %v7025_v7 = vadd.f32 %v7024_v19, %v14919_v31  ;;  %v7026_v53 = vpop.f32.mrb[103].mxu1  ;;  %7499 = vmatmul.mubr.bf16.gmra.mrb[160].mxu0 %v7169_v17 }
 0xc88   : > { %v7126_v28 = vmax.f32 %v7023_v2, 0.0  ;;  %v7027_v15 = vadd.f32 %v7026_v53, %v14922_v22 }
 0xc89   : > { %v7127_v48 = vmax.f32 %v7025_v7, 0.0 }
 0xc8a   : > { %v7128_v18 = vmax.f32 %v7027_v15, 0.0 }
 0xc8b   : > { %v7171_v24 = vpack.c.bf16 %v7127_v48, %v7125_v51 }
 0xc8c   : > { %v7172_v10 = vpack.c.bf16 %v7128_v18, %v7126_v28  ;;  %v7030_v49 = vpop.f32.mrb[104].mxu1 }
 0xc8d   : > { %v7031_v29 = vadd.f32 %v7030_v49, %v14919_v31  ;;  %v7032_v14 = vpop.f32.mrb[105].mxu1 }
 0xc8e   : > { %v7033_v32 = vadd.f32 %v7032_v14, %v14922_v22  ;;  %v7034_v3 = vpop.f32.mrb[106].mxu1  ;;  %7508 = vmatprep.mubr.bf16.mxu0 %v7172_v10 }
 0xc8f   : > { %v7129_v23 = vmax.f32 %v7031_v29, 0.0  ;;  %v7035_v26 = vadd.f32 %v7034_v3, %v14919_v31  ;;  %v7036_v55 = vpop.f32.mrb[107].mxu1  ;;  %7509 = vmatmul.mubr.bf16.gmra.mrb[164].mxu0 %v7171_v24 }
 0xc90   : > { %v7130_v61 = vmax.f32 %v7033_v32, 0.0  ;;  %v7037_v1 = vadd.f32 %v7036_v55, %v14922_v22 }
 0xc91   : > { %v7131_v17 = vmax.f32 %v7035_v26, 0.0 }
 0xc92   : > { %v7132_v27 = vmax.f32 %v7037_v1, 0.0 }
 0xc93   : > { %v7173_v21 = vpack.c.bf16 %v7131_v17, %v7129_v23  ;;  %v11966_v17 = vld [vmem:[#allocation6 + $0x4f4] ss:$8 sps:$4 sm:$0xff]  }
 0xc94   : > { %v7174_v43 = vpack.c.bf16 %v7132_v27, %v7130_v61  ;;  %v7040_v13 = vpop.f32.mrb[108].mxu1  ;;  %7900 = vmatprep.subr.bf16.mxu0 %v11966_v17  ;;  %10932 = vmatprep.subr.bf16.mxu1 %v11966_v17 }
 0xc95   : > { %v7041_v2 = vadd.f32 %v7040_v13, %v14919_v31  ;;  %v7042_v19 = vpop.f32.mrb[109].mxu1 }
 0xc96   : > { %v7043_v51 = vadd.f32 %v7042_v19, %v14922_v22  ;;  %v7044_v7 = vpop.f32.mrb[110].mxu1  ;;  %7518 = vmatprep.mubr.bf16.mxu0 %v7174_v43  ;;  %v11964_v43 = vld [vmem:[#allocation6 + $0x4f0] ss:$8 sps:$4 sm:$0xff]  }
 0xc97   : > { %v7133_v53 = vmax.f32 %v7041_v2, 0.0  ;;  %v7045_v28 = vadd.f32 %v7044_v7, %v14919_v31  ;;  %v7046_v15 = vpop.f32.mrb[111].mxu1  ;;  %7519 = vmatmul.mubr.bf16.gmra.mrb[168].mxu0 %v7173_v21  ;;  %10948 = vmatpush1.bf16.msra.mxu1 %v11964_v43 }
 0xc98   : > { %v7134_v48 = vmax.f32 %v7043_v51, 0.0  ;;  %v7047_v18 = vadd.f32 %v7046_v15, %v14922_v22  ;;  %7901 = vmatpush1.bf16.msra.mxu0 %v11964_v43 }
 0xc99   : > { %v7135_v24 = vmax.f32 %v7045_v28, 0.0 }
 0xc9a   : > { %v7136_v10 = vmax.f32 %v7047_v18, 0.0 }
 0xc9b   : > { %v7175_v49 = vpack.c.bf16 %v7135_v24, %v7133_v53 }
 0xc9c   : > { %v7176_v29 = vpack.c.bf16 %v7136_v10, %v7134_v48  ;;  %v7050_v14 = vpop.f32.mrb[112].mxu1 }
 0xc9d   : > { %v7051_v32 = vadd.f32 %v7050_v14, %v14919_v31  ;;  %v7052_v3 = vpop.f32.mrb[113].mxu1 }
 0xc9e   : > { %v7053_v23 = vadd.f32 %v7052_v3, %v14922_v22  ;;  %v7054_v26 = vpop.f32.mrb[114].mxu1  ;;  %7528 = vmatprep.mubr.bf16.mxu0 %v7176_v29 }
 0xc9f   : > { %v7137_v55 = vmax.f32 %v7051_v32, 0.0  ;;  %v7055_v61 = vadd.f32 %v7054_v26, %v14919_v31  ;;  %v7056_v1 = vpop.f32.mrb[115].mxu1  ;;  %7529 = vmatmul.mubr.bf16.gmra.mrb[172].mxu0 %v7175_v49  ;;  %v7676_v32 = vld [vmem:[%s15907_s9 + $0x8] sm:$0xff] }
 0xca0   : > { %v7138_v27 = vmax.f32 %v7053_v23, 0.0  ;;  %v7057_v21 = vadd.f32 %v7056_v1, %v14922_v22  ;;  %8063 = vmatprep.subr.mxu0 %v7676_v32 }
 0xca1   : > { %v7139_v13 = vmax.f32 %v7055_v61, 0.0 }
 0xca2   : > { %v7140_v2 = vmax.f32 %v7057_v21, 0.0 }
 0xca3   : > { %v7177_v19 = vpack.c.bf16 %v7139_v13, %v7137_v55 }
 0xca4   : > { %v7178_v51 = vpack.c.bf16 %v7140_v2, %v7138_v27  ;;  %v7060_v7 = vpop.f32.mrb[116].mxu1 }
 0xca5   : > { %v7061_v53 = vadd.f32 %v7060_v7, %v14919_v31  ;;  %v7062_v28 = vpop.f32.mrb[117].mxu1 }
 0xca6   : > { %v7063_v15 = vadd.f32 %v7062_v28, %v14922_v22  ;;  %v7064_v48 = vpop.f32.mrb[118].mxu1  ;;  %7538 = vmatprep.mubr.bf16.mxu0 %v7178_v51 }
 0xca7   : > { %v7141_v18 = vmax.f32 %v7061_v53, 0.0  ;;  %v7065_v24 = vadd.f32 %v7064_v48, %v14919_v31  ;;  %v7066_v10 = vpop.f32.mrb[119].mxu1  ;;  %7539 = vmatmul.mubr.bf16.gmra.mrb[176].mxu0 %v7177_v19 }
 0xca8   : > { %v7142_v49 = vmax.f32 %v7063_v15, 0.0  ;;  %v7067_v29 = vadd.f32 %v7066_v10, %v14922_v22 }
 0xca9   : > { %v7143_v14 = vmax.f32 %v7065_v24, 0.0 }
 0xcaa   : > { %v7144_v3 = vmax.f32 %v7067_v29, 0.0 }
 0xcab   : > { %v7179_v23 = vpack.c.bf16 %v7143_v14, %v7141_v18 }
 0xcac   : > { %v7180_v26 = vpack.c.bf16 %v7144_v3, %v7142_v49  ;;  %v7070_v55 = vpop.f32.mrb[120].mxu1 }
 0xcad   : > { %v7071_v61 = vadd.f32 %v7070_v55, %v14919_v31  ;;  %v7072_v1 = vpop.f32.mrb[121].mxu1 }
 0xcae   : > { %v7073_v17 = vadd.f32 %v7072_v1, %v14922_v22  ;;  %v7074_v27 = vpop.f32.mrb[122].mxu1  ;;  %7548 = vmatprep.mubr.bf16.mxu0 %v7180_v26  ;;  %v7220_v1 = vsub.s32 4, %v14679_v50 }
 0xcaf   : > { %v7145_v21 = vmax.f32 %v7071_v61, 0.0  ;;  %v7075_v43 = vadd.f32 %v7074_v27, %v14919_v31  ;;  %v7076_v13 = vpop.f32.mrb[123].mxu1  ;;  %7549 = vmatmul.mubr.bf16.gmra.mrb[180].mxu0 %v7179_v23 }
 0xcb0   : > { %v7146_v2 = vmax.f32 %v7073_v17, 0.0  ;;  %v7077_v19 = vadd.f32 %v7076_v13, %v14922_v22  ;;  %v15080_v17 = vld [vmem:[%s15909_s11] sm:$0xff] }
 0xcb1   : > { %v7147_v51 = vmax.f32 %v7075_v43, 0.0 }
 0xcb2   : > { %v7148_v7 = vmax.f32 %v7077_v19, 0.0 }
 0xcb3   : > { %v7181_v53 = vpack.c.bf16 %v7147_v51, %v7145_v21 }
 0xcb4   : > { %v7182_v28 = vpack.c.bf16 %v7148_v7, %v7146_v2  ;;  %v7080_v15 = vpop.f32.mrb[124].mxu1 }
 0xcb5   : > { %v7081_v48 = vadd.f32 %v7080_v15, %v14919_v31  ;;  %v7082_v18 = vpop.f32.mrb[125].mxu1 }
 0xcb6   : > { %v7083_v24 = vadd.f32 %v7082_v18, %v14922_v22  ;;  %v7084_v10 = vpop.f32.mrb[126].mxu1  ;;  %7558 = vmatprep.mubr.bf16.mxu0 %v7182_v28 }
 0xcb7   : > { %v7149_v49 = vmax.f32 %v7081_v48, 0.0  ;;  %v7085_v29 = vadd.f32 %v7084_v10, %v14919_v31  ;;  %v7086_v14 = vpop.f32.mrb[127].mxu1  ;;  %7559 = vmatmul.mubr.bf16.gmra.mrb[184].mxu0 %v7181_v53  ;;  %v15083_v31 = vrot.slane %v15080_v17, %v7220_v1 }
 0xcb8   : > { %v7150_v32 = vmax.f32 %v7083_v24, 0.0  ;;  %v7087_v3 = vadd.f32 %v7086_v14, %v14922_v22  ;;  %v15088_v22 = vld [vmem:[%s15909_s11 + $0x8] sm:$0xff] }
 0xcb9   : > { %v7151_v23 = vmax.f32 %v7085_v29, 0.0  ;;  %v15091_v27 = vrot.slane %v15088_v22, %v7220_v1 }
 0xcba   : > { %v7152_v26 = vmax.f32 %v7087_v3, 0.0 }
 0xcbb   : > { %v7183_v55 = vpack.c.bf16 %v7151_v23, %v7149_v49 }
 0xcbc   : > { %v7184_v61 = vpack.c.bf16 %v7152_v26, %v7150_v32  ;;  %v7675_v32 = vld [vmem:[%s15907_s9] sm:$0xff] }
 0xcbe   : > { %7568 = vmatprep.mubr.bf16.mxu0 %v7184_v61 }
 0xcbf   : > { %7569 = vmatmul.mubr.bf16.gmra.mrb[188].mxu0 %v7183_v55 }
 0xd1a   : > { %v7420_v21 = vpop.f32.mrb[128].mxu0 }
 0xd1b   : > { %v7421_v43 = vadd.f32 %v7420_v21, %v15083_v31  ;;  %v7422_v13 = vpop.f32.mrb[129].mxu0 }
 0xd1c   : > { %v7423_v2 = vadd.f32 %v7422_v13, %v15091_v27  ;;  %v7424_v19 = vpop.f32.mrb[130].mxu0 }
 0xd1d   : > { %v7425_v51 = vadd.f32 %v7424_v19, %v15083_v31  ;;  %v7426_v7 = vpop.f32.mrb[131].mxu0  ;;  %v7579_v28 = vmax.f32 %v7421_v43, 0.0 }
 0xd1e   : > { %v7427_v53 = vadd.f32 %v7426_v7, %v15091_v27  ;;  %v7580_v48 = vmax.f32 %v7423_v2, 0.0 }
 0xd1f   : > { %v7581_v15 = vmax.f32 %v7425_v51, 0.0 }
 0xd20   : > { %v7582_v18 = vmax.f32 %v7427_v53, 0.0 }
 0xd21   : > { %v7643_v24 = vpack.c.bf16 %v7581_v15, %v7579_v28 }
 0xd22   : > { %v7644_v10 = vpack.c.bf16 %v7582_v18, %v7580_v48  ;;  %v7430_v49 = vpop.f32.mrb[132].mxu0 }
 0xd23   : > { %v7431_v29 = vadd.f32 %v7430_v49, %v15083_v31  ;;  %v7432_v14 = vpop.f32.mrb[133].mxu0 }
 0xd24   : > { %v7433_v3 = vadd.f32 %v7432_v14, %v15091_v27  ;;  %v7434_v23 = vpop.f32.mrb[134].mxu0  ;;  %7902 = vmatprep.mubr.bf16.mxu0 %v7644_v10 }
 0xd25   : > { %v7435_v26 = vadd.f32 %v7434_v23, %v15083_v31  ;;  %v7436_v55 = vpop.f32.mrb[135].mxu0  ;;  %7903 = vmatmul.mubr.bf16.vlgmr.msra.gmra.mrb[192].mxu0 %v7643_v24  ;;  %v7583_v1 = vmax.f32 %v7431_v29, 0.0 }
 0xd26   : > { %v7437_v61 = vadd.f32 %v7436_v55, %v15091_v27  ;;  %8064 = vmatpush1.msra.mxu0 %v7675_v32  ;;  %v7584_v43 = vmax.f32 %v7433_v3, 0.0 }
 0xd27   : > { %v7585_v21 = vmax.f32 %v7435_v26, 0.0 }
 0xd28   : > { %v7586_v13 = vmax.f32 %v7437_v61, 0.0 }
 0xd29   : > { %v7645_v2 = vpack.c.bf16 %v7585_v21, %v7583_v1 }
 0xd2a   : > { %v7646_v19 = vpack.c.bf16 %v7586_v13, %v7584_v43  ;;  %v7440_v51 = vpop.f32.mrb[136].mxu0 }
 0xd2b   : > { %v7441_v7 = vadd.f32 %v7440_v51, %v15083_v31  ;;  %v7442_v53 = vpop.f32.mrb[137].mxu0 }
 0xd2c   : > { %v7443_v28 = vadd.f32 %v7442_v53, %v15091_v27  ;;  %v7444_v15 = vpop.f32.mrb[138].mxu0  ;;  %7912 = vmatprep.mubr.bf16.mxu0 %v7646_v19 }
 0xd2d   : > { %v7445_v48 = vadd.f32 %v7444_v15, %v15083_v31  ;;  %v7446_v18 = vpop.f32.mrb[139].mxu0  ;;  %7913 = vmatmul.mubr.bf16.gmra.mrb[196].mxu0 %v7645_v2  ;;  %v7587_v10 = vmax.f32 %v7441_v7, 0.0  ;;  %v11969_v2 = vld [vmem:[#allocation6 + $0x504] ss:$8 sps:$4 sm:$0xff]   ;;  %v16102_v7 = vmov 0.0  }
 0xd2e   : > { %v7447_v24 = vadd.f32 %v7446_v18, %v15091_v27  ;;  %v7588_v29 = vmax.f32 %v7443_v28, 0.0  ;;  %8689 = vmatprep.subr.bf16.mxu1 %v11969_v2 }
 0xd2f   : > { %v7589_v49 = vmax.f32 %v7445_v48, 0.0 }
 0xd30   : > { %v7590_v14 = vmax.f32 %v7447_v24, 0.0  ;;  %v11967_v24 = vld [vmem:[#allocation6 + $0x500] ss:$8 sps:$4 sm:$0xff]  }
 0xd31   : > { %v7647_v32 = vpack.c.bf16 %v7589_v49, %v7587_v10 }
 0xd32   : > { %v7648_v3 = vpack.c.bf16 %v7590_v14, %v7588_v29  ;;  %v7450_v23 = vpop.f32.mrb[140].mxu0  ;;  %v11972_v29 = vld [vmem:[#allocation6 + $0x514] ss:$8 sps:$4 sm:$0xff]  }
 0xd33   : > { %v7451_v26 = vadd.f32 %v7450_v23, %v15083_v31  ;;  %v7452_v55 = vpop.f32.mrb[141].mxu0 }
 0xd34   : > { %v7453_v61 = vadd.f32 %v7452_v55, %v15091_v27  ;;  %7922 = vmatprep.mubr.bf16.mxu0 %v7648_v3  ;;  %v7454_v1 = vpop.f32.mrb[142].mxu0 }
 0xd35   : > { %v7591_v21 = vmax.f32 %v7451_v26, 0.0  ;;  %v7455_v43 = vadd.f32 %v7454_v1, %v15083_v31  ;;  %7923 = vmatmul.mubr.bf16.gmra.mrb[200].mxu0 %v7647_v32  ;;  %v7456_v13 = vpop.f32.mrb[143].mxu0  ;;  %v11970_v1 = vld [vmem:[#allocation6 + $0x510] ss:$8 sps:$4 sm:$0xff]  }
 0xd36   : > { %v7592_v19 = vmax.f32 %v7453_v61, 0.0  ;;  %v7457_v51 = vadd.f32 %v7456_v13, %v15091_v27  ;;  %8127 = vmatprep.mubr.f32.mxu0 %v16102_v7 }
 0xd37   : > { %v7593_v53 = vmax.f32 %v7455_v43, 0.0  ;;  %v11975_v43 = vld [vmem:[#allocation6 + $0x524] ss:$8 sps:$4 sm:$0xff]  }
 0xd38   : > { %v7594_v28 = vmax.f32 %v7457_v51, 0.0 }
 0xd39   : > { %v7649_v15 = vpack.c.bf16 %v7593_v53, %v7591_v21 }
 0xd3a   : > { %v7650_v48 = vpack.c.bf16 %v7594_v28, %v7592_v19  ;;  %v7460_v18 = vpop.f32.mrb[144].mxu0 }
 0xd3b   : > { %v7461_v10 = vadd.f32 %v7460_v18, %v15083_v31  ;;  %v7462_v49 = vpop.f32.mrb[145].mxu0 }
 0xd3c   : > { %v7463_v14 = vadd.f32 %v7462_v49, %v15091_v27  ;;  %v7464_v32 = vpop.f32.mrb[146].mxu0  ;;  %7932 = vmatprep.mubr.bf16.mxu1 %v7650_v48 }
 0xd3d   : > { %v7595_v3 = vmax.f32 %v7461_v10, 0.0  ;;  %v7465_v23 = vadd.f32 %v7464_v32, %v15083_v31  ;;  %10546 = vmatmul.mubr.msk.f32.vlgmr.msra.gmra.mrb[204].mxu0 %vm5266_vm3, %v14311_v6  ;;  %v7466_v26 = vpop.f32.mrb[147].mxu0  ;;  %7933 = vmatmul.mubr.bf16.vlgmr.msra.gmra.mrb[128].mxu1 %v7649_v15  ;;  %v11973_v6 = vld [vmem:[#allocation6 + $0x520] ss:$8 sps:$4 sm:$0xff]   ;;  %v11978_v15 = vld [vmem:[#allocation6 + $0x534] ss:$8 sps:$4 sm:$0xff]  }
 0xd3e   : > { %v7596_v55 = vmax.f32 %v7463_v14, 0.0  ;;  %v7467_v61 = vadd.f32 %v7466_v26, %v15091_v27  ;;  %8133 = vmatprep.mubr.f32.mxu0 %v16102_v7  ;;  %8690 = vmatpush1.bf16.msra.mxu1 %v11967_v24  ;;  %v11976_v14 = vld [vmem:[#allocation6 + $0x530] ss:$8 sps:$4 sm:$0xff]  }
 0xd3f   : > { %v7597_v21 = vmax.f32 %v7465_v23, 0.0  ;;  %8691 = vmatprep.subr.bf16.mxu1 %v11972_v29 }
 0xd40   : > { %v7598_v13 = vmax.f32 %v7467_v61, 0.0 }
 0xd41   : > { %v7651_v2 = vpack.c.bf16 %v7597_v21, %v7595_v3  ;;  %10547 = vmatmul.mubr.msk.f32.gmra.mrb[206].mxu0 %vm5266_vm3, %v14317_v8  ;;  %v11981_v3 = vld [vmem:[#allocation6 + $0x544] ss:$8 sps:$4 sm:$0xff]  }
 0xd42   : > { %v7652_v19 = vpack.c.bf16 %v7598_v13, %v7596_v55  ;;  %v7470_v51 = vpop.f32.mrb[148].mxu0  ;;  %8139 = vmatprep.mubr.f32.mxu0 %v16102_v7  ;;  %8692 = vmatpush1.bf16.msra.mxu1 %v11970_v1 }
 0xd43   : > { %v7471_v53 = vadd.f32 %v7470_v51, %v15083_v31  ;;  %v7472_v28 = vpop.f32.mrb[149].mxu0  ;;  %8693 = vmatprep.subr.bf16.mxu1 %v11975_v43  ;;  %v11984_v43 = vld [vmem:[#allocation6 + $0x554] ss:$8 sps:$4 sm:$0xff]  }
 0xd44   : > { %v7473_v48 = vadd.f32 %v7472_v28, %v15091_v27  ;;  %v7474_v18 = vpop.f32.mrb[150].mxu0  ;;  %7942 = vmatprep.mubr.bf16.mxu1 %v7652_v19  ;;  %v11982_v28 = vld [vmem:[#allocation6 + $0x550] ss:$8 sps:$4 sm:$0xff]  }
 0xd45   : > { %v7599_v24 = vmax.f32 %v7471_v53, 0.0  ;;  %v7475_v10 = vadd.f32 %v7474_v18, %v15083_v31  ;;  %10548 = vmatmul.mubr.msk.f32.gmra.mrb[208].mxu0 %vm5266_vm3, %v14328_v36  ;;  %v7476_v8 = vpop.f32.mrb[151].mxu0  ;;  %7943 = vmatmul.mubr.bf16.gmra.mrb[132].mxu1 %v7651_v2  ;;  %v11979_v36 = vld [vmem:[#allocation6 + $0x540] ss:$8 sps:$4 sm:$0xff]  }
 0xd46   : > { %v7600_v49 = vmax.f32 %v7473_v48, 0.0  ;;  %v7477_v29 = vadd.f32 %v7476_v8, %v15091_v27  ;;  %8145 = vmatprep.mubr.f32.mxu0 %v16102_v7  ;;  %8694 = vmatpush1.bf16.msra.mxu1 %v11973_v6  ;;  %v11987_v48 = vld [vmem:[#allocation6 + $0x564] ss:$8 sps:$4 sm:$0xff]  }
 0xd47   : > { %v7601_v32 = vmax.f32 %v7475_v10, 0.0  ;;  %8695 = vmatprep.subr.bf16.mxu1 %v11978_v15 }
 0xd48   : > { %v7602_v23 = vmax.f32 %v7477_v29, 0.0 }
 0xd49   : > { %v7653_v26 = vpack.c.bf16 %v7601_v32, %v7599_v24  ;;  %10549 = vmatmul.mubr.msk.f32.gmra.mrb[210].mxu0 %vm5266_vm3, %v14339_v54 }
 0xd4a   : > { %v7654_v55 = vpack.c.bf16 %v7602_v23, %v7600_v49  ;;  %v7480_v61 = vpop.f32.mrb[152].mxu0  ;;  %8151 = vmatprep.mubr.f32.mxu0 %v16102_v7  ;;  %8696 = vmatpush1.bf16.msra.mxu1 %v11976_v14  ;;  %v11990_v14 = vld [vmem:[#allocation6 + $0x574] ss:$8 sps:$4 sm:$0xff]  }
 0xd4b   : > { %v7481_v1 = vadd.f32 %v7480_v61, %v15083_v31  ;;  %v7482_v21 = vpop.f32.mrb[153].mxu0  ;;  %8697 = vmatprep.subr.bf16.mxu1 %v11981_v3 }
 0xd4c   : > { %v7483_v13 = vadd.f32 %v7482_v21, %v15091_v27  ;;  %v7484_v2 = vpop.f32.mrb[154].mxu0  ;;  %7952 = vmatprep.mubr.bf16.mxu1 %v7654_v55  ;;  %v11993_v21 = vld [vmem:[#allocation6 + $0x584] ss:$8 sps:$4 sm:$0xff]  }
 0xd4d   : > { %v7603_v19 = vmax.f32 %v7481_v1, 0.0  ;;  %v7485_v51 = vadd.f32 %v7484_v2, %v15083_v31  ;;  %10550 = vmatmul.mubr.msk.f32.gmra.mrb[212].mxu0 %vm5266_vm3, %v14350_v30  ;;  %v7486_v54 = vpop.f32.mrb[155].mxu0  ;;  %7953 = vmatmul.mubr.bf16.gmra.mrb[136].mxu1 %v7653_v26  ;;  %v11985_v30 = vld [vmem:[#allocation6 + $0x560] ss:$8 sps:$4 sm:$0xff]  }
 0xd4e   : > { %v7604_v6 = vmax.f32 %v7483_v13, 0.0  ;;  %v7487_v53 = vadd.f32 %v7486_v54, %v15091_v27  ;;  %8157 = vmatprep.mubr.f32.mxu0 %v16102_v7  ;;  %8698 = vmatpush1.bf16.msra.mxu1 %v11979_v36  ;;  %v11988_v36 = vld [vmem:[#allocation6 + $0x570] ss:$8 sps:$4 sm:$0xff]  }
 0xd4f   : > { %v7605_v15 = vmax.f32 %v7485_v51, 0.0  ;;  %8699 = vmatprep.subr.bf16.mxu1 %v11984_v43 }
 0xd50   : > { %v7606_v18 = vmax.f32 %v7487_v53, 0.0 }
 0xd51   : > { %v7655_v24 = vpack.c.bf16 %v7605_v15, %v7603_v19  ;;  %10551 = vmatmul.mubr.msk.f32.gmra.mrb[214].mxu0 %vm5266_vm3, %v14361_v35 }
 0xd52   : > { %v7656_v10 = vpack.c.bf16 %v7606_v18, %v7604_v6  ;;  %v7490_v8 = vpop.f32.mrb[156].mxu0  ;;  %8163 = vmatprep.mubr.f32.mxu0 %v16102_v7  ;;  %8700 = vmatpush1.bf16.msra.mxu1 %v11982_v28  ;;  %v11996_v6 = vld [vmem:[#allocation6 + $0x594] ss:$8 sps:$4 sm:$0xff]  }
 0xd53   : > { %v7491_v49 = vadd.f32 %v7490_v8, %v15083_v31  ;;  %v7492_v29 = vpop.f32.mrb[157].mxu0  ;;  %8701 = vmatprep.subr.bf16.mxu1 %v11987_v48 }
 0xd54   : > { %v7493_v32 = vadd.f32 %v7492_v29, %v15091_v27  ;;  %v7494_v3 = vpop.f32.mrb[158].mxu0  ;;  %7962 = vmatprep.mubr.bf16.mxu1 %v7656_v10  ;;  %v11994_v10 = vld [vmem:[#allocation6 + $0x590] ss:$8 sps:$4 sm:$0xff]  }
 0xd55   : > { %v7607_v23 = vmax.f32 %v7491_v49, 0.0  ;;  %v7495_v26 = vadd.f32 %v7494_v3, %v15083_v31  ;;  %10552 = vmatmul.mubr.msk.f32.gmra.mrb[216].mxu0 %vm5266_vm3, %v14373_v60  ;;  %v7496_v35 = vpop.f32.mrb[159].mxu0  ;;  %7963 = vmatmul.mubr.bf16.gmra.mrb[140].mxu1 %v7655_v24  ;;  %v11991_v60 = vld [vmem:[#allocation6 + $0x580] ss:$8 sps:$4 sm:$0xff]  }
 0xd56   : > { %v7608_v55 = vmax.f32 %v7493_v32, 0.0  ;;  %v7497_v61 = vadd.f32 %v7496_v35, %v15091_v27  ;;  %8169 = vmatprep.mubr.f32.mxu0 %v16102_v7  ;;  %8702 = vmatpush1.bf16.msra.mxu1 %v11985_v30  ;;  %v11999_v30 = vld [vmem:[#allocation6 + $0x5a4] ss:$8 sps:$4 sm:$0xff]  }
 0xd57   : > { %v7609_v1 = vmax.f32 %v7495_v26, 0.0  ;;  %8703 = vmatprep.subr.bf16.mxu1 %v11990_v14 }
 0xd58   : > { %v7610_v43 = vmax.f32 %v7497_v61, 0.0 }
 0xd59   : > { %v7657_v13 = vpack.c.bf16 %v7609_v1, %v7607_v23  ;;  %10553 = vmatmul.mubr.msk.f32.gmra.mrb[218].mxu0 %vm5266_vm3, %v14385_v47 }
 0xd5a   : > { %v7658_v2 = vpack.c.bf16 %v7610_v43, %v7608_v55  ;;  %v7500_v19 = vpop.f32.mrb[160].mxu0  ;;  %8175 = vmatprep.mubr.f32.mxu0 %v16102_v7  ;;  %8704 = vmatpush1.bf16.msra.mxu1 %v11988_v36 }
 0xd5b   : > { %v7501_v51 = vadd.f32 %v7500_v19, %v15083_v31  ;;  %v7502_v54 = vpop.f32.mrb[161].mxu0  ;;  %8705 = vmatprep.subr.bf16.mxu1 %v11993_v21 }
 0xd5c   : > { %v7503_v53 = vadd.f32 %v7502_v54, %v15091_v27  ;;  %v7504_v28 = vpop.f32.mrb[162].mxu0  ;;  %7972 = vmatprep.mubr.bf16.mxu1 %v7658_v2 }
 0xd5d   : > { %v7611_v15 = vmax.f32 %v7501_v51, 0.0  ;;  %v7505_v48 = vadd.f32 %v7504_v28, %v15083_v31  ;;  %10554 = vmatmul.mubr.msk.f32.gmra.mrb[220].mxu0 %vm5266_vm3, %v14397_v41  ;;  %v7506_v47 = vpop.f32.mrb[163].mxu0  ;;  %7973 = vmatmul.mubr.bf16.gmra.mrb[144].mxu1 %v7657_v13  ;;  %v11997_v41 = vld [vmem:[#allocation6 + $0x5a0] ss:$8 sps:$4 sm:$0xff]  }
 0xd5e   : > { %v7612_v18 = vmax.f32 %v7503_v53, 0.0  ;;  %v7507_v24 = vadd.f32 %v7506_v47, %v15091_v27  ;;  %8181 = vmatprep.mubr.f32.mxu0 %v16102_v7  ;;  %8706 = vmatpush1.bf16.msra.mxu1 %v11991_v60 }
 0xd5f   : > { %v7613_v8 = vmax.f32 %v7505_v48, 0.0  ;;  %8707 = vmatprep.subr.bf16.mxu1 %v11996_v6 }
 0xd60   : > { %v7614_v49 = vmax.f32 %v7507_v24, 0.0 }
 0xd61   : > { %v7659_v29 = vpack.c.bf16 %v7613_v8, %v7611_v15  ;;  %10555 = vmatmul.mubr.msk.f32.gmra.mrb[222].mxu0 %vm5266_vm3, %v14409_v12 }
 0xd62   : > { %v7660_v14 = vpack.c.bf16 %v7614_v49, %v7612_v18  ;;  %v7510_v32 = vpop.f32.mrb[164].mxu0  ;;  %8187 = vmatprep.mubr.f32.mxu0 %v16102_v7  ;;  %8708 = vmatpush1.bf16.msra.mxu1 %v11994_v10 }
 0xd63   : > { %v7511_v3 = vadd.f32 %v7510_v32, %v15083_v31  ;;  %v7512_v23 = vpop.f32.mrb[165].mxu0  ;;  %8709 = vmatprep.subr.bf16.mxu1 %v11999_v30 }
 0xd64   : > { %v7513_v26 = vadd.f32 %v7512_v23, %v15091_v27  ;;  %v7514_v35 = vpop.f32.mrb[166].mxu0  ;;  %7982 = vmatprep.mubr.bf16.mxu1 %v7660_v14 }
 0xd65   : > { %v7615_v55 = vmax.f32 %v7511_v3, 0.0  ;;  %v7515_v61 = vadd.f32 %v7514_v35, %v15083_v31  ;;  %10556 = vmatmul.mubr.msk.f32.gmra.mrb[224].mxu0 %vm5266_vm3, %v14421_v11  ;;  %v7516_v12 = vpop.f32.mrb[167].mxu0  ;;  %7983 = vmatmul.mubr.bf16.gmra.mrb[148].mxu1 %v7659_v29 }
 0xd66   : > { %v7616_v36 = vmax.f32 %v7513_v26, 0.0  ;;  %v7517_v1 = vadd.f32 %v7516_v12, %v15091_v27  ;;  %8193 = vmatprep.mubr.f32.mxu0 %v16102_v7  ;;  %8710 = vmatpush1.bf16.msra.mxu1 %v11997_v41  ;;  %v12000_v12 = vld [vmem:[#allocation6 + $0x5b0] ss:$8 sps:$4 sm:$0xff]  }
 0xd67   : > { %v7617_v21 = vmax.f32 %v7515_v61, 0.0 }
 0xd68   : > { %v7618_v43 = vmax.f32 %v7517_v1, 0.0 }
 0xd69   : > { %v7661_v13 = vpack.c.bf16 %v7617_v21, %v7615_v55  ;;  %10557 = vmatmul.mubr.msk.f32.gmra.mrb[226].mxu0 %vm5266_vm3, %v14433_v16 }
 0xd6a   : > { %v7662_v2 = vpack.c.bf16 %v7618_v43, %v7616_v36  ;;  %v7520_v19 = vpop.f32.mrb[168].mxu0  ;;  %8199 = vmatprep.mubr.f32.mxu0 %v16102_v7  ;;  %v12002_v36 = vld [vmem:[#allocation6 + $0x5b4] ss:$8 sps:$4 sm:$0xff]  }
 0xd6b   : > { %v7521_v11 = vadd.f32 %v7520_v19, %v15083_v31  ;;  %v7522_v60 = vpop.f32.mrb[169].mxu0  ;;  %8711 = vmatprep.subr.bf16.mxu1 %v12002_v36 }
 0xd6c   : > { %v7523_v51 = vadd.f32 %v7522_v60, %v15091_v27  ;;  %v7524_v54 = vpop.f32.mrb[170].mxu0  ;;  %7992 = vmatprep.mubr.bf16.mxu1 %v7662_v2  ;;  %8712 = vmatpush1.bf16.msra.mxu1 %v12000_v12 }
 0xd6d   : > { %v7619_v6 = vmax.f32 %v7521_v11, 0.0  ;;  %v7525_v53 = vadd.f32 %v7524_v54, %v15083_v31  ;;  %10558 = vmatmul.mubr.msk.f32.gmra.mrb[228].mxu0 %vm5266_vm3, %v14445_v20  ;;  %v7526_v28 = vpop.f32.mrb[171].mxu0  ;;  %7993 = vmatmul.mubr.bf16.gmra.mrb[152].mxu1 %v7661_v13 }
 0xd6e   : > { %v7620_v16 = vmax.f32 %v7523_v51, 0.0  ;;  %v7527_v15 = vadd.f32 %v7526_v28, %v15091_v27  ;;  %8205 = vmatprep.mubr.f32.mxu0 %v16102_v7  ;;  %v12003_v28 = vld [vmem:[#allocation6 + $0x5c0] ss:$8 sps:$4 sm:$0xff]  }
 0xd6f   : > { %v7621_v48 = vmax.f32 %v7525_v53, 0.0 }
 0xd70   : > { %v7622_v47 = vmax.f32 %v7527_v15, 0.0 }
 0xd71   : > { %v7663_v18 = vpack.c.bf16 %v7621_v48, %v7619_v6  ;;  %10559 = vmatmul.mubr.msk.f32.gmra.mrb[230].mxu0 %vm5266_vm3, %v14457_v25 }
 0xd72   : > { %v7664_v24 = vpack.c.bf16 %v7622_v47, %v7620_v16  ;;  %v7530_v10 = vpop.f32.mrb[172].mxu0  ;;  %8211 = vmatprep.mubr.f32.mxu0 %v16102_v7  ;;  %v12005_v16 = vld [vmem:[#allocation6 + $0x5c4] ss:$8 sps:$4 sm:$0xff]  }
 0xd73   : > { %v7531_v8 = vadd.f32 %v7530_v10, %v15083_v31  ;;  %v7532_v20 = vpop.f32.mrb[173].mxu0  ;;  %8713 = vmatprep.subr.bf16.mxu1 %v12005_v16 }
 0xd74   : > { %v7533_v30 = vadd.f32 %v7532_v20, %v15091_v27  ;;  %v7534_v49 = vpop.f32.mrb[174].mxu0  ;;  %8002 = vmatprep.mubr.bf16.mxu1 %v7664_v24  ;;  %8714 = vmatpush1.bf16.msra.mxu1 %v12003_v28  ;;  %v12017_v28 = vld [vmem:[#allocation6 + $0x604] ss:$8 sps:$4 sm:$0xff]  }
 0xd75   : > { %v7623_v29 = vmax.f32 %v7531_v8, 0.0  ;;  %v7535_v14 = vadd.f32 %v7534_v49, %v15083_v31  ;;  %10560 = vmatmul.mubr.msk.f32.gmra.mrb[232].mxu0 %vm5266_vm3, %v14469_v4  ;;  %v7536_v32 = vpop.f32.mrb[175].mxu0  ;;  %8003 = vmatmul.mubr.bf16.gmra.mrb[156].mxu1 %v7663_v18 }
 0xd76   : > { %v7624_v25 = vmax.f32 %v7533_v30, 0.0  ;;  %v7537_v41 = vadd.f32 %v7536_v32, %v15091_v27  ;;  %8217 = vmatprep.mubr.f32.mxu0 %v16102_v7  ;;  %v12006_v32 = vld [vmem:[#allocation6 + $0x5d0] ss:$8 sps:$4 sm:$0xff]   ;;  %9179 = vmatprep.subr.bf16.mxu0 %v12017_v28 }
 0xd77   : > { %v7625_v3 = vmax.f32 %v7535_v14, 0.0 }
 0xd78   : > { %v7626_v23 = vmax.f32 %v7537_v41, 0.0 }
 0xd79   : > { %v7665_v26 = vpack.c.bf16 %v7625_v3, %v7623_v29  ;;  %10561 = vmatmul.mubr.msk.f32.gmra.mrb[234].mxu0 %vm5266_vm3, %v14481_v34 }
 0xd7a   : > { %v7666_v35 = vpack.c.bf16 %v7626_v23, %v7624_v25  ;;  %v7540_v55 = vpop.f32.mrb[176].mxu0  ;;  %8223 = vmatprep.mubr.f32.mxu0 %v16102_v7  ;;  %v12008_v25 = vld [vmem:[#allocation6 + $0x5d4] ss:$8 sps:$4 sm:$0xff]  }
 0xd7b   : > { %v7541_v61 = vadd.f32 %v7540_v55, %v15083_v31  ;;  %v7542_v4 = vpop.f32.mrb[177].mxu0  ;;  %8715 = vmatprep.subr.bf16.mxu1 %v12008_v25  ;;  %v12026_v25 = vld [vmem:[#allocation6 + $0x634] ss:$8 sps:$4 sm:$0xff]  }
 0xd7c   : > { %v7543_v1 = vadd.f32 %v7542_v4, %v15091_v27  ;;  %v7544_v21 = vpop.f32.mrb[178].mxu0  ;;  %8012 = vmatprep.mubr.bf16.mxu1 %v7666_v35  ;;  %8716 = vmatpush1.bf16.msra.mxu1 %v12006_v32 }
 0xd7d   : > { %v7627_v43 = vmax.f32 %v7541_v61, 0.0  ;;  %v7545_v13 = vadd.f32 %v7544_v21, %v15083_v31  ;;  %10562 = vmatmul.mubr.msk.f32.gmra.mrb[236].mxu0 %vm5266_vm3, %v14493_v38  ;;  %v7546_v34 = vpop.f32.mrb[179].mxu0  ;;  %8013 = vmatmul.mubr.bf16.gmra.mrb[160].mxu1 %v7665_v26 }
 0xd7e   : > { %v7628_v2 = vmax.f32 %v7543_v1, 0.0  ;;  %v7547_v19 = vadd.f32 %v7546_v34, %v15091_v27  ;;  %8229 = vmatprep.mubr.f32.mxu0 %v16102_v7 }
 0xd7f   : > { %v7629_v11 = vmax.f32 %v7545_v13, 0.0 }
 0xd80   : > { %v7630_v60 = vmax.f32 %v7547_v19, 0.0 }
 0xd81   : > { %v7667_v51 = vpack.c.bf16 %v7629_v11, %v7627_v43  ;;  %10563 = vmatmul.mubr.msk.f32.gmra.mrb[238].mxu0 %vm5266_vm3, %v14505_v39 }
 0xd82   : > { %v7668_v54 = vpack.c.bf16 %v7630_v60, %v7628_v2  ;;  %v7550_v6 = vpop.f32.mrb[180].mxu0  ;;  %8235 = vmatprep.mubr.f32.mxu0 %v16102_v7 }
 0xd83   : > { %v7551_v38 = vadd.f32 %v7550_v6, %v15083_v31  ;;  %v7552_v53 = vpop.f32.mrb[181].mxu0 }
 0xd84   : > { %v7553_v15 = vadd.f32 %v7552_v53, %v15091_v27  ;;  %v7554_v48 = vpop.f32.mrb[182].mxu0  ;;  %8022 = vmatprep.mubr.bf16.mxu1 %v7668_v54 }
 0xd85   : > { %v7631_v47 = vmax.f32 %v7551_v38, 0.0  ;;  %v7555_v18 = vadd.f32 %v7554_v48, %v15083_v31  ;;  %10564 = vmatmul.mubr.msk.f32.gmra.mrb[240].mxu0 %vm5266_vm3, %v14517_v40  ;;  %v7556_v39 = vpop.f32.mrb[183].mxu0  ;;  %8023 = vmatmul.mubr.bf16.gmra.mrb[164].mxu1 %v7667_v51  ;;  %v12009_v51 = vld [vmem:[#allocation6 + $0x5e0] ss:$8 sps:$4 sm:$0xff]   ;;  %v12020_v48 = vld [vmem:[#allocation6 + $0x614] ss:$8 sps:$4 sm:$0xff]  }
 0xd86   : > { %v7632_v24 = vmax.f32 %v7553_v15, 0.0  ;;  %v7557_v10 = vadd.f32 %v7556_v39, %v15091_v27  ;;  %8241 = vmatprep.mubr.f32.mxu0 %v16102_v7 }
 0xd87   : > { %v7633_v8 = vmax.f32 %v7555_v18, 0.0  ;;  %v8322_v18 = vsub.s32 5, %v14679_v50 }
 0xd88   : > { %v7634_v20 = vmax.f32 %v7557_v10, 0.0 }
 0xd89   : > { %v7669_v30 = vpack.c.bf16 %v7633_v8, %v7631_v47  ;;  %10565 = vmatmul.mubr.msk.f32.gmra.mrb[242].mxu0 %vm5266_vm3, %v14529_v44  ;;  %v15270_v8 = vrot.slane %v15080_v17, %v8322_v18 }
 0xd8a   : > { %v7670_v49 = vpack.c.bf16 %v7634_v20, %v7632_v24  ;;  %v7560_v29 = vpop.f32.mrb[184].mxu0  ;;  %8247 = vmatprep.mubr.f32.mxu0 %v16102_v7 }
 0xd8b   : > { %v7561_v40 = vadd.f32 %v7560_v29, %v15083_v31  ;;  %v7562_v14 = vpop.f32.mrb[185].mxu0  ;;  %v12023_v29 = vld [vmem:[#allocation6 + $0x624] ss:$8 sps:$4 sm:$0xff]  }
 0xd8c   : > { %v7563_v41 = vadd.f32 %v7562_v14, %v15091_v27  ;;  %v7564_v3 = vpop.f32.mrb[186].mxu0  ;;  %8032 = vmatprep.mubr.bf16.mxu1 %v7670_v49  ;;  %v12021_v49 = vld [vmem:[#allocation6 + $0x620] ss:$8 sps:$4 sm:$0xff]   ;;  %v15275_v14 = vrot.slane %v15088_v22, %v8322_v18 }
 0xd8d   : > { %v7635_v23 = vmax.f32 %v7561_v40, 0.0  ;;  %v7565_v26 = vadd.f32 %v7564_v3, %v15083_v31  ;;  %10566 = vmatmul.mubr.msk.f32.gmra.mrb[244].mxu0 %vm5266_vm3, %v14541_v45  ;;  %v7566_v44 = vpop.f32.mrb[187].mxu0  ;;  %8033 = vmatmul.mubr.bf16.gmra.mrb[168].mxu1 %v7669_v30 }
 0xd8e   : > { %v7636_v35 = vmax.f32 %v7563_v41, 0.0  ;;  %v7567_v55 = vadd.f32 %v7566_v44, %v15091_v27  ;;  %8253 = vmatprep.mubr.f32.mxu0 %v16102_v7 }
 0xd8f   : > { %v7637_v61 = vmax.f32 %v7565_v26, 0.0 }
 0xd90   : > { %v7638_v4 = vmax.f32 %v7567_v55, 0.0 }
 0xd91   : > { %v7671_v12 = vpack.c.bf16 %v7637_v61, %v7635_v23  ;;  %10567 = vmatmul.mubr.msk.f32.gmra.mrb[246].mxu0 %vm5266_vm3, %v14553_v46  ;;  %v12011_v46 = vld [vmem:[#allocation6 + $0x5e4] ss:$8 sps:$4 sm:$0xff]   ;;  %v12024_v23 = vld [vmem:[#allocation6 + $0x630] ss:$8 sps:$4 sm:$0xff]  }
 0xd92   : > { %v7672_v36 = vpack.c.bf16 %v7638_v4, %v7636_v35  ;;  %v7570_v1 = vpop.f32.mrb[188].mxu0  ;;  %8259 = vmatprep.mubr.f32.mxu0 %v16102_v7  ;;  %8717 = vmatprep.subr.bf16.mxu1 %v12011_v46  ;;  %v12029_v61 = vld [vmem:[#allocation6 + $0x644] ss:$8 sps:$4 sm:$0xff]  }
 0xd93   : > { %v7571_v45 = vadd.f32 %v7570_v1, %v15083_v31  ;;  %v7572_v21 = vpop.f32.mrb[189].mxu0  ;;  %8718 = vmatpush1.bf16.msra.mxu1 %v12009_v51  ;;  %v12027_v1 = vld [vmem:[#allocation6 + $0x640] ss:$8 sps:$4 sm:$0xff]  }
 0xd94   : > { %v7573_v43 = vadd.f32 %v7572_v21, %v15091_v27  ;;  %v7574_v13 = vpop.f32.mrb[190].mxu0  ;;  %8042 = vmatprep.mubr.bf16.mxu1 %v7672_v36 }
 0xd95   : > { %v7639_v34 = vmax.f32 %v7571_v45, 0.0  ;;  %v7575_v2 = vadd.f32 %v7574_v13, %v15083_v31  ;;  %10568 = vmatmul.mubr.msk.f32.gmra.mrb[248].mxu0 %vm5266_vm3, %v14580_v42  ;;  %v7576_v19 = vpop.f32.mrb[191].mxu0  ;;  %8043 = vmatmul.mubr.bf16.gmra.mrb[172].mxu1 %v7671_v12  ;;  %v12014_v31 = vld [vmem:[#allocation6 + $0x5f4] ss:$8 sps:$4 sm:$0xff]   ;;  %v12012_v42 = vld [vmem:[#allocation6 + $0x5f0] ss:$8 sps:$4 sm:$0xff]  }
 0xd96   : > { %v7640_v11 = vmax.f32 %v7573_v43, 0.0  ;;  %v7577_v60 = vadd.f32 %v7576_v19, %v15091_v27  ;;  %8265 = vmatprep.mubr.f32.mxu0 %v16102_v7  ;;  %8719 = vmatprep.subr.bf16.mxu1 %v12014_v31  ;;  %v12015_v27 = vld [vmem:[#allocation6 + $0x600] ss:$8 sps:$4 sm:$0xff]   ;;  %v12030_v31 = vld [vmem:[#allocation6 + $0x650] ss:$8 sps:$4 sm:$0xff]  }
 0xd97   : > { %v7641_v54 = vmax.f32 %v7575_v2, 0.0  ;;  %8720 = vmatpush1.bf16.msra.mxu1 %v12012_v42  ;;  %9180 = vmatpush1.bf16.msra.mxu0 %v12015_v27  ;;  %v12032_v2 = vld [vmem:[#allocation6 + $0x654] ss:$8 sps:$4 sm:$0xff]  }
 0xd98   : > { %v7642_v6 = vmax.f32 %v7577_v60, 0.0  ;;  %9181 = vmatprep.subr.bf16.mxu0 %v12020_v48 }
 0xd99   : > { %v7673_v38 = vpack.c.bf16 %v7641_v54, %v7639_v34  ;;  %10569 = vmatmul.mubr.msk.f32.gmra.mrb[250].mxu0 %vm5266_vm3, %v14587_v0 }
 0xd9a   : > { %v7674_v53 = vpack.c.bf16 %v7642_v6, %v7640_v11  ;;  %8271 = vmatprep.mubr.f32.mxu0 %v16102_v7 }
 0xd9c   : > { %8052 = vmatprep.mubr.bf16.mxu1 %v7674_v53 }
 0xd9d   : > { %10570 = vmatmul.mubr.msk.f32.gmra.mrb[252].mxu0 %vm5266_vm3, %v14594_v37  ;;  %8053 = vmatmul.mubr.bf16.gmra.mrb[176].mxu1 %v7673_v38 }
 0xd9e   : > { %8277 = vmatprep.mubr.f32.mxu0 %v16102_v7 }
 0xda1   : > { %10571 = vmatmul.mubr.msk.f32.gmra.mrb[254].mxu0 %vm5266_vm3, %v14601_v33 }
 0xda2   : > { %8283 = vmatprep.mubr.f32.mxu0 %v16102_v7 }
 0xda5   : > { %10572 = vmatmul.mubr.msk.f32.gmra.mrb[0].mxu0 %vm5266_vm3, %v14613_v58 }
 0xda6   : > { %8289 = vmatprep.mubr.f32.mxu0 %v16102_v7 }
 0xda9   : > { %10573 = vmatmul.mubr.msk.f32.gmra.mrb[2].mxu0 %vm5266_vm3, %v14625_v52 }
 0xdaa   : > { %8295 = vmatprep.mubr.f32.mxu0 %v16102_v7 }
 0xdad   : > { %10574 = vmatmul.mubr.msk.f32.gmra.mrb[4].mxu0 %vm5266_vm3, %v14637_v63 }
 0xdae   : > { %8301 = vmatprep.mubr.f32.mxu0 %v16102_v7 }
 0xdb1   : > { %10575 = vmatmul.mubr.msk.f32.gmra.mrb[6].mxu0 %vm5266_vm3, %v14649_v56 }
 0xdb2   : > { %8307 = vmatprep.mubr.f32.mxu0 %v16102_v7 }
 0xdb5   : > { %10576 = vmatmul.mubr.msk.f32.gmra.mrb[8].mxu0 %vm5266_vm3, %v14661_v57 }
 0xdb6   : > { %8313 = vmatprep.mubr.f32.mxu0 %v16102_v7  ;;  %v12018_v7 = vld [vmem:[#allocation6 + $0x610] ss:$8 sps:$4 sm:$0xff]  }
 0xdb7   : > { %9182 = vmatpush1.bf16.msra.mxu0 %v12018_v7  ;;  %v12033_v7 = vld [vmem:[#allocation6 + $0x660] ss:$8 sps:$4 sm:$0xff]  }
 0xdb8   : > { %9183 = vmatprep.subr.bf16.mxu0 %v12023_v29 }
 0xdb9   : > { %10577 = vmatmul.mubr.msk.f32.gmra.mrb[10].mxu0 %vm5266_vm3, %v14673_v62 }
 0xdbb   : > { %9184 = vmatpush1.bf16.msra.mxu0 %v12021_v49 }
 0xdbc   : > { %9185 = vmatprep.subr.bf16.mxu0 %v12026_v25 }
 0xdbf   : > { %9186 = vmatpush1.bf16.msra.mxu0 %v12024_v23 }
 0xdc0   : > { %9187 = vmatprep.subr.bf16.mxu0 %v12029_v61 }
 0xdc3   : > { %9188 = vmatpush1.bf16.msra.mxu0 %v12027_v1 }
 0xdc4   : > { %9189 = vmatprep.subr.bf16.mxu0 %v12032_v2 }
 0xdc7   : > { %9190 = vmatpush1.bf16.msra.mxu0 %v12030_v31 }
 0xdf8   : > { %v7904_v0 = vpop.f32.mrb[192].mxu0 }
 0xdf9   : > { %v7906_v37 = vpop.f32.mrb[193].mxu0 }
 0xdfa   : > { %v7908_v33 = vpop.f32.mrb[194].mxu0 }
 0xdfb   : > { %v7910_v58 = vpop.f32.mrb[195].mxu0 }
 0xe00   : > { %v7914_v52 = vpop.f32.mrb[196].mxu0 }
 0xe01   : > { %v7916_v63 = vpop.f32.mrb[197].mxu0 }
 0xe02   : > { %v7918_v16 = vpop.f32.mrb[198].mxu0 }
 0xe03   : > { %v15256_v56 = vpop.f32.mrb[199].mxu0 }
 0xe08   : > { %v15258_v15 = vpop.f32.mrb[200].mxu0 }
 0xe09   : > { %v15260_v57 = vpop.f32.mrb[201].mxu0 }
 0xe0a   : > { %v15262_v62 = vpop.f32.mrb[202].mxu0 }
 0xe0b   : > { %v15264_v47 = vpop.f32.mrb[203].mxu0 }
 0xe10   : > { %v8129_v39 = vpop.f32.mrb[204].mxu0  ;;  %v15267_v24 = vpop.f32.mrb[128].mxu1 }
 0xe11   : > { %v8130_v10 = vadd.f32 %v8129_v39, %v7904_v0  ;;  %v8131_v20 = vpop.f32.mrb[205].mxu0  ;;  %v15272_v30 = vpop.f32.mrb[129].mxu1 }
 0xe12   : > { %v8132_v40 = vadd.f32 %v8131_v20, %v7906_v37  ;;  %v15277_v32 = vpop.f32.mrb[130].mxu1  ;;  %v12035_v37 = vld [vmem:[#allocation6 + $0x664] ss:$8 sps:$4 sm:$0xff]  }
 0xe13   : > { %v15279_v41 = vpop.f32.mrb[131].mxu1  ;;  %v8328_v17 = vadd.f32 %v15270_v8, %v8130_v10  ;;  %9191 = vmatprep.subr.bf16.mxu0 %v12035_v37 }
 0xe14   : > { %v8135_v3 = vpop.f32.mrb[206].mxu0  ;;  %v8329_v35 = vadd.f32 %v15275_v14, %v8132_v40  ;;  %9192 = vmatpush1.bf16.msra.mxu0 %v12033_v7 }
 0xe15   : > { %v8136_v26 = vadd.f32 %v8135_v3, %v7908_v33  ;;  %v8137_v44 = vpop.f32.mrb[207].mxu0  ;;  %v8392_v45 = vmax.f32 %v8328_v17, 0.0 }
 0xe16   : > { %v8138_v55 = vadd.f32 %v8137_v44, %v7910_v58  ;;  %v8393_v19 = vmax.f32 %v8329_v35, 0.0 }
 0xe17   : > { %v8330_v22 = vadd.f32 %v15270_v8, %v8136_v26  ;;  %v12036_v26 = vld [vmem:[#allocation6 + $0x670] ss:$8 sps:$4 sm:$0xff]  }
 0xe18   : > { %v8331_v4 = vadd.f32 %v15275_v14, %v8138_v55  ;;  %v8141_v12 = vpop.f32.mrb[208].mxu0  ;;  %v15285_v36 = vpop.f32.mrb[132].mxu1  ;;  %v12041_v55 = vld [vmem:[#allocation6 + $0x684] ss:$8 sps:$4 sm:$0xff]  }
 0xe19   : > { %v8394_v21 = vmax.f32 %v8330_v22, 0.0  ;;  %v8142_v43 = vadd.f32 %v8141_v12, %v7914_v52  ;;  %v8143_v13 = vpop.f32.mrb[209].mxu0  ;;  %v15287_v34 = vpop.f32.mrb[133].mxu1 }
 0xe1a   : > { %v8395_v46 = vmax.f32 %v8331_v4, 0.0  ;;  %v8144_v11 = vadd.f32 %v8143_v13, %v7916_v63  ;;  %v15289_v60 = vpop.f32.mrb[134].mxu1 }
 0xe1b   : > { %v8456_v51 = vpack.c.bf16 %v8394_v21, %v8392_v45  ;;  %v15291_v54 = vpop.f32.mrb[135].mxu1  ;;  %v8332_v53 = vadd.f32 %v15270_v8, %v8142_v43  ;;  %v12039_v45 = vld [vmem:[#allocation6 + $0x680] ss:$8 sps:$4 sm:$0xff]  }
 0xe1c   : > { %v8147_v6 = vpop.f32.mrb[210].mxu0  ;;  %v8457_v38 = vpack.c.bf16 %v8395_v46, %v8393_v19  ;;  %v8333_v33 = vadd.f32 %v15275_v14, %v8144_v11 }
 0xe1d   : > { %v8148_v42 = vadd.f32 %v8147_v6, %v7918_v16  ;;  %v8149_v0 = vpop.f32.mrb[211].mxu0  ;;  %v8396_v48 = vmax.f32 %v8332_v53, 0.0 }
 0xe1e   : > { %v8150_v58 = vadd.f32 %v8149_v0, %v15256_v56  ;;  %8721 = vmatprep.mubr.bf16.mxu1 %v8457_v38  ;;  %v12038_v56 = vld [vmem:[#allocation6 + $0x674] ss:$8 sps:$4 sm:$0xff]   ;;  %v8397_v20 = vmax.f32 %v8333_v33, 0.0  ;;  %v12047_v33 = vld [vmem:[#allocation6 + $0x6a4] ss:$8 sps:$4 sm:$0xff]  }
 0xe1f   : > { %v8334_v52 = vadd.f32 %v15270_v8, %v8148_v42  ;;  %8722 = vmatmul.mubr.bf16.vlgmr.msra.gmra.mrb[180].mxu1 %v8456_v51  ;;  %9193 = vmatprep.subr.bf16.mxu0 %v12038_v56  ;;  %v12042_v42 = vld [vmem:[#allocation6 + $0x690] ss:$8 sps:$4 sm:$0xff]  }
 0xe20   : > { %v8335_v63 = vadd.f32 %v15275_v14, %v8150_v58  ;;  %v8153_v27 = vpop.f32.mrb[212].mxu0  ;;  %v15298_v28 = vpop.f32.mrb[136].mxu1  ;;  %9194 = vmatpush1.bf16.msra.mxu0 %v12036_v26 }
 0xe21   : > { %v8398_v16 = vmax.f32 %v8334_v52, 0.0  ;;  %v8154_v18 = vadd.f32 %v8153_v27, %v15258_v15  ;;  %v8155_v39 = vpop.f32.mrb[213].mxu0  ;;  %v15301_v10 = vpop.f32.mrb[137].mxu1  ;;  %9195 = vmatprep.subr.bf16.mxu0 %v12041_v55 }
 0xe22   : > { %v8399_v49 = vmax.f32 %v8335_v63, 0.0  ;;  %v8156_v29 = vadd.f32 %v8155_v39, %v15260_v57  ;;  %v15304_v40 = vpop.f32.mrb[138].mxu1 }
 0xe23   : > { %v15306_v25 = vpop.f32.mrb[139].mxu1  ;;  %v8458_v3 = vpack.c.bf16 %v8398_v16, %v8396_v48  ;;  %v8336_v15 = vadd.f32 %v15270_v8, %v8154_v18  ;;  %v12045_v48 = vld [vmem:[#allocation6 + $0x6a0] ss:$8 sps:$4 sm:$0xff]  }
 0xe24   : > { %v8159_v23 = vpop.f32.mrb[214].mxu0  ;;  %v8459_v17 = vpack.c.bf16 %v8399_v49, %v8397_v20  ;;  %v8337_v22 = vadd.f32 %v15275_v14, %v8156_v29  ;;  %9196 = vmatpush1.bf16.msra.mxu0 %v12039_v45 }
 0xe25   : > { %v8160_v44 = vadd.f32 %v8159_v23, %v15262_v62  ;;  %v8161_v35 = vpop.f32.mrb[215].mxu0  ;;  %v8400_v21 = vmax.f32 %v8336_v15, 0.0 }
 0xe26   : > { %v8162_v57 = vadd.f32 %v8161_v35, %v15264_v47  ;;  %8731 = vmatprep.mubr.bf16.mxu1 %v8459_v17  ;;  %v12044_v47 = vld [vmem:[#allocation6 + $0x694] ss:$8 sps:$4 sm:$0xff]   ;;  %v8401_v19 = vmax.f32 %v8337_v22, 0.0  ;;  %v12053_v22 = vld [vmem:[#allocation6 + $0x6c4] ss:$8 sps:$4 sm:$0xff]  }
 0xe27   : > { %v8338_v61 = vadd.f32 %v15270_v8, %v8160_v44  ;;  %8732 = vmatmul.mubr.bf16.gmra.mrb[184].mxu1 %v8458_v3  ;;  %9197 = vmatprep.subr.bf16.mxu0 %v12044_v47  ;;  %v12048_v44 = vld [vmem:[#allocation6 + $0x6b0] ss:$8 sps:$4 sm:$0xff]  }
 0xe28   : > { %v8339_v4 = vadd.f32 %v15275_v14, %v8162_v57  ;;  %v8165_v12 = vpop.f32.mrb[216].mxu0  ;;  %v15314_v1 = vpop.f32.mrb[140].mxu1  ;;  %9198 = vmatpush1.bf16.msra.mxu0 %v12042_v42 }
 0xe29   : > { %v8402_v62 = vmax.f32 %v8338_v61, 0.0  ;;  %v8166_v43 = vadd.f32 %v8165_v12, %v15267_v24  ;;  %v8167_v13 = vpop.f32.mrb[217].mxu0  ;;  %v15317_v2 = vpop.f32.mrb[141].mxu1  ;;  %9199 = vmatprep.subr.bf16.mxu0 %v12047_v33 }
 0xe2a   : > { %v8403_v46 = vmax.f32 %v8339_v4, 0.0  ;;  %v8168_v11 = vadd.f32 %v8167_v13, %v15272_v30  ;;  %v15320_v51 = vpop.f32.mrb[142].mxu1 }
 0xe2b   : > { %v15322_v6 = vpop.f32.mrb[143].mxu1  ;;  %v8460_v38 = vpack.c.bf16 %v8402_v62, %v8400_v21  ;;  %v8340_v24 = vadd.f32 %v15270_v8, %v8166_v43  ;;  %v12051_v21 = vld [vmem:[#allocation6 + $0x6c0] ss:$8 sps:$4 sm:$0xff]  }
 0xe2c   : > { %v8171_v31 = vpop.f32.mrb[218].mxu0  ;;  %v8461_v53 = vpack.c.bf16 %v8403_v46, %v8401_v19  ;;  %v8341_v58 = vadd.f32 %v15275_v14, %v8168_v11  ;;  %9200 = vmatpush1.bf16.msra.mxu0 %v12045_v48 }
 0xe2d   : > { %v8172_v0 = vadd.f32 %v8171_v31, %v15277_v32  ;;  %v8173_v37 = vpop.f32.mrb[219].mxu0  ;;  %v8404_v16 = vmax.f32 %v8340_v24, 0.0 }
 0xe2e   : > { %v8174_v30 = vadd.f32 %v8173_v37, %v15279_v41  ;;  %8741 = vmatprep.mubr.bf16.mxu1 %v8461_v53  ;;  %v12050_v41 = vld [vmem:[#allocation6 + $0x6b4] ss:$8 sps:$4 sm:$0xff]   ;;  %v8405_v20 = vmax.f32 %v8341_v58, 0.0  ;;  %v12059_v58 = vld [vmem:[#allocation6 + $0x6e4] ss:$8 sps:$4 sm:$0xff]  }
 0xe2f   : > { %v8342_v52 = vadd.f32 %v15270_v8, %v8172_v0  ;;  %8742 = vmatmul.mubr.bf16.gmra.mrb[188].mxu1 %v8460_v38  ;;  %9201 = vmatprep.subr.bf16.mxu0 %v12050_v41  ;;  %v12054_v0 = vld [vmem:[#allocation6 + $0x6d0] ss:$8 sps:$4 sm:$0xff]  }
 0xe30   : > { %v8343_v63 = vadd.f32 %v15275_v14, %v8174_v30  ;;  %v8177_v27 = vpop.f32.mrb[220].mxu0  ;;  %v15330_v7 = vpop.f32.mrb[144].mxu1  ;;  %9202 = vmatpush1.bf16.msra.mxu0 %v12048_v44 }
 0xe31   : > { %v8406_v32 = vmax.f32 %v8342_v52, 0.0  ;;  %v8178_v18 = vadd.f32 %v8177_v27, %v15285_v36  ;;  %v8179_v39 = vpop.f32.mrb[221].mxu0  ;;  %v15333_v56 = vpop.f32.mrb[145].mxu1  ;;  %9203 = vmatprep.subr.bf16.mxu0 %v12053_v22 }
 0xe32   : > { %v8407_v49 = vmax.f32 %v8343_v63, 0.0  ;;  %v8180_v29 = vadd.f32 %v8179_v39, %v15287_v34  ;;  %v15336_v3 = vpop.f32.mrb[146].mxu1 }
 0xe33   : > { %v15338_v23 = vpop.f32.mrb[147].mxu1  ;;  %v8462_v17 = vpack.c.bf16 %v8406_v32, %v8404_v16  ;;  %v8344_v36 = vadd.f32 %v15270_v8, %v8178_v18  ;;  %v12057_v16 = vld [vmem:[#allocation6 + $0x6e0] ss:$8 sps:$4 sm:$0xff]  }
 0xe34   : > { %v8183_v26 = vpop.f32.mrb[222].mxu0  ;;  %v8463_v15 = vpack.c.bf16 %v8407_v49, %v8405_v20  ;;  %v8345_v57 = vadd.f32 %v15275_v14, %v8180_v29  ;;  %9204 = vmatpush1.bf16.msra.mxu0 %v12051_v21 }
 0xe35   : > { %v8184_v35 = vadd.f32 %v8183_v26, %v15289_v60  ;;  %v8185_v55 = vpop.f32.mrb[223].mxu0  ;;  %v8408_v62 = vmax.f32 %v8344_v36, 0.0 }
 0xe36   : > { %v8186_v34 = vadd.f32 %v8185_v55, %v15291_v54  ;;  %8751 = vmatprep.mubr.bf16.mxu1 %v8463_v15  ;;  %v12056_v54 = vld [vmem:[#allocation6 + $0x6d4] ss:$8 sps:$4 sm:$0xff]   ;;  %v8409_v19 = vmax.f32 %v8345_v57, 0.0 }
 0xe37   : > { %v8346_v61 = vadd.f32 %v15270_v8, %v8184_v35  ;;  %8752 = vmatmul.mubr.bf16.gmra.mrb[192].mxu1 %v8462_v17  ;;  %9205 = vmatprep.subr.bf16.mxu0 %v12056_v54 }
 0xe38   : > { %v8347_v4 = vadd.f32 %v15275_v14, %v8186_v34  ;;  %v8189_v12 = vpop.f32.mrb[224].mxu0  ;;  %v15346_v45 = vpop.f32.mrb[148].mxu1  ;;  %9206 = vmatpush1.bf16.msra.mxu0 %v12054_v0 }
 0xe39   : > { %v8410_v60 = vmax.f32 %v8346_v61, 0.0  ;;  %v8190_v43 = vadd.f32 %v8189_v12, %v15298_v28  ;;  %v8191_v13 = vpop.f32.mrb[225].mxu0  ;;  %v15349_v47 = vpop.f32.mrb[149].mxu1  ;;  %9207 = vmatprep.subr.bf16.mxu0 %v12059_v58 }
 0xe3a   : > { %v8411_v46 = vmax.f32 %v8347_v4, 0.0  ;;  %v8192_v11 = vadd.f32 %v8191_v13, %v15301_v10  ;;  %v15352_v38 = vpop.f32.mrb[150].mxu1 }
 0xe3b   : > { %v15354_v31 = vpop.f32.mrb[151].mxu1  ;;  %v8464_v53 = vpack.c.bf16 %v8410_v60, %v8408_v62  ;;  %v8348_v28 = vadd.f32 %v15270_v8, %v8190_v43 }
 0xe3c   : > { %v8195_v42 = vpop.f32.mrb[226].mxu0  ;;  %v8465_v24 = vpack.c.bf16 %v8411_v46, %v8409_v19  ;;  %v8349_v30 = vadd.f32 %v15275_v14, %v8192_v11  ;;  %9208 = vmatpush1.bf16.msra.mxu0 %v12057_v16 }
 0xe3d   : > { %v8196_v37 = vadd.f32 %v8195_v42, %v15304_v40  ;;  %v8197_v33 = vpop.f32.mrb[227].mxu0  ;;  %v8412_v32 = vmax.f32 %v8348_v28, 0.0 }
 0xe3e   : > { %v8198_v10 = vadd.f32 %v8197_v33, %v15306_v25  ;;  %8761 = vmatprep.mubr.bf16.mxu1 %v8465_v24  ;;  %v8413_v25 = vmax.f32 %v8349_v30, 0.0 }
 0xe3f   : > { %v8350_v52 = vadd.f32 %v15270_v8, %v8196_v37  ;;  %8762 = vmatmul.mubr.bf16.gmra.mrb[196].mxu1 %v8464_v53 }
 0xe40   : > { %v8351_v63 = vadd.f32 %v15275_v14, %v8198_v10  ;;  %v8201_v27 = vpop.f32.mrb[228].mxu0  ;;  %v15362_v48 = vpop.f32.mrb[152].mxu1 }
 0xe41   : > { %v8414_v40 = vmax.f32 %v8350_v52, 0.0  ;;  %v8202_v18 = vadd.f32 %v8201_v27, %v15314_v1  ;;  %v8203_v39 = vpop.f32.mrb[229].mxu0  ;;  %v15365_v41 = vpop.f32.mrb[153].mxu1 }
 0xe42   : > { %v8415_v20 = vmax.f32 %v8351_v63, 0.0  ;;  %v8204_v49 = vadd.f32 %v8203_v39, %v15317_v2  ;;  %v15368_v29 = vpop.f32.mrb[154].mxu1 }
 0xe43   : > { %v15370_v17 = vpop.f32.mrb[155].mxu1  ;;  %v8466_v26 = vpack.c.bf16 %v8414_v40, %v8412_v32  ;;  %v8352_v36 = vadd.f32 %v15270_v8, %v8202_v18 }
 0xe44   : > { %v8207_v15 = vpop.f32.mrb[230].mxu0  ;;  %v8467_v44 = vpack.c.bf16 %v8415_v20, %v8413_v25  ;;  %v8353_v55 = vadd.f32 %v15275_v14, %v8204_v49 }
 0xe45   : > { %v8208_v1 = vadd.f32 %v8207_v15, %v15320_v51  ;;  %v8209_v35 = vpop.f32.mrb[231].mxu0  ;;  %v8416_v4 = vmax.f32 %v8352_v36, 0.0 }
 0xe46   : > { %v8210_v22 = vadd.f32 %v8209_v35, %v15322_v6  ;;  %8771 = vmatprep.mubr.bf16.mxu1 %v8467_v44  ;;  %v8417_v60 = vmax.f32 %v8353_v55, 0.0 }
 0xe47   : > { %v8354_v2 = vadd.f32 %v15270_v8, %v8208_v1  ;;  %8772 = vmatmul.mubr.bf16.gmra.mrb[200].mxu1 %v8466_v26 }
 0xe48   : > { %v8355_v57 = vadd.f32 %v15275_v14, %v8210_v22  ;;  %v8213_v34 = vpop.f32.mrb[232].mxu0  ;;  %v15378_v61 = vpop.f32.mrb[156].mxu1 }
 0xe49   : > { %v8418_v12 = vmax.f32 %v8354_v2, 0.0  ;;  %v8214_v21 = vadd.f32 %v8213_v34, %v15330_v7  ;;  %v8215_v62 = vpop.f32.mrb[233].mxu0  ;;  %v15381_v51 = vpop.f32.mrb[157].mxu1 }
 0xe4a   : > { %v8419_v43 = vmax.f32 %v8355_v57, 0.0  ;;  %v8216_v6 = vadd.f32 %v8215_v62, %v15333_v56  ;;  %v15384_v13 = vpop.f32.mrb[158].mxu1 }
 0xe4b   : > { %v15386_v54 = vpop.f32.mrb[159].mxu1  ;;  %v8468_v19 = vpack.c.bf16 %v8418_v12, %v8416_v4  ;;  %v8356_v53 = vadd.f32 %v15270_v8, %v8214_v21 }
 0xe4c   : > { %v8219_v46 = vpop.f32.mrb[234].mxu0  ;;  %v8469_v11 = vpack.c.bf16 %v8419_v43, %v8417_v60  ;;  %v8357_v7 = vadd.f32 %v15275_v14, %v8216_v6 }
 0xe4d   : > { %v8220_v42 = vadd.f32 %v8219_v46, %v15336_v3  ;;  %v8221_v24 = vpop.f32.mrb[235].mxu0  ;;  %v8420_v58 = vmax.f32 %v8356_v53, 0.0 }
 0xe4e   : > { %v8222_v0 = vadd.f32 %v8221_v24, %v15338_v23  ;;  %8781 = vmatprep.mubr.bf16.mxu1 %v8469_v11  ;;  %v8421_v63 = vmax.f32 %v8357_v7, 0.0 }
 0xe4f   : > { %v8358_v28 = vadd.f32 %v15270_v8, %v8220_v42  ;;  %8782 = vmatmul.mubr.bf16.gmra.mrb[204].mxu1 %v8468_v19 }
 0xe50   : > { %v8359_v56 = vadd.f32 %v15275_v14, %v8222_v0  ;;  %v8225_v37 = vpop.f32.mrb[236].mxu0  ;;  %v15394_v33 = vpop.f32.mrb[160].mxu1 }
 0xe51   : > { %v8422_v30 = vmax.f32 %v8358_v28, 0.0  ;;  %v8226_v10 = vadd.f32 %v8225_v37, %v15346_v45  ;;  %v8227_v52 = vpop.f32.mrb[237].mxu0  ;;  %v15397_v3 = vpop.f32.mrb[161].mxu1 }
 0xe52   : > { %v8423_v27 = vmax.f32 %v8359_v56, 0.0  ;;  %v8228_v23 = vadd.f32 %v8227_v52, %v15349_v47  ;;  %v15400_v16 = vpop.f32.mrb[162].mxu1 }
 0xe53   : > { %v15402_v32 = vpop.f32.mrb[163].mxu1  ;;  %v8470_v40 = vpack.c.bf16 %v8422_v30, %v8420_v58  ;;  %v8360_v25 = vadd.f32 %v15270_v8, %v8226_v10 }
 0xe54   : > { %v8231_v18 = vpop.f32.mrb[238].mxu0  ;;  %v8471_v39 = vpack.c.bf16 %v8423_v27, %v8421_v63  ;;  %v8361_v45 = vadd.f32 %v15275_v14, %v8228_v23 }
 0xe55   : > { %v8232_v20 = vadd.f32 %v8231_v18, %v15352_v38  ;;  %v8233_v49 = vpop.f32.mrb[239].mxu0  ;;  %v8424_v1 = vmax.f32 %v8360_v25, 0.0 }
 0xe56   : > { %v8234_v26 = vadd.f32 %v8233_v49, %v15354_v31  ;;  %8791 = vmatprep.mubr.bf16.mxu1 %v8471_v39  ;;  %v8425_v2 = vmax.f32 %v8361_v45, 0.0 }
 0xe57   : > { %v8362_v15 = vadd.f32 %v15270_v8, %v8232_v20  ;;  %8792 = vmatmul.mubr.bf16.gmra.mrb[208].mxu1 %v8470_v40 }
 0xe58   : > { %v8363_v47 = vadd.f32 %v15275_v14, %v8234_v26  ;;  %v8237_v44 = vpop.f32.mrb[240].mxu0  ;;  %v15410_v36 = vpop.f32.mrb[164].mxu1 }
 0xe59   : > { %v8426_v35 = vmax.f32 %v8362_v15, 0.0  ;;  %v8238_v55 = vadd.f32 %v8237_v44, %v15362_v48  ;;  %v8239_v22 = vpop.f32.mrb[241].mxu0  ;;  %v15413_v38 = vpop.f32.mrb[165].mxu1 }
 0xe5a   : > { %v8427_v57 = vmax.f32 %v8363_v47, 0.0  ;;  %v8240_v31 = vadd.f32 %v8239_v22, %v15365_v41  ;;  %v15416_v34 = vpop.f32.mrb[166].mxu1 }
 0xe5b   : > { %v15418_v4 = vpop.f32.mrb[167].mxu1  ;;  %v8472_v12 = vpack.c.bf16 %v8426_v35, %v8424_v1  ;;  %v8364_v60 = vadd.f32 %v15270_v8, %v8238_v55 }
 0xe5c   : > { %v8243_v21 = vpop.f32.mrb[242].mxu0  ;;  %v8473_v62 = vpack.c.bf16 %v8427_v57, %v8425_v2  ;;  %v8365_v48 = vadd.f32 %v15275_v14, %v8240_v31 }
 0xe5d   : > { %v8244_v43 = vadd.f32 %v8243_v21, %v15368_v29  ;;  %v8245_v6 = vpop.f32.mrb[243].mxu0  ;;  %v8428_v42 = vmax.f32 %v8364_v60, 0.0 }
 0xe5e   : > { %v8246_v19 = vadd.f32 %v8245_v6, %v15370_v17  ;;  %8801 = vmatprep.mubr.bf16.mxu1 %v8473_v62  ;;  %v8429_v28 = vmax.f32 %v8365_v48, 0.0 }
 0xe5f   : > { %v8366_v46 = vadd.f32 %v15270_v8, %v8244_v43  ;;  %8802 = vmatmul.mubr.bf16.gmra.mrb[212].mxu1 %v8472_v12 }
 0xe60   : > { %v8367_v41 = vadd.f32 %v15275_v14, %v8246_v19  ;;  %v8249_v11 = vpop.f32.mrb[244].mxu0  ;;  %v15426_v53 = vpop.f32.mrb[168].mxu1 }
 0xe61   : > { %v8430_v24 = vmax.f32 %v8366_v46, 0.0  ;;  %v8250_v7 = vadd.f32 %v8249_v11, %v15378_v61  ;;  %v8251_v0 = vpop.f32.mrb[245].mxu0  ;;  %v15429_v29 = vpop.f32.mrb[169].mxu1 }
 0xe62   : > { %v8431_v56 = vmax.f32 %v8367_v41, 0.0  ;;  %v8252_v17 = vadd.f32 %v8251_v0, %v15381_v51  ;;  %v15432_v37 = vpop.f32.mrb[170].mxu1 }
 0xe63   : > { %v15434_v58 = vpop.f32.mrb[171].mxu1  ;;  %v8474_v30 = vpack.c.bf16 %v8430_v24, %v8428_v42  ;;  %v8368_v63 = vadd.f32 %v15270_v8, %v8250_v7 }
 0xe64   : > { %v8255_v10 = vpop.f32.mrb[246].mxu0  ;;  %v8475_v52 = vpack.c.bf16 %v8431_v56, %v8429_v28  ;;  %v8369_v61 = vadd.f32 %v15275_v14, %v8252_v17 }
 0xe65   : > { %v8256_v27 = vadd.f32 %v8255_v10, %v15384_v13  ;;  %v8257_v23 = vpop.f32.mrb[247].mxu0  ;;  %v8432_v20 = vmax.f32 %v8368_v63, 0.0 }
 0xe66   : > { %v8258_v40 = vadd.f32 %v8257_v23, %v15386_v54  ;;  %8811 = vmatprep.mubr.bf16.mxu1 %v8475_v52  ;;  %v8433_v15 = vmax.f32 %v8369_v61, 0.0 }
 0xe67   : > { %v8370_v18 = vadd.f32 %v15270_v8, %v8256_v27  ;;  %8812 = vmatmul.mubr.bf16.gmra.mrb[216].mxu1 %v8474_v30  ;;  %v12060_v27 = vld [vmem:[#allocation6 + $0x6f0] ss:$8 sps:$4 sm:$0xff]  }
 0xe68   : > { %v8371_v51 = vadd.f32 %v15275_v14, %v8258_v40  ;;  %v8261_v39 = vpop.f32.mrb[248].mxu0  ;;  %v15442_v25 = vpop.f32.mrb[172].mxu1 }
 0xe69   : > { %v8434_v49 = vmax.f32 %v8370_v18, 0.0  ;;  %v8262_v45 = vadd.f32 %v8261_v39, %v15394_v33  ;;  %v8263_v26 = vpop.f32.mrb[249].mxu0  ;;  %v15445_v13 = vpop.f32.mrb[173].mxu1 }
 0xe6a   : > { %v8435_v47 = vmax.f32 %v8371_v51, 0.0  ;;  %v8264_v54 = vadd.f32 %v8263_v26, %v15397_v3  ;;  %v15448_v44 = vpop.f32.mrb[174].mxu1 }
 0xe6b   : > { %v15450_v1 = vpop.f32.mrb[175].mxu1  ;;  %v8476_v35 = vpack.c.bf16 %v8434_v49, %v8432_v20  ;;  %v8372_v2 = vadd.f32 %v15270_v8, %v8262_v45 }
 0xe6c   : > { %v8267_v55 = vpop.f32.mrb[250].mxu0  ;;  %v8477_v22 = vpack.c.bf16 %v8435_v47, %v8433_v15  ;;  %v8373_v33 = vadd.f32 %v15275_v14, %v8264_v54 }
 0xe6d   : > { %v8268_v57 = vadd.f32 %v8267_v55, %v15400_v16  ;;  %v8269_v31 = vpop.f32.mrb[251].mxu0  ;;  %v8436_v43 = vmax.f32 %v8372_v2, 0.0 }
 0xe6e   : > { %v8270_v12 = vadd.f32 %v8269_v31, %v15402_v32  ;;  %8821 = vmatprep.mubr.bf16.mxu1 %v8477_v22  ;;  %v8437_v46 = vmax.f32 %v8373_v33, 0.0 }
 0xe6f   : > { %v8374_v21 = vadd.f32 %v15270_v8, %v8268_v57  ;;  %8822 = vmatmul.mubr.bf16.gmra.mrb[220].mxu1 %v8476_v35 }
 0xe70   : > { %v8375_v3 = vadd.f32 %v15275_v14, %v8270_v12  ;;  %v8273_v62 = vpop.f32.mrb[252].mxu0  ;;  %v15458_v60 = vpop.f32.mrb[176].mxu1 }
 0xe71   : > { %v8438_v6 = vmax.f32 %v8374_v21, 0.0  ;;  %v8274_v48 = vadd.f32 %v8273_v62, %v15410_v36  ;;  %v8275_v19 = vpop.f32.mrb[253].mxu0  ;;  %v15461_v16 = vpop.f32.mrb[177].mxu1 }
 0xe72   : > { %v8439_v41 = vmax.f32 %v8375_v3, 0.0  ;;  %v8276_v32 = vadd.f32 %v8275_v19, %v15413_v38  ;;  %v15464_v11 = vpop.f32.mrb[178].mxu1  ;;  %v12062_v38 = vld [vmem:[#allocation6 + $0x6f4] ss:$8 sps:$4 sm:$0xff]  }
 0xe73   : > { %v15466_v42 = vpop.f32.mrb[179].mxu1  ;;  %v8478_v24 = vpack.c.bf16 %v8438_v6, %v8436_v43  ;;  %v8376_v28 = vadd.f32 %v15270_v8, %v8274_v48  ;;  %9209 = vmatprep.subr.bf16.mxu0 %v12062_v38 }
 0xe74   : > { %v8279_v7 = vpop.f32.mrb[254].mxu0  ;;  %v8479_v0 = vpack.c.bf16 %v8439_v41, %v8437_v46  ;;  %v8377_v36 = vadd.f32 %v15275_v14, %v8276_v32  ;;  %9210 = vmatpush1.bf16.msra.mxu0 %v12060_v27 }
 0xe75   : > { %v8280_v56 = vadd.f32 %v8279_v7, %v15416_v34  ;;  %v8281_v17 = vpop.f32.mrb[255].mxu0  ;;  %v8440_v23 = vmax.f32 %v8376_v28, 0.0 }
 0xe76   : > { %v8282_v30 = vadd.f32 %v8281_v17, %v15418_v4  ;;  %8831 = vmatprep.mubr.bf16.mxu1 %v8479_v0  ;;  %v8441_v34 = vmax.f32 %v8377_v36, 0.0 }
 0xe77   : > { %v8378_v10 = vadd.f32 %v15270_v8, %v8280_v56  ;;  %8832 = vmatmul.mubr.bf16.gmra.mrb[224].mxu1 %v8478_v24 }
 0xe78   : > { %v8379_v52 = vadd.f32 %v15275_v14, %v8282_v30  ;;  %v8285_v63 = vpop.f32.mrb[0].mxu0 }
 0xe79   : > { %v8442_v61 = vmax.f32 %v8378_v10, 0.0  ;;  %v8286_v40 = vadd.f32 %v8285_v63, %v15426_v53  ;;  %v8287_v18 = vpop.f32.mrb[1].mxu0 }
 0xe7a   : > { %v8443_v51 = vmax.f32 %v8379_v52, 0.0  ;;  %v8288_v39 = vadd.f32 %v8287_v18, %v15429_v29  ;;  %v12066_v18 = vld [vmem:[%s15910_s12 + $0x8] sm:$0xff]  }
 0xe7b   : > { %v8480_v4 = vpack.c.bf16 %v8442_v61, %v8440_v23  ;;  %v8380_v45 = vadd.f32 %v15270_v8, %v8286_v40 }
 0xe7c   : > { %v8291_v20 = vpop.f32.mrb[2].mxu0  ;;  %v8481_v49 = vpack.c.bf16 %v8443_v51, %v8441_v34  ;;  %v8381_v47 = vadd.f32 %v15275_v14, %v8288_v39  ;;  %v15514_v34 = vld [vmem:[%s15909_s11] sm:$0xff]  ;;  %v15522_v39 = vld [vmem:[%s15909_s11 + $0x8] sm:$0xff] }
 0xe7d   : > { %v8292_v26 = vadd.f32 %v8291_v20, %v15432_v37  ;;  %v8293_v15 = vpop.f32.mrb[3].mxu0  ;;  %v8444_v55 = vmax.f32 %v8380_v45, 0.0 }
 0xe7e   : > { %v8294_v54 = vadd.f32 %v8293_v15, %v15434_v58  ;;  %8841 = vmatprep.mubr.bf16.mxu1 %v8481_v49  ;;  %v8445_v31 = vmax.f32 %v8381_v47, 0.0 }
 0xe7f   : > { %v8382_v53 = vadd.f32 %v15270_v8, %v8292_v26  ;;  %8842 = vmatmul.mubr.bf16.gmra.mrb[228].mxu1 %v8480_v4 }
 0xe80   : > { %v8383_v35 = vadd.f32 %v15275_v14, %v8294_v54  ;;  %v8297_v29 = vpop.f32.mrb[4].mxu0 }
 0xe81   : > { %v8446_v22 = vmax.f32 %v8382_v53, 0.0  ;;  %v8298_v2 = vadd.f32 %v8297_v29, %v15442_v25  ;;  %v8299_v57 = vpop.f32.mrb[5].mxu0  ;;  %v12067_v53 = vld [vmem:[%s15910_s12 + $0x50] sm:$0xff]   ;;  %v12069_v29 = vld [vmem:[%s15910_s12 + $0x58] sm:$0xff]  }
 0xe82   : > { %v8447_v33 = vmax.f32 %v8383_v35, 0.0  ;;  %v8300_v37 = vadd.f32 %v8299_v57, %v15445_v13  ;;  %v12068_v35 = vld [vmem:[%s15910_s12 + $0x10] sm:$0xff]  }
 0xe83   : > { %v8482_v12 = vpack.c.bf16 %v8446_v22, %v8444_v55  ;;  %v8384_v58 = vadd.f32 %v15270_v8, %v8298_v2 }
 0xe84   : > { %v8303_v21 = vpop.f32.mrb[6].mxu0  ;;  %v8483_v3 = vpack.c.bf16 %v8447_v33, %v8445_v31  ;;  %v8385_v6 = vadd.f32 %v15275_v14, %v8300_v37  ;;  %v12070_v33 = vld [vmem:[%s15910_s12 + $0x18] sm:$0xff]  }
 0xe85   : > { %v8304_v62 = vadd.f32 %v8303_v21, %v15448_v44  ;;  %v8305_v43 = vpop.f32.mrb[7].mxu0  ;;  %v8448_v13 = vmax.f32 %v8384_v58, 0.0 }
 0xe86   : > { %v8306_v48 = vadd.f32 %v8305_v43, %v15450_v1  ;;  %8851 = vmatprep.mubr.bf16.mxu1 %v8483_v3  ;;  %v8449_v7 = vmax.f32 %v8385_v6, 0.0 }
 0xe87   : > { %v8386_v25 = vadd.f32 %v15270_v8, %v8304_v62  ;;  %8852 = vmatmul.mubr.bf16.gmra.mrb[232].mxu1 %v8482_v12  ;;  %v12071_v12 = vld [vmem:[%s15910_s12 + $0x60] sm:$0xff]  }
 0xe88   : > { %v8387_v19 = vadd.f32 %v15275_v14, %v8306_v48  ;;  %v8309_v46 = vpop.f32.mrb[8].mxu0  ;;  %v12072_v48 = vld [vmem:[%s15910_s12 + $0x20] sm:$0xff]  }
 0xe89   : > { %v8450_v41 = vmax.f32 %v8386_v25, 0.0  ;;  %v8310_v32 = vadd.f32 %v8309_v46, %v15458_v60  ;;  %v8311_v24 = vpop.f32.mrb[9].mxu0  ;;  %v12073_v46 = vld [vmem:[%s15910_s12 + $0x68] sm:$0xff]  }
 0xe8a   : > { %v8451_v0 = vmax.f32 %v8387_v19, 0.0  ;;  %v8312_v44 = vadd.f32 %v8311_v24, %v15461_v16 }
 0xe8b   : > { %v8484_v28 = vpack.c.bf16 %v8450_v41, %v8448_v13  ;;  %v8388_v1 = vadd.f32 %v15270_v8, %v8310_v32 }
 0xe8c   : > { %v8315_v56 = vpop.f32.mrb[10].mxu0  ;;  %v8485_v17 = vpack.c.bf16 %v8451_v0, %v8449_v7  ;;  %v8389_v10 = vadd.f32 %v15275_v14, %v8312_v44  ;;  %v12074_v0 = vld [vmem:[%s15910_s12 + $0x28] sm:$0xff]  }
 0xe8d   : > { %v8316_v36 = vadd.f32 %v8315_v56, %v15464_v11  ;;  %v8317_v30 = vpop.f32.mrb[11].mxu0  ;;  %v8452_v63 = vmax.f32 %v8388_v1, 0.0  ;;  %v12063_v11 = vld [vmem:[%s15910_s12 + $0x40] sm:$0xff]  }
 0xe8e   : > { %v8318_v38 = vadd.f32 %v8317_v30, %v15466_v42  ;;  %8861 = vmatprep.mubr.bf16.mxu1 %v8485_v17  ;;  %v8453_v27 = vmax.f32 %v8389_v10, 0.0  ;;  %v12064_v42 = vld [vmem:[%s15910_s12] sm:$0xff]   ;;  %10773 = vmatprep.subr.bf16.mxu1 %v12063_v11  ;;  %v12078_v11 = vld [vmem:[%s15910_s12 + $0x38] sm:$0xff]  }
 0xe8f   : > { %v8390_v60 = vadd.f32 %v15270_v8, %v8316_v36  ;;  %8862 = vmatmul.mubr.bf16.gmra.mrb[236].mxu1 %v8484_v28  ;;  %v8523_v8 = vsub.s32 6, %v14679_v50  ;;  %v12075_v28 = vld [vmem:[%s15910_s12 + $0x70] sm:$0xff]  }
 0xe90   : > { %v8391_v52 = vadd.f32 %v15275_v14, %v8318_v38  ;;  %10774 = vmatpush3.bf16.msra.mxu1 %v12064_v42  ;;  %v12065_v14 = vld [vmem:[%s15910_s12 + $0x48] sm:$0xff]   ;;  %v12076_v38 = vld [vmem:[%s15910_s12 + $0x30] sm:$0xff]  }
 0xe91   : > { %v8454_v16 = vmax.f32 %v8390_v60, 0.0  ;;  %v15517_v51 = vrot.slane %v15514_v34, %v8523_v8  ;;  %10775 = vmatprep.subr.bf16.mxu1 %v12065_v14  ;;  %v15525_v4 = vrot.slane %v15522_v39, %v8523_v8 }
 0xe92   : > { %v8455_v23 = vmax.f32 %v8391_v52, 0.0 }
 0xe93   : > { %v8486_v61 = vpack.c.bf16 %v8454_v16, %v8452_v63  ;;  %v12077_v63 = vld [vmem:[%s15910_s12 + $0x78] sm:$0xff]  }
 0xe94   : > { %v8487_v40 = vpack.c.bf16 %v8455_v23, %v8453_v27  ;;  %10776 = vmatpush3.bf16.msra.mxu1 %v12066_v18 }
 0xe95   : > { %10777 = vmatprep.subr.bf16.mxu1 %v12067_v53 }
 0xe96   : > { %8871 = vmatprep.mubr.bf16.mxu1 %v8487_v40 }
 0xe97   : > { %8872 = vmatmul.mubr.bf16.gmra.mrb[240].mxu1 %v8486_v61 }
 0xe98   : > { %10778 = vmatpush3.bf16.msra.mxu1 %v12068_v35 }
 0xe99   : > { %10779 = vmatprep.subr.bf16.mxu1 %v12069_v29 }
 0xe9c   : > { %10780 = vmatpush3.bf16.msra.mxu1 %v12070_v33 }
 0xe9d   : > { %10781 = vmatprep.subr.bf16.mxu1 %v12071_v12 }
 0xea0   : > { %10782 = vmatpush3.bf16.msra.mxu1 %v12072_v48 }
 0xea1   : > { %10783 = vmatprep.subr.bf16.mxu1 %v12073_v46 }
 0xea4   : > { %10784 = vmatpush3.bf16.msra.mxu1 %v12074_v0 }
 0xea5   : > { %10785 = vmatprep.subr.bf16.mxu1 %v12075_v28 }
 0xea8   : > { %10786 = vmatpush3.bf16.msra.mxu1 %v12076_v38 }
 0xea9   : > { %10787 = vmatprep.subr.bf16.mxu1 %v12077_v63 }
 0xeac   : > { %10788 = vmatpush3.bf16.msra.mxu1 %v12078_v11 }
 0xef2   : > { %v8723_v20 = vpop.f32.mrb[180].mxu1 }
 0xef3   : > { %v8724_v49 = vadd.f32 %v8723_v20, %v15517_v51  ;;  %v8725_v45 = vpop.f32.mrb[181].mxu1 }
 0xef4   : > { %v8726_v26 = vadd.f32 %v8725_v45, %v15525_v4  ;;  %v8727_v15 = vpop.f32.mrb[182].mxu1 }
 0xef5   : > { %v8728_v47 = vadd.f32 %v8727_v15, %v15517_v51  ;;  %v8729_v54 = vpop.f32.mrb[183].mxu1  ;;  %v8882_v22 = vmax.f32 %v8724_v49, 0.0 }
 0xef6   : > { %v8730_v55 = vadd.f32 %v8729_v54, %v15525_v4  ;;  %v8883_v57 = vmax.f32 %v8726_v26, 0.0 }
 0xef7   : > { %v8884_v2 = vmax.f32 %v8728_v47, 0.0 }
 0xef8   : > { %v8885_v31 = vmax.f32 %v8730_v55, 0.0 }
 0xef9   : > { %v8946_v37 = vpack.c.bf16 %v8884_v2, %v8882_v22 }
 0xefa   : > { %v8947_v21 = vpack.c.bf16 %v8885_v31, %v8883_v57  ;;  %v8733_v3 = vpop.f32.mrb[184].mxu1 }
 0xefb   : > { %v8734_v58 = vadd.f32 %v8733_v3, %v15517_v51  ;;  %v8735_v62 = vpop.f32.mrb[185].mxu1 }
 0xefc   : > { %v8736_v43 = vadd.f32 %v8735_v62, %v15525_v4  ;;  %v8737_v6 = vpop.f32.mrb[186].mxu1  ;;  %9211 = vmatprep.mubr.bf16.mxu0 %v8947_v21 }
 0xefd   : > { %v8738_v25 = vadd.f32 %v8737_v6, %v15517_v51  ;;  %v8739_v19 = vpop.f32.mrb[187].mxu1  ;;  %9212 = vmatmul.mubr.bf16.vlgmr.msra.gmra.mrb[12].mxu0 %v8946_v37  ;;  %v8886_v41 = vmax.f32 %v8734_v58, 0.0 }
 0xefe   : > { %v8740_v13 = vadd.f32 %v8739_v19, %v15525_v4  ;;  %v8887_v24 = vmax.f32 %v8736_v43, 0.0 }
 0xeff   : > { %v8888_v32 = vmax.f32 %v8738_v25, 0.0 }
 0xf00   : > { %v8889_v7 = vmax.f32 %v8740_v13, 0.0 }
 0xf01   : > { %v8948_v44 = vpack.c.bf16 %v8888_v32, %v8886_v41 }
 0xf02   : > { %v8949_v56 = vpack.c.bf16 %v8889_v7, %v8887_v24  ;;  %v8743_v17 = vpop.f32.mrb[188].mxu1 }
 0xf03   : > { %v8744_v1 = vadd.f32 %v8743_v17, %v15517_v51  ;;  %v8745_v36 = vpop.f32.mrb[189].mxu1 }
 0xf04   : > { %v8746_v30 = vadd.f32 %v8745_v36, %v15525_v4  ;;  %v8747_v10 = vpop.f32.mrb[190].mxu1  ;;  %9221 = vmatprep.mubr.bf16.mxu0 %v8949_v56 }
 0xf05   : > { %v8748_v60 = vadd.f32 %v8747_v10, %v15517_v51  ;;  %v8749_v52 = vpop.f32.mrb[191].mxu1  ;;  %9222 = vmatmul.mubr.bf16.gmra.mrb[16].mxu0 %v8948_v44  ;;  %v8890_v27 = vmax.f32 %v8744_v1, 0.0 }
 0xf06   : > { %v8750_v16 = vadd.f32 %v8749_v52, %v15525_v4  ;;  %v8891_v61 = vmax.f32 %v8746_v30, 0.0 }
 0xf07   : > { %v8892_v23 = vmax.f32 %v8748_v60, 0.0 }
 0xf08   : > { %v8893_v40 = vmax.f32 %v8750_v16, 0.0 }
 0xf09   : > { %v8950_v42 = vpack.c.bf16 %v8892_v23, %v8890_v27 }
 0xf0a   : > { %v8951_v8 = vpack.c.bf16 %v8893_v40, %v8891_v61  ;;  %v8753_v14 = vpop.f32.mrb[192].mxu1 }
 0xf0b   : > { %v8754_v18 = vadd.f32 %v8753_v14, %v15517_v51  ;;  %v8755_v20 = vpop.f32.mrb[193].mxu1 }
 0xf0c   : > { %v8756_v49 = vadd.f32 %v8755_v20, %v15525_v4  ;;  %v8757_v45 = vpop.f32.mrb[194].mxu1  ;;  %9231 = vmatprep.mubr.bf16.mxu0 %v8951_v8 }
 0xf0d   : > { %v8758_v26 = vadd.f32 %v8757_v45, %v15517_v51  ;;  %v8759_v15 = vpop.f32.mrb[195].mxu1  ;;  %9232 = vmatmul.mubr.bf16.gmra.mrb[20].mxu0 %v8950_v42  ;;  %v8894_v54 = vmax.f32 %v8754_v18, 0.0 }
 0xf0e   : > { %v8760_v47 = vadd.f32 %v8759_v15, %v15525_v4  ;;  %v8895_v35 = vmax.f32 %v8756_v49, 0.0 }
 0xf0f   : > { %v8896_v53 = vmax.f32 %v8758_v26, 0.0 }
 0xf10   : > { %v8897_v29 = vmax.f32 %v8760_v47, 0.0 }
 0xf11   : > { %v8952_v55 = vpack.c.bf16 %v8896_v53, %v8894_v54 }
 0xf12   : > { %v8953_v22 = vpack.c.bf16 %v8897_v29, %v8895_v35  ;;  %v8763_v2 = vpop.f32.mrb[196].mxu1 }
 0xf13   : > { %v8764_v57 = vadd.f32 %v8763_v2, %v15517_v51  ;;  %v8765_v31 = vpop.f32.mrb[197].mxu1 }
 0xf14   : > { %v8766_v33 = vadd.f32 %v8765_v31, %v15525_v4  ;;  %v8767_v37 = vpop.f32.mrb[198].mxu1  ;;  %9241 = vmatprep.mubr.bf16.mxu0 %v8953_v22 }
 0xf15   : > { %v8768_v12 = vadd.f32 %v8767_v37, %v15517_v51  ;;  %v8769_v21 = vpop.f32.mrb[199].mxu1  ;;  %9242 = vmatmul.mubr.bf16.gmra.mrb[24].mxu0 %v8952_v55  ;;  %v8898_v58 = vmax.f32 %v8764_v57, 0.0 }
 0xf16   : > { %v8770_v3 = vadd.f32 %v8769_v21, %v15525_v4  ;;  %v8899_v43 = vmax.f32 %v8766_v33, 0.0 }
 0xf17   : > { %v8900_v62 = vmax.f32 %v8768_v12, 0.0 }
 0xf18   : > { %v8901_v6 = vmax.f32 %v8770_v3, 0.0 }
 0xf19   : > { %v8954_v48 = vpack.c.bf16 %v8900_v62, %v8898_v58 }
 0xf1a   : > { %v8955_v25 = vpack.c.bf16 %v8901_v6, %v8899_v43  ;;  %v8773_v19 = vpop.f32.mrb[200].mxu1 }
 0xf1b   : > { %v8774_v46 = vadd.f32 %v8773_v19, %v15517_v51  ;;  %v8775_v13 = vpop.f32.mrb[201].mxu1 }
 0xf1c   : > { %v8776_v41 = vadd.f32 %v8775_v13, %v15525_v4  ;;  %v8777_v32 = vpop.f32.mrb[202].mxu1  ;;  %9251 = vmatprep.mubr.bf16.mxu0 %v8955_v25 }
 0xf1d   : > { %v8778_v24 = vadd.f32 %v8777_v32, %v15517_v51  ;;  %v8779_v7 = vpop.f32.mrb[203].mxu1  ;;  %9252 = vmatmul.mubr.bf16.gmra.mrb[28].mxu0 %v8954_v48  ;;  %v8902_v44 = vmax.f32 %v8774_v46, 0.0 }
 0xf1e   : > { %v8780_v0 = vadd.f32 %v8779_v7, %v15525_v4  ;;  %v8903_v56 = vmax.f32 %v8776_v41, 0.0 }
 0xf1f   : > { %v8904_v28 = vmax.f32 %v8778_v24, 0.0 }
 0xf20   : > { %v8905_v17 = vmax.f32 %v8780_v0, 0.0 }
 0xf21   : > { %v8956_v1 = vpack.c.bf16 %v8904_v28, %v8902_v44 }
 0xf22   : > { %v8957_v36 = vpack.c.bf16 %v8905_v17, %v8903_v56  ;;  %v8783_v30 = vpop.f32.mrb[204].mxu1 }
 0xf23   : > { %v8784_v10 = vadd.f32 %v8783_v30, %v15517_v51  ;;  %v8785_v38 = vpop.f32.mrb[205].mxu1 }
 0xf24   : > { %v8786_v60 = vadd.f32 %v8785_v38, %v15525_v4  ;;  %v8787_v52 = vpop.f32.mrb[206].mxu1  ;;  %9261 = vmatprep.mubr.bf16.mxu0 %v8957_v36 }
 0xf25   : > { %v8788_v63 = vadd.f32 %v8787_v52, %v15517_v51  ;;  %v8789_v16 = vpop.f32.mrb[207].mxu1  ;;  %9262 = vmatmul.mubr.bf16.gmra.mrb[32].mxu0 %v8956_v1  ;;  %v8906_v23 = vmax.f32 %v8784_v10, 0.0 }
 0xf26   : > { %v8790_v27 = vadd.f32 %v8789_v16, %v15525_v4  ;;  %v8907_v40 = vmax.f32 %v8786_v60, 0.0 }
 0xf27   : > { %v8908_v61 = vmax.f32 %v8788_v63, 0.0 }
 0xf28   : > { %v8909_v11 = vmax.f32 %v8790_v27, 0.0 }
 0xf29   : > { %v8958_v42 = vpack.c.bf16 %v8908_v61, %v8906_v23 }
 0xf2a   : > { %v8959_v8 = vpack.c.bf16 %v8909_v11, %v8907_v40  ;;  %v8793_v14 = vpop.f32.mrb[208].mxu1 }
 0xf2b   : > { %v8794_v18 = vadd.f32 %v8793_v14, %v15517_v51  ;;  %v8795_v20 = vpop.f32.mrb[209].mxu1 }
 0xf2c   : > { %v8796_v49 = vadd.f32 %v8795_v20, %v15525_v4  ;;  %v8797_v45 = vpop.f32.mrb[210].mxu1  ;;  %9271 = vmatprep.mubr.bf16.mxu0 %v8959_v8 }
 0xf2d   : > { %v8798_v26 = vadd.f32 %v8797_v45, %v15517_v51  ;;  %v8799_v15 = vpop.f32.mrb[211].mxu1  ;;  %9272 = vmatmul.mubr.bf16.gmra.mrb[36].mxu0 %v8958_v42  ;;  %v8910_v54 = vmax.f32 %v8794_v18, 0.0 }
 0xf2e   : > { %v8800_v47 = vadd.f32 %v8799_v15, %v15525_v4  ;;  %v8911_v35 = vmax.f32 %v8796_v49, 0.0 }
 0xf2f   : > { %v8912_v53 = vmax.f32 %v8798_v26, 0.0 }
 0xf30   : > { %v8913_v29 = vmax.f32 %v8800_v47, 0.0 }
 0xf31   : > { %v8960_v55 = vpack.c.bf16 %v8912_v53, %v8910_v54 }
 0xf32   : > { %v8961_v22 = vpack.c.bf16 %v8913_v29, %v8911_v35  ;;  %v8803_v2 = vpop.f32.mrb[212].mxu1 }
 0xf33   : > { %v8804_v57 = vadd.f32 %v8803_v2, %v15517_v51  ;;  %v8805_v31 = vpop.f32.mrb[213].mxu1 }
 0xf34   : > { %v8806_v33 = vadd.f32 %v8805_v31, %v15525_v4  ;;  %v8807_v37 = vpop.f32.mrb[214].mxu1  ;;  %9281 = vmatprep.mubr.bf16.mxu0 %v8961_v22 }
 0xf35   : > { %v8808_v12 = vadd.f32 %v8807_v37, %v15517_v51  ;;  %v8809_v21 = vpop.f32.mrb[215].mxu1  ;;  %9282 = vmatmul.mubr.bf16.gmra.mrb[40].mxu0 %v8960_v55  ;;  %v8914_v58 = vmax.f32 %v8804_v57, 0.0 }
 0xf36   : > { %v8810_v3 = vadd.f32 %v8809_v21, %v15525_v4  ;;  %v8915_v43 = vmax.f32 %v8806_v33, 0.0 }
 0xf37   : > { %v8916_v62 = vmax.f32 %v8808_v12, 0.0 }
 0xf38   : > { %v8917_v6 = vmax.f32 %v8810_v3, 0.0 }
 0xf39   : > { %v8962_v48 = vpack.c.bf16 %v8916_v62, %v8914_v58 }
 0xf3a   : > { %v8963_v25 = vpack.c.bf16 %v8917_v6, %v8915_v43  ;;  %v8813_v19 = vpop.f32.mrb[216].mxu1 }
 0xf3b   : > { %v8814_v46 = vadd.f32 %v8813_v19, %v15517_v51  ;;  %v8815_v13 = vpop.f32.mrb[217].mxu1 }
 0xf3c   : > { %v8816_v41 = vadd.f32 %v8815_v13, %v15525_v4  ;;  %v8817_v32 = vpop.f32.mrb[218].mxu1  ;;  %9291 = vmatprep.mubr.bf16.mxu0 %v8963_v25 }
 0xf3d   : > { %v8818_v24 = vadd.f32 %v8817_v32, %v15517_v51  ;;  %v8819_v7 = vpop.f32.mrb[219].mxu1  ;;  %9292 = vmatmul.mubr.bf16.gmra.mrb[44].mxu0 %v8962_v48  ;;  %v8918_v44 = vmax.f32 %v8814_v46, 0.0 }
 0xf3e   : > { %v8820_v0 = vadd.f32 %v8819_v7, %v15525_v4  ;;  %v8919_v56 = vmax.f32 %v8816_v41, 0.0 }
 0xf3f   : > { %v8920_v28 = vmax.f32 %v8818_v24, 0.0 }
 0xf40   : > { %v8921_v17 = vmax.f32 %v8820_v0, 0.0 }
 0xf41   : > { %v8964_v1 = vpack.c.bf16 %v8920_v28, %v8918_v44 }
 0xf42   : > { %v8965_v36 = vpack.c.bf16 %v8921_v17, %v8919_v56  ;;  %v8823_v30 = vpop.f32.mrb[220].mxu1 }
 0xf43   : > { %v8824_v10 = vadd.f32 %v8823_v30, %v15517_v51  ;;  %v8825_v38 = vpop.f32.mrb[221].mxu1 }
 0xf44   : > { %v8826_v60 = vadd.f32 %v8825_v38, %v15525_v4  ;;  %v8827_v52 = vpop.f32.mrb[222].mxu1  ;;  %9301 = vmatprep.mubr.bf16.mxu0 %v8965_v36 }
 0xf45   : > { %v8828_v63 = vadd.f32 %v8827_v52, %v15517_v51  ;;  %v8829_v16 = vpop.f32.mrb[223].mxu1  ;;  %9302 = vmatmul.mubr.bf16.gmra.mrb[48].mxu0 %v8964_v1  ;;  %v8922_v23 = vmax.f32 %v8824_v10, 0.0 }
 0xf46   : > { %v8830_v27 = vadd.f32 %v8829_v16, %v15525_v4  ;;  %v8923_v40 = vmax.f32 %v8826_v60, 0.0 }
 0xf47   : > { %v8924_v61 = vmax.f32 %v8828_v63, 0.0 }
 0xf48   : > { %v8925_v11 = vmax.f32 %v8830_v27, 0.0 }
 0xf49   : > { %v8966_v42 = vpack.c.bf16 %v8924_v61, %v8922_v23 }
 0xf4a   : > { %v8967_v8 = vpack.c.bf16 %v8925_v11, %v8923_v40  ;;  %v8833_v14 = vpop.f32.mrb[224].mxu1 }
 0xf4b   : > { %v8834_v18 = vadd.f32 %v8833_v14, %v15517_v51  ;;  %v8835_v20 = vpop.f32.mrb[225].mxu1 }
 0xf4c   : > { %v8836_v49 = vadd.f32 %v8835_v20, %v15525_v4  ;;  %v8837_v45 = vpop.f32.mrb[226].mxu1  ;;  %9311 = vmatprep.mubr.bf16.mxu0 %v8967_v8 }
 0xf4d   : > { %v8838_v26 = vadd.f32 %v8837_v45, %v15517_v51  ;;  %v8839_v15 = vpop.f32.mrb[227].mxu1  ;;  %9312 = vmatmul.mubr.bf16.gmra.mrb[52].mxu0 %v8966_v42  ;;  %v8926_v54 = vmax.f32 %v8834_v18, 0.0 }
 0xf4e   : > { %v8840_v47 = vadd.f32 %v8839_v15, %v15525_v4  ;;  %v8927_v35 = vmax.f32 %v8836_v49, 0.0 }
 0xf4f   : > { %v8928_v53 = vmax.f32 %v8838_v26, 0.0 }
 0xf50   : > { %v8929_v29 = vmax.f32 %v8840_v47, 0.0 }
 0xf51   : > { %v8968_v55 = vpack.c.bf16 %v8928_v53, %v8926_v54 }
 0xf52   : > { %v8969_v22 = vpack.c.bf16 %v8929_v29, %v8927_v35  ;;  %v8843_v2 = vpop.f32.mrb[228].mxu1 }
 0xf53   : > { %v8844_v57 = vadd.f32 %v8843_v2, %v15517_v51  ;;  %v8845_v31 = vpop.f32.mrb[229].mxu1  ;;  %v16105_v2 = vld [vmem:[#allocation36_spill] sm:$0xff] }
 0xf54   : > { %v8846_v33 = vadd.f32 %v8845_v31, %v15525_v4  ;;  %v8847_v37 = vpop.f32.mrb[230].mxu1  ;;  %9321 = vmatprep.mubr.bf16.mxu0 %v8969_v22  ;;  %v16106_v31 = vld [vmem:[#allocation37_spill] sm:$0xff] }
 0xf55   : > { %v8848_v12 = vadd.f32 %v8847_v37, %v15517_v51  ;;  %v8849_v21 = vpop.f32.mrb[231].mxu1  ;;  %9322 = vmatmul.mubr.bf16.gmra.mrb[56].mxu0 %v8968_v55  ;;  %v8930_v58 = vmax.f32 %v8844_v57, 0.0  ;;  %v9013_v57 = vsub.s32 7, %v14679_v50  ;;  %v16109_v37 = vld [vmem:[#allocation10_spill] sm:$0xff] }
 0xf56   : > { %v8850_v3 = vadd.f32 %v8849_v21, %v15525_v4  ;;  %v8931_v43 = vmax.f32 %v8846_v33, 0.0  ;;  %v16108_v33 = vld [vmem:[#allocation42_spill] sm:$0xff] }
 0xf57   : > { %v8932_v62 = vmax.f32 %v8848_v12, 0.0  ;;  %v15645_v9 = vrot.slane %v15514_v34, %v9013_v57  ;;  %v15648_v59 = vrot.slane %v15522_v39, %v9013_v57  ;;  %v16111_v39 = vld [vmem:[#allocation12_spill] sm:$0xff] }
 0xf58   : > { %v8933_v6 = vmax.f32 %v8850_v3, 0.0 }
 0xf59   : > { %v8970_v48 = vpack.c.bf16 %v8932_v62, %v8930_v58 }
 0xf5a   : > { %v8971_v25 = vpack.c.bf16 %v8933_v6, %v8931_v43  ;;  %v8853_v19 = vpop.f32.mrb[232].mxu1  ;;  %v16110_v43 = vld [vmem:[#allocation11_spill] sm:$0xff] }
 0xf5b   : > { %v8854_v46 = vadd.f32 %v8853_v19, %v15517_v51  ;;  %v8855_v13 = vpop.f32.mrb[233].mxu1 }
 0xf5c   : > { %v8856_v41 = vadd.f32 %v8855_v13, %v15525_v4  ;;  %v8857_v32 = vpop.f32.mrb[234].mxu1  ;;  %9331 = vmatprep.mubr.bf16.mxu0 %v8971_v25 }
 0xf5d   : > { %v8858_v24 = vadd.f32 %v8857_v32, %v15517_v51  ;;  %v8859_v7 = vpop.f32.mrb[235].mxu1  ;;  %9332 = vmatmul.mubr.bf16.gmra.mrb[60].mxu0 %v8970_v48  ;;  %v8934_v44 = vmax.f32 %v8854_v46, 0.0  ;;  %v16113_v32 = vld [vmem:[#allocation14_spill] sm:$0xff] }
 0xf5e   : > { %v8860_v0 = vadd.f32 %v8859_v7, %v15525_v4  ;;  %v8935_v56 = vmax.f32 %v8856_v41, 0.0  ;;  %v16112_v41 = vld [vmem:[#allocation13_spill] sm:$0xff] }
 0xf5f   : > { %v8936_v28 = vmax.f32 %v8858_v24, 0.0 }
 0xf60   : > { %v8937_v17 = vmax.f32 %v8860_v0, 0.0 }
 0xf61   : > { %v8972_v1 = vpack.c.bf16 %v8936_v28, %v8934_v44 }
 0xf62   : > { %v8973_v36 = vpack.c.bf16 %v8937_v17, %v8935_v56  ;;  %v8863_v30 = vpop.f32.mrb[236].mxu1 }
 0xf63   : > { %v8864_v10 = vadd.f32 %v8863_v30, %v15517_v51  ;;  %v8865_v38 = vpop.f32.mrb[237].mxu1 }
 0xf64   : > { %v8866_v60 = vadd.f32 %v8865_v38, %v15525_v4  ;;  %v8867_v52 = vpop.f32.mrb[238].mxu1  ;;  %9341 = vmatprep.mubr.bf16.mxu0 %v8973_v36  ;;  %v16114_v36 = vld [vmem:[#allocation15_spill] sm:$0xff] }
 0xf65   : > { %v8868_v63 = vadd.f32 %v8867_v52, %v15517_v51  ;;  %v8869_v16 = vpop.f32.mrb[239].mxu1  ;;  %9342 = vmatmul.mubr.bf16.gmra.mrb[64].mxu0 %v8972_v1  ;;  %v8938_v23 = vmax.f32 %v8864_v10, 0.0  ;;  %v16115_v10 = vld [vmem:[#allocation16_spill] sm:$0xff] }
 0xf66   : > { %v8870_v27 = vadd.f32 %v8869_v16, %v15525_v4  ;;  %v8939_v40 = vmax.f32 %v8866_v60, 0.0 }
 0xf67   : > { %v8940_v61 = vmax.f32 %v8868_v63, 0.0 }
 0xf68   : > { %v8941_v11 = vmax.f32 %v8870_v27, 0.0  ;;  %v16116_v27 = vld [vmem:[#allocation17_spill] sm:$0xff] }
 0xf69   : > { %v8974_v42 = vpack.c.bf16 %v8940_v61, %v8938_v23 }
 0xf6a   : > { %v8975_v8 = vpack.c.bf16 %v8941_v11, %v8939_v40  ;;  %v8873_v14 = vpop.f32.mrb[240].mxu1  ;;  %v16117_v40 = vld [vmem:[#allocation18_spill] sm:$0xff] }
 0xf6b   : > { %v8874_v18 = vadd.f32 %v8873_v14, %v15517_v51  ;;  %v8875_v20 = vpop.f32.mrb[241].mxu1 }
 0xf6c   : > { %v8876_v49 = vadd.f32 %v8875_v20, %v15525_v4  ;;  %v8877_v45 = vpop.f32.mrb[242].mxu1  ;;  %9351 = vmatprep.mubr.bf16.mxu0 %v8975_v8 }
 0xf6d   : > { %v8878_v26 = vadd.f32 %v8877_v45, %v15517_v51  ;;  %v8879_v15 = vpop.f32.mrb[243].mxu1  ;;  %9352 = vmatmul.mubr.bf16.gmra.mrb[68].mxu0 %v8974_v42  ;;  %v8942_v54 = vmax.f32 %v8874_v18, 0.0  ;;  %v16103_v51 = vld [vmem:[#allocation31_spill] sm:$0xff] }
 0xf6e   : > { %v8880_v47 = vadd.f32 %v8879_v15, %v15525_v4  ;;  %v8943_v35 = vmax.f32 %v8876_v49, 0.0  ;;  %9802 = vrot.lane.b32.xlu1 %v16103_v51, %s12419_s26  ;;  %v16104_v4 = vld [vmem:[#allocation35_spill] sm:$0xff]  ;;  %v16121_v51 = vld [vmem:[#allocation22_spill] sm:$0xff] }
 0xf6f   : > { %v8944_v53 = vmax.f32 %v8878_v26, 0.0  ;;  %9804 = vrot.lane.b32.xlu0 %v16104_v4, %s12419_s26  ;;  %v16118_v49 = vld [vmem:[#allocation19_spill] sm:$0xff]  ;;  %v16119_v26 = vld [vmem:[#allocation20_spill] sm:$0xff] }
 0xf70   : > { %v8945_v29 = vmax.f32 %v8880_v47, 0.0 }
 0xf71   : > { %v8976_v55 = vpack.c.bf16 %v8944_v53, %v8942_v54 }
 0xf72   : > { %v8977_v22 = vpack.c.bf16 %v8945_v29, %v8943_v35  ;;  %9806 = vrot.lane.b32.xlu1 %v16105_v2, %s12419_s26  ;;  %v16120_v29 = vld [vmem:[#allocation21_spill] sm:$0xff] }
 0xf73   : > { %9808 = vrot.lane.b32.xlu0 %v16106_v31, %s12419_s26 }
 0xf74   : > { %9361 = vmatprep.mubr.bf16.mxu0 %v8977_v22 }
 0xf75   : > { %9362 = vmatmul.mubr.bf16.gmra.mrb[72].mxu0 %v8976_v55 }
 0xf76   : > { %9810 = vrot.lane.b32.xlu1 %v16107_v5, %s12419_s26 }
 0xf77   : > { %9812 = vrot.lane.b32.xlu0 %v16108_v33, %s12419_s26 }
 0xf7a   : > { %9814 = vrot.lane.b32.xlu1 %v16109_v37, %s12419_s26  ;;  %v16122_v37 = vld [vmem:[#allocation23_spill] sm:$0xff] }
 0xf7b   : > { %9816 = vrot.lane.b32.xlu0 %v16110_v43, %s12419_s26  ;;  %v16124_v43 = vld [vmem:[#allocation25_spill] sm:$0xff] }
 0xf7e   : > { %9818 = vrot.lane.b32.xlu1 %v16111_v39, %s12419_s26 }
 0xf7f   : > { %9820 = vrot.lane.b32.xlu0 %v16112_v41, %s12419_s26 }
 0xf82   : > { %9822 = vrot.lane.b32.xlu1 %v16113_v32, %s12419_s26 }
 0xf83   : > { %9824 = vrot.lane.b32.xlu0 %v16114_v36, %s12419_s26  ;;  %v16128_v36 = vld [vmem:[#allocation29_spill] sm:$0xff] }
 0xf86   : > { %9826 = vrot.lane.b32.xlu1 %v16115_v10, %s12419_s26 }
 0xf87   : > { %9828 = vrot.lane.b32.xlu0 %v16116_v27, %s12419_s26 }
 0xf8a   : > { %9830 = vrot.lane.b32.xlu1 %v16117_v40, %s12419_s26 }
 0xf8b   : > { %9832 = vrot.lane.b32.xlu0 %v16118_v49, %s12419_s26 }
 0xf8e   : > { %9834 = vrot.lane.b32.xlu1 %v16119_v26, %s12419_s26 }
 0xf8f   : > { %9836 = vrot.lane.b32.xlu0 %v16120_v29, %s12419_s26 }
 0xf92   : > { %9838 = vrot.lane.b32.xlu1 %v16121_v51, %s12419_s26 }
 0xf93   : > { %9840 = vrot.lane.b32.xlu0 %v16122_v37, %s12419_s26 }
 0xf97   : > { %9844 = vrot.lane.b32.xlu0 %v16124_v43, %s12419_s26 }
 0xfd0   : > { %v9213_v12 = vpop.f32.mrb[12].mxu0 }
 0xfd1   : > { %v9214_v50 = vadd.f32 %v9213_v12, %v15645_v9  ;;  %v9215_v21 = vpop.f32.mrb[13].mxu0 }
 0xfd2   : > { %v9216_v3 = vadd.f32 %v9215_v21, %v15648_v59  ;;  %v9217_v58 = vpop.f32.mrb[14].mxu0 }
 0xfd3   : > { %v9218_v62 = vadd.f32 %v9217_v58, %v15645_v9  ;;  %v9219_v34 = vpop.f32.mrb[15].mxu0  ;;  %v9372_v48 = vmax.f32 %v9214_v50, 0.0  ;;  %v16123_v50 = vld [vmem:[#allocation24_spill] sm:$0xff] }
 0xfd4   : > { %v9220_v6 = vadd.f32 %v9219_v34, %v15648_v59  ;;  %v9373_v19 = vmax.f32 %v9216_v3, 0.0  ;;  %9842 = vrot.lane.b32.xlu1 %v16123_v50, %s12419_s26 }
 0xfd5   : > { %v9374_v25 = vmax.f32 %v9218_v62, 0.0 }
 0xfd6   : > { %v9375_v46 = vmax.f32 %v9220_v6, 0.0 }
 0xfd7   : > { %v9436_v13 = vpack.c.bf16 %v9374_v25, %v9372_v48  ;;  %v16125_v48 = vld [vmem:[#allocation26_spill] sm:$0xff] }
 0xfd8   : > { %v9437_v24 = vpack.c.bf16 %v9375_v46, %v9373_v19  ;;  %v9223_v7 = vpop.f32.mrb[16].mxu0  ;;  %9846 = vrot.lane.b32.xlu1 %v16125_v48, %s12419_s26 }
 0xfd9   : > { %v9224_v0 = vadd.f32 %v9223_v7, %v15645_v9  ;;  %v9225_v44 = vpop.f32.mrb[17].mxu0 }
 0xfda   : > { %v9226_v28 = vadd.f32 %v9225_v44, %v15648_v59  ;;  %v9227_v56 = vpop.f32.mrb[18].mxu0  ;;  %9635 = vmatprep.mubr.bf16.mxu1 %v9437_v24  ;;  %v16126_v24 = vld [vmem:[#allocation27_spill] sm:$0xff] }
 0xfdb   : > { %v9228_v17 = vadd.f32 %v9227_v56, %v15645_v9  ;;  %v9229_v1 = vpop.f32.mrb[19].mxu0  ;;  %9636 = vmatmul.mubr.bf16.vlgmr.msra.gmra.mrb[244].mxu1 %v9436_v13  ;;  %v9376_v38 = vmax.f32 %v9224_v0, 0.0  ;;  %9848 = vrot.lane.b32.xlu0 %v16126_v24, %s12419_s26  ;;  %v16127_v0 = vld [vmem:[#allocation28_spill] sm:$0xff] }
 0xfdc   : > { %v9230_v30 = vadd.f32 %v9229_v1, %v15648_v59  ;;  %v9377_v52 = vmax.f32 %v9226_v28, 0.0  ;;  %9850 = vrot.lane.b32.xlu1 %v16127_v0, %s12419_s26 }
 0xfdd   : > { %v9378_v60 = vmax.f32 %v9228_v17, 0.0 }
 0xfde   : > { %v9379_v63 = vmax.f32 %v9230_v30, 0.0 }
 0xfdf   : > { %v9438_v16 = vpack.c.bf16 %v9378_v60, %v9376_v38  ;;  %9852 = vrot.lane.b32.xlu0 %v16128_v36, %s12419_s26  ;;  %v16129_v38 = vld [vmem:[#allocation30_spill] sm:$0xff] }
 0xfe0   : > { %v9439_v23 = vpack.c.bf16 %v9379_v63, %v9377_v52  ;;  %v9233_v61 = vpop.f32.mrb[20].mxu0  ;;  %9854 = vrot.lane.b32.xlu1 %v16129_v38, %s12419_s26 }
 0xfe1   : > { %v9234_v11 = vadd.f32 %v9233_v61, %v15645_v9  ;;  %v9235_v42 = vpop.f32.mrb[21].mxu0  ;;  %v16130_v61 = vld [vmem:[#allocation32_spill] sm:$0xff] }
 0xfe2   : > { %v9236_v8 = vadd.f32 %v9235_v42, %v15648_v59  ;;  %v9237_v14 = vpop.f32.mrb[22].mxu0  ;;  %9643 = vmatprep.mubr.bf16.mxu1 %v9439_v23 }
 0xfe3   : > { %v9238_v18 = vadd.f32 %v9237_v14, %v15645_v9  ;;  %v9239_v20 = vpop.f32.mrb[23].mxu0  ;;  %9644 = vmatmul.mubr.bf16.gmra.mrb[248].mxu1 %v9438_v16  ;;  %v9380_v15 = vmax.f32 %v9234_v11, 0.0  ;;  %9856 = vrot.lane.b32.xlu0 %v16130_v61, %s12419_s26  ;;  %v16131_v11 = vld [vmem:[#allocation33_spill] sm:$0xff] }
 0xfe4   : > { %v9240_v45 = vadd.f32 %v9239_v20, %v15648_v59  ;;  %v9381_v54 = vmax.f32 %v9236_v8, 0.0  ;;  %9858 = vrot.lane.b32.xlu1 %v16131_v11, %s12419_s26 }
 0xfe5   : > { %v9382_v47 = vmax.f32 %v9238_v18, 0.0 }
 0xfe6   : > { %v9383_v53 = vmax.f32 %v9240_v45, 0.0 }
 0xfe7   : > { %v9440_v35 = vpack.c.bf16 %v9382_v47, %v9380_v15 }
 0xfe8   : > { %v9441_v55 = vpack.c.bf16 %v9383_v53, %v9381_v54  ;;  %v9243_v22 = vpop.f32.mrb[24].mxu0 }
 0xfe9   : > { %v9244_v4 = vadd.f32 %v9243_v22, %v15645_v9  ;;  %v9245_v2 = vpop.f32.mrb[25].mxu0 }
 0xfea   : > { %v9246_v57 = vadd.f32 %v9245_v2, %v15648_v59  ;;  %v9247_v31 = vpop.f32.mrb[26].mxu0  ;;  %9651 = vmatprep.mubr.bf16.mxu1 %v9441_v55 }
 0xfeb   : > { %v9248_v5 = vadd.f32 %v9247_v31, %v15645_v9  ;;  %v9249_v33 = vpop.f32.mrb[27].mxu0  ;;  %9652 = vmatmul.mubr.bf16.gmra.mrb[252].mxu1 %v9440_v35  ;;  %v9384_v21 = vmax.f32 %v9244_v4, 0.0 }
 0xfec   : > { %v9250_v12 = vadd.f32 %v9249_v33, %v15648_v59  ;;  %v9385_v58 = vmax.f32 %v9246_v57, 0.0 }
 0xfed   : > { %v9386_v3 = vmax.f32 %v9248_v5, 0.0 }
 0xfee   : > { %v9387_v62 = vmax.f32 %v9250_v12, 0.0 }
 0xfef   : > { %v9442_v34 = vpack.c.bf16 %v9386_v3, %v9384_v21 }
 0xff0   : > { %v9443_v39 = vpack.c.bf16 %v9387_v62, %v9385_v58  ;;  %v9253_v6 = vpop.f32.mrb[28].mxu0 }
 0xff1   : > { %v9254_v25 = vadd.f32 %v9253_v6, %v15645_v9  ;;  %v9255_v19 = vpop.f32.mrb[29].mxu0 }
 0xff2   : > { %v9256_v46 = vadd.f32 %v9255_v19, %v15648_v59  ;;  %v9257_v13 = vpop.f32.mrb[30].mxu0  ;;  %9659 = vmatprep.mubr.bf16.mxu1 %v9443_v39 }
 0xff3   : > { %v9258_v41 = vadd.f32 %v9257_v13, %v15645_v9  ;;  %v9259_v32 = vpop.f32.mrb[31].mxu0  ;;  %9660 = vmatmul.mubr.bf16.gmra.mrb[0].mxu1 %v9442_v34  ;;  %v9388_v44 = vmax.f32 %v9254_v25, 0.0 }
 0xff4   : > { %v9260_v7 = vadd.f32 %v9259_v32, %v15648_v59  ;;  %v9389_v56 = vmax.f32 %v9256_v46, 0.0 }
 0xff5   : > { %v9390_v28 = vmax.f32 %v9258_v41, 0.0 }
 0xff6   : > { %v9391_v17 = vmax.f32 %v9260_v7, 0.0 }
 0xff7   : > { %v9444_v1 = vpack.c.bf16 %v9390_v28, %v9388_v44 }
 0xff8   : > { %v9445_v30 = vpack.c.bf16 %v9391_v17, %v9389_v56  ;;  %v9263_v10 = vpop.f32.mrb[32].mxu0 }
 0xff9   : > { %v9264_v60 = vadd.f32 %v9263_v10, %v15645_v9  ;;  %v9265_v52 = vpop.f32.mrb[33].mxu0 }
 0xffa   : > { %v9266_v63 = vadd.f32 %v9265_v52, %v15648_v59  ;;  %v9267_v16 = vpop.f32.mrb[34].mxu0  ;;  %9667 = vmatprep.mubr.bf16.mxu1 %v9445_v30 }
 0xffb   : > { %v9268_v27 = vadd.f32 %v9267_v16, %v15645_v9  ;;  %v9269_v23 = vpop.f32.mrb[35].mxu0  ;;  %9668 = vmatmul.mubr.bf16.gmra.mrb[4].mxu1 %v9444_v1  ;;  %v9392_v42 = vmax.f32 %v9264_v60, 0.0 }
 0xffc   : > { %v9270_v40 = vadd.f32 %v9269_v23, %v15648_v59  ;;  %v9393_v14 = vmax.f32 %v9266_v63, 0.0 }
 0xffd   : > { %v9394_v8 = vmax.f32 %v9268_v27, 0.0 }
 0xffe   : > { %v9395_v18 = vmax.f32 %v9270_v40, 0.0 }
 0xfff   : > { %v9446_v20 = vpack.c.bf16 %v9394_v8, %v9392_v42 }
0x1000   : > { %v9447_v49 = vpack.c.bf16 %v9395_v18, %v9393_v14  ;;  %v9273_v45 = vpop.f32.mrb[36].mxu0 }
0x1001   : > { %v9274_v26 = vadd.f32 %v9273_v45, %v15645_v9  ;;  %v9275_v15 = vpop.f32.mrb[37].mxu0 }
0x1002   : > { %v9276_v47 = vadd.f32 %v9275_v15, %v15648_v59  ;;  %v9277_v54 = vpop.f32.mrb[38].mxu0  ;;  %9675 = vmatprep.mubr.bf16.mxu1 %v9447_v49 }
0x1003   : > { %v9278_v53 = vadd.f32 %v9277_v54, %v15645_v9  ;;  %v9279_v35 = vpop.f32.mrb[39].mxu0  ;;  %9676 = vmatmul.mubr.bf16.gmra.mrb[8].mxu1 %v9446_v20  ;;  %v9396_v55 = vmax.f32 %v9274_v26, 0.0 }
0x1004   : > { %v9280_v29 = vadd.f32 %v9279_v35, %v15648_v59  ;;  %v9397_v51 = vmax.f32 %v9276_v47, 0.0 }
0x1005   : > { %v9398_v22 = vmax.f32 %v9278_v53, 0.0 }
0x1006   : > { %v9399_v4 = vmax.f32 %v9280_v29, 0.0 }
0x1007   : > { %v9448_v2 = vpack.c.bf16 %v9398_v22, %v9396_v55 }
0x1008   : > { %v9449_v57 = vpack.c.bf16 %v9399_v4, %v9397_v51  ;;  %v9283_v31 = vpop.f32.mrb[40].mxu0 }
0x1009   : > { %v9284_v5 = vadd.f32 %v9283_v31, %v15645_v9  ;;  %v9285_v33 = vpop.f32.mrb[41].mxu0 }
0x100a   : > { %v9286_v37 = vadd.f32 %v9285_v33, %v15648_v59  ;;  %v9287_v12 = vpop.f32.mrb[42].mxu0  ;;  %9683 = vmatprep.mubr.bf16.mxu1 %v9449_v57 }
0x100b   : > { %v9288_v50 = vadd.f32 %v9287_v12, %v15645_v9  ;;  %v9289_v21 = vpop.f32.mrb[43].mxu0  ;;  %9684 = vmatmul.mubr.bf16.gmra.mrb[12].mxu1 %v9448_v2  ;;  %v9400_v58 = vmax.f32 %v9284_v5, 0.0 }
0x100c   : > { %v9290_v3 = vadd.f32 %v9289_v21, %v15648_v59  ;;  %v9401_v34 = vmax.f32 %v9286_v37, 0.0 }
0x100d   : > { %v9402_v62 = vmax.f32 %v9288_v50, 0.0 }
0x100e   : > { %v9403_v43 = vmax.f32 %v9290_v3, 0.0 }
0x100f   : > { %v9450_v39 = vpack.c.bf16 %v9402_v62, %v9400_v58 }
0x1010   : > { %v9451_v6 = vpack.c.bf16 %v9403_v43, %v9401_v34  ;;  %v9293_v48 = vpop.f32.mrb[44].mxu0 }
0x1011   : > { %v9294_v25 = vadd.f32 %v9293_v48, %v15645_v9  ;;  %v9295_v19 = vpop.f32.mrb[45].mxu0 }
0x1012   : > { %v9296_v46 = vadd.f32 %v9295_v19, %v15648_v59  ;;  %v9297_v13 = vpop.f32.mrb[46].mxu0  ;;  %9691 = vmatprep.mubr.bf16.mxu1 %v9451_v6 }
0x1013   : > { %v9298_v41 = vadd.f32 %v9297_v13, %v15645_v9  ;;  %v9299_v32 = vpop.f32.mrb[47].mxu0  ;;  %9692 = vmatmul.mubr.bf16.gmra.mrb[16].mxu1 %v9450_v39  ;;  %v9404_v7 = vmax.f32 %v9294_v25, 0.0 }
0x1014   : > { %v9300_v24 = vadd.f32 %v9299_v32, %v15648_v59  ;;  %v9405_v44 = vmax.f32 %v9296_v46, 0.0 }
0x1015   : > { %v9406_v0 = vmax.f32 %v9298_v41, 0.0 }
0x1016   : > { %v9407_v28 = vmax.f32 %v9300_v24, 0.0 }
0x1017   : > { %v9452_v56 = vpack.c.bf16 %v9406_v0, %v9404_v7 }
0x1018   : > { %v9453_v17 = vpack.c.bf16 %v9407_v28, %v9405_v44  ;;  %v9303_v1 = vpop.f32.mrb[48].mxu0 }
0x1019   : > { %v9304_v36 = vadd.f32 %v9303_v1, %v15645_v9  ;;  %v9305_v30 = vpop.f32.mrb[49].mxu0 }
0x101a   : > { %v9306_v10 = vadd.f32 %v9305_v30, %v15648_v59  ;;  %v9307_v38 = vpop.f32.mrb[50].mxu0  ;;  %9699 = vmatprep.mubr.bf16.mxu1 %v9453_v17 }
0x101b   : > { %v9308_v60 = vadd.f32 %v9307_v38, %v15645_v9  ;;  %v9309_v52 = vpop.f32.mrb[51].mxu0  ;;  %9700 = vmatmul.mubr.bf16.gmra.mrb[20].mxu1 %v9452_v56  ;;  %v9408_v16 = vmax.f32 %v9304_v36, 0.0 }
0x101c   : > { %v9310_v63 = vadd.f32 %v9309_v52, %v15648_v59  ;;  %v9409_v23 = vmax.f32 %v9306_v10, 0.0 }
0x101d   : > { %v9410_v27 = vmax.f32 %v9308_v60, 0.0 }
0x101e   : > { %v9411_v61 = vmax.f32 %v9310_v63, 0.0 }
0x101f   : > { %v9454_v40 = vpack.c.bf16 %v9410_v27, %v9408_v16 }
0x1020   : > { %v9455_v11 = vpack.c.bf16 %v9411_v61, %v9409_v23  ;;  %v9313_v42 = vpop.f32.mrb[52].mxu0 }
0x1021   : > { %v9314_v8 = vadd.f32 %v9313_v42, %v15645_v9  ;;  %v9315_v14 = vpop.f32.mrb[53].mxu0 }
0x1022   : > { %v9316_v18 = vadd.f32 %v9315_v14, %v15648_v59  ;;  %v9317_v20 = vpop.f32.mrb[54].mxu0  ;;  %9707 = vmatprep.mubr.bf16.mxu1 %v9455_v11 }
0x1023   : > { %v9318_v49 = vadd.f32 %v9317_v20, %v15645_v9  ;;  %v9319_v45 = vpop.f32.mrb[55].mxu0  ;;  %9708 = vmatmul.mubr.bf16.gmra.mrb[24].mxu1 %v9454_v40  ;;  %v9412_v15 = vmax.f32 %v9314_v8, 0.0 }
0x1024   : > { %v9320_v26 = vadd.f32 %v9319_v45, %v15648_v59  ;;  %v9413_v54 = vmax.f32 %v9316_v18, 0.0 }
0x1025   : > { %v9414_v47 = vmax.f32 %v9318_v49, 0.0 }
0x1026   : > { %v9415_v53 = vmax.f32 %v9320_v26, 0.0 }
0x1027   : > { %v9456_v35 = vpack.c.bf16 %v9414_v47, %v9412_v15 }
0x1028   : > { %v9457_v29 = vpack.c.bf16 %v9415_v53, %v9413_v54  ;;  %v9323_v55 = vpop.f32.mrb[56].mxu0 }
0x1029   : > { %v9324_v22 = vadd.f32 %v9323_v55, %v15645_v9  ;;  %v9325_v51 = vpop.f32.mrb[57].mxu0 }
0x102a   : > { %v9326_v4 = vadd.f32 %v9325_v51, %v15648_v59  ;;  %v9327_v2 = vpop.f32.mrb[58].mxu0  ;;  %9715 = vmatprep.mubr.bf16.mxu1 %v9457_v29 }
0x102b   : > { %v9328_v57 = vadd.f32 %v9327_v2, %v15645_v9  ;;  %v9329_v31 = vpop.f32.mrb[59].mxu0  ;;  %9716 = vmatmul.mubr.bf16.gmra.mrb[28].mxu1 %v9456_v35  ;;  %v9416_v33 = vmax.f32 %v9324_v22, 0.0 }
0x102c   : > { %v9330_v5 = vadd.f32 %v9329_v31, %v15648_v59  ;;  %v9417_v12 = vmax.f32 %v9326_v4, 0.0 }
0x102d   : > { %v9418_v37 = vmax.f32 %v9328_v57, 0.0 }
0x102e   : > { %v9419_v50 = vmax.f32 %v9330_v5, 0.0 }
0x102f   : > { %v9458_v21 = vpack.c.bf16 %v9418_v37, %v9416_v33  ;;  %v9797_v33 = vpop.permute.xlu0 %9796 }
0x1030   : > { %v9459_v3 = vpack.c.bf16 %v9419_v50, %v9417_v12  ;;  %v9333_v58 = vpop.f32.mrb[60].mxu0 }
0x1031   : > { %v9334_v62 = vadd.f32 %v9333_v58, %v15645_v9  ;;  %v9335_v34 = vpop.f32.mrb[61].mxu0 }
0x1032   : > { %v9336_v43 = vadd.f32 %v9335_v34, %v15648_v59  ;;  %v9337_v39 = vpop.f32.mrb[62].mxu0  ;;  %9723 = vmatprep.mubr.bf16.mxu1 %v9459_v3 }
0x1033   : > { %v9338_v6 = vadd.f32 %v9337_v39, %v15645_v9  ;;  %v9339_v48 = vpop.f32.mrb[63].mxu0  ;;  %9724 = vmatmul.mubr.bf16.gmra.mrb[32].mxu1 %v9458_v21  ;;  %v9420_v19 = vmax.f32 %v9334_v62, 0.0  ;;  %v9799_v62 = vpop.permute.xlu0 %9798 }
0x1034   : > { %v9340_v25 = vadd.f32 %v9339_v48, %v15648_v59  ;;  %v9421_v13 = vmax.f32 %v9336_v43, 0.0  ;;  %v9801_v39 = vpop.permute.xlu1 %9800 }
0x1035   : > { %v9422_v46 = vmax.f32 %v9338_v6, 0.0 }
0x1036   : > { %v9423_v41 = vmax.f32 %v9340_v25, 0.0 }
0x1037   : > { %v9460_v32 = vpack.c.bf16 %v9422_v46, %v9420_v19 }
0x1038   : > { %v9461_v24 = vpack.c.bf16 %v9423_v41, %v9421_v13  ;;  %v9343_v7 = vpop.f32.mrb[64].mxu0 }
0x1039   : > { %v9344_v0 = vadd.f32 %v9343_v7, %v15645_v9  ;;  %v9345_v44 = vpop.f32.mrb[65].mxu0 }
0x103a   : > { %v9346_v28 = vadd.f32 %v9345_v44, %v15648_v59  ;;  %v9347_v56 = vpop.f32.mrb[66].mxu0  ;;  %9731 = vmatprep.mubr.bf16.mxu1 %v9461_v24  ;;  %v9803_v24 = vpop.permute.xlu1 %9802 }
0x103b   : > { %v9348_v17 = vadd.f32 %v9347_v56, %v15645_v9  ;;  %v9349_v1 = vpop.f32.mrb[67].mxu0  ;;  %9732 = vmatmul.mubr.bf16.gmra.mrb[36].mxu1 %v9460_v32  ;;  %v9424_v30 = vmax.f32 %v9344_v0, 0.0 }
0x103c   : > { %v9350_v36 = vadd.f32 %v9349_v1, %v15648_v59  ;;  %v9425_v38 = vmax.f32 %v9346_v28, 0.0 }
0x103d   : > { %v9426_v10 = vmax.f32 %v9348_v17, 0.0 }
0x103e   : > { %v9427_v60 = vmax.f32 %v9350_v36, 0.0 }
0x103f   : > { %v9462_v52 = vpack.c.bf16 %v9426_v10, %v9424_v30  ;;  %v9805_v30 = vpop.permute.xlu0 %9804 }
0x1040   : > { %v9463_v63 = vpack.c.bf16 %v9427_v60, %v9425_v38  ;;  %v9353_v16 = vpop.f32.mrb[68].mxu0  ;;  %v9807_v60 = vpop.permute.xlu1 %9806 }
0x1041   : > { %v9354_v27 = vadd.f32 %v9353_v16, %v15645_v9  ;;  %v9355_v23 = vpop.f32.mrb[69].mxu0 }
0x1042   : > { %v9356_v61 = vadd.f32 %v9355_v23, %v15648_v59  ;;  %v9357_v40 = vpop.f32.mrb[70].mxu0  ;;  %9739 = vmatprep.mubr.bf16.mxu1 %v9463_v63 }
0x1043   : > { %v9358_v11 = vadd.f32 %v9357_v40, %v15645_v9  ;;  %v9359_v42 = vpop.f32.mrb[71].mxu0  ;;  %9740 = vmatmul.mubr.bf16.gmra.mrb[40].mxu1 %v9462_v52  ;;  %v9428_v14 = vmax.f32 %v9354_v27, 0.0 }
0x1044   : > { %v9360_v8 = vadd.f32 %v9359_v42, %v15648_v59  ;;  %v9429_v20 = vmax.f32 %v9356_v61, 0.0  ;;  %v9809_v42 = vpop.permute.xlu0 %9808 }
0x1045   : > { %v9430_v18 = vmax.f32 %v9358_v11, 0.0 }
0x1046   : > { %v9431_v49 = vmax.f32 %v9360_v8, 0.0 }
0x1047   : > { %v9464_v45 = vpack.c.bf16 %v9430_v18, %v9428_v14  ;;  %v9811_v18 = vpop.permute.xlu1 %9810 }
0x1048   : > { %v9465_v26 = vpack.c.bf16 %v9431_v49, %v9429_v20  ;;  %v9363_v15 = vpop.f32.mrb[72].mxu0 }
0x1049   : > { %v9364_v47 = vadd.f32 %v9363_v15, %v15645_v9  ;;  %v9365_v54 = vpop.f32.mrb[73].mxu0 }
0x104a   : > { %v9366_v53 = vadd.f32 %v9365_v54, %v15648_v59  ;;  %v9367_v35 = vpop.f32.mrb[74].mxu0  ;;  %9747 = vmatprep.mubr.bf16.mxu1 %v9465_v26 }
0x104b   : > { %v9368_v29 = vadd.f32 %v9367_v35, %v15645_v9  ;;  %v9369_v55 = vpop.f32.mrb[75].mxu0  ;;  %9748 = vmatmul.mubr.bf16.gmra.mrb[44].mxu1 %v9464_v45  ;;  %v9432_v51 = vmax.f32 %v9364_v47, 0.0  ;;  %v15765_v9 = vld [vmem:[%s15911_s13] ss:$0 sm:$0xff]  ;;  %v9813_v35 = vpop.permute.xlu0 %9812 }
0x104c   : > { %v9370_v22 = vadd.f32 %v9369_v55, %v15648_v59  ;;  %v9433_v2 = vmax.f32 %v9366_v53, 0.0 }
0x104d   : > { %v9434_v4 = vmax.f32 %v9368_v29, 0.0 }
0x104e   : > { %v9435_v57 = vmax.f32 %v9370_v22, 0.0  ;;  %v9815_v22 = vpop.permute.xlu1 %9814 }
0x104f   : > { %v9466_v31 = vpack.c.bf16 %v9434_v4, %v9432_v51 }
0x1050   : > { %v9467_v5 = vpack.c.bf16 %v9435_v57, %v9433_v2 }
0x1052   : > { %9755 = vmatprep.mubr.bf16.mxu1 %v9467_v5 }
0x1053   : > { %9756 = vmatmul.mubr.bf16.gmra.mrb[48].mxu1 %v9466_v31 }
0x10ae   : > { %v10789_v37 = vpop.f32.mrb[244].mxu1 }
0x10af   : > { %v10790_v12 = vpop.f32.mrb[245].mxu1 }
0x10b0   : > { %v10791_v50 = vadd.f32 %v10790_v12, %v10789_v37  ;;  %v10792_v59 = vpop.f32.mrb[246].mxu1  ;;  %v9817_v12 = vpop.permute.xlu0 %9816 }
0x10b1   : > { %v10793_v21 = vpop.f32.mrb[247].mxu1 }
0x10b2   : > { %v9638_v3 = vadd.f32 %v10791_v50, %v15765_v9  ;;  %v10794_v58 = vadd.f32 %v10793_v21, %v10792_v59  ;;  %v9819_v21 = vpop.permute.xlu1 %9818 }
0x10b4   : > { %v9892_v34 = vsel %vm5266_vm3, %v9638_v3, %v9797_v33  ;;  %v9641_v43 = vadd.f32 %v10794_v58, %v15765_v9 }
0x10b5   : > { %9925 = vst.msk [vmem:[%s12599_s27] sm:$0xff] %vm9924_vm4, %v9892_v34 }
0x10b6   : > { %v9893_v6 = vsel %vm5266_vm3, %v9641_v43, %v9799_v62  ;;  %v10795_v48 = vpop.f32.mrb[248].mxu1 }
0x10b7   : > { %9926 = vst.msk [vmem:[%s12599_s27 + $0x8] sm:$0xff] %vm9924_vm4, %v9893_v6  ;;  %v10796_v25 = vpop.f32.mrb[249].mxu1 }
0x10b8   : > { %v10797_v19 = vadd.f32 %v10796_v25, %v10795_v48  ;;  %v10798_v46 = vpop.f32.mrb[250].mxu1  ;;  %v9821_v25 = vpop.permute.xlu0 %9820 }
0x10b9   : > { %v10799_v13 = vpop.f32.mrb[251].mxu1 }
0x10ba   : > { %v9646_v41 = vadd.f32 %v10797_v19, %v15765_v9  ;;  %v10800_v32 = vadd.f32 %v10799_v13, %v10798_v46  ;;  %v9823_v13 = vpop.permute.xlu1 %9822 }
0x10bc   : > { %v9894_v7 = vsel %vm5266_vm3, %v9646_v41, %v9801_v39  ;;  %v9649_v0 = vadd.f32 %v10800_v32, %v15765_v9 }
0x10bd   : > { %9927 = vst.msk [vmem:[%s12599_s27 + $0x10] sm:$0xff] %vm9924_vm4, %v9894_v7 }
0x10be   : > { %v9895_v44 = vsel %vm5266_vm3, %v9649_v0, %v9803_v24  ;;  %v10801_v28 = vpop.f32.mrb[252].mxu1 }
0x10bf   : > { %9928 = vst.msk [vmem:[%s12599_s27 + $0x18] sm:$0xff] %vm9924_vm4, %v9895_v44  ;;  %v10802_v56 = vpop.f32.mrb[253].mxu1 }
0x10c0   : > { %v10803_v17 = vadd.f32 %v10802_v56, %v10801_v28  ;;  %v10804_v1 = vpop.f32.mrb[254].mxu1 }
0x10c1   : > { %v10805_v36 = vpop.f32.mrb[255].mxu1 }
0x10c2   : > { %v9654_v10 = vadd.f32 %v10803_v17, %v15765_v9  ;;  %v10806_v38 = vadd.f32 %v10805_v36, %v10804_v1  ;;  %v9825_v17 = vpop.permute.xlu0 %9824 }
0x10c4   : > { %v9657_v52 = vadd.f32 %v10806_v38, %v15765_v9  ;;  %v9896_v63 = vsel %vm5266_vm3, %v9654_v10, %v9805_v30  ;;  %v9827_v30 = vpop.permute.xlu1 %9826 }
0x10c5   : > { %9929 = vst.msk [vmem:[%s12599_s27 + $0x20] sm:$0xff] %vm9924_vm4, %v9896_v63 }
0x10c6   : > { %v9897_v16 = vsel %vm5266_vm3, %v9657_v52, %v9807_v60  ;;  %v10807_v27 = vpop.f32.mrb[0].mxu1 }
0x10c7   : > { %9930 = vst.msk [vmem:[%s12599_s27 + $0x28] sm:$0xff] %vm9924_vm4, %v9897_v16  ;;  %v10808_v23 = vpop.f32.mrb[1].mxu1 }
0x10c8   : > { %v10809_v61 = vadd.f32 %v10808_v23, %v10807_v27  ;;  %v10810_v40 = vpop.f32.mrb[2].mxu1 }
0x10c9   : > { %v10811_v11 = vpop.f32.mrb[3].mxu1 }
0x10ca   : > { %v9662_v8 = vadd.f32 %v10809_v61, %v15765_v9  ;;  %v10812_v14 = vadd.f32 %v10811_v11, %v10810_v40  ;;  %v9829_v61 = vpop.permute.xlu0 %9828 }
0x10cc   : > { %v9665_v20 = vadd.f32 %v10812_v14, %v15765_v9  ;;  %v9898_v49 = vsel %vm5266_vm3, %v9662_v8, %v9809_v42  ;;  %v9831_v42 = vpop.permute.xlu1 %9830 }
0x10cd   : > { %9931 = vst.msk [vmem:[%s12599_s27 + $0x30] sm:$0xff] %vm9924_vm4, %v9898_v49 }
0x10ce   : > { %v9899_v45 = vsel %vm5266_vm3, %v9665_v20, %v9811_v18  ;;  %v10813_v26 = vpop.f32.mrb[4].mxu1 }
0x10cf   : > { %9932 = vst.msk [vmem:[%s12599_s27 + $0x38] sm:$0xff] %vm9924_vm4, %v9899_v45  ;;  %v10814_v15 = vpop.f32.mrb[5].mxu1 }
0x10d0   : > { %v10815_v47 = vadd.f32 %v10814_v15, %v10813_v26  ;;  %v10816_v54 = vpop.f32.mrb[6].mxu1 }
0x10d1   : > { %v10817_v53 = vpop.f32.mrb[7].mxu1 }
0x10d2   : > { %v9670_v29 = vadd.f32 %v10815_v47, %v15765_v9  ;;  %v10818_v55 = vadd.f32 %v10817_v53, %v10816_v54  ;;  %v9833_v47 = vpop.permute.xlu0 %9832 }
0x10d4   : > { %v9673_v51 = vadd.f32 %v10818_v55, %v15765_v9  ;;  %v9900_v4 = vsel %vm5266_vm3, %v9670_v29, %v9813_v35  ;;  %v9835_v35 = vpop.permute.xlu1 %9834 }
0x10d5   : > { %9933 = vst.msk [vmem:[%s12599_s27 + $0x40] sm:$0xff] %vm9924_vm4, %v9900_v4 }
0x10d6   : > { %v9901_v2 = vsel %vm5266_vm3, %v9673_v51, %v9815_v22  ;;  %v10819_v57 = vpop.f32.mrb[8].mxu1 }
0x10d7   : > { %9934 = vst.msk [vmem:[%s12599_s27 + $0x48] sm:$0xff] %vm9924_vm4, %v9901_v2  ;;  %v10820_v31 = vpop.f32.mrb[9].mxu1 }
0x10d8   : > { %v10821_v5 = vadd.f32 %v10820_v31, %v10819_v57  ;;  %v10822_v33 = vpop.f32.mrb[10].mxu1 }
0x10d9   : > { %v10823_v37 = vpop.f32.mrb[11].mxu1 }
0x10da   : > { %v9678_v50 = vadd.f32 %v10821_v5, %v15765_v9  ;;  %v10824_v59 = vadd.f32 %v10823_v37, %v10822_v33  ;;  %v9837_v5 = vpop.permute.xlu0 %9836 }
0x10dc   : > { %v9681_v3 = vadd.f32 %v10824_v59, %v15765_v9  ;;  %v9902_v58 = vsel %vm5266_vm3, %v9678_v50, %v9817_v12  ;;  %v9839_v12 = vpop.permute.xlu1 %9838 }
0x10dd   : > { %9935 = vst.msk [vmem:[%s12599_s27 + $0x50] sm:$0xff] %vm9924_vm4, %v9902_v58 }
0x10de   : > { %v9903_v62 = vsel %vm5266_vm3, %v9681_v3, %v9819_v21  ;;  %v10825_v34 = vpop.f32.mrb[12].mxu1 }
0x10df   : > { %9936 = vst.msk [vmem:[%s12599_s27 + $0x58] sm:$0xff] %vm9924_vm4, %v9903_v62  ;;  %v10826_v43 = vpop.f32.mrb[13].mxu1 }
0x10e0   : > { %v10827_v39 = vadd.f32 %v10826_v43, %v10825_v34  ;;  %v10828_v6 = vpop.f32.mrb[14].mxu1 }
0x10e1   : > { %v10829_v48 = vpop.f32.mrb[15].mxu1 }
0x10e2   : > { %v9686_v19 = vadd.f32 %v10827_v39, %v15765_v9  ;;  %v10830_v46 = vadd.f32 %v10829_v48, %v10828_v6  ;;  %v9841_v39 = vpop.permute.xlu0 %9840 }
0x10e4   : > { %v9689_v41 = vadd.f32 %v10830_v46, %v15765_v9  ;;  %v9904_v32 = vsel %vm5266_vm3, %v9686_v19, %v9821_v25  ;;  %v9843_v25 = vpop.permute.xlu1 %9842 }
0x10e5   : > { %9937 = vst.msk [vmem:[%s12599_s27 + $0x60] sm:$0xff] %vm9924_vm4, %v9904_v32 }
0x10e6   : > { %v9905_v24 = vsel %vm5266_vm3, %v9689_v41, %v9823_v13  ;;  %v10831_v7 = vpop.f32.mrb[16].mxu1 }
0x10e7   : > { %9938 = vst.msk [vmem:[%s12599_s27 + $0x68] sm:$0xff] %vm9924_vm4, %v9905_v24  ;;  %v10832_v0 = vpop.f32.mrb[17].mxu1 }
0x10e8   : > { %v10833_v44 = vadd.f32 %v10832_v0, %v10831_v7  ;;  %v10834_v28 = vpop.f32.mrb[18].mxu1 }
0x10e9   : > { %v10835_v56 = vpop.f32.mrb[19].mxu1 }
0x10ea   : > { %v9694_v1 = vadd.f32 %v10833_v44, %v15765_v9  ;;  %v10836_v36 = vadd.f32 %v10835_v56, %v10834_v28  ;;  %v9845_v44 = vpop.permute.xlu0 %9844 }
0x10ec   : > { %v9697_v10 = vadd.f32 %v10836_v36, %v15765_v9  ;;  %v9906_v38 = vsel %vm5266_vm3, %v9694_v1, %v9825_v17  ;;  %v9847_v17 = vpop.permute.xlu1 %9846 }
0x10ed   : > { %9939 = vst.msk [vmem:[%s12599_s27 + $0x70] sm:$0xff] %vm9924_vm4, %v9906_v38 }
0x10ee   : > { %v9907_v60 = vsel %vm5266_vm3, %v9697_v10, %v9827_v30  ;;  %v10837_v52 = vpop.f32.mrb[20].mxu1 }
0x10ef   : > { %9940 = vst.msk [vmem:[%s12599_s27 + $0x78] sm:$0xff] %vm9924_vm4, %v9907_v60  ;;  %v10838_v63 = vpop.f32.mrb[21].mxu1 }
0x10f0   : > { %v10839_v16 = vadd.f32 %v10838_v63, %v10837_v52  ;;  %v10840_v27 = vpop.f32.mrb[22].mxu1 }
0x10f1   : > { %v10841_v23 = vpop.f32.mrb[23].mxu1 }
0x10f2   : > { %v9702_v40 = vadd.f32 %v10839_v16, %v15765_v9  ;;  %v10842_v11 = vadd.f32 %v10841_v23, %v10840_v27  ;;  %v9849_v16 = vpop.permute.xlu0 %9848 }
0x10f4   : > { %v9705_v8 = vadd.f32 %v10842_v11, %v15765_v9  ;;  %v9908_v14 = vsel %vm5266_vm3, %v9702_v40, %v9829_v61  ;;  %v9851_v61 = vpop.permute.xlu1 %9850 }
0x10f5   : > { %9941 = vst.msk [vmem:[%s12599_s27 + $0x80] sm:$0xff] %vm9924_vm4, %v9908_v14 }
0x10f6   : > { %v9909_v18 = vsel %vm5266_vm3, %v9705_v8, %v9831_v42  ;;  %v10843_v20 = vpop.f32.mrb[24].mxu1 }
0x10f7   : > { %9942 = vst.msk [vmem:[%s12599_s27 + $0x88] sm:$0xff] %vm9924_vm4, %v9909_v18  ;;  %v10844_v49 = vpop.f32.mrb[25].mxu1 }
0x10f8   : > { %v10845_v45 = vadd.f32 %v10844_v49, %v10843_v20  ;;  %v10846_v26 = vpop.f32.mrb[26].mxu1 }
0x10f9   : > { %v10847_v15 = vpop.f32.mrb[27].mxu1 }
0x10fa   : > { %v9710_v54 = vadd.f32 %v10845_v45, %v15765_v9  ;;  %v10848_v53 = vadd.f32 %v10847_v15, %v10846_v26  ;;  %v9853_v45 = vpop.permute.xlu0 %9852 }
0x10fc   : > { %v9713_v29 = vadd.f32 %v10848_v53, %v15765_v9  ;;  %v9910_v55 = vsel %vm5266_vm3, %v9710_v54, %v9833_v47  ;;  %v9855_v47 = vpop.permute.xlu1 %9854 }
0x10fd   : > { %9943 = vst.msk [vmem:[%s12599_s27 + $0x90] sm:$0xff] %vm9924_vm4, %v9910_v55 }
0x10fe   : > { %v9911_v22 = vsel %vm5266_vm3, %v9713_v29, %v9835_v35  ;;  %v10849_v51 = vpop.f32.mrb[28].mxu1 }
0x10ff   : > { %9944 = vst.msk [vmem:[%s12599_s27 + $0x98] sm:$0xff] %vm9924_vm4, %v9911_v22  ;;  %v10850_v4 = vpop.f32.mrb[29].mxu1 }
0x1100   : > { %v10851_v2 = vadd.f32 %v10850_v4, %v10849_v51  ;;  %v10852_v57 = vpop.f32.mrb[30].mxu1 }
0x1101   : > { %v10853_v31 = vpop.f32.mrb[31].mxu1 }
0x1102   : > { %v9718_v33 = vadd.f32 %v10851_v2, %v15765_v9  ;;  %v10854_v37 = vadd.f32 %v10853_v31, %v10852_v57  ;;  %v9857_v2 = vpop.permute.xlu0 %9856 }
0x1104   : > { %v9721_v50 = vadd.f32 %v10854_v37, %v15765_v9  ;;  %v9912_v59 = vsel %vm5266_vm3, %v9718_v33, %v9837_v5  ;;  %v9859_v5 = vpop.permute.xlu1 %9858 }
0x1105   : > { %9945 = vst.msk [vmem:[%s12599_s27 + $0xa0] sm:$0xff] %vm9924_vm4, %v9912_v59 }
0x1106   : > { %v9913_v21 = vsel %vm5266_vm3, %v9721_v50, %v9839_v12  ;;  %v10855_v3 = vpop.f32.mrb[32].mxu1 }
0x1107   : > { %9946 = vst.msk [vmem:[%s12599_s27 + $0xa8] sm:$0xff] %vm9924_vm4, %v9913_v21  ;;  %v10856_v58 = vpop.f32.mrb[33].mxu1 }
0x1108   : > { %v10857_v62 = vadd.f32 %v10856_v58, %v10855_v3  ;;  %v10858_v34 = vpop.f32.mrb[34].mxu1 }
0x1109   : > { %v10859_v43 = vpop.f32.mrb[35].mxu1 }
0x110a   : > { %v9726_v6 = vadd.f32 %v10857_v62, %v15765_v9  ;;  %v10860_v48 = vadd.f32 %v10859_v43, %v10858_v34 }
0x110c   : > { %v9729_v19 = vadd.f32 %v10860_v48, %v15765_v9  ;;  %v9914_v46 = vsel %vm5266_vm3, %v9726_v6, %v9841_v39 }
0x110d   : > { %9947 = vst.msk [vmem:[%s12599_s27 + $0xb0] sm:$0xff] %vm9924_vm4, %v9914_v46 }
0x110e   : > { %v9915_v13 = vsel %vm5266_vm3, %v9729_v19, %v9843_v25  ;;  %v10861_v41 = vpop.f32.mrb[36].mxu1 }
0x110f   : > { %9948 = vst.msk [vmem:[%s12599_s27 + $0xb8] sm:$0xff] %vm9924_vm4, %v9915_v13  ;;  %v10862_v32 = vpop.f32.mrb[37].mxu1 }
0x1110   : > { %v10863_v24 = vadd.f32 %v10862_v32, %v10861_v41  ;;  %v10864_v7 = vpop.f32.mrb[38].mxu1 }
0x1111   : > { %v10865_v0 = vpop.f32.mrb[39].mxu1 }
0x1112   : > { %v9734_v28 = vadd.f32 %v10863_v24, %v15765_v9  ;;  %v10866_v56 = vadd.f32 %v10865_v0, %v10864_v7 }
0x1114   : > { %v9737_v1 = vadd.f32 %v10866_v56, %v15765_v9  ;;  %v9916_v36 = vsel %vm5266_vm3, %v9734_v28, %v9845_v44 }
0x1115   : > { %9949 = vst.msk [vmem:[%s12599_s27 + $0xc0] sm:$0xff] %vm9924_vm4, %v9916_v36 }
0x1116   : > { %v9917_v30 = vsel %vm5266_vm3, %v9737_v1, %v9847_v17  ;;  %v10867_v10 = vpop.f32.mrb[40].mxu1 }
0x1117   : > { %9950 = vst.msk [vmem:[%s12599_s27 + $0xc8] sm:$0xff] %vm9924_vm4, %v9917_v30  ;;  %v10868_v38 = vpop.f32.mrb[41].mxu1 }
0x1118   : > { %v10869_v60 = vadd.f32 %v10868_v38, %v10867_v10  ;;  %v10870_v52 = vpop.f32.mrb[42].mxu1 }
0x1119   : > { %v10871_v63 = vpop.f32.mrb[43].mxu1 }
0x111a   : > { %v9742_v27 = vadd.f32 %v10869_v60, %v15765_v9  ;;  %v10872_v23 = vadd.f32 %v10871_v63, %v10870_v52 }
0x111c   : > { %v9745_v40 = vadd.f32 %v10872_v23, %v15765_v9  ;;  %v9918_v11 = vsel %vm5266_vm3, %v9742_v27, %v9849_v16 }
0x111d   : > { %9951 = vst.msk [vmem:[%s12599_s27 + $0xd0] sm:$0xff] %vm9924_vm4, %v9918_v11 }
0x111e   : > { %v9919_v42 = vsel %vm5266_vm3, %v9745_v40, %v9851_v61  ;;  %v10873_v8 = vpop.f32.mrb[44].mxu1 }
0x111f   : > { %9952 = vst.msk [vmem:[%s12599_s27 + $0xd8] sm:$0xff] %vm9924_vm4, %v9919_v42  ;;  %v10874_v14 = vpop.f32.mrb[45].mxu1 }
0x1120   : > { %v10875_v18 = vadd.f32 %v10874_v14, %v10873_v8  ;;  %v10876_v20 = vpop.f32.mrb[46].mxu1 }
0x1121   : > { %v10877_v49 = vpop.f32.mrb[47].mxu1 }
0x1122   : > { %v9750_v26 = vadd.f32 %v10875_v18, %v15765_v9  ;;  %v10878_v15 = vadd.f32 %v10877_v49, %v10876_v20 }
0x1124   : > { %v9753_v54 = vadd.f32 %v10878_v15, %v15765_v9  ;;  %v9920_v53 = vsel %vm5266_vm3, %v9750_v26, %v9853_v45 }
0x1125   : > { %9953 = vst.msk [vmem:[%s12599_s27 + $0xe0] sm:$0xff] %vm9924_vm4, %v9920_v53 }
0x1126   : > { %v9921_v35 = vsel %vm5266_vm3, %v9753_v54, %v9855_v47  ;;  %v10879_v29 = vpop.f32.mrb[48].mxu1 }
0x1127   : > { %9954 = vst.msk [vmem:[%s12599_s27 + $0xe8] sm:$0xff] %vm9924_vm4, %v9921_v35  ;;  %v10880_v55 = vpop.f32.mrb[49].mxu1 }
0x1128   : > { %v10881_v22 = vadd.f32 %v10880_v55, %v10879_v29  ;;  %v10882_v51 = vpop.f32.mrb[50].mxu1 }
0x1129   : > { %v10883_v4 = vpop.f32.mrb[51].mxu1 }
0x112a   : > { %v9758_v57 = vadd.f32 %v10881_v22, %v15765_v9  ;;  %v10884_v31 = vadd.f32 %v10883_v4, %v10882_v51 }
0x112c   : > { %v9761_v33 = vadd.f32 %v10884_v31, %v15765_v9  ;;  %v9922_v37 = vsel %vm5266_vm3, %v9758_v57, %v9857_v2 }
0x112d   : > { %9955 = vst.msk [vmem:[%s12599_s27 + $0xf0] sm:$0xff] %vm9924_vm4, %v9922_v37 }
0x112e   : > { %v9923_v12 = vsel %vm5266_vm3, %v9761_v33, %v9859_v5 }
0x112f   : > { %9956 = vst.msk [vmem:[%s12599_s27 + $0xf8] sm:$0xff] %vm9924_vm4, %v9923_v12 }
0x1130 PF: > { %s27_s15 = sadd.s32 1, %s12283_s15  }
0x1131   : > { %p24_p3 = scmp.ge.s32.totalorder %s27_s15, 4  }
0x1133   :  { %26 = sbr.rel (!%p24_p3) target bundleno = 4 (0x4), region = 131 }
0x113a   :  { %9979 = vsyncpa [#allocation5], 1 }
0x113b   :  { %9981 = vsyncpa [#allocation5 + $0x1], 1 }
0x113c   :  { %9982 = vsyncpa [#allocation7], 1 }

</bundles_post_ra>
